<compile_context>
chip_gen: v7x
topology: tpu7x:2x2x1
jax: 0.10.0
libtpu: 0.0.40
codegen_flags: <defaults>
</compile_context>

<pallas_src>
import functools
import math

import jax
import jax.numpy as jnp
from jax.experimental import pallas as pl
from jax.experimental.pallas import tpu as pltpu


def _round_up(x, m):
    return (x + m - 1) // m * m


# ---------------------------------------------------------------------------
# Pallas kernel 1: fused (matmul + bias + optional ReLU + optional LRN(2))
# with f32 accumulator.  Used for every conv (via im2col) and Linear layer.
# Grid = (M tiles, N tiles, K tiles); K is the reduction axis (innermost).
# ---------------------------------------------------------------------------
def _matmul_bias_kernel(x_ref, w_ref, b_ref, o_ref, acc_ref, *, relu, lrn):
    k = pl.program_id(2)

    @pl.when(k == 0)
    def _():
        acc_ref[...] = jnp.zeros_like(acc_ref)

    acc_ref[...] += jnp.dot(x_ref[...], w_ref[...],
                            preferred_element_type=jnp.float32)

    @pl.when(k == pl.num_programs(2) - 1)
    def _():
        z = acc_ref[...] + b_ref[...]
        if relu:
            z = jnp.maximum(z, 0.0)
        if lrn:
            # PyTorch LocalResponseNorm(size=2, alpha=1e-4, beta=0.75, k=1):
            #   out[c] = z[c] / (1 + 1e-4 * (z[c-1]^2 + z[c]^2)/2)^0.75, z[-1]=0
            # Channels live on lanes; whole channel axis is inside this tile.
            sq = z * z
            prev = pltpu.roll(sq, shift=1, axis=1)          # prev[c] = sq[c-1]
            lane = jax.lax.broadcasted_iota(jnp.int32, z.shape, 1)
            prev = jnp.where(lane == 0, 0.0, prev)          # zero-pad channel -1
            d = 1.0 + 1e-4 * 0.5 * (sq + prev)
            inv = jax.lax.rsqrt(d)                          # d^-0.5  (EUP)
            z = z * inv * jnp.sqrt(inv)                     # z * d^-0.75
        o_ref[...] = z.astype(o_ref.dtype)


def matmul_bias(x, w, b, *, relu, lrn=False):
    """y = x @ w + b (optionally ReLU, optionally fused LRN(2) over N=lanes)."""
    M, K = x.shape
    K2, N = w.shape
    assert K == K2
    tm = min(256, _round_up(M, 16))
    tk = min(512, _round_up(K, 128))
    tn = min(256, _round_up(N, 128))
    Mp = _round_up(M, tm)
    Kp = _round_up(K, tk)
    Np = _round_up(N, tn)
    if lrn:
        # Fused LRN needs the whole channel axis in a single lane tile.
        assert Np == tn, (Np, tn)

    # bf16 operands (MXU-native on v6e/v7x, also accepted by v5e MXU),
    # f32 accumulation inside the kernel.
    xp = jnp.pad(x.astype(jnp.float32), ((0, Mp - M), (0, Kp - K))).astype(jnp.bfloat16)
    wp = jnp.pad(w.astype(jnp.float32), ((0, Kp - K), (0, Np - N))).astype(jnp.bfloat16)
    bp = jnp.pad(b.astype(jnp.float32), (0, Np - N)).reshape(1, Np)

    out = pl.pallas_call(
        functools.partial(_matmul_bias_kernel, relu=relu, lrn=lrn),
        out_shape=jax.ShapeDtypeStruct((Mp, Np), jnp.float32),
        grid_spec=pltpu.PrefetchScalarGridSpec(
            num_scalar_prefetch=0,
            grid=(Mp // tm, Np // tn, Kp // tk),
            in_specs=[
                pl.BlockSpec((tm, tk), lambda i, j, k: (i, k)),
                pl.BlockSpec((tk, tn), lambda i, j, k: (k, j)),
                pl.BlockSpec((1, tn), lambda i, j, k: (0, j)),
            ],
            out_specs=pl.BlockSpec((tm, tn), lambda i, j, k: (i, j)),
            scratch_shapes=[pltpu.VMEM((tm, tn), jnp.float32)],
        ),
        compiler_params=pltpu.CompilerParams(
            dimension_semantics=("parallel", "parallel", "arbitrary"),
            vmem_limit_bytes=32 * 1024 * 1024),
    )(xp, wp, bp)
    return out[:M, :N]


# ---------------------------------------------------------------------------
# Pallas kernel 2: MaxPool2d(kernel_size=3, stride=2), no padding.
# Wrapper splits the input into the four (row, col) parity sub-grids once;
# the kernel is then a pure 9-way elementwise max over unit-stride slices,
# tiled over the batch (C stays on lanes, W-halves on sublanes).
# ---------------------------------------------------------------------------
def _maxpool3x3s2_kernel(ee_ref, eo_ref, oe_ref, oo_ref, o_ref):
    OH, OW = o_ref.shape[1], o_ref.shape[2]
    ee = ee_ref[0]      # (He, We, C)  even rows, even cols
    eo = eo_ref[0]      # (He, Wo, C)  even rows, odd  cols
    oe = oe_ref[0]      # (Ho, We, C)  odd  rows, even cols
    oo = oo_ref[0]      # (Ho, Wo, C)  odd  rows, odd  cols
    # out[i, j] = max over input rows {2i,2i+1,2i+2} and cols {2j,2j+1,2j+2}
    m = jnp.maximum(ee[0:OH, 0:OW], ee[0:OH, 1:OW + 1])
    m = jnp.maximum(m, ee[1:OH + 1, 0:OW])
    m = jnp.maximum(m, ee[1:OH + 1, 1:OW + 1])
    m = jnp.maximum(m, eo[0:OH, 0:OW])
    m = jnp.maximum(m, eo[1:OH + 1, 0:OW])
    m = jnp.maximum(m, oe[0:OH, 0:OW])
    m = jnp.maximum(m, oe[0:OH, 1:OW + 1])
    m = jnp.maximum(m, oo[0:OH, 0:OW])
    o_ref[0] = m


def maxpool_3x3_s2(x_nhwc):
    N, H, W, C = x_nhwc.shape
    OH = (H - 3) // 2 + 1
    OW = (W - 3) // 2 + 1
    # Single parity split (one XLA pass), keeps C on lanes; no transposes.
    ee = x_nhwc[:, 0::2, 0::2, :]
    eo = x_nhwc[:, 0::2, 1::2, :]
    oe = x_nhwc[:, 1::2, 0::2, :]
    oo = x_nhwc[:, 1::2, 1::2, :]
    He, We = ee.shape[1], ee.shape[2]
    Ho, Wo = oo.shape[1], oo.shape[2]
    out = pl.pallas_call(
        _maxpool3x3s2_kernel,
        out_shape=jax.ShapeDtypeStruct((N, OH, OW, C), jnp.float32),
        grid_spec=pltpu.PrefetchScalarGridSpec(
            num_scalar_prefetch=0,
            grid=(N,),
            in_specs=[
                pl.BlockSpec((1, He, We, C), lambda n: (n, 0, 0, 0)),
                pl.BlockSpec((1, He, Wo, C), lambda n: (n, 0, 0, 0)),
                pl.BlockSpec((1, Ho, We, C), lambda n: (n, 0, 0, 0)),
                pl.BlockSpec((1, Ho, Wo, C), lambda n: (n, 0, 0, 0)),
            ],
            out_specs=pl.BlockSpec((1, OH, OW, C), lambda n: (n, 0, 0, 0)),
        ),
        compiler_params=pltpu.CompilerParams(
            dimension_semantics=("parallel",),
            vmem_limit_bytes=32 * 1024 * 1024),
    )(ee, eo, oe, oo)
    return out


# ---------------------------------------------------------------------------
# Glue: im2col patch extraction, conv wrapper, adaptive average pool.
# ---------------------------------------------------------------------------
def _im2col(x_nhwc, kh, kw, stride, pad):
    # TODO(synk): im2col patches are still materialized in HBM (KH*KW x traffic);
    # an in-kernel shifted-window accumulation would remove this extra bandwidth.
    x = jnp.pad(x_nhwc, ((0, 0), (pad, pad), (pad, pad), (0, 0)))
    N, H, W, C = x.shape
    oh = (H - kh) // stride + 1
    ow = (W - kw) // stride + 1
    cols = []
    for dy in range(kh):
        for dx in range(kw):
            cols.append(x[:, dy:dy + stride * (oh - 1) + 1:stride,
                          dx:dx + stride * (ow - 1) + 1:stride, :])
    patches = jnp.stack(cols, axis=3)                # (N, oh, ow, kh*kw, C)
    return patches.reshape(N * oh * ow, kh * kw * C), (N, oh, ow)


def conv2d(x_nhwc, w, b, *, stride, pad, relu, lrn=False):
    # w: PyTorch layout (OC, IC, KH, KW); b: (OC,)
    OC, IC, KH, KW = w.shape
    patches, (N, OH, OW) = _im2col(x_nhwc, KH, KW, stride, pad)
    wmat = jnp.transpose(w, (2, 3, 1, 0)).reshape(KH * KW * IC, OC)
    y = matmul_bias(patches, wmat, b, relu=relu, lrn=lrn)
    return y.reshape(N, OH, OW, OC)


def adaptive_avg_pool(x_nhwc, out_h, out_w):
    # Exact PyTorch AdaptiveAvgPool2d window semantics (tiny tensor -> XLA glue).
    N, H, W, C = x_nhwc.shape
    rows = []
    for i in range(out_h):
        hs, he = (i * H) // out_h, ((i + 1) * H + out_h - 1) // out_h
        cols = []
        for j in range(out_w):
            ws, we = (j * W) // out_w, ((j + 1) * W + out_w - 1) // out_w
            cols.append(jnp.mean(x_nhwc[:, hs:he, ws:we, :], axis=(1, 2)))
        rows.append(jnp.stack(cols, axis=1))         # (N, out_w, C)
    return jnp.stack(rows, axis=1)                   # (N, out_h, out_w, C)


# ---------------------------------------------------------------------------
# AlexNet forward.
# ---------------------------------------------------------------------------
def alexnet_forward(x_nchw, p):
    x = jnp.transpose(x_nchw, (0, 2, 3, 1))          # NCHW -> NHWC
    # layer1: Conv(11, s4) + ReLU + LRN(2) [fused] + MaxPool(3, s2)
    x = conv2d(x, p["w1"], p["b1"], stride=4, pad=0, relu=True, lrn=True)
    x = maxpool_3x3_s2(x)
    # layer2: Conv(5, s1, p2) + ReLU + LRN(2) [fused] + MaxPool(3, s2)
    x = conv2d(x, p["w2"], p["b2"], stride=1, pad=2, relu=True, lrn=True)
    x = maxpool_3x3_s2(x)
    # layer3/4: Conv(3, s1, p1) + ReLU
    x = conv2d(x, p["w3"], p["b3"], stride=1, pad=1, relu=True)
    x = conv2d(x, p["w4"], p["b4"], stride=1, pad=1, relu=True)
    # layer5: Conv(3, s1, p1) + ReLU + MaxPool(3, s2)
    x = conv2d(x, p["w5"], p["b5"], stride=1, pad=1, relu=True)
    x = maxpool_3x3_s2(x)
    # adaptive avg pool to (6, 6), flatten in torch NCHW order
    x = adaptive_avg_pool(x, 6, 6)
    x = jnp.transpose(x, (0, 3, 1, 2)).reshape(x.shape[0], -1)   # (N, 256*6*6)
    # classifier (weights stored pre-transposed: (in_features, out_features))
    # TODO(synk): Dropout(0.5) implemented as identity (eval mode).
    x = matmul_bias(x, p["fc1_wT"], p["fc1_b"], relu=True)
    x = matmul_bias(x, p["fc2_wT"], p["fc2_b"], relu=True)
    x = matmul_bias(x, p["fc3_wT"], p["fc3_b"], relu=False)
    return x


def init_params(key, in_channels, num_classes):
    ks = jax.random.split(key, 8)

    def conv_w(k, oc, ic, kh, kw):
        fan_in = ic * kh * kw
        return jax.random.normal(k, (oc, ic, kh, kw), jnp.float32) / math.sqrt(fan_in)

    def fc_wT(k, in_f, out_f):
        # Stored as (in_features, out_features) == torch Linear weight transposed,
        # so no per-call transpose of the large FC matrices is needed.
        return jax.random.normal(k, (in_f, out_f), jnp.float32) / math.sqrt(in_f)

    return {
        "w1": conv_w(ks[0], 96, in_channels, 11, 11), "b1": jnp.zeros((96,), jnp.float32),
        "w2": conv_w(ks[1], 256, 96, 5, 5),           "b2": jnp.zeros((256,), jnp.float32),
        "w3": conv_w(ks[2], 384, 256, 3, 3),          "b3": jnp.zeros((384,), jnp.float32),
        "w4": conv_w(ks[3], 384, 384, 3, 3),          "b4": jnp.zeros((384,), jnp.float32),
        "w5": conv_w(ks[4], 256, 384, 3, 3),          "b5": jnp.zeros((256,), jnp.float32),
        "fc1_wT": fc_wT(ks[5], 6 * 6 * 256, 4096),    "fc1_b": jnp.zeros((4096,), jnp.float32),
        "fc2_wT": fc_wT(ks[6], 4096, 4096),           "fc2_b": jnp.zeros((4096,), jnp.float32),
        "fc3_wT": fc_wT(ks[7], 4096, num_classes),    "fc3_b": jnp.zeros((num_classes,), jnp.float32),
    }


if __name__ == "__main__":
    in_channels, num_classes = 3, 10
    batch, spatial = 2, 67   # smallest spatial size that keeps every pool valid
    key = jax.random.PRNGKey(0)
    k_param, k_x = jax.random.split(key)
    params = init_params(k_param, in_channels, num_classes)
    x = jax.random.normal(k_x, (batch, in_channels, spatial, spatial), jnp.float32)

    fwd = jax.jit(alexnet_forward)
    out = fwd(x, params)
    jax.block_until_ready(out)
    assert out.shape == (batch, num_classes), out.shape
    assert bool(jnp.all(jnp.isfinite(out)))
    print("KERNEL_OK")
</pallas_src>

<mosaic_0001>
module attributes {stable_mosaic.version = 11 : i64} {
  func.func @_matmul_bias_kernel(%arg0: i32, %arg1: i32, %arg2: i32, %arg3: memref<256x384xbf16, #tpu.memory_space<vmem>>, %arg4: memref<384x128xbf16, #tpu.memory_space<vmem>>, %arg5: memref<1x128xf32, #tpu.memory_space<vmem>>, %arg6: memref<256x128xf32, #tpu.memory_space<vmem>>, %arg7: memref<256x128xf32, #tpu.memory_space<vmem>>) attributes {dimension_semantics = [#tpu.dimension_semantics<parallel>, #tpu.dimension_semantics<parallel>, #tpu.dimension_semantics<arbitrary>], iteration_bounds = array<i64: 2, 1, 1>, scalar_prefetch = 0 : i64, scratch_operands = 1 : i64, tpu.core_type = #tpu.core_type<tc>, window_params = [{transform_indices = @transform_0, window_bounds = array<i64: 256, 384>}, {transform_indices = @transform_1, window_bounds = array<i64: 384, 128>}, {transform_indices = @transform_2, window_bounds = array<i64: 1, 128>}, {transform_indices = @transform_3, window_bounds = array<i64: 256, 128>}]} {
    %c0_i32 = arith.constant 0 : i32
    %0 = arith.cmpi eq, %arg2, %c0_i32 : i32
    %1 = arith.extui %0 : i1 to i32
    %c0_i32_0 = arith.constant 0 : i32
    %2 = arith.cmpi ne, %1, %c0_i32_0 : i32
    scf.if %2 {
      %cst_10 = arith.constant 0.000000e+00 : f32
      %12 = vector.broadcast %cst_10 : f32 to vector<256x128xf32>
      %c0_11 = arith.constant 0 : index
      %c0_12 = arith.constant 0 : index
      %13 = vector.load %arg7[%c0_11, %c0_12] : memref<256x128xf32, #tpu.memory_space<vmem>>, vector<256x128xf32>
      tpu.vector_store %arg7[%c0_11, %c0_12], %12 {strides = array<i32>} : memref<256x128xf32, #tpu.memory_space<vmem>>, vector<256x128xf32>,
    } else {
    }
    %c0 = arith.constant 0 : index
    %c0_1 = arith.constant 0 : index
    %3 = vector.load %arg7[%c0, %c0_1] : memref<256x128xf32, #tpu.memory_space<vmem>>, vector<256x128xf32>
    %c0_2 = arith.constant 0 : index
    %c0_3 = arith.constant 0 : index
    %4 = vector.load %arg3[%c0_2, %c0_3] : memref<256x384xbf16, #tpu.memory_space<vmem>>, vector<256x384xbf16>
    %c0_4 = arith.constant 0 : index
    %c0_5 = arith.constant 0 : index
    %5 = vector.load %arg4[%c0_4, %c0_5] : memref<384x128xbf16, #tpu.memory_space<vmem>>, vector<384x128xbf16>
    %cst = arith.constant dense<0.000000e+00> : vector<256x128xf32>
    %6 = tpu.matmul %4, %5, %cst {dimension_numbers = #tpu.dot_dimension_numbers<[1], [0], [0], [1], [0, 0, 1, 1], [], []>} : vector<256x384xbf16>, vector<384x128xbf16>, vector<256x128xf32> -> vector<256x128xf32>
    %7 = arith.addf %3, %6 : vector<256x128xf32>
    %c0_6 = arith.constant 0 : index
    %c0_7 = arith.constant 0 : index
    %8 = vector.load %arg7[%c0_6, %c0_7] : memref<256x128xf32, #tpu.memory_space<vmem>>, vector<256x128xf32>
    tpu.vector_store %arg7[%c0_6, %c0_7], %7 {strides = array<i32>} : memref<256x128xf32, #tpu.memory_space<vmem>>, vector<256x128xf32>,
    %c0_i32_8 = arith.constant 0 : i32
    %9 = arith.cmpi eq, %arg2, %c0_i32_8 : i32
    %10 = arith.extui %9 : i1 to i32
    %c0_i32_9 = arith.constant 0 : i32
    %11 = arith.cmpi ne, %10, %c0_i32_9 : i32
    scf.if %11 {
      %c0_10 = arith.constant 0 : index
      %c0_11 = arith.constant 0 : index
      %12 = vector.load %arg7[%c0_10, %c0_11] : memref<256x128xf32, #tpu.memory_space<vmem>>, vector<256x128xf32>
      %c0_12 = arith.constant 0 : index
      %c0_13 = arith.constant 0 : index
      %13 = vector.load %arg5[%c0_12, %c0_13] : memref<1x128xf32, #tpu.memory_space<vmem>>, vector<1x128xf32>
      %14 = vector.broadcast %13 : vector<1x128xf32> to vector<256x128xf32>
      %15 = arith.addf %12, %14 : vector<256x128xf32>
      %cst_14 = arith.constant 0.000000e+00 : f32
      %16 = vector.broadcast %cst_14 : f32 to vector<256x128xf32>
      %17 = arith.maximumf %15, %16 : vector<256x128xf32>
      %18 = arith.mulf %17, %17 : vector<256x128xf32>
      %c1_i32 = arith.constant 1 : i32
      %19 = tpu.dynamic_rotate %18 by %c1_i32 dim 1 : vector<256x128xf32>, i32 -> vector<256x128xf32>
      %20 = tpu.iota {dimensions = array<i32: 1>} : vector<256x128xi32>
      %c0_i32_15 = arith.constant 0 : i32
      %21 = vector.broadcast %c0_i32_15 : i32 to vector<256x128xi32>
      %22 = arith.cmpi eq, %20, %21 : vector<256x128xi32>
      %cst_16 = arith.constant 0.000000e+00 : f32
      %23 = vector.broadcast %cst_16 : f32 to vector<256x128xf32>
      %24 = arith.select %22, %23, %19 : vector<256x128xi1>, vector<256x128xf32>
      %25 = arith.addf %18, %24 : vector<256x128xf32>
      %cst_17 = arith.constant 5.000000e-05 : f32
      %26 = vector.broadcast %cst_17 : f32 to vector<256x128xf32>
      %27 = arith.mulf %26, %25 : vector<256x128xf32>
      %cst_18 = arith.constant 1.000000e+00 : f32
      %28 = vector.broadcast %cst_18 : f32 to vector<256x128xf32>
      %29 = arith.addf %28, %27 : vector<256x128xf32>
      %30 = math.rsqrt %29 : vector<256x128xf32>
      %31 = arith.mulf %17, %30 : vector<256x128xf32>
      %32 = math.sqrt %30 : vector<256x128xf32>
      %33 = arith.mulf %31, %32 : vector<256x128xf32>
      %c0_19 = arith.constant 0 : index
      %c0_20 = arith.constant 0 : index
      %34 = vector.load %arg6[%c0_19, %c0_20] : memref<256x128xf32, #tpu.memory_space<vmem>>, vector<256x128xf32>
      tpu.vector_store %arg6[%c0_19, %c0_20], %33 {strides = array<i32>} : memref<256x128xf32, #tpu.memory_space<vmem>>, vector<256x128xf32>,
    } else {
    }
    return
  }
  func.func @transform_0(%arg0: i32, %arg1: i32, %arg2: i32) -> (i32, i32) {
    %c0_i32 = arith.constant 0 : i32
    return %arg0, %arg2 : i32, i32
  }
  func.func @transform_1(%arg0: i32, %arg1: i32, %arg2: i32) -> (i32, i32) {
    %c0_i32 = arith.constant 0 : i32
    return %arg2, %arg1 : i32, i32
  }
  func.func @transform_2(%arg0: i32, %arg1: i32, %arg2: i32) -> (i32, i32) {
    %c0_i32 = arith.constant 0 : i32
    %c0_i32_0 = arith.constant 0 : i32
    return %c0_i32, %arg1 : i32, i32
  }
  func.func @transform_3(%arg0: i32, %arg1: i32, %arg2: i32) -> (i32, i32) {
    %c0_i32 = arith.constant 0 : i32
    return %arg0, %arg1 : i32, i32
  }
}

module attributes {stable_mosaic.version = 11 : i64} {
  func.func @_maxpool3x3s2_kernel(%arg0: i32, %arg1: memref<1x8x8x96xf32, #tpu.memory_space<vmem>>, %arg2: memref<1x8x7x96xf32, #tpu.memory_space<vmem>>, %arg3: memref<1x7x8x96xf32, #tpu.memory_space<vmem>>, %arg4: memref<1x7x7x96xf32, #tpu.memory_space<vmem>>, %arg5: memref<1x7x7x96xf32, #tpu.memory_space<vmem>>) attributes {dimension_semantics = [#tpu.dimension_semantics<parallel>], iteration_bounds = array<i64: 2>, scalar_prefetch = 0 : i64, scratch_operands = 0 : i64, tpu.core_type = #tpu.core_type<tc>, window_params = [{transform_indices = @transform_0, window_bounds = array<i64: 1, 8, 8, 96>}, {transform_indices = @transform_1, window_bounds = array<i64: 1, 8, 7, 96>}, {transform_indices = @transform_2, window_bounds = array<i64: 1, 7, 8, 96>}, {transform_indices = @transform_3, window_bounds = array<i64: 1, 7, 7, 96>}, {transform_indices = @transform_4, window_bounds = array<i64: 1, 7, 7, 96>}]} {
    %c0 = arith.constant 0 : index
    %c0_0 = arith.constant 0 : index
    %c0_1 = arith.constant 0 : index
    %c0_2 = arith.constant 0 : index
    %0 = vector.load %arg1[%c0, %c0_0, %c0_1, %c0_2] : memref<1x8x8x96xf32, #tpu.memory_space<vmem>>, vector<1x8x8x96xf32>
    %1 = vector.shape_cast %0 : vector<1x8x8x96xf32> to vector<8x8x96xf32>
    %c0_3 = arith.constant 0 : index
    %c0_4 = arith.constant 0 : index
    %c0_5 = arith.constant 0 : index
    %c0_6 = arith.constant 0 : index
    %2 = vector.load %arg2[%c0_3, %c0_4, %c0_5, %c0_6] : memref<1x8x7x96xf32, #tpu.memory_space<vmem>>, vector<1x8x7x96xf32>
    %3 = vector.shape_cast %2 : vector<1x8x7x96xf32> to vector<8x7x96xf32>
    %c0_7 = arith.constant 0 : index
    %c0_8 = arith.constant 0 : index
    %c0_9 = arith.constant 0 : index
    %c0_10 = arith.constant 0 : index
    %4 = vector.load %arg3[%c0_7, %c0_8, %c0_9, %c0_10] : memref<1x7x8x96xf32, #tpu.memory_space<vmem>>, vector<1x7x8x96xf32>
    %5 = vector.shape_cast %4 : vector<1x7x8x96xf32> to vector<7x8x96xf32>
    %c0_11 = arith.constant 0 : index
    %c0_12 = arith.constant 0 : index
    %c0_13 = arith.constant 0 : index
    %c0_14 = arith.constant 0 : index
    %6 = vector.load %arg4[%c0_11, %c0_12, %c0_13, %c0_14] : memref<1x7x7x96xf32, #tpu.memory_space<vmem>>, vector<1x7x7x96xf32>
    %7 = vector.shape_cast %6 : vector<1x7x7x96xf32> to vector<7x7x96xf32>
    %8 = vector.extract_strided_slice %1 {offsets = [0, 0, 0], sizes = [7, 7, 96], strides = [1, 1, 1]} : vector<8x8x96xf32> to vector<7x7x96xf32>
    %9 = vector.extract_strided_slice %1 {offsets = [0, 1, 0], sizes = [7, 7, 96], strides = [1, 1, 1]} : vector<8x8x96xf32> to vector<7x7x96xf32>
    %10 = arith.maximumf %8, %9 : vector<7x7x96xf32>
    %11 = vector.extract_strided_slice %1 {offsets = [1, 0, 0], sizes = [7, 7, 96], strides = [1, 1, 1]} : vector<8x8x96xf32> to vector<7x7x96xf32>
    %12 = arith.maximumf %10, %11 : vector<7x7x96xf32>
    %13 = vector.extract_strided_slice %1 {offsets = [1, 1, 0], sizes = [7, 7, 96], strides = [1, 1, 1]} : vector<8x8x96xf32> to vector<7x7x96xf32>
    %14 = arith.maximumf %12, %13 : vector<7x7x96xf32>
    %15 = vector.extract_strided_slice %3 {offsets = [0, 0, 0], sizes = [7, 7, 96], strides = [1, 1, 1]} : vector<8x7x96xf32> to vector<7x7x96xf32>
    %16 = arith.maximumf %14, %15 : vector<7x7x96xf32>
    %17 = vector.extract_strided_slice %3 {offsets = [1, 0, 0], sizes = [7, 7, 96], strides = [1, 1, 1]} : vector<8x7x96xf32> to vector<7x7x96xf32>
    %18 = arith.maximumf %16, %17 : vector<7x7x96xf32>
    %19 = vector.extract_strided_slice %5 {offsets = [0, 0, 0], sizes = [7, 7, 96], strides = [1, 1, 1]} : vector<7x8x96xf32> to vector<7x7x96xf32>
    %20 = arith.maximumf %18, %19 : vector<7x7x96xf32>
    %21 = vector.extract_strided_slice %5 {offsets = [0, 1, 0], sizes = [7, 7, 96], strides = [1, 1, 1]} : vector<7x8x96xf32> to vector<7x7x96xf32>
    %22 = arith.maximumf %20, %21 : vector<7x7x96xf32>
    %23 = arith.maximumf %22, %7 : vector<7x7x96xf32>
    %c0_15 = arith.constant 0 : index
    %c0_16 = arith.constant 0 : index
    %c0_17 = arith.constant 0 : index
    %c0_18 = arith.constant 0 : index
    %24 = vector.load %arg5[%c0_15, %c0_16, %c0_17, %c0_18] : memref<1x7x7x96xf32, #tpu.memory_space<vmem>>, vector<1x7x7x96xf32>
    %25 = vector.shape_cast %24 : vector<1x7x7x96xf32> to vector<7x7x96xf32>
    %26 = vector.shape_cast %23 : vector<7x7x96xf32> to vector<1x7x7x96xf32>
    tpu.vector_store %arg5[%c0_15, %c0_16, %c0_17, %c0_18], %26 {strides = array<i32>} : memref<1x7x7x96xf32, #tpu.memory_space<vmem>>, vector<1x7x7x96xf32>,
    return
  }
  func.func @transform_0(%arg0: i32) -> (i32, i32, i32, i32) {
    %c0_i32 = arith.constant 0 : i32
    %c0_i32_0 = arith.constant 0 : i32
    %c0_i32_1 = arith.constant 0 : i32
    %c0_i32_2 = arith.constant 0 : i32
    return %arg0, %c0_i32, %c0_i32_0, %c0_i32_1 : i32, i32, i32, i32
  }
  func.func @transform_1(%arg0: i32) -> (i32, i32, i32, i32) {
    %c0_i32 = arith.constant 0 : i32
    %c0_i32_0 = arith.constant 0 : i32
    %c0_i32_1 = arith.constant 0 : i32
    %c0_i32_2 = arith.constant 0 : i32
    return %arg0, %c0_i32, %c0_i32_0, %c0_i32_1 : i32, i32, i32, i32
  }
  func.func @transform_2(%arg0: i32) -> (i32, i32, i32, i32) {
    %c0_i32 = arith.constant 0 : i32
    %c0_i32_0 = arith.constant 0 : i32
    %c0_i32_1 = arith.constant 0 : i32
    %c0_i32_2 = arith.constant 0 : i32
    return %arg0, %c0_i32, %c0_i32_0, %c0_i32_1 : i32, i32, i32, i32
  }
  func.func @transform_3(%arg0: i32) -> (i32, i32, i32, i32) {
    %c0_i32 = arith.constant 0 : i32
    %c0_i32_0 = arith.constant 0 : i32
    %c0_i32_1 = arith.constant 0 : i32
    %c0_i32_2 = arith.constant 0 : i32
    return %arg0, %c0_i32, %c0_i32_0, %c0_i32_1 : i32, i32, i32, i32
  }
  func.func @transform_4(%arg0: i32) -> (i32, i32, i32, i32) {
    %c0_i32 = arith.constant 0 : i32
    %c0_i32_0 = arith.constant 0 : i32
    %c0_i32_1 = arith.constant 0 : i32
    %c0_i32_2 = arith.constant 0 : i32
    return %arg0, %c0_i32, %c0_i32_0, %c0_i32_1 : i32, i32, i32, i32
  }
}

module attributes {stable_mosaic.version = 11 : i64} {
  func.func @_matmul_bias_kernel(%arg0: i32, %arg1: i32, %arg2: i32, %arg3: memref<112x512xbf16, #tpu.memory_space<vmem>>, %arg4: memref<512x256xbf16, #tpu.memory_space<vmem>>, %arg5: memref<1x256xf32, #tpu.memory_space<vmem>>, %arg6: memref<112x256xf32, #tpu.memory_space<vmem>>, %arg7: memref<112x256xf32, #tpu.memory_space<vmem>>) attributes {dimension_semantics = [#tpu.dimension_semantics<parallel>, #tpu.dimension_semantics<parallel>, #tpu.dimension_semantics<arbitrary>], iteration_bounds = array<i64: 1, 1, 5>, scalar_prefetch = 0 : i64, scratch_operands = 1 : i64, tpu.core_type = #tpu.core_type<tc>, window_params = [{transform_indices = @transform_0, window_bounds = array<i64: 112, 512>}, {transform_indices = @transform_1, window_bounds = array<i64: 512, 256>}, {transform_indices = @transform_2, window_bounds = array<i64: 1, 256>}, {transform_indices = @transform_3, window_bounds = array<i64: 112, 256>}]} {
    %c0_i32 = arith.constant 0 : i32
    %0 = arith.cmpi eq, %arg2, %c0_i32 : i32
    %1 = arith.extui %0 : i1 to i32
    %c0_i32_0 = arith.constant 0 : i32
    %2 = arith.cmpi ne, %1, %c0_i32_0 : i32
    scf.if %2 {
      %cst_9 = arith.constant 0.000000e+00 : f32
      %12 = vector.broadcast %cst_9 : f32 to vector<112x256xf32>
      %c0_10 = arith.constant 0 : index
      %c0_11 = arith.constant 0 : index
      %13 = vector.load %arg7[%c0_10, %c0_11] : memref<112x256xf32, #tpu.memory_space<vmem>>, vector<112x256xf32>
      tpu.vector_store %arg7[%c0_10, %c0_11], %12 {strides = array<i32>} : memref<112x256xf32, #tpu.memory_space<vmem>>, vector<112x256xf32>,
    } else {
    }
    %c0 = arith.constant 0 : index
    %c0_1 = arith.constant 0 : index
    %3 = vector.load %arg7[%c0, %c0_1] : memref<112x256xf32, #tpu.memory_space<vmem>>, vector<112x256xf32>
    %c0_2 = arith.constant 0 : index
    %c0_3 = arith.constant 0 : index
    %4 = vector.load %arg3[%c0_2, %c0_3] : memref<112x512xbf16, #tpu.memory_space<vmem>>, vector<112x512xbf16>
    %c0_4 = arith.constant 0 : index
    %c0_5 = arith.constant 0 : index
    %5 = vector.load %arg4[%c0_4, %c0_5] : memref<512x256xbf16, #tpu.memory_space<vmem>>, vector<512x256xbf16>
    %cst = arith.constant dense<0.000000e+00> : vector<112x256xf32>
    %6 = tpu.matmul %4, %5, %cst {dimension_numbers = #tpu.dot_dimension_numbers<[1], [0], [0], [1], [0, 0, 1, 1], [], []>} : vector<112x512xbf16>, vector<512x256xbf16>, vector<112x256xf32> -> vector<112x256xf32>
    %7 = arith.addf %3, %6 : vector<112x256xf32>
    %c0_6 = arith.constant 0 : index
    %c0_7 = arith.constant 0 : index
    %8 = vector.load %arg7[%c0_6, %c0_7] : memref<112x256xf32, #tpu.memory_space<vmem>>, vector<112x256xf32>
    tpu.vector_store %arg7[%c0_6, %c0_7], %7 {strides = array<i32>} : memref<112x256xf32, #tpu.memory_space<vmem>>, vector<112x256xf32>,
    %c4_i32 = arith.constant 4 : i32
    %9 = arith.cmpi eq, %arg2, %c4_i32 : i32
    %10 = arith.extui %9 : i1 to i32
    %c0_i32_8 = arith.constant 0 : i32
    %11 = arith.cmpi ne, %10, %c0_i32_8 : i32
    scf.if %11 {
      %c0_9 = arith.constant 0 : index
      %c0_10 = arith.constant 0 : index
      %12 = vector.load %arg7[%c0_9, %c0_10] : memref<112x256xf32, #tpu.memory_space<vmem>>, vector<112x256xf32>
      %c0_11 = arith.constant 0 : index
      %c0_12 = arith.constant 0 : index
      %13 = vector.load %arg5[%c0_11, %c0_12] : memref<1x256xf32, #tpu.memory_space<vmem>>, vector<1x256xf32>
      %14 = vector.broadcast %13 : vector<1x256xf32> to vector<112x256xf32>
      %15 = arith.addf %12, %14 : vector<112x256xf32>
      %cst_13 = arith.constant 0.000000e+00 : f32
      %16 = vector.broadcast %cst_13 : f32 to vector<112x256xf32>
      %17 = arith.maximumf %15, %16 : vector<112x256xf32>
      %18 = arith.mulf %17, %17 : vector<112x256xf32>
      %c1_i32 = arith.constant 1 : i32
      %19 = tpu.dynamic_rotate %18 by %c1_i32 dim 1 : vector<112x256xf32>, i32 -> vector<112x256xf32>
      %20 = tpu.iota {dimensions = array<i32: 1>} : vector<112x256xi32>
      %c0_i32_14 = arith.constant 0 : i32
      %21 = vector.broadcast %c0_i32_14 : i32 to vector<112x256xi32>
      %22 = arith.cmpi eq, %20, %21 : vector<112x256xi32>
      %cst_15 = arith.constant 0.000000e+00 : f32
      %23 = vector.broadcast %cst_15 : f32 to vector<112x256xf32>
      %24 = arith.select %22, %23, %19 : vector<112x256xi1>, vector<112x256xf32>
      %25 = arith.addf %18, %24 : vector<112x256xf32>
      %cst_16 = arith.constant 5.000000e-05 : f32
      %26 = vector.broadcast %cst_16 : f32 to vector<112x256xf32>
      %27 = arith.mulf %26, %25 : vector<112x256xf32>
      %cst_17 = arith.constant 1.000000e+00 : f32
      %28 = vector.broadcast %cst_17 : f32 to vector<112x256xf32>
      %29 = arith.addf %28, %27 : vector<112x256xf32>
      %30 = math.rsqrt %29 : vector<112x256xf32>
      %31 = arith.mulf %17, %30 : vector<112x256xf32>
      %32 = math.sqrt %30 : vector<112x256xf32>
      %33 = arith.mulf %31, %32 : vector<112x256xf32>
      %c0_18 = arith.constant 0 : index
      %c0_19 = arith.constant 0 : index
      %34 = vector.load %arg6[%c0_18, %c0_19] : memref<112x256xf32, #tpu.memory_space<vmem>>, vector<112x256xf32>
      tpu.vector_store %arg6[%c0_18, %c0_19], %33 {strides = array<i32>} : memref<112x256xf32, #tpu.memory_space<vmem>>, vector<112x256xf32>,
    } else {
    }
    return
  }
  func.func @transform_0(%arg0: i32, %arg1: i32, %arg2: i32) -> (i32, i32) {
    %c0_i32 = arith.constant 0 : i32
    return %arg0, %arg2 : i32, i32
  }
  func.func @transform_1(%arg0: i32, %arg1: i32, %arg2: i32) -> (i32, i32) {
    %c0_i32 = arith.constant 0 : i32
    return %arg2, %arg1 : i32, i32
  }
  func.func @transform_2(%arg0: i32, %arg1: i32, %arg2: i32) -> (i32, i32) {
    %c0_i32 = arith.constant 0 : i32
    %c0_i32_0 = arith.constant 0 : i32
    return %c0_i32, %arg1 : i32, i32
  }
  func.func @transform_3(%arg0: i32, %arg1: i32, %arg2: i32) -> (i32, i32) {
    %c0_i32 = arith.constant 0 : i32
    return %arg0, %arg1 : i32, i32
  }
}

module attributes {stable_mosaic.version = 11 : i64} {
  func.func @_maxpool3x3s2_kernel(%arg0: i32, %arg1: memref<1x4x4x256xf32, #tpu.memory_space<vmem>>, %arg2: memref<1x4x3x256xf32, #tpu.memory_space<vmem>>, %arg3: memref<1x3x4x256xf32, #tpu.memory_space<vmem>>, %arg4: memref<1x3x3x256xf32, #tpu.memory_space<vmem>>, %arg5: memref<1x3x3x256xf32, #tpu.memory_space<vmem>>) attributes {dimension_semantics = [#tpu.dimension_semantics<parallel>], iteration_bounds = array<i64: 2>, scalar_prefetch = 0 : i64, scratch_operands = 0 : i64, tpu.core_type = #tpu.core_type<tc>, window_params = [{transform_indices = @transform_0, window_bounds = array<i64: 1, 4, 4, 256>}, {transform_indices = @transform_1, window_bounds = array<i64: 1, 4, 3, 256>}, {transform_indices = @transform_2, window_bounds = array<i64: 1, 3, 4, 256>}, {transform_indices = @transform_3, window_bounds = array<i64: 1, 3, 3, 256>}, {transform_indices = @transform_4, window_bounds = array<i64: 1, 3, 3, 256>}]} {
    %c0 = arith.constant 0 : index
    %c0_0 = arith.constant 0 : index
    %c0_1 = arith.constant 0 : index
    %c0_2 = arith.constant 0 : index
    %0 = vector.load %arg1[%c0, %c0_0, %c0_1, %c0_2] : memref<1x4x4x256xf32, #tpu.memory_space<vmem>>, vector<1x4x4x256xf32>
    %1 = vector.shape_cast %0 : vector<1x4x4x256xf32> to vector<4x4x256xf32>
    %c0_3 = arith.constant 0 : index
    %c0_4 = arith.constant 0 : index
    %c0_5 = arith.constant 0 : index
    %c0_6 = arith.constant 0 : index
    %2 = vector.load %arg2[%c0_3, %c0_4, %c0_5, %c0_6] : memref<1x4x3x256xf32, #tpu.memory_space<vmem>>, vector<1x4x3x256xf32>
    %3 = vector.shape_cast %2 : vector<1x4x3x256xf32> to vector<4x3x256xf32>
    %c0_7 = arith.constant 0 : index
    %c0_8 = arith.constant 0 : index
    %c0_9 = arith.constant 0 : index
    %c0_10 = arith.constant 0 : index
    %4 = vector.load %arg3[%c0_7, %c0_8, %c0_9, %c0_10] : memref<1x3x4x256xf32, #tpu.memory_space<vmem>>, vector<1x3x4x256xf32>
    %5 = vector.shape_cast %4 : vector<1x3x4x256xf32> to vector<3x4x256xf32>
    %c0_11 = arith.constant 0 : index
    %c0_12 = arith.constant 0 : index
    %c0_13 = arith.constant 0 : index
    %c0_14 = arith.constant 0 : index
    %6 = vector.load %arg4[%c0_11, %c0_12, %c0_13, %c0_14] : memref<1x3x3x256xf32, #tpu.memory_space<vmem>>, vector<1x3x3x256xf32>
    %7 = vector.shape_cast %6 : vector<1x3x3x256xf32> to vector<3x3x256xf32>
    %8 = vector.extract_strided_slice %1 {offsets = [0, 0, 0], sizes = [3, 3, 256], strides = [1, 1, 1]} : vector<4x4x256xf32> to vector<3x3x256xf32>
    %9 = vector.extract_strided_slice %1 {offsets = [0, 1, 0], sizes = [3, 3, 256], strides = [1, 1, 1]} : vector<4x4x256xf32> to vector<3x3x256xf32>
    %10 = arith.maximumf %8, %9 : vector<3x3x256xf32>
    %11 = vector.extract_strided_slice %1 {offsets = [1, 0, 0], sizes = [3, 3, 256], strides = [1, 1, 1]} : vector<4x4x256xf32> to vector<3x3x256xf32>
    %12 = arith.maximumf %10, %11 : vector<3x3x256xf32>
    %13 = vector.extract_strided_slice %1 {offsets = [1, 1, 0], sizes = [3, 3, 256], strides = [1, 1, 1]} : vector<4x4x256xf32> to vector<3x3x256xf32>
    %14 = arith.maximumf %12, %13 : vector<3x3x256xf32>
    %15 = vector.extract_strided_slice %3 {offsets = [0, 0, 0], sizes = [3, 3, 256], strides = [1, 1, 1]} : vector<4x3x256xf32> to vector<3x3x256xf32>
    %16 = arith.maximumf %14, %15 : vector<3x3x256xf32>
    %17 = vector.extract_strided_slice %3 {offsets = [1, 0, 0], sizes = [3, 3, 256], strides = [1, 1, 1]} : vector<4x3x256xf32> to vector<3x3x256xf32>
    %18 = arith.maximumf %16, %17 : vector<3x3x256xf32>
    %19 = vector.extract_strided_slice %5 {offsets = [0, 0, 0], sizes = [3, 3, 256], strides = [1, 1, 1]} : vector<3x4x256xf32> to vector<3x3x256xf32>
    %20 = arith.maximumf %18, %19 : vector<3x3x256xf32>
    %21 = vector.extract_strided_slice %5 {offsets = [0, 1, 0], sizes = [3, 3, 256], strides = [1, 1, 1]} : vector<3x4x256xf32> to vector<3x3x256xf32>
    %22 = arith.maximumf %20, %21 : vector<3x3x256xf32>
    %23 = arith.maximumf %22, %7 : vector<3x3x256xf32>
    %c0_15 = arith.constant 0 : index
    %c0_16 = arith.constant 0 : index
    %c0_17 = arith.constant 0 : index
    %c0_18 = arith.constant 0 : index
    %24 = vector.load %arg5[%c0_15, %c0_16, %c0_17, %c0_18] : memref<1x3x3x256xf32, #tpu.memory_space<vmem>>, vector<1x3x3x256xf32>
    %25 = vector.shape_cast %24 : vector<1x3x3x256xf32> to vector<3x3x256xf32>
    %26 = vector.shape_cast %23 : vector<3x3x256xf32> to vector<1x3x3x256xf32>
    tpu.vector_store %arg5[%c0_15, %c0_16, %c0_17, %c0_18], %26 {strides = array<i32>} : memref<1x3x3x256xf32, #tpu.memory_space<vmem>>, vector<1x3x3x256xf32>,
    return
  }
  func.func @transform_0(%arg0: i32) -> (i32, i32, i32, i32) {
    %c0_i32 = arith.constant 0 : i32
    %c0_i32_0 = arith.constant 0 : i32
    %c0_i32_1 = arith.constant 0 : i32
    %c0_i32_2 = arith.constant 0 : i32
    return %arg0, %c0_i32, %c0_i32_0, %c0_i32_1 : i32, i32, i32, i32
  }
  func.func @transform_1(%arg0: i32) -> (i32, i32, i32, i32) {
    %c0_i32 = arith.constant 0 : i32
    %c0_i32_0 = arith.constant 0 : i32
    %c0_i32_1 = arith.constant 0 : i32
    %c0_i32_2 = arith.constant 0 : i32
    return %arg0, %c0_i32, %c0_i32_0, %c0_i32_1 : i32, i32, i32, i32
  }
  func.func @transform_2(%arg0: i32) -> (i32, i32, i32, i32) {
    %c0_i32 = arith.constant 0 : i32
    %c0_i32_0 = arith.constant 0 : i32
    %c0_i32_1 = arith.constant 0 : i32
    %c0_i32_2 = arith.constant 0 : i32
    return %arg0, %c0_i32, %c0_i32_0, %c0_i32_1 : i32, i32, i32, i32
  }
  func.func @transform_3(%arg0: i32) -> (i32, i32, i32, i32) {
    %c0_i32 = arith.constant 0 : i32
    %c0_i32_0 = arith.constant 0 : i32
    %c0_i32_1 = arith.constant 0 : i32
    %c0_i32_2 = arith.constant 0 : i32
    return %arg0, %c0_i32, %c0_i32_0, %c0_i32_1 : i32, i32, i32, i32
  }
  func.func @transform_4(%arg0: i32) -> (i32, i32, i32, i32) {
    %c0_i32 = arith.constant 0 : i32
    %c0_i32_0 = arith.constant 0 : i32
    %c0_i32_1 = arith.constant 0 : i32
    %c0_i32_2 = arith.constant 0 : i32
    return %arg0, %c0_i32, %c0_i32_0, %c0_i32_1 : i32, i32, i32, i32
  }
}

module attributes {stable_mosaic.version = 11 : i64} {
  func.func @_matmul_bias_kernel(%arg0: i32, %arg1: i32, %arg2: i32, %arg3: memref<32x512xbf16, #tpu.memory_space<vmem>>, %arg4: memref<512x256xbf16, #tpu.memory_space<vmem>>, %arg5: memref<1x256xf32, #tpu.memory_space<vmem>>, %arg6: memref<32x256xf32, #tpu.memory_space<vmem>>, %arg7: memref<32x256xf32, #tpu.memory_space<vmem>>) attributes {dimension_semantics = [#tpu.dimension_semantics<parallel>, #tpu.dimension_semantics<parallel>, #tpu.dimension_semantics<arbitrary>], iteration_bounds = array<i64: 1, 2, 5>, scalar_prefetch = 0 : i64, scratch_operands = 1 : i64, tpu.core_type = #tpu.core_type<tc>, window_params = [{transform_indices = @transform_0, window_bounds = array<i64: 32, 512>}, {transform_indices = @transform_1, window_bounds = array<i64: 512, 256>}, {transform_indices = @transform_2, window_bounds = array<i64: 1, 256>}, {transform_indices = @transform_3, window_bounds = array<i64: 32, 256>}]} {
    %c0_i32 = arith.constant 0 : i32
    %0 = arith.cmpi eq, %arg2, %c0_i32 : i32
    %1 = arith.extui %0 : i1 to i32
    %c0_i32_0 = arith.constant 0 : i32
    %2 = arith.cmpi ne, %1, %c0_i32_0 : i32
    scf.if %2 {
      %cst_9 = arith.constant 0.000000e+00 : f32
      %12 = vector.broadcast %cst_9 : f32 to vector<32x256xf32>
      %c0_10 = arith.constant 0 : index
      %c0_11 = arith.constant 0 : index
      %13 = vector.load %arg7[%c0_10, %c0_11] : memref<32x256xf32, #tpu.memory_space<vmem>>, vector<32x256xf32>
      tpu.vector_store %arg7[%c0_10, %c0_11], %12 {strides = array<i32>} : memref<32x256xf32, #tpu.memory_space<vmem>>, vector<32x256xf32>,
    } else {
    }
    %c0 = arith.constant 0 : index
    %c0_1 = arith.constant 0 : index
    %3 = vector.load %arg7[%c0, %c0_1] : memref<32x256xf32, #tpu.memory_space<vmem>>, vector<32x256xf32>
    %c0_2 = arith.constant 0 : index
    %c0_3 = arith.constant 0 : index
    %4 = vector.load %arg3[%c0_2, %c0_3] : memref<32x512xbf16, #tpu.memory_space<vmem>>, vector<32x512xbf16>
    %c0_4 = arith.constant 0 : index
    %c0_5 = arith.constant 0 : index
    %5 = vector.load %arg4[%c0_4, %c0_5] : memref<512x256xbf16, #tpu.memory_space<vmem>>, vector<512x256xbf16>
    %cst = arith.constant dense<0.000000e+00> : vector<32x256xf32>
    %6 = tpu.matmul %4, %5, %cst {dimension_numbers = #tpu.dot_dimension_numbers<[1], [0], [0], [1], [0, 0, 1, 1], [], []>} : vector<32x512xbf16>, vector<512x256xbf16>, vector<32x256xf32> -> vector<32x256xf32>
    %7 = arith.addf %3, %6 : vector<32x256xf32>
    %c0_6 = arith.constant 0 : index
    %c0_7 = arith.constant 0 : index
    %8 = vector.load %arg7[%c0_6, %c0_7] : memref<32x256xf32, #tpu.memory_space<vmem>>, vector<32x256xf32>
    tpu.vector_store %arg7[%c0_6, %c0_7], %7 {strides = array<i32>} : memref<32x256xf32, #tpu.memory_space<vmem>>, vector<32x256xf32>,
    %c4_i32 = arith.constant 4 : i32
    %9 = arith.cmpi eq, %arg2, %c4_i32 : i32
    %10 = arith.extui %9 : i1 to i32
    %c0_i32_8 = arith.constant 0 : i32
    %11 = arith.cmpi ne, %10, %c0_i32_8 : i32
    scf.if %11 {
      %c0_9 = arith.constant 0 : index
      %c0_10 = arith.constant 0 : index
      %12 = vector.load %arg7[%c0_9, %c0_10] : memref<32x256xf32, #tpu.memory_space<vmem>>, vector<32x256xf32>
      %c0_11 = arith.constant 0 : index
      %c0_12 = arith.constant 0 : index
      %13 = vector.load %arg5[%c0_11, %c0_12] : memref<1x256xf32, #tpu.memory_space<vmem>>, vector<1x256xf32>
      %14 = vector.broadcast %13 : vector<1x256xf32> to vector<32x256xf32>
      %15 = arith.addf %12, %14 : vector<32x256xf32>
      %cst_13 = arith.constant 0.000000e+00 : f32
      %16 = vector.broadcast %cst_13 : f32 to vector<32x256xf32>
      %17 = arith.maximumf %15, %16 : vector<32x256xf32>
      %c0_14 = arith.constant 0 : index
      %c0_15 = arith.constant 0 : index
      %18 = vector.load %arg6[%c0_14, %c0_15] : memref<32x256xf32, #tpu.memory_space<vmem>>, vector<32x256xf32>
      tpu.vector_store %arg6[%c0_14, %c0_15], %17 {strides = array<i32>} : memref<32x256xf32, #tpu.memory_space<vmem>>, vector<32x256xf32>,
    } else {
    }
    return
  }
  func.func @transform_0(%arg0: i32, %arg1: i32, %arg2: i32) -> (i32, i32) {
    %c0_i32 = arith.constant 0 : i32
    return %arg0, %arg2 : i32, i32
  }
  func.func @transform_1(%arg0: i32, %arg1: i32, %arg2: i32) -> (i32, i32) {
    %c0_i32 = arith.constant 0 : i32
    return %arg2, %arg1 : i32, i32
  }
  func.func @transform_2(%arg0: i32, %arg1: i32, %arg2: i32) -> (i32, i32) {
    %c0_i32 = arith.constant 0 : i32
    %c0_i32_0 = arith.constant 0 : i32
    return %c0_i32, %arg1 : i32, i32
  }
  func.func @transform_3(%arg0: i32, %arg1: i32, %arg2: i32) -> (i32, i32) {
    %c0_i32 = arith.constant 0 : i32
    return %arg0, %arg1 : i32, i32
  }
}

module attributes {stable_mosaic.version = 11 : i64} {
  func.func @_matmul_bias_kernel(%arg0: i32, %arg1: i32, %arg2: i32, %arg3: memref<32x512xbf16, #tpu.memory_space<vmem>>, %arg4: memref<512x256xbf16, #tpu.memory_space<vmem>>, %arg5: memref<1x256xf32, #tpu.memory_space<vmem>>, %arg6: memref<32x256xf32, #tpu.memory_space<vmem>>, %arg7: memref<32x256xf32, #tpu.memory_space<vmem>>) attributes {dimension_semantics = [#tpu.dimension_semantics<parallel>, #tpu.dimension_semantics<parallel>, #tpu.dimension_semantics<arbitrary>], iteration_bounds = array<i64: 1, 2, 7>, scalar_prefetch = 0 : i64, scratch_operands = 1 : i64, tpu.core_type = #tpu.core_type<tc>, window_params = [{transform_indices = @transform_0, window_bounds = array<i64: 32, 512>}, {transform_indices = @transform_1, window_bounds = array<i64: 512, 256>}, {transform_indices = @transform_2, window_bounds = array<i64: 1, 256>}, {transform_indices = @transform_3, window_bounds = array<i64: 32, 256>}]} {
    %c0_i32 = arith.constant 0 : i32
    %0 = arith.cmpi eq, %arg2, %c0_i32 : i32
    %1 = arith.extui %0 : i1 to i32
    %c0_i32_0 = arith.constant 0 : i32
    %2 = arith.cmpi ne, %1, %c0_i32_0 : i32
    scf.if %2 {
      %cst_9 = arith.constant 0.000000e+00 : f32
      %12 = vector.broadcast %cst_9 : f32 to vector<32x256xf32>
      %c0_10 = arith.constant 0 : index
      %c0_11 = arith.constant 0 : index
      %13 = vector.load %arg7[%c0_10, %c0_11] : memref<32x256xf32, #tpu.memory_space<vmem>>, vector<32x256xf32>
      tpu.vector_store %arg7[%c0_10, %c0_11], %12 {strides = array<i32>} : memref<32x256xf32, #tpu.memory_space<vmem>>, vector<32x256xf32>,
    } else {
    }
    %c0 = arith.constant 0 : index
    %c0_1 = arith.constant 0 : index
    %3 = vector.load %arg7[%c0, %c0_1] : memref<32x256xf32, #tpu.memory_space<vmem>>, vector<32x256xf32>
    %c0_2 = arith.constant 0 : index
    %c0_3 = arith.constant 0 : index
    %4 = vector.load %arg3[%c0_2, %c0_3] : memref<32x512xbf16, #tpu.memory_space<vmem>>, vector<32x512xbf16>
    %c0_4 = arith.constant 0 : index
    %c0_5 = arith.constant 0 : index
    %5 = vector.load %arg4[%c0_4, %c0_5] : memref<512x256xbf16, #tpu.memory_space<vmem>>, vector<512x256xbf16>
    %cst = arith.constant dense<0.000000e+00> : vector<32x256xf32>
    %6 = tpu.matmul %4, %5, %cst {dimension_numbers = #tpu.dot_dimension_numbers<[1], [0], [0], [1], [0, 0, 1, 1], [], []>} : vector<32x512xbf16>, vector<512x256xbf16>, vector<32x256xf32> -> vector<32x256xf32>
    %7 = arith.addf %3, %6 : vector<32x256xf32>
    %c0_6 = arith.constant 0 : index
    %c0_7 = arith.constant 0 : index
    %8 = vector.load %arg7[%c0_6, %c0_7] : memref<32x256xf32, #tpu.memory_space<vmem>>, vector<32x256xf32>
    tpu.vector_store %arg7[%c0_6, %c0_7], %7 {strides = array<i32>} : memref<32x256xf32, #tpu.memory_space<vmem>>, vector<32x256xf32>,
    %c6_i32 = arith.constant 6 : i32
    %9 = arith.cmpi eq, %arg2, %c6_i32 : i32
    %10 = arith.extui %9 : i1 to i32
    %c0_i32_8 = arith.constant 0 : i32
    %11 = arith.cmpi ne, %10, %c0_i32_8 : i32
    scf.if %11 {
      %c0_9 = arith.constant 0 : index
      %c0_10 = arith.constant 0 : index
      %12 = vector.load %arg7[%c0_9, %c0_10] : memref<32x256xf32, #tpu.memory_space<vmem>>, vector<32x256xf32>
      %c0_11 = arith.constant 0 : index
      %c0_12 = arith.constant 0 : index
      %13 = vector.load %arg5[%c0_11, %c0_12] : memref<1x256xf32, #tpu.memory_space<vmem>>, vector<1x256xf32>
      %14 = vector.broadcast %13 : vector<1x256xf32> to vector<32x256xf32>
      %15 = arith.addf %12, %14 : vector<32x256xf32>
      %cst_13 = arith.constant 0.000000e+00 : f32
      %16 = vector.broadcast %cst_13 : f32 to vector<32x256xf32>
      %17 = arith.maximumf %15, %16 : vector<32x256xf32>
      %c0_14 = arith.constant 0 : index
      %c0_15 = arith.constant 0 : index
      %18 = vector.load %arg6[%c0_14, %c0_15] : memref<32x256xf32, #tpu.memory_space<vmem>>, vector<32x256xf32>
      tpu.vector_store %arg6[%c0_14, %c0_15], %17 {strides = array<i32>} : memref<32x256xf32, #tpu.memory_space<vmem>>, vector<32x256xf32>,
    } else {
    }
    return
  }
  func.func @transform_0(%arg0: i32, %arg1: i32, %arg2: i32) -> (i32, i32) {
    %c0_i32 = arith.constant 0 : i32
    return %arg0, %arg2 : i32, i32
  }
  func.func @transform_1(%arg0: i32, %arg1: i32, %arg2: i32) -> (i32, i32) {
    %c0_i32 = arith.constant 0 : i32
    return %arg2, %arg1 : i32, i32
  }
  func.func @transform_2(%arg0: i32, %arg1: i32, %arg2: i32) -> (i32, i32) {
    %c0_i32 = arith.constant 0 : i32
    %c0_i32_0 = arith.constant 0 : i32
    return %c0_i32, %arg1 : i32, i32
  }
  func.func @transform_3(%arg0: i32, %arg1: i32, %arg2: i32) -> (i32, i32) {
    %c0_i32 = arith.constant 0 : i32
    return %arg0, %arg1 : i32, i32
  }
}

module attributes {stable_mosaic.version = 11 : i64} {
  func.func @_matmul_bias_kernel(%arg0: i32, %arg1: i32, %arg2: i32, %arg3: memref<32x512xbf16, #tpu.memory_space<vmem>>, %arg4: memref<512x256xbf16, #tpu.memory_space<vmem>>, %arg5: memref<1x256xf32, #tpu.memory_space<vmem>>, %arg6: memref<32x256xf32, #tpu.memory_space<vmem>>, %arg7: memref<32x256xf32, #tpu.memory_space<vmem>>) attributes {dimension_semantics = [#tpu.dimension_semantics<parallel>, #tpu.dimension_semantics<parallel>, #tpu.dimension_semantics<arbitrary>], iteration_bounds = array<i64: 1, 1, 7>, scalar_prefetch = 0 : i64, scratch_operands = 1 : i64, tpu.core_type = #tpu.core_type<tc>, window_params = [{transform_indices = @transform_0, window_bounds = array<i64: 32, 512>}, {transform_indices = @transform_1, window_bounds = array<i64: 512, 256>}, {transform_indices = @transform_2, window_bounds = array<i64: 1, 256>}, {transform_indices = @transform_3, window_bounds = array<i64: 32, 256>}]} {
    %c0_i32 = arith.constant 0 : i32
    %0 = arith.cmpi eq, %arg2, %c0_i32 : i32
    %1 = arith.extui %0 : i1 to i32
    %c0_i32_0 = arith.constant 0 : i32
    %2 = arith.cmpi ne, %1, %c0_i32_0 : i32
    scf.if %2 {
      %cst_9 = arith.constant 0.000000e+00 : f32
      %12 = vector.broadcast %cst_9 : f32 to vector<32x256xf32>
      %c0_10 = arith.constant 0 : index
      %c0_11 = arith.constant 0 : index
      %13 = vector.load %arg7[%c0_10, %c0_11] : memref<32x256xf32, #tpu.memory_space<vmem>>, vector<32x256xf32>
      tpu.vector_store %arg7[%c0_10, %c0_11], %12 {strides = array<i32>} : memref<32x256xf32, #tpu.memory_space<vmem>>, vector<32x256xf32>,
    } else {
    }
    %c0 = arith.constant 0 : index
    %c0_1 = arith.constant 0 : index
    %3 = vector.load %arg7[%c0, %c0_1] : memref<32x256xf32, #tpu.memory_space<vmem>>, vector<32x256xf32>
    %c0_2 = arith.constant 0 : index
    %c0_3 = arith.constant 0 : index
    %4 = vector.load %arg3[%c0_2, %c0_3] : memref<32x512xbf16, #tpu.memory_space<vmem>>, vector<32x512xbf16>
    %c0_4 = arith.constant 0 : index
    %c0_5 = arith.constant 0 : index
    %5 = vector.load %arg4[%c0_4, %c0_5] : memref<512x256xbf16, #tpu.memory_space<vmem>>, vector<512x256xbf16>
    %cst = arith.constant dense<0.000000e+00> : vector<32x256xf32>
    %6 = tpu.matmul %4, %5, %cst {dimension_numbers = #tpu.dot_dimension_numbers<[1], [0], [0], [1], [0, 0, 1, 1], [], []>} : vector<32x512xbf16>, vector<512x256xbf16>, vector<32x256xf32> -> vector<32x256xf32>
    %7 = arith.addf %3, %6 : vector<32x256xf32>
    %c0_6 = arith.constant 0 : index
    %c0_7 = arith.constant 0 : index
    %8 = vector.load %arg7[%c0_6, %c0_7] : memref<32x256xf32, #tpu.memory_space<vmem>>, vector<32x256xf32>
    tpu.vector_store %arg7[%c0_6, %c0_7], %7 {strides = array<i32>} : memref<32x256xf32, #tpu.memory_space<vmem>>, vector<32x256xf32>,
    %c6_i32 = arith.constant 6 : i32
    %9 = arith.cmpi eq, %arg2, %c6_i32 : i32
    %10 = arith.extui %9 : i1 to i32
    %c0_i32_8 = arith.constant 0 : i32
    %11 = arith.cmpi ne, %10, %c0_i32_8 : i32
    scf.if %11 {
      %c0_9 = arith.constant 0 : index
      %c0_10 = arith.constant 0 : index
      %12 = vector.load %arg7[%c0_9, %c0_10] : memref<32x256xf32, #tpu.memory_space<vmem>>, vector<32x256xf32>
      %c0_11 = arith.constant 0 : index
      %c0_12 = arith.constant 0 : index
      %13 = vector.load %arg5[%c0_11, %c0_12] : memref<1x256xf32, #tpu.memory_space<vmem>>, vector<1x256xf32>
      %14 = vector.broadcast %13 : vector<1x256xf32> to vector<32x256xf32>
      %15 = arith.addf %12, %14 : vector<32x256xf32>
      %cst_13 = arith.constant 0.000000e+00 : f32
      %16 = vector.broadcast %cst_13 : f32 to vector<32x256xf32>
      %17 = arith.maximumf %15, %16 : vector<32x256xf32>
      %c0_14 = arith.constant 0 : index
      %c0_15 = arith.constant 0 : index
      %18 = vector.load %arg6[%c0_14, %c0_15] : memref<32x256xf32, #tpu.memory_space<vmem>>, vector<32x256xf32>
      tpu.vector_store %arg6[%c0_14, %c0_15], %17 {strides = array<i32>} : memref<32x256xf32, #tpu.memory_space<vmem>>, vector<32x256xf32>,
    } else {
    }
    return
  }
  func.func @transform_0(%arg0: i32, %arg1: i32, %arg2: i32) -> (i32, i32) {
    %c0_i32 = arith.constant 0 : i32
    return %arg0, %arg2 : i32, i32
  }
  func.func @transform_1(%arg0: i32, %arg1: i32, %arg2: i32) -> (i32, i32) {
    %c0_i32 = arith.constant 0 : i32
    return %arg2, %arg1 : i32, i32
  }
  func.func @transform_2(%arg0: i32, %arg1: i32, %arg2: i32) -> (i32, i32) {
    %c0_i32 = arith.constant 0 : i32
    %c0_i32_0 = arith.constant 0 : i32
    return %c0_i32, %arg1 : i32, i32
  }
  func.func @transform_3(%arg0: i32, %arg1: i32, %arg2: i32) -> (i32, i32) {
    %c0_i32 = arith.constant 0 : i32
    return %arg0, %arg1 : i32, i32
  }
}

module attributes {stable_mosaic.version = 11 : i64} {
  func.func @_maxpool3x3s2_kernel(%arg0: i32, %arg1: memref<1x2x2x256xf32, #tpu.memory_space<vmem>>, %arg2: memref<1x2x1x256xf32, #tpu.memory_space<vmem>>, %arg3: memref<1x1x2x256xf32, #tpu.memory_space<vmem>>, %arg4: memref<1x1x1x256xf32, #tpu.memory_space<vmem>>, %arg5: memref<1x1x1x256xf32, #tpu.memory_space<vmem>>) attributes {dimension_semantics = [#tpu.dimension_semantics<parallel>], iteration_bounds = array<i64: 2>, scalar_prefetch = 0 : i64, scratch_operands = 0 : i64, tpu.core_type = #tpu.core_type<tc>, window_params = [{transform_indices = @transform_0, window_bounds = array<i64: 1, 2, 2, 256>}, {transform_indices = @transform_1, window_bounds = array<i64: 1, 2, 1, 256>}, {transform_indices = @transform_2, window_bounds = array<i64: 1, 1, 2, 256>}, {transform_indices = @transform_3, window_bounds = array<i64: 1, 1, 1, 256>}, {transform_indices = @transform_4, window_bounds = array<i64: 1, 1, 1, 256>}]} {
    %c0 = arith.constant 0 : index
    %c0_0 = arith.constant 0 : index
    %c0_1 = arith.constant 0 : index
    %c0_2 = arith.constant 0 : index
    %0 = vector.load %arg1[%c0, %c0_0, %c0_1, %c0_2] : memref<1x2x2x256xf32, #tpu.memory_space<vmem>>, vector<1x2x2x256xf32>
    %1 = vector.shape_cast %0 : vector<1x2x2x256xf32> to vector<2x2x256xf32>
    %c0_3 = arith.constant 0 : index
    %c0_4 = arith.constant 0 : index
    %c0_5 = arith.constant 0 : index
    %c0_6 = arith.constant 0 : index
    %2 = vector.load %arg2[%c0_3, %c0_4, %c0_5, %c0_6] : memref<1x2x1x256xf32, #tpu.memory_space<vmem>>, vector<1x2x1x256xf32>
    %3 = vector.shape_cast %2 : vector<1x2x1x256xf32> to vector<2x1x256xf32>
    %c0_7 = arith.constant 0 : index
    %c0_8 = arith.constant 0 : index
    %c0_9 = arith.constant 0 : index
    %c0_10 = arith.constant 0 : index
    %4 = vector.load %arg3[%c0_7, %c0_8, %c0_9, %c0_10] : memref<1x1x2x256xf32, #tpu.memory_space<vmem>>, vector<1x1x2x256xf32>
    %5 = vector.shape_cast %4 : vector<1x1x2x256xf32> to vector<1x2x256xf32>
    %c0_11 = arith.constant 0 : index
    %c0_12 = arith.constant 0 : index
    %c0_13 = arith.constant 0 : index
    %c0_14 = arith.constant 0 : index
    %6 = vector.load %arg4[%c0_11, %c0_12, %c0_13, %c0_14] : memref<1x1x1x256xf32, #tpu.memory_space<vmem>>, vector<1x1x1x256xf32>
    %7 = vector.shape_cast %6 : vector<1x1x1x256xf32> to vector<1x1x256xf32>
    %8 = vector.extract_strided_slice %1 {offsets = [0, 0, 0], sizes = [1, 1, 256], strides = [1, 1, 1]} : vector<2x2x256xf32> to vector<1x1x256xf32>
    %9 = vector.extract_strided_slice %1 {offsets = [0, 1, 0], sizes = [1, 1, 256], strides = [1, 1, 1]} : vector<2x2x256xf32> to vector<1x1x256xf32>
    %10 = arith.maximumf %8, %9 : vector<1x1x256xf32>
    %11 = vector.extract_strided_slice %1 {offsets = [1, 0, 0], sizes = [1, 1, 256], strides = [1, 1, 1]} : vector<2x2x256xf32> to vector<1x1x256xf32>
    %12 = arith.maximumf %10, %11 : vector<1x1x256xf32>
    %13 = vector.extract_strided_slice %1 {offsets = [1, 1, 0], sizes = [1, 1, 256], strides = [1, 1, 1]} : vector<2x2x256xf32> to vector<1x1x256xf32>
    %14 = arith.maximumf %12, %13 : vector<1x1x256xf32>
    %15 = vector.extract_strided_slice %3 {offsets = [0, 0, 0], sizes = [1, 1, 256], strides = [1, 1, 1]} : vector<2x1x256xf32> to vector<1x1x256xf32>
    %16 = arith.maximumf %14, %15 : vector<1x1x256xf32>
    %17 = vector.extract_strided_slice %3 {offsets = [1, 0, 0], sizes = [1, 1, 256], strides = [1, 1, 1]} : vector<2x1x256xf32> to vector<1x1x256xf32>
    %18 = arith.maximumf %16, %17 : vector<1x1x256xf32>
    %19 = vector.extract_strided_slice %5 {offsets = [0, 0, 0], sizes = [1, 1, 256], strides = [1, 1, 1]} : vector<1x2x256xf32> to vector<1x1x256xf32>
    %20 = arith.maximumf %18, %19 : vector<1x1x256xf32>
    %21 = vector.extract_strided_slice %5 {offsets = [0, 1, 0], sizes = [1, 1, 256], strides = [1, 1, 1]} : vector<1x2x256xf32> to vector<1x1x256xf32>
    %22 = arith.maximumf %20, %21 : vector<1x1x256xf32>
    %23 = arith.maximumf %22, %7 : vector<1x1x256xf32>
    %c0_15 = arith.constant 0 : index
    %c0_16 = arith.constant 0 : index
    %c0_17 = arith.constant 0 : index
    %c0_18 = arith.constant 0 : index
    %24 = vector.load %arg5[%c0_15, %c0_16, %c0_17, %c0_18] : memref<1x1x1x256xf32, #tpu.memory_space<vmem>>, vector<1x1x1x256xf32>
    %25 = vector.shape_cast %24 : vector<1x1x1x256xf32> to vector<1x1x256xf32>
    %26 = vector.shape_cast %23 : vector<1x1x256xf32> to vector<1x1x1x256xf32>
    tpu.vector_store %arg5[%c0_15, %c0_16, %c0_17, %c0_18], %26 {strides = array<i32>} : memref<1x1x1x256xf32, #tpu.memory_space<vmem>>, vector<1x1x1x256xf32>,
    return
  }
  func.func @transform_0(%arg0: i32) -> (i32, i32, i32, i32) {
    %c0_i32 = arith.constant 0 : i32
    %c0_i32_0 = arith.constant 0 : i32
    %c0_i32_1 = arith.constant 0 : i32
    %c0_i32_2 = arith.constant 0 : i32
    return %arg0, %c0_i32, %c0_i32_0, %c0_i32_1 : i32, i32, i32, i32
  }
  func.func @transform_1(%arg0: i32) -> (i32, i32, i32, i32) {
    %c0_i32 = arith.constant 0 : i32
    %c0_i32_0 = arith.constant 0 : i32
    %c0_i32_1 = arith.constant 0 : i32
    %c0_i32_2 = arith.constant 0 : i32
    return %arg0, %c0_i32, %c0_i32_0, %c0_i32_1 : i32, i32, i32, i32
  }
  func.func @transform_2(%arg0: i32) -> (i32, i32, i32, i32) {
    %c0_i32 = arith.constant 0 : i32
    %c0_i32_0 = arith.constant 0 : i32
    %c0_i32_1 = arith.constant 0 : i32
    %c0_i32_2 = arith.constant 0 : i32
    return %arg0, %c0_i32, %c0_i32_0, %c0_i32_1 : i32, i32, i32, i32
  }
  func.func @transform_3(%arg0: i32) -> (i32, i32, i32, i32) {
    %c0_i32 = arith.constant 0 : i32
    %c0_i32_0 = arith.constant 0 : i32
    %c0_i32_1 = arith.constant 0 : i32
    %c0_i32_2 = arith.constant 0 : i32
    return %arg0, %c0_i32, %c0_i32_0, %c0_i32_1 : i32, i32, i32, i32
  }
  func.func @transform_4(%arg0: i32) -> (i32, i32, i32, i32) {
    %c0_i32 = arith.constant 0 : i32
    %c0_i32_0 = arith.constant 0 : i32
    %c0_i32_1 = arith.constant 0 : i32
    %c0_i32_2 = arith.constant 0 : i32
    return %arg0, %c0_i32, %c0_i32_0, %c0_i32_1 : i32, i32, i32, i32
  }
}

module attributes {stable_mosaic.version = 11 : i64} {
  func.func @_matmul_bias_kernel(%arg0: i32, %arg1: i32, %arg2: i32, %arg3: memref<16x512xbf16, #tpu.memory_space<vmem>>, %arg4: memref<512x256xbf16, #tpu.memory_space<vmem>>, %arg5: memref<1x256xf32, #tpu.memory_space<vmem>>, %arg6: memref<16x256xf32, #tpu.memory_space<vmem>>, %arg7: memref<16x256xf32, #tpu.memory_space<vmem>>) attributes {dimension_semantics = [#tpu.dimension_semantics<parallel>, #tpu.dimension_semantics<parallel>, #tpu.dimension_semantics<arbitrary>], iteration_bounds = array<i64: 1, 16, 18>, scalar_prefetch = 0 : i64, scratch_operands = 1 : i64, tpu.core_type = #tpu.core_type<tc>, window_params = [{transform_indices = @transform_0, window_bounds = array<i64: 16, 512>}, {transform_indices = @transform_1, window_bounds = array<i64: 512, 256>}, {transform_indices = @transform_2, window_bounds = array<i64: 1, 256>}, {transform_indices = @transform_3, window_bounds = array<i64: 16, 256>}]} {
    %c0_i32 = arith.constant 0 : i32
    %0 = arith.cmpi eq, %arg2, %c0_i32 : i32
    %1 = arith.extui %0 : i1 to i32
    %c0_i32_0 = arith.constant 0 : i32
    %2 = arith.cmpi ne, %1, %c0_i32_0 : i32
    scf.if %2 {
      %cst_9 = arith.constant 0.000000e+00 : f32
      %12 = vector.broadcast %cst_9 : f32 to vector<16x256xf32>
      %c0_10 = arith.constant 0 : index
      %c0_11 = arith.constant 0 : index
      %13 = vector.load %arg7[%c0_10, %c0_11] : memref<16x256xf32, #tpu.memory_space<vmem>>, vector<16x256xf32>
      tpu.vector_store %arg7[%c0_10, %c0_11], %12 {strides = array<i32>} : memref<16x256xf32, #tpu.memory_space<vmem>>, vector<16x256xf32>,
    } else {
    }
    %c0 = arith.constant 0 : index
    %c0_1 = arith.constant 0 : index
    %3 = vector.load %arg7[%c0, %c0_1] : memref<16x256xf32, #tpu.memory_space<vmem>>, vector<16x256xf32>
    %c0_2 = arith.constant 0 : index
    %c0_3 = arith.constant 0 : index
    %4 = vector.load %arg3[%c0_2, %c0_3] : memref<16x512xbf16, #tpu.memory_space<vmem>>, vector<16x512xbf16>
    %c0_4 = arith.constant 0 : index
    %c0_5 = arith.constant 0 : index
    %5 = vector.load %arg4[%c0_4, %c0_5] : memref<512x256xbf16, #tpu.memory_space<vmem>>, vector<512x256xbf16>
    %cst = arith.constant dense<0.000000e+00> : vector<16x256xf32>
    %6 = tpu.matmul %4, %5, %cst {dimension_numbers = #tpu.dot_dimension_numbers<[1], [0], [0], [1], [0, 0, 1, 1], [], []>} : vector<16x512xbf16>, vector<512x256xbf16>, vector<16x256xf32> -> vector<16x256xf32>
    %7 = arith.addf %3, %6 : vector<16x256xf32>
    %c0_6 = arith.constant 0 : index
    %c0_7 = arith.constant 0 : index
    %8 = vector.load %arg7[%c0_6, %c0_7] : memref<16x256xf32, #tpu.memory_space<vmem>>, vector<16x256xf32>
    tpu.vector_store %arg7[%c0_6, %c0_7], %7 {strides = array<i32>} : memref<16x256xf32, #tpu.memory_space<vmem>>, vector<16x256xf32>,
    %c17_i32 = arith.constant 17 : i32
    %9 = arith.cmpi eq, %arg2, %c17_i32 : i32
    %10 = arith.extui %9 : i1 to i32
    %c0_i32_8 = arith.constant 0 : i32
    %11 = arith.cmpi ne, %10, %c0_i32_8 : i32
    scf.if %11 {
      %c0_9 = arith.constant 0 : index
      %c0_10 = arith.constant 0 : index
      %12 = vector.load %arg7[%c0_9, %c0_10] : memref<16x256xf32, #tpu.memory_space<vmem>>, vector<16x256xf32>
      %c0_11 = arith.constant 0 : index
      %c0_12 = arith.constant 0 : index
      %13 = vector.load %arg5[%c0_11, %c0_12] : memref<1x256xf32, #tpu.memory_space<vmem>>, vector<1x256xf32>
      %14 = vector.broadcast %13 : vector<1x256xf32> to vector<16x256xf32>
      %15 = arith.addf %12, %14 : vector<16x256xf32>
      %cst_13 = arith.constant 0.000000e+00 : f32
      %16 = vector.broadcast %cst_13 : f32 to vector<16x256xf32>
      %17 = arith.maximumf %15, %16 : vector<16x256xf32>
      %c0_14 = arith.constant 0 : index
      %c0_15 = arith.constant 0 : index
      %18 = vector.load %arg6[%c0_14, %c0_15] : memref<16x256xf32, #tpu.memory_space<vmem>>, vector<16x256xf32>
      tpu.vector_store %arg6[%c0_14, %c0_15], %17 {strides = array<i32>} : memref<16x256xf32, #tpu.memory_space<vmem>>, vector<16x256xf32>,
    } else {
    }
    return
  }
  func.func @transform_0(%arg0: i32, %arg1: i32, %arg2: i32) -> (i32, i32) {
    %c0_i32 = arith.constant 0 : i32
    return %arg0, %arg2 : i32, i32
  }
  func.func @transform_1(%arg0: i32, %arg1: i32, %arg2: i32) -> (i32, i32) {
    %c0_i32 = arith.constant 0 : i32
    return %arg2, %arg1 : i32, i32
  }
  func.func @transform_2(%arg0: i32, %arg1: i32, %arg2: i32) -> (i32, i32) {
    %c0_i32 = arith.constant 0 : i32
    %c0_i32_0 = arith.constant 0 : i32
    return %c0_i32, %arg1 : i32, i32
  }
  func.func @transform_3(%arg0: i32, %arg1: i32, %arg2: i32) -> (i32, i32) {
    %c0_i32 = arith.constant 0 : i32
    return %arg0, %arg1 : i32, i32
  }
}

module attributes {stable_mosaic.version = 11 : i64} {
  func.func @_matmul_bias_kernel(%arg0: i32, %arg1: i32, %arg2: i32, %arg3: memref<16x512xbf16, #tpu.memory_space<vmem>>, %arg4: memref<512x256xbf16, #tpu.memory_space<vmem>>, %arg5: memref<1x256xf32, #tpu.memory_space<vmem>>, %arg6: memref<16x256xf32, #tpu.memory_space<vmem>>, %arg7: memref<16x256xf32, #tpu.memory_space<vmem>>) attributes {dimension_semantics = [#tpu.dimension_semantics<parallel>, #tpu.dimension_semantics<parallel>, #tpu.dimension_semantics<arbitrary>], iteration_bounds = array<i64: 1, 16, 8>, scalar_prefetch = 0 : i64, scratch_operands = 1 : i64, tpu.core_type = #tpu.core_type<tc>, window_params = [{transform_indices = @transform_0, window_bounds = array<i64: 16, 512>}, {transform_indices = @transform_1, window_bounds = array<i64: 512, 256>}, {transform_indices = @transform_2, window_bounds = array<i64: 1, 256>}, {transform_indices = @transform_3, window_bounds = array<i64: 16, 256>}]} {
    %c0_i32 = arith.constant 0 : i32
    %0 = arith.cmpi eq, %arg2, %c0_i32 : i32
    %1 = arith.extui %0 : i1 to i32
    %c0_i32_0 = arith.constant 0 : i32
    %2 = arith.cmpi ne, %1, %c0_i32_0 : i32
    scf.if %2 {
      %cst_9 = arith.constant 0.000000e+00 : f32
      %12 = vector.broadcast %cst_9 : f32 to vector<16x256xf32>
      %c0_10 = arith.constant 0 : index
      %c0_11 = arith.constant 0 : index
      %13 = vector.load %arg7[%c0_10, %c0_11] : memref<16x256xf32, #tpu.memory_space<vmem>>, vector<16x256xf32>
      tpu.vector_store %arg7[%c0_10, %c0_11], %12 {strides = array<i32>} : memref<16x256xf32, #tpu.memory_space<vmem>>, vector<16x256xf32>,
    } else {
    }
    %c0 = arith.constant 0 : index
    %c0_1 = arith.constant 0 : index
    %3 = vector.load %arg7[%c0, %c0_1] : memref<16x256xf32, #tpu.memory_space<vmem>>, vector<16x256xf32>
    %c0_2 = arith.constant 0 : index
    %c0_3 = arith.constant 0 : index
    %4 = vector.load %arg3[%c0_2, %c0_3] : memref<16x512xbf16, #tpu.memory_space<vmem>>, vector<16x512xbf16>
    %c0_4 = arith.constant 0 : index
    %c0_5 = arith.constant 0 : index
    %5 = vector.load %arg4[%c0_4, %c0_5] : memref<512x256xbf16, #tpu.memory_space<vmem>>, vector<512x256xbf16>
    %cst = arith.constant dense<0.000000e+00> : vector<16x256xf32>
    %6 = tpu.matmul %4, %5, %cst {dimension_numbers = #tpu.dot_dimension_numbers<[1], [0], [0], [1], [0, 0, 1, 1], [], []>} : vector<16x512xbf16>, vector<512x256xbf16>, vector<16x256xf32> -> vector<16x256xf32>
    %7 = arith.addf %3, %6 : vector<16x256xf32>
    %c0_6 = arith.constant 0 : index
    %c0_7 = arith.constant 0 : index
    %8 = vector.load %arg7[%c0_6, %c0_7] : memref<16x256xf32, #tpu.memory_space<vmem>>, vector<16x256xf32>
    tpu.vector_store %arg7[%c0_6, %c0_7], %7 {strides = array<i32>} : memref<16x256xf32, #tpu.memory_space<vmem>>, vector<16x256xf32>,
    %c7_i32 = arith.constant 7 : i32
    %9 = arith.cmpi eq, %arg2, %c7_i32 : i32
    %10 = arith.extui %9 : i1 to i32
    %c0_i32_8 = arith.constant 0 : i32
    %11 = arith.cmpi ne, %10, %c0_i32_8 : i32
    scf.if %11 {
      %c0_9 = arith.constant 0 : index
      %c0_10 = arith.constant 0 : index
      %12 = vector.load %arg7[%c0_9, %c0_10] : memref<16x256xf32, #tpu.memory_space<vmem>>, vector<16x256xf32>
      %c0_11 = arith.constant 0 : index
      %c0_12 = arith.constant 0 : index
      %13 = vector.load %arg5[%c0_11, %c0_12] : memref<1x256xf32, #tpu.memory_space<vmem>>, vector<1x256xf32>
      %14 = vector.broadcast %13 : vector<1x256xf32> to vector<16x256xf32>
      %15 = arith.addf %12, %14 : vector<16x256xf32>
      %cst_13 = arith.constant 0.000000e+00 : f32
      %16 = vector.broadcast %cst_13 : f32 to vector<16x256xf32>
      %17 = arith.maximumf %15, %16 : vector<16x256xf32>
      %c0_14 = arith.constant 0 : index
      %c0_15 = arith.constant 0 : index
      %18 = vector.load %arg6[%c0_14, %c0_15] : memref<16x256xf32, #tpu.memory_space<vmem>>, vector<16x256xf32>
      tpu.vector_store %arg6[%c0_14, %c0_15], %17 {strides = array<i32>} : memref<16x256xf32, #tpu.memory_space<vmem>>, vector<16x256xf32>,
    } else {
    }
    return
  }
  func.func @transform_0(%arg0: i32, %arg1: i32, %arg2: i32) -> (i32, i32) {
    %c0_i32 = arith.constant 0 : i32
    return %arg0, %arg2 : i32, i32
  }
  func.func @transform_1(%arg0: i32, %arg1: i32, %arg2: i32) -> (i32, i32) {
    %c0_i32 = arith.constant 0 : i32
    return %arg2, %arg1 : i32, i32
  }
  func.func @transform_2(%arg0: i32, %arg1: i32, %arg2: i32) -> (i32, i32) {
    %c0_i32 = arith.constant 0 : i32
    %c0_i32_0 = arith.constant 0 : i32
    return %c0_i32, %arg1 : i32, i32
  }
  func.func @transform_3(%arg0: i32, %arg1: i32, %arg2: i32) -> (i32, i32) {
    %c0_i32 = arith.constant 0 : i32
    return %arg0, %arg1 : i32, i32
  }
}

module attributes {stable_mosaic.version = 11 : i64} {
  func.func @_matmul_bias_kernel(%arg0: i32, %arg1: i32, %arg2: i32, %arg3: memref<16x512xbf16, #tpu.memory_space<vmem>>, %arg4: memref<512x128xbf16, #tpu.memory_space<vmem>>, %arg5: memref<1x128xf32, #tpu.memory_space<vmem>>, %arg6: memref<16x128xf32, #tpu.memory_space<vmem>>, %arg7: memref<16x128xf32, #tpu.memory_space<vmem>>) attributes {dimension_semantics = [#tpu.dimension_semantics<parallel>, #tpu.dimension_semantics<parallel>, #tpu.dimension_semantics<arbitrary>], iteration_bounds = array<i64: 1, 1, 8>, scalar_prefetch = 0 : i64, scratch_operands = 1 : i64, tpu.core_type = #tpu.core_type<tc>, window_params = [{transform_indices = @transform_0, window_bounds = array<i64: 16, 512>}, {transform_indices = @transform_1, window_bounds = array<i64: 512, 128>}, {transform_indices = @transform_2, window_bounds = array<i64: 1, 128>}, {transform_indices = @transform_3, window_bounds = array<i64: 16, 128>}]} {
    %c0_i32 = arith.constant 0 : i32
    %0 = arith.cmpi eq, %arg2, %c0_i32 : i32
    %1 = arith.extui %0 : i1 to i32
    %c0_i32_0 = arith.constant 0 : i32
    %2 = arith.cmpi ne, %1, %c0_i32_0 : i32
    scf.if %2 {
      %cst_9 = arith.constant 0.000000e+00 : f32
      %12 = vector.broadcast %cst_9 : f32 to vector<16x128xf32>
      %c0_10 = arith.constant 0 : index
      %c0_11 = arith.constant 0 : index
      %13 = vector.load %arg7[%c0_10, %c0_11] : memref<16x128xf32, #tpu.memory_space<vmem>>, vector<16x128xf32>
      tpu.vector_store %arg7[%c0_10, %c0_11], %12 {strides = array<i32>} : memref<16x128xf32, #tpu.memory_space<vmem>>, vector<16x128xf32>,
    } else {
    }
    %c0 = arith.constant 0 : index
    %c0_1 = arith.constant 0 : index
    %3 = vector.load %arg7[%c0, %c0_1] : memref<16x128xf32, #tpu.memory_space<vmem>>, vector<16x128xf32>
    %c0_2 = arith.constant 0 : index
    %c0_3 = arith.constant 0 : index
    %4 = vector.load %arg3[%c0_2, %c0_3] : memref<16x512xbf16, #tpu.memory_space<vmem>>, vector<16x512xbf16>
    %c0_4 = arith.constant 0 : index
    %c0_5 = arith.constant 0 : index
    %5 = vector.load %arg4[%c0_4, %c0_5] : memref<512x128xbf16, #tpu.memory_space<vmem>>, vector<512x128xbf16>
    %cst = arith.constant dense<0.000000e+00> : vector<16x128xf32>
    %6 = tpu.matmul %4, %5, %cst {dimension_numbers = #tpu.dot_dimension_numbers<[1], [0], [0], [1], [0, 0, 1, 1], [], []>} : vector<16x512xbf16>, vector<512x128xbf16>, vector<16x128xf32> -> vector<16x128xf32>
    %7 = arith.addf %3, %6 : vector<16x128xf32>
    %c0_6 = arith.constant 0 : index
    %c0_7 = arith.constant 0 : index
    %8 = vector.load %arg7[%c0_6, %c0_7] : memref<16x128xf32, #tpu.memory_space<vmem>>, vector<16x128xf32>
    tpu.vector_store %arg7[%c0_6, %c0_7], %7 {strides = array<i32>} : memref<16x128xf32, #tpu.memory_space<vmem>>, vector<16x128xf32>,
    %c7_i32 = arith.constant 7 : i32
    %9 = arith.cmpi eq, %arg2, %c7_i32 : i32
    %10 = arith.extui %9 : i1 to i32
    %c0_i32_8 = arith.constant 0 : i32
    %11 = arith.cmpi ne, %10, %c0_i32_8 : i32
    scf.if %11 {
      %c0_9 = arith.constant 0 : index
      %c0_10 = arith.constant 0 : index
      %12 = vector.load %arg7[%c0_9, %c0_10] : memref<16x128xf32, #tpu.memory_space<vmem>>, vector<16x128xf32>
      %c0_11 = arith.constant 0 : index
      %c0_12 = arith.constant 0 : index
      %13 = vector.load %arg5[%c0_11, %c0_12] : memref<1x128xf32, #tpu.memory_space<vmem>>, vector<1x128xf32>
      %14 = vector.broadcast %13 : vector<1x128xf32> to vector<16x128xf32>
      %15 = arith.addf %12, %14 : vector<16x128xf32>
      %c0_13 = arith.constant 0 : index
      %c0_14 = arith.constant 0 : index
      %16 = vector.load %arg6[%c0_13, %c0_14] : memref<16x128xf32, #tpu.memory_space<vmem>>, vector<16x128xf32>
      tpu.vector_store %arg6[%c0_13, %c0_14], %15 {strides = array<i32>} : memref<16x128xf32, #tpu.memory_space<vmem>>, vector<16x128xf32>,
    } else {
    }
    return
  }
  func.func @transform_0(%arg0: i32, %arg1: i32, %arg2: i32) -> (i32, i32) {
    %c0_i32 = arith.constant 0 : i32
    return %arg0, %arg2 : i32, i32
  }
  func.func @transform_1(%arg0: i32, %arg1: i32, %arg2: i32) -> (i32, i32) {
    %c0_i32 = arith.constant 0 : i32
    return %arg2, %arg1 : i32, i32
  }
  func.func @transform_2(%arg0: i32, %arg1: i32, %arg2: i32) -> (i32, i32) {
    %c0_i32 = arith.constant 0 : i32
    %c0_i32_0 = arith.constant 0 : i32
    return %c0_i32, %arg1 : i32, i32
  }
  func.func @transform_3(%arg0: i32, %arg1: i32, %arg2: i32) -> (i32, i32) {
    %c0_i32 = arith.constant 0 : i32
    return %arg0, %arg1 : i32, i32
  }
}

</mosaic_0001>

<bundles_post_ra>
// kernel: alexnet_forward.11
= control target key start
LH: loop header
LB: loop body
LE: loop exit
PB: predicated region body
PF: predicated region fallthrough
CT: control target
= control target key end

     0   :  { %s2606_s12 = smov 0   ;;  %s2608_s13 = smov 0   ;;  %s3566_s0 = inlined_call_operand.vmem [shape: bf16[512,384], index: 0, kind: input, shape index: {}]   ;;  %s3567_s1 = inlined_call_operand.vmem [shape: bf16[384,128], index: 1, kind: input, shape index: {}]   ;;  %s3568_s2 = inlined_call_operand.vmem [shape: f32[1,128], index: 2, kind: input, shape index: {}]   ;;  %s3569_s3 = inlined_call_operand.vmem [shape: f32[512,128], index: 3, kind: output, shape index: {}]  }
   0x1   :  { %s2610_s14 = smov 0  }
   0x2 LB: > { %s32_s15 = sadd.s32 1, %s2579_s13  ;;  %p2039_p0 = scmp.ge.s32.totalorder %s2583_s14, 1  ;;  %s2583_s14 = sphi %s2610_s14, %s13_s14   ;;  %s2579_s13 = sphi %s2608_s13, %s3619_s13   ;;  %s2575_s12 = sphi %s2606_s12, %s3618_s12  }
   0x3   : > { %p34_p1 = scmp.ge.s32.totalorder %s32_s15, 2  ;;  %p191_p2 = scmp.lt.s32.totalorder %s2583_s14, 3 }
   0x5   : > { %s3621_s15 = smov (%p34_p1, %s32_s15), 0  ;;  %p192_p3 = pnand %p2039_p0, %p191_p2 }
   0x7   : > { %195 = sbr.rel (%p192_p3) target bundleno = 553 (0x229), region = 32 }
   0xe   : > { %v2345_v0 = vld [vmem:[%s3567_s1 + $0x40] sm:$0xff]   ;;  %s2040_s18 = sshll.u32 %s2575_s12, 5  ;;  %v2347_v2 = vld [vmem:[%s3567_s1 + $0x48] sm:$0xff]   ;;  %v2349_v4 = vld [vmem:[%s3567_s1 + $0x50] sm:$0xff]   ;;  %s2585_s25 = smov 1  }
   0xf   : > { %v2346_v1 = vld [vmem:[%s3567_s1] sm:$0xff]   ;;  %2119 = vmatprep.subr.bf16.mxu0 %v2345_v0  ;;  %2303 = vmatprep.subr.bf16.mxu1 %v2345_v0  ;;  %p236_p4 = scmp.lt.s32.totalorder %s2040_s18, 63  ;;  %v2348_v3 = vld [vmem:[%s3567_s1 + $0x8] sm:$0xff]   ;;  %v2350_v5 = vld [vmem:[%s3567_s1 + $0x10] sm:$0xff]  }
  0x10   : > { %2120 = vmatpush3.bf16.msra.mxu0 %v2346_v1  ;;  %2311 = vmatpush3.bf16.msra.mxu1 %v2346_v1  ;;  %v2351_v6 = vld [vmem:[%s3567_s1 + $0x58] sm:$0xff]   ;;  %v2353_v8 = vld [vmem:[%s3567_s1 + $0x60] sm:$0xff]   ;;  %v2355_v10 = vld [vmem:[%s3567_s1 + $0x68] sm:$0xff]  }
  0x11   : > { %2121 = vmatprep.subr.bf16.mxu0 %v2347_v2  ;;  %2304 = vmatprep.subr.bf16.mxu1 %v2347_v2  ;;  %s3623_s18 = smov (!%p236_p4, %s2040_s18), 63  ;;  %v2352_v7 = vld [vmem:[%s3567_s1 + $0x18] sm:$0xff]   ;;  %v2354_v9 = vld [vmem:[%s3567_s1 + $0x20] sm:$0xff]   ;;  %v2356_v13 = vld [vmem:[%s3567_s1 + $0x28] sm:$0xff]  }
  0x12   : > { %s2319_s4 = smul.u32 12, %s3623_s18  ;;  %v2357_v14 = vld [vmem:[%s3567_s1 + $0x70] sm:$0xff]   ;;  %v2359_v16 = vld [vmem:[%s3567_s1 + $0x78] sm:$0xff]   ;;  %v2367_v18 = vld [vmem:[%s3567_s1 + $0x80] sm:$0xff]   ;;  %s2043_s26 = sshll.u32 %s3623_s18, 3 }
  0x13   : > { %v2358_v15 = vld [vmem:[%s3567_s1 + $0x30] sm:$0xff]   ;;  %v2360_v17 = vld [vmem:[%s3567_s1 + $0x38] sm:$0xff]   ;;  %v2368_v22 = vld [vmem:[%s3567_s1 + $0x88] sm:$0xff]   ;;  %s3166_s28 = scalar_lea.vmem %s3569_s3, %s2043_s26 }
  0x14   : > { %2122 = vmatpush3.bf16.msra.mxu0 %v2348_v3  ;;  %2312 = vmatpush3.bf16.msra.mxu1 %v2348_v3  ;;  %s2657_s11 = scalar_lea.vmem %s3566_s0, %s2319_s4  ;;  %v2375_v25 = vld [vmem:[%s3567_s1 + $0x90] sm:$0xff]   ;;  %v2376_v27 = vld [vmem:[%s3567_s1 + $0x98] sm:$0xff]   ;;  %v2383_v30 = vld [vmem:[%s3567_s1 + $0xa0] sm:$0xff]  }
  0x15   : > { %2123 = vmatprep.subr.bf16.mxu0 %v2349_v4  ;;  %2305 = vmatprep.subr.bf16.mxu1 %v2349_v4  ;;  %v2363_v11 = vld [vmem:[%s2657_s11 + $0x4] ss:$12 sps:$4 sm:$0xff]   ;;  %v2361_v19 = vld [vmem:[%s2657_s11] ss:$12 sps:$4 sm:$0xff]   ;;  %v2369_v21 = vld [vmem:[%s2657_s11 + $0x1c] ss:$12 sps:$4 sm:$0xff]  }
  0x16   : > { %v2366_v12 = vld [vmem:[%s2657_s11 + $0x124] ss:$12 sps:$4 sm:$0xff]   ;;  %880 = vmatprep.mubr.bf16.mxu0 %v2363_v11  ;;  %v2364_v20 = vld [vmem:[%s2657_s11 + $0x120] ss:$12 sps:$4 sm:$0xff]   ;;  %v2371_v23 = vld [vmem:[%s2657_s11 + $0x13c] ss:$12 sps:$4 sm:$0xff]  }
  0x17   : > { %976 = vmatprep.mubr.bf16.mxu1 %v2366_v12  ;;  %v2373_v24 = vld [vmem:[%s2657_s11 + $0x18] ss:$12 sps:$4 sm:$0xff]   ;;  %v2377_v28 = vld [vmem:[%s2657_s11 + $0x34] ss:$12 sps:$4 sm:$0xff]   ;;  %v2381_v31 = vld [vmem:[%s2657_s11 + $0x30] ss:$12 sps:$4 sm:$0xff]  }
  0x18   : > { %2124 = vmatpush3.bf16.msra.mxu0 %v2350_v5  ;;  %2313 = vmatpush3.bf16.msra.mxu1 %v2350_v5  ;;  %v2374_v26 = vld [vmem:[%s2657_s11 + $0x138] ss:$12 sps:$4 sm:$0xff]   ;;  %v2379_v29 = vld [vmem:[%s2657_s11 + $0x154] ss:$12 sps:$4 sm:$0xff]   ;;  %v2382_v32 = vld [vmem:[%s2657_s11 + $0x150] ss:$12 sps:$4 sm:$0xff]  }
  0x19   : > { %2125 = vmatprep.subr.bf16.mxu0 %v2351_v6  ;;  %2306 = vmatprep.subr.bf16.mxu1 %v2351_v6  ;;  %v2384_v33 = vld [vmem:[%s3567_s1 + $0xa8] sm:$0xff]   ;;  %v2391_v36 = vld [vmem:[%s3567_s1 + $0xb0] sm:$0xff]   ;;  %v2392_v40 = vld [vmem:[%s3567_s1 + $0xb8] sm:$0xff]  }
  0x1a   : > { %v2385_v34 = vld [vmem:[%s2657_s11 + $0x4c] ss:$12 sps:$4 sm:$0xff]   ;;  %v2389_v37 = vld [vmem:[%s2657_s11 + $0x48] ss:$12 sps:$4 sm:$0xff]   ;;  %v2393_v39 = vld [vmem:[%s2657_s11 + $0x64] ss:$12 sps:$4 sm:$0xff]  }
  0x1b   : > { %v2387_v35 = vld [vmem:[%s2657_s11 + $0x16c] ss:$12 sps:$4 sm:$0xff]   ;;  %v2390_v38 = vld [vmem:[%s2657_s11 + $0x168] ss:$12 sps:$4 sm:$0xff]   ;;  %v2402_v47 = vld [vmem:[%s2657_s11 + $0x50] ss:$12 sps:$4 sm:$0xff]  }
  0x1c   : > { %2126 = vmatpush3.bf16.msra.mxu0 %v2352_v7  ;;  %2314 = vmatpush3.bf16.msra.mxu1 %v2352_v7  ;;  %v2395_v41 = vld [vmem:[%s2657_s11 + $0x8] ss:$12 sps:$4 sm:$0xff]   ;;  %v2396_v42 = vld [vmem:[%s2657_s11 + $0x60] ss:$12 sps:$4 sm:$0xff]   ;;  %v2400_v45 = vld [vmem:[%s2657_s11 + $0x38] ss:$12 sps:$4 sm:$0xff]  }
  0x1d   : > { %2127 = vmatprep.subr.bf16.mxu0 %v2353_v8  ;;  %2307 = vmatprep.subr.bf16.mxu1 %v2353_v8  ;;  %v2397_v43 = vld [vmem:[%s2657_s11 + $0x20] ss:$12 sps:$4 sm:$0xff]   ;;  %v2398_v44 = vld [vmem:[%s2657_s11 + $0x7c] ss:$12 sps:$4 sm:$0xff]   ;;  %v2401_v46 = vld [vmem:[%s2657_s11 + $0x78] ss:$12 sps:$4 sm:$0xff]  }
  0x1e   : > { %v2403_v48 = vld [vmem:[%s2657_s11 + $0x94] ss:$12 sps:$4 sm:$0xff]   ;;  %v2406_v50 = vld [vmem:[%s2657_s11 + $0x90] ss:$12 sps:$4 sm:$0xff]   ;;  %v2408_v52 = vld [vmem:[%s2657_s11 + $0xac] ss:$12 sps:$4 sm:$0xff]  }
  0x1f   : > { %v2405_v49 = vld [vmem:[%s2657_s11 + $0x68] ss:$12 sps:$4 sm:$0xff]   ;;  %v2407_v51 = vld [vmem:[%s2657_s11 + $0x80] ss:$12 sps:$4 sm:$0xff]   ;;  %v2410_v53 = vld [vmem:[%s2657_s11 + $0x98] ss:$12 sps:$4 sm:$0xff]  }
  0x20   : > { %2128 = vmatpush3.bf16.msra.mxu0 %v2354_v9  ;;  %2315 = vmatpush3.bf16.msra.mxu1 %v2354_v9  ;;  %v2411_v54 = vld [vmem:[%s2657_s11 + $0xa8] ss:$12 sps:$4 sm:$0xff]   ;;  %v2412_v55 = vld [vmem:[%s2657_s11 + $0xb0] ss:$12 sps:$4 sm:$0xff]   ;;  %v2416_v58 = vld [vmem:[%s2657_s11 + $0xc0] ss:$12 sps:$4 sm:$0xff]  }
  0x21   : > { %2129 = vmatprep.subr.bf16.mxu0 %v2355_v10  ;;  %2308 = vmatprep.subr.bf16.mxu1 %v2355_v10  ;;  %v2413_v56 = vld [vmem:[%s2657_s11 + $0xc4] ss:$12 sps:$4 sm:$0xff]   ;;  %v2415_v57 = vld [vmem:[%s2657_s11 + $0xc8] ss:$12 sps:$4 sm:$0xff]   ;;  %v2417_v59 = vld [vmem:[%s2657_s11 + $0xe0] ss:$12 sps:$4 sm:$0xff]  }
  0x22   : > { %v2418_v60 = vld [vmem:[%s2657_s11 + $0xdc] ss:$12 sps:$4 sm:$0xff]   ;;  %v2420_v61 = vld [vmem:[%s2657_s11 + $0xf8] ss:$12 sps:$4 sm:$0xff]   ;;  %v2423_v0 = vld [vmem:[%s2657_s11 + $0xf4] ss:$12 sps:$4 sm:$0xff]  }
  0x23   : > { %v2421_v62 = vld [vmem:[%s2657_s11 + $0xd8] ss:$12 sps:$4 sm:$0xff]   ;;  %v2422_v63 = vld [vmem:[%s2657_s11 + $0x110] ss:$12 sps:$4 sm:$0xff]   ;;  %v2425_v1 = vld [vmem:[%s2657_s11 + $0x128] ss:$12 sps:$4 sm:$0xff]  }
  0x24   : > { %2130 = vmatpush3.bf16.msra.mxu0 %v2356_v13  ;;  %2316 = vmatpush3.bf16.msra.mxu1 %v2356_v13  ;;  %v2426_v2 = vld [vmem:[%s2657_s11 + $0xf0] ss:$12 sps:$4 sm:$0xff]   ;;  %v2427_v3 = vld [vmem:[%s2657_s11 + $0x140] ss:$12 sps:$4 sm:$0xff]   ;;  %v2430_v5 = vld [vmem:[%s2657_s11 + $0x158] ss:$12 sps:$4 sm:$0xff]  }
  0x25   : > { %2131 = vmatprep.subr.bf16.mxu0 %v2357_v14  ;;  %2309 = vmatprep.subr.bf16.mxu1 %v2357_v14  ;;  %v2428_v4 = vld [vmem:[%s2657_s11 + $0x10c] ss:$12 sps:$4 sm:$0xff]   ;;  %v2431_v6 = vld [vmem:[%s2657_s11 + $0x108] ss:$12 sps:$4 sm:$0xff]   ;;  %v2432_v7 = vld [vmem:[%s2657_s11 + $0x170] ss:$12 sps:$4 sm:$0xff]  }
  0x28   : > { %2132 = vmatpush3.bf16.msra.mxu0 %v2358_v15  ;;  %2317 = vmatpush3.bf16.msra.mxu1 %v2358_v15 }
  0x29   : > { %2133 = vmatprep.subr.bf16.mxu0 %v2359_v16  ;;  %2310 = vmatprep.subr.bf16.mxu1 %v2359_v16 }
  0x2c   : > { %2134 = vmatpush3.bf16.msra.mxu0 %v2360_v17  ;;  %2318 = vmatpush3.bf16.msra.mxu1 %v2360_v17 }
  0x2d   : > { %2255 = vmatprep.subr.bf16.mxu1 %v2367_v18 }
  0x2f   : > { %881 = vmatmul.mubr.bf16.vlgmr.msra.gmra.mrb[0].mxu0 %v2361_v19  ;;  %977 = vmatmul.mubr.bf16.vlgmr.msra.gmra.mrb[0].mxu1 %v2364_v20 }
  0x30   : > { %2256 = vmatpush3.bf16.msra.mxu1 %v2367_v18  ;;  %888 = vmatprep.mubr.bf16.mxu0 %v2369_v21 }
  0x31   : > { %2257 = vmatprep.subr.bf16.mxu1 %v2368_v22  ;;  %984 = vmatprep.mubr.bf16.mxu1 %v2371_v23 }
  0x34   : > { %2258 = vmatpush3.bf16.msra.mxu1 %v2368_v22 }
  0x35   : > { %2259 = vmatprep.subr.bf16.mxu1 %v2375_v25 }
  0x37   : > { %889 = vmatmul.mubr.bf16.gmra.mrb[4].mxu0 %v2373_v24  ;;  %985 = vmatmul.mubr.bf16.gmra.mrb[4].mxu1 %v2374_v26 }
  0x38   : > { %2260 = vmatpush3.bf16.msra.mxu1 %v2375_v25  ;;  %896 = vmatprep.mubr.bf16.mxu0 %v2377_v28 }
  0x39   : > { %2261 = vmatprep.subr.bf16.mxu1 %v2376_v27  ;;  %992 = vmatprep.mubr.bf16.mxu1 %v2379_v29 }
  0x3c   : > { %2262 = vmatpush3.bf16.msra.mxu1 %v2376_v27 }
  0x3d   : > { %2263 = vmatprep.subr.bf16.mxu1 %v2383_v30 }
  0x3f   : > { %897 = vmatmul.mubr.bf16.gmra.mrb[8].mxu0 %v2381_v31  ;;  %993 = vmatmul.mubr.bf16.gmra.mrb[8].mxu1 %v2382_v32 }
  0x40   : > { %2264 = vmatpush3.bf16.msra.mxu1 %v2383_v30  ;;  %904 = vmatprep.mubr.bf16.mxu0 %v2385_v34 }
  0x41   : > { %2265 = vmatprep.subr.bf16.mxu1 %v2384_v33  ;;  %1000 = vmatprep.mubr.bf16.mxu1 %v2387_v35 }
  0x44   : > { %2266 = vmatpush3.bf16.msra.mxu1 %v2384_v33 }
  0x45   : > { %2267 = vmatprep.subr.bf16.mxu1 %v2391_v36 }
  0x47   : > { %905 = vmatmul.mubr.bf16.gmra.mrb[12].mxu0 %v2389_v37  ;;  %1001 = vmatmul.mubr.bf16.gmra.mrb[12].mxu1 %v2390_v38 }
  0x48   : > { %2268 = vmatpush3.bf16.msra.mxu1 %v2391_v36  ;;  %912 = vmatprep.mubr.bf16.mxu0 %v2393_v39 }
  0x49   : > { %2269 = vmatprep.subr.bf16.mxu1 %v2392_v40  ;;  %2271 = vmatprep.mubr.bf16.mxu1 %v2395_v41 }
  0x4c   : > { %2270 = vmatpush3.bf16.msra.mxu1 %v2392_v40 }
  0x4f   : > { %913 = vmatmul.mubr.bf16.gmra.mrb[16].mxu0 %v2396_v42  ;;  %2272 = vmatmul.mubr.bf16.vlgmr.msra.gmra.mrb[16].mxu1 %v2397_v43 }
  0x50   : > { %920 = vmatprep.mubr.bf16.mxu0 %v2398_v44  ;;  %2275 = vmatprep.mubr.bf16.mxu1 %v2400_v45 }
  0x57   : > { %921 = vmatmul.mubr.bf16.gmra.mrb[20].mxu0 %v2401_v46  ;;  %2276 = vmatmul.mubr.bf16.gmra.mrb[20].mxu1 %v2402_v47 }
  0x58   : > { %928 = vmatprep.mubr.bf16.mxu0 %v2403_v48  ;;  %2279 = vmatprep.mubr.bf16.mxu1 %v2405_v49 }
  0x5f   : > { %929 = vmatmul.mubr.bf16.gmra.mrb[24].mxu0 %v2406_v50  ;;  %2280 = vmatmul.mubr.bf16.gmra.mrb[24].mxu1 %v2407_v51 }
  0x60   : > { %936 = vmatprep.mubr.bf16.mxu0 %v2408_v52  ;;  %2283 = vmatprep.mubr.bf16.mxu1 %v2410_v53 }
  0x67   : > { %937 = vmatmul.mubr.bf16.gmra.mrb[28].mxu0 %v2411_v54  ;;  %2284 = vmatmul.mubr.bf16.gmra.mrb[28].mxu1 %v2412_v55 }
  0x68   : > { %944 = vmatprep.mubr.bf16.mxu0 %v2413_v56  ;;  %2287 = vmatprep.mubr.bf16.mxu1 %v2415_v57 }
  0x6f   : > { %945 = vmatmul.mubr.bf16.gmra.mrb[32].mxu0 %v2416_v58  ;;  %2288 = vmatmul.mubr.bf16.gmra.mrb[32].mxu1 %v2417_v59  ;;  %v2771_v58 = vld [vmem:[%s3568_s2] ss:$0 sm:$0xff] }
  0x70   : > { %952 = vmatprep.mubr.bf16.mxu0 %v2418_v60  ;;  %2291 = vmatprep.mubr.bf16.mxu1 %v2420_v61 }
  0x77   : > { %953 = vmatmul.mubr.bf16.gmra.mrb[36].mxu0 %v2421_v62  ;;  %2292 = vmatmul.mubr.bf16.gmra.mrb[36].mxu1 %v2422_v63 }
  0x78   : > { %960 = vmatprep.mubr.bf16.mxu0 %v2423_v0  ;;  %2295 = vmatprep.mubr.bf16.mxu1 %v2425_v1 }
  0x7f   : > { %961 = vmatmul.mubr.bf16.gmra.mrb[40].mxu0 %v2426_v2  ;;  %2296 = vmatmul.mubr.bf16.gmra.mrb[40].mxu1 %v2427_v3 }
  0x80   : > { %968 = vmatprep.mubr.bf16.mxu0 %v2428_v4  ;;  %2299 = vmatprep.mubr.bf16.mxu1 %v2430_v5 }
  0x87   : > { %969 = vmatmul.mubr.bf16.gmra.mrb[44].mxu0 %v2431_v6  ;;  %2300 = vmatmul.mubr.bf16.gmra.mrb[44].mxu1 %v2432_v7 }
 0x102   : > { %v2135_v8 = vpop.f32.mrb[0].mxu0  ;;  %v2207_v9 = vpop.f32.mrb[0].mxu1 }
 0x103   : > { %v2136_v10 = vpop.f32.mrb[1].mxu0  ;;  %v2208_v11 = vpop.f32.mrb[1].mxu1 }
 0x104   : > { %v2137_v12 = vadd.f32 %v2136_v10, %v2135_v8  ;;  %v2752_v13 = vadd.f32 %v2208_v11, %v2207_v9  ;;  %v2138_v14 = vpop.f32.mrb[2].mxu0  ;;  %v2210_v15 = vpop.f32.mrb[2].mxu1 }
 0x105   : > { %v2139_v16 = vpop.f32.mrb[3].mxu0  ;;  %v2211_v17 = vpop.f32.mrb[3].mxu1 }
 0x106   : > { %v2140_v18 = vadd.f32 %v2139_v16, %v2138_v14  ;;  %v2754_v19 = vadd.f32 %v2211_v17, %v2210_v15 }
 0x10a   : > { %v2141_v20 = vpop.f32.mrb[4].mxu0  ;;  %v2213_v21 = vpop.f32.mrb[4].mxu1 }
 0x10b   : > { %v2142_v22 = vpop.f32.mrb[5].mxu0  ;;  %v2214_v23 = vpop.f32.mrb[5].mxu1 }
 0x10c   : > { %v2143_v24 = vadd.f32 %v2142_v22, %v2141_v20  ;;  %v2756_v25 = vadd.f32 %v2214_v23, %v2213_v21  ;;  %v2144_v26 = vpop.f32.mrb[6].mxu0  ;;  %v2216_v27 = vpop.f32.mrb[6].mxu1 }
 0x10d   : > { %v2145_v28 = vpop.f32.mrb[7].mxu0  ;;  %v2217_v29 = vpop.f32.mrb[7].mxu1 }
 0x10e   : > { %v2146_v30 = vadd.f32 %v2145_v28, %v2144_v26  ;;  %v2758_v31 = vadd.f32 %v2217_v29, %v2216_v27 }
 0x112   : > { %v2147_v32 = vpop.f32.mrb[8].mxu0  ;;  %v2219_v33 = vpop.f32.mrb[8].mxu1 }
 0x113   : > { %v2148_v34 = vpop.f32.mrb[9].mxu0  ;;  %v2220_v35 = vpop.f32.mrb[9].mxu1 }
 0x114   : > { %v2149_v36 = vadd.f32 %v2148_v34, %v2147_v32  ;;  %v2760_v37 = vadd.f32 %v2220_v35, %v2219_v33  ;;  %v2150_v38 = vpop.f32.mrb[10].mxu0  ;;  %v2222_v39 = vpop.f32.mrb[10].mxu1 }
 0x115   : > { %v2151_v40 = vpop.f32.mrb[11].mxu0  ;;  %v2223_v41 = vpop.f32.mrb[11].mxu1 }
 0x116   : > { %v2152_v42 = vadd.f32 %v2151_v40, %v2150_v38  ;;  %v2762_v43 = vadd.f32 %v2223_v41, %v2222_v39 }
 0x11a   : > { %v2153_v44 = vpop.f32.mrb[12].mxu0  ;;  %v2225_v45 = vpop.f32.mrb[12].mxu1 }
 0x11b   : > { %v2154_v46 = vpop.f32.mrb[13].mxu0  ;;  %v2226_v47 = vpop.f32.mrb[13].mxu1 }
 0x11c   : > { %v2155_v48 = vadd.f32 %v2154_v46, %v2153_v44  ;;  %v2764_v49 = vadd.f32 %v2226_v47, %v2225_v45  ;;  %v2156_v50 = vpop.f32.mrb[14].mxu0  ;;  %v2228_v51 = vpop.f32.mrb[14].mxu1 }
 0x11d   : > { %v2157_v52 = vpop.f32.mrb[15].mxu0  ;;  %v2229_v53 = vpop.f32.mrb[15].mxu1 }
 0x11e   : > { %v2158_v54 = vadd.f32 %v2157_v52, %v2156_v50  ;;  %v2766_v55 = vadd.f32 %v2229_v53, %v2228_v51 }
 0x122   : > { %v2159_v56 = vpop.f32.mrb[16].mxu0  ;;  %v2273_v57 = vpop.f32.mrb[16].mxu1 }
 0x123   : > { %v1052_v59 = vadd.f32 %v2273_v57, %v2143_v24  ;;  %v2160_v60 = vpop.f32.mrb[17].mxu0  ;;  %v1043_v61 = vpop.f32.mrb[17].mxu1 }
 0x124   : > { %v2161_v62 = vadd.f32 %v2160_v60, %v2159_v56  ;;  %v1044_v63 = vadd.f32 %v2137_v12, %v1043_v61  ;;  %v2162_v0 = vpop.f32.mrb[18].mxu0  ;;  %v2274_v1 = vpop.f32.mrb[18].mxu1 }
 0x125   : > { %v1278_v2 = vadd.f32 %v2771_v58, %v1052_v59  ;;  %v1055_v3 = vadd.f32 %v2274_v1, %v2146_v30  ;;  %v2163_v4 = vpop.f32.mrb[19].mxu0  ;;  %v1046_v5 = vpop.f32.mrb[19].mxu1 }
 0x126   : > { %v1276_v6 = vadd.f32 %v2771_v58, %v1044_v63  ;;  %v2164_v7 = vadd.f32 %v2163_v4, %v2162_v0  ;;  %v1047_v8 = vadd.f32 %v2140_v18, %v1046_v5 }
 0x127   : > { %v2775_v9 = vmax.f32 %v1278_v2, 0.0  ;;  %v1279_v10 = vadd.f32 %v2771_v58, %v1055_v3 }
 0x128   : > { %v2778_v11 = vmax.f32 %v1276_v6, 0.0  ;;  %v1277_v14 = vadd.f32 %v2771_v58, %v1047_v8 }
 0x129   : > { %v2781_v12 = vmax.f32 %v1279_v10, 0.0  ;;  %v2785_v15 = vmul.f32 %v2775_v9, %v2775_v9 }
 0x12a   : > { %v2787_v16 = vmax.f32 %v1277_v14, 0.0  ;;  %v2165_v17 = vpop.f32.mrb[20].mxu0  ;;  %v2277_v20 = vpop.f32.mrb[20].mxu1  ;;  %v2791_v18 = vmul.f32 %v2778_v11, %v2778_v11 }
 0x12b   : > { %v1068_v21 = vadd.f32 %v2277_v20, %v2155_v48  ;;  %v2166_v22 = vpop.f32.mrb[21].mxu0  ;;  %v1059_v23 = vpop.f32.mrb[21].mxu1  ;;  %1376 = vrot.lane.b32.xlu1 %v2785_v15, %s2585_s25  ;;  %v2800_v34 = vmul.f32 %v2781_v12, %v2781_v12 }
 0x12c   : > { %v2167_v24 = vadd.f32 %v2166_v22, %v2165_v17  ;;  %v1060_v26 = vadd.f32 %v2149_v36, %v1059_v23  ;;  %v2168_v27 = vpop.f32.mrb[22].mxu0  ;;  %v2278_v28 = vpop.f32.mrb[22].mxu1  ;;  %1372 = vrot.lane.b32.xlu0 %v2791_v18, %s2585_s25  ;;  %v2805_v36 = vmul.f32 %v2787_v16, %v2787_v16 }
 0x12d   : > { %v1282_v29 = vadd.f32 %v2771_v58, %v1068_v21  ;;  %v1071_v30 = vadd.f32 %v2278_v28, %v2158_v54  ;;  %v2169_v32 = vpop.f32.mrb[23].mxu0  ;;  %v1062_v33 = vpop.f32.mrb[23].mxu1 }
 0x12e   : > { %v1280_v35 = vadd.f32 %v2771_v58, %v1060_v26  ;;  %v2170_v38 = vadd.f32 %v2169_v32, %v2168_v27  ;;  %v1063_v39 = vadd.f32 %v2152_v42, %v1062_v33 }
 0x12f   : > { %v2807_v40 = vmax.f32 %v1282_v29, 0.0  ;;  %v1283_v41 = vadd.f32 %v2771_v58, %v1071_v30  ;;  %1378 = vrot.lane.b32.xlu1 %v2800_v34, %s2585_s25 }
 0x130   : > { %v1281_v44 = vadd.f32 %v2771_v58, %v1063_v39  ;;  %1374 = vrot.lane.b32.xlu0 %v2805_v36, %s2585_s25  ;;  %v2821_v46 = vmax.f32 %v1280_v35, 0.0 }
 0x131   : > { %v2815_v45 = vmax.f32 %v1283_v41, 0.0  ;;  %v2819_v42 = vmul.f32 %v2807_v40, %v2807_v40 }
 0x132   : > { %v2171_v47 = vpop.f32.mrb[24].mxu0  ;;  %v2281_v48 = vpop.f32.mrb[24].mxu1  ;;  %v2823_v50 = vmax.f32 %v1281_v44, 0.0 }
 0x133   : > { %v1084_v51 = vadd.f32 %v2281_v48, %v2167_v24  ;;  %v2172_v52 = vpop.f32.mrb[25].mxu0  ;;  %v1075_v53 = vpop.f32.mrb[25].mxu1  ;;  %v2827_v54 = vmul.f32 %v2815_v45, %v2815_v45 }
 0x134   : > { %v2173_v56 = vadd.f32 %v2172_v52, %v2171_v47  ;;  %v1076_v57 = vadd.f32 %v2161_v62, %v1075_v53  ;;  %v2174_v59 = vpop.f32.mrb[26].mxu0  ;;  %v2282_v60 = vpop.f32.mrb[26].mxu1  ;;  %1384 = vrot.lane.b32.xlu0 %v2819_v42, %s2585_s25  ;;  %v2837_v62 = vmul.f32 %v2821_v46, %v2821_v46  ;;  %v2844_v8 = vmul.f32 %v2823_v50, %v2823_v50 }
 0x135   : > { %v1286_v61 = vadd.f32 %v2771_v58, %v1084_v51  ;;  %v1087_v63 = vadd.f32 %v2282_v60, %v2170_v38  ;;  %v2175_v0 = vpop.f32.mrb[27].mxu0  ;;  %v1078_v1 = vpop.f32.mrb[27].mxu1  ;;  %1386 = vrot.lane.b32.xlu1 %v2827_v54, %s2585_s25 }
 0x136   : > { %v1284_v2 = vadd.f32 %v2771_v58, %v1076_v57  ;;  %v2176_v3 = vadd.f32 %v2175_v0, %v2174_v59  ;;  %v1079_v4 = vadd.f32 %v2164_v7, %v1078_v1 }
 0x137   : > { %v2839_v5 = vmax.f32 %v1286_v61, 0.0  ;;  %v1287_v6 = vadd.f32 %v2771_v58, %v1087_v63 }
 0x138   : > { %v1285_v10 = vadd.f32 %v2771_v58, %v1079_v4  ;;  %1380 = vrot.lane.b32.xlu0 %v2837_v62, %s2585_s25  ;;  %v2849_v14 = vmax.f32 %v1284_v2, 0.0 }
 0x139   : > { %v2851_v7 = vmax.f32 %v1287_v6, 0.0  ;;  %1382 = vrot.lane.b32.xlu1 %v2844_v8, %s2585_s25  ;;  %v2857_v17 = vmul.f32 %v2839_v5, %v2839_v5 }
 0x13a   : > { %v2177_v20 = vpop.f32.mrb[28].mxu0  ;;  %v2285_v21 = vpop.f32.mrb[28].mxu1  ;;  %v2859_v22 = vmax.f32 %v1285_v10, 0.0  ;;  %v2871_v35 = vmul.f32 %v2849_v14, %v2849_v14 }
 0x13b   : > { %v2178_v23 = vpop.f32.mrb[29].mxu0  ;;  %v1091_v24 = vpop.f32.mrb[29].mxu1  ;;  %v2863_v26 = vmul.f32 %v2851_v7, %v2851_v7 }
 0x13c   : > { %v2179_v27 = vadd.f32 %v2178_v23, %v2177_v20  ;;  %v1092_v28 = vadd.f32 %v2173_v56, %v1091_v24  ;;  %v2180_v29 = vpop.f32.mrb[30].mxu0  ;;  %v2286_v30 = vpop.f32.mrb[30].mxu1  ;;  %1392 = vrot.lane.b32.xlu0 %v2857_v17, %s2585_s25  ;;  %v2876_v47 = vmul.f32 %v2859_v22, %v2859_v22 }
 0x13d   : > { %v2181_v32 = vpop.f32.mrb[31].mxu0  ;;  %v1094_v33 = vpop.f32.mrb[31].mxu1  ;;  %1394 = vrot.lane.b32.xlu1 %v2863_v26, %s2585_s25 }
 0x13e   : > { %v1100_v38 = vadd.f32 %v2285_v21, %v2179_v27  ;;  %v1288_v39 = vadd.f32 %v2771_v58, %v1092_v28  ;;  %v2182_v41 = vadd.f32 %v2181_v32, %v2180_v29  ;;  %v1095_v44 = vadd.f32 %v2176_v3, %v1094_v33 }
 0x140   : > { %v1290_v48 = vadd.f32 %v2771_v58, %v1100_v38  ;;  %v2879_v51 = vmax.f32 %v1288_v39, 0.0  ;;  %v1103_v52 = vadd.f32 %v2286_v30, %v2182_v41  ;;  %v1289_v53 = vadd.f32 %v2771_v58, %v1095_v44  ;;  %1388 = vrot.lane.b32.xlu0 %v2871_v35, %s2585_s25 }
 0x141   : > { %1390 = vrot.lane.b32.xlu1 %v2876_v47, %s2585_s25 }
 0x142   : > { %v2886_v56 = vmax.f32 %v1290_v48, 0.0  ;;  %v1291_v57 = vadd.f32 %v2771_v58, %v1103_v52  ;;  %v2889_v59 = vmax.f32 %v1289_v53, 0.0  ;;  %v2183_v60 = vpop.f32.mrb[32].mxu0  ;;  %v2289_v61 = vpop.f32.mrb[32].mxu1  ;;  %v2893_v63 = vmul.f32 %v2879_v51, %v2879_v51 }
 0x143   : > { %v2184_v0 = vpop.f32.mrb[33].mxu0  ;;  %v1107_v1 = vpop.f32.mrb[33].mxu1 }
 0x144   : > { %v2895_v2 = vmax.f32 %v1291_v57, 0.0  ;;  %v2185_v3 = vadd.f32 %v2184_v0, %v2183_v60  ;;  %v2186_v4 = vpop.f32.mrb[34].mxu0  ;;  %v2290_v6 = vpop.f32.mrb[34].mxu1  ;;  %1396 = vrot.lane.b32.xlu0 %v2893_v63, %s2585_s25  ;;  %v2901_v10 = vmul.f32 %v2889_v59, %v2889_v59  ;;  %v2907_v27 = vmul.f32 %v2886_v56, %v2886_v56 }
 0x145   : > { %v2187_v20 = vpop.f32.mrb[35].mxu0  ;;  %v1110_v21 = vpop.f32.mrb[35].mxu1 }
 0x146   : > { %v1108_v23 = vadd.f32 %v2185_v3, %v1107_v1  ;;  %v2188_v24 = vadd.f32 %v2187_v20, %v2186_v4  ;;  %1398 = vrot.lane.b32.xlu1 %v2901_v10, %s2585_s25  ;;  %v2914_v30 = vmul.f32 %v2895_v2, %v2895_v2 }
 0x148   : > { %v1292_v28 = vadd.f32 %v2771_v58, %v1108_v23  ;;  %v1111_v29 = vadd.f32 %v2188_v24, %v1110_v21  ;;  %1400 = vrot.lane.b32.xlu0 %v2907_v27, %s2585_s25 }
 0x14a   : > { %v2916_v32 = vmax.f32 %v1292_v28, 0.0  ;;  %v1293_v33 = vadd.f32 %v2771_v58, %v1111_v29  ;;  %v2189_v38 = vpop.f32.mrb[36].mxu0  ;;  %v2919_v39 = vpop.f32.mrb[36].mxu1  ;;  %1402 = vrot.lane.b32.xlu1 %v2914_v30, %s2585_s25 }
 0x14b   : > { %v2190_v41 = vpop.f32.mrb[37].mxu0  ;;  %v1123_v44 = vpop.f32.mrb[37].mxu1 }
 0x14c   : > { %3586 = vst [vmem:[#allocation3_spill] sm:$0xff] %v2916_v32  ;;  %v2923_v48 = vmax.f32 %v1293_v33, 0.0  ;;  %v2191_v52 = vadd.f32 %v2190_v41, %v2189_v38  ;;  %v2192_v53 = vpop.f32.mrb[38].mxu0  ;;  %v2925_v57 = vpop.f32.mrb[38].mxu1  ;;  %v2929_v60 = vmul.f32 %v2916_v32, %v2916_v32 }
 0x14d   : > { %v2193_v0 = vpop.f32.mrb[39].mxu0  ;;  %v1126_v1 = vpop.f32.mrb[39].mxu1 }
 0x14e   : > { %3587 = vst [vmem:[#allocation4_spill] sm:$0xff] %v2923_v48  ;;  %v1116_v3 = vadd.f32 %v2289_v61, %v2191_v52  ;;  %v2194_v4 = vadd.f32 %v2193_v0, %v2192_v53  ;;  %1404 = vrot.lane.b32.xlu0 %v2929_v60, %s2585_s25  ;;  %v2935_v20 = vmul.f32 %v2923_v48, %v2923_v48 }
 0x150   : > { %v1294_v21 = vadd.f32 %v2771_v58, %v1116_v3  ;;  %v1119_v23 = vadd.f32 %v2290_v6, %v2194_v4  ;;  %1406 = vrot.lane.b32.xlu1 %v2935_v20, %s2585_s25 }
 0x152   : > { %v2940_v24 = vmax.f32 %v1294_v21, 0.0  ;;  %v1295_v28 = vadd.f32 %v2771_v58, %v1119_v23  ;;  %v2195_v29 = vpop.f32.mrb[40].mxu0  ;;  %v2297_v61 = vpop.f32.mrb[40].mxu1 }
 0x153   : > { %v1148_v33 = vadd.f32 %v2297_v61, %v2756_v25  ;;  %v2196_v38 = vpop.f32.mrb[41].mxu0  ;;  %v1139_v41 = vpop.f32.mrb[41].mxu1 }
 0x154   : > { %v2944_v52 = vmax.f32 %v1295_v28, 0.0  ;;  %v2197_v53 = vadd.f32 %v2196_v38, %v2195_v29  ;;  %v1140_v0 = vadd.f32 %v2752_v13, %v1139_v41  ;;  %v2198_v3 = vpop.f32.mrb[42].mxu0  ;;  %v2298_v6 = vpop.f32.mrb[42].mxu1  ;;  %v2949_v4 = vmul.f32 %v2940_v24, %v2940_v24 }
 0x155   : > { %v1302_v21 = vadd.f32 %v2771_v58, %v1148_v33  ;;  %v1151_v23 = vadd.f32 %v2298_v6, %v2758_v31  ;;  %v2199_v48 = vpop.f32.mrb[43].mxu0  ;;  %v1142_v32 = vpop.f32.mrb[43].mxu1 }
 0x156   : > { %v1124_v25 = vadd.f32 %v2197_v53, %v1123_v44  ;;  %v1300_v61 = vadd.f32 %v2771_v58, %v1140_v0  ;;  %v2200_v28 = vadd.f32 %v2199_v48, %v2198_v3  ;;  %v1143_v29 = vadd.f32 %v2754_v19, %v1142_v32  ;;  %1408 = vrot.lane.b32.xlu0 %v2949_v4, %s2585_s25 }
 0x157   : > { %v2957_v13 = vmax.f32 %v1302_v21, 0.0  ;;  %v1303_v38 = vadd.f32 %v2771_v58, %v1151_v23  ;;  %v2962_v33 = vmul.f32 %v2944_v52, %v2944_v52 }
 0x158   : > { %v1127_v31 = vadd.f32 %v2200_v28, %v1126_v1  ;;  %v1301_v41 = vadd.f32 %v2771_v58, %v1143_v29  ;;  %v1296_v44 = vadd.f32 %v2771_v58, %v1124_v25  ;;  %v2966_v53 = vmax.f32 %v1300_v61, 0.0 }
 0x159   : > { %3588 = vst [vmem:[#allocation5_spill] sm:$0xff] %v2957_v13  ;;  %v2968_v48 = vmax.f32 %v1303_v38, 0.0  ;;  %1410 = vrot.lane.b32.xlu1 %v2962_v33, %s2585_s25  ;;  %v2974_v19 = vmul.f32 %v2957_v13, %v2957_v13 }
 0x15a   : > { %v2201_v32 = vpop.f32.mrb[44].mxu0  ;;  %v2301_v0 = vpop.f32.mrb[44].mxu1  ;;  %v1297_v3 = vadd.f32 %v2771_v58, %v1127_v31  ;;  %v2977_v1 = vmax.f32 %v1301_v41, 0.0  ;;  %v2987_v13 = vmax.f32 %v1296_v44, 0.0 }
 0x15b   : > { %3589 = vst [vmem:[#allocation6_spill] sm:$0xff] %v2968_v48  ;;  %v1164_v6 = vadd.f32 %v2301_v0, %v2764_v49  ;;  %v2202_v21 = vpop.f32.mrb[45].mxu0  ;;  %v1155_v23 = vpop.f32.mrb[45].mxu1  ;;  %1424 = vrot.lane.b32.xlu0 %v2974_v19, %s2585_s25  ;;  %v2984_v25 = vmul.f32 %v2968_v48, %v2968_v48  ;;  %v2995_v48 = vmul.f32 %v2966_v53, %v2966_v53 }
 0x15c   : > { %3590 = vst [vmem:[#allocation7_spill] sm:$0xff] %v2977_v1  ;;  %v2203_v61 = vadd.f32 %v2202_v21, %v2201_v32  ;;  %v1156_v28 = vadd.f32 %v2760_v37, %v1155_v23  ;;  %v2204_v29 = vpop.f32.mrb[46].mxu0  ;;  %v2302_v38 = vpop.f32.mrb[46].mxu1  ;;  %3591 = vst [vmem:[#allocation8_spill] sm:$0xff] %v2987_v13  ;;  %v3000_v23 = vmax.f32 %v1297_v3, 0.0 }
 0x15d   : > { %v1306_v31 = vadd.f32 %v2771_v58, %v1164_v6  ;;  %v1167_v49 = vadd.f32 %v2302_v38, %v2766_v55  ;;  %v2205_v41 = vpop.f32.mrb[47].mxu0  ;;  %v1158_v0 = vpop.f32.mrb[47].mxu1  ;;  %1426 = vrot.lane.b32.xlu1 %v2984_v25, %s2585_s25  ;;  %v3007_v6 = vmul.f32 %v2977_v1, %v2977_v1 }
 0x15e   : > { %v1132_v32 = vadd.f32 %v2919_v39, %v2203_v61  ;;  %v1304_v37 = vadd.f32 %v2771_v58, %v1156_v28  ;;  %v2206_v21 = vadd.f32 %v2205_v41, %v2204_v29  ;;  %v1159_v44 = vadd.f32 %v2762_v43, %v1158_v0  ;;  %3592 = vst [vmem:[#allocation9_spill] sm:$0xff] %v3000_v23 }
 0x15f   : > { %v1307_v55 = vadd.f32 %v2771_v58, %v1167_v49  ;;  %1420 = vrot.lane.b32.xlu0 %v2995_v48, %s2585_s25  ;;  %v3018_v43 = vmul.f32 %v2987_v13, %v2987_v13 }
 0x160   : > { %v1298_v38 = vadd.f32 %v2771_v58, %v1132_v32  ;;  %v1135_v39 = vadd.f32 %v2925_v57, %v2206_v21  ;;  %v1305_v61 = vadd.f32 %v2771_v58, %v1159_v44  ;;  %v3012_v28 = vmax.f32 %v1304_v37, 0.0 }
 0x161   : > { %1422 = vrot.lane.b32.xlu1 %v3007_v6, %s2585_s25  ;;  %v3027_v57 = vmul.f32 %v3000_v23, %v3000_v23  ;;  %v3045_v32 = vmax.f32 %v1306_v31, 0.0  ;;  %v3053_v21 = vmax.f32 %v1307_v55, 0.0 }
 0x162   : > { %3593 = vst [vmem:[#allocation10_spill] sm:$0xff] %v3012_v28  ;;  %v1299_v3 = vadd.f32 %v2771_v58, %v1135_v39  ;;  %v3021_v29 = vmax.f32 %v1305_v61, 0.0  ;;  %v3029_v49 = vmax.f32 %v1298_v38, 0.0  ;;  %v3035_v41 = vmul.f32 %v3012_v28, %v3012_v28 }
 0x163   : > { %1412 = vrot.lane.b32.xlu0 %v3018_v43, %s2585_s25  ;;  %3597 = vst [vmem:[#allocation14_spill] sm:$0xff] %v3045_v32  ;;  %3598 = vst [vmem:[#allocation15_spill] sm:$0xff] %v3053_v21  ;;  %v3065_v31 = vmul.f32 %v3045_v32, %v3045_v32  ;;  %v3071_v55 = vmul.f32 %v3053_v21, %v3053_v21  ;;  %v1436_v38 = vlaneseq }
 0x164   : > { %3594 = vst [vmem:[#allocation11_spill] sm:$0xff] %v3021_v29  ;;  %3595 = vst [vmem:[#allocation12_spill] sm:$0xff] %v3029_v49  ;;  %v3037_v0 = vmax.f32 %v1299_v3, 0.0  ;;  %v3043_v58 = vmul.f32 %v3021_v29, %v3021_v29  ;;  %v3051_v37 = vmul.f32 %v3029_v49, %v3029_v49 }
 0x165   : > { %1414 = vrot.lane.b32.xlu1 %v3027_v57, %s2585_s25  ;;  %3600 = vst [vmem:[#allocation17_spill] sm:$0xff] %v3065_v31  ;;  %3601 = vst [vmem:[#allocation18_spill] sm:$0xff] %v3071_v55  ;;  %v3075_v39 = vand.u32 127, %v1436_v38 }
 0x166   : > { %3596 = vst [vmem:[#allocation13_spill] sm:$0xff] %v3037_v0  ;;  %v3059_v44 = vmul.f32 %v3037_v0, %v3037_v0 }
 0x167   : > { %1428 = vrot.lane.b32.xlu0 %v3035_v41, %s2585_s25  ;;  %vm1438_vm0 = vcmp.eq.s32.totalorder %v3075_v39, 0 }
 0x168   : > { %3599 = vst [vmem:[#allocation16_spill] sm:$0xff] %v3059_v44 }
 0x169   : > { %1430 = vrot.lane.b32.xlu1 %v3043_v58, %s2585_s25 }
 0x16b   : > { %1416 = vrot.lane.b32.xlu0 %v3051_v37, %s2585_s25 }
 0x16d   : > { %1418 = vrot.lane.b32.xlu1 %v3059_v44, %s2585_s25 }
 0x16f   : > { %1432 = vrot.lane.b32.xlu0 %v3065_v31, %s2585_s25 }
 0x171   : > { %1434 = vrot.lane.b32.xlu1 %v3071_v55, %s2585_s25 }
 0x19d   : > { %v1377_v61 = vpop.permute.xlu1 %1376 }
 0x19e   : > { %v1441_v3 = vsel %vm1438_vm0, 0.0, %v1377_v61  ;;  %v1373_v32 = vpop.permute.xlu0 %1372 }
 0x19f   : > { %v1473_v0 = vadd.f32 %v1441_v3, %v2785_v15  ;;  %v1439_v49 = vsel %vm1438_vm0, 0.0, %v1373_v32 }
 0x1a0   : > { %v1471_v21 = vadd.f32 %v1439_v49, %v2791_v18 }
 0x1a1   : > { %v1505_v29 = vmul.f32 5e-05, %v1473_v0  ;;  %v1379_v28 = vpop.permute.xlu1 %1378 }
 0x1a2   : > { %v1503_v23 = vmul.f32 5e-05, %v1471_v21  ;;  %v1442_v38 = vsel %vm1438_vm0, 0.0, %v1379_v28  ;;  %v1375_v13 = vpop.permute.xlu0 %1374 }
 0x1a3   : > { %v1537_v55 = vadd.f32 1.0, %v1505_v29  ;;  %v1474_v1 = vadd.f32 %v1442_v38, %v2800_v34  ;;  %v1440_v61 = vsel %vm1438_vm0, 0.0, %v1375_v13 }
 0x1a4   : > { %v1535_v31 = vadd.f32 1.0, %v1503_v23  ;;  %v1472_v15 = vadd.f32 %v1440_v61, %v2805_v36 }
 0x1a5   : > { %2433 = vrsqrt.f32 %v1537_v55  ;;  %v1506_v32 = vmul.f32 5e-05, %v1474_v1 }
 0x1a6   : > { %2435 = vrsqrt.f32 %v1535_v31  ;;  %v1504_v18 = vmul.f32 5e-05, %v1472_v15  ;;  %v1385_v49 = vpop.permute.xlu0 %1384 }
 0x1a7   : > { %v1538_v0 = vadd.f32 1.0, %v1506_v32  ;;  %v1445_v21 = vsel %vm1438_vm0, 0.0, %v1385_v49  ;;  %v1387_v28 = vpop.permute.xlu1 %1386 }
 0x1a8   : > { %v1536_v3 = vadd.f32 1.0, %v1504_v18  ;;  %v1477_v29 = vadd.f32 %v1445_v21, %v2819_v42  ;;  %v1446_v34 = vsel %vm1438_vm0, 0.0, %v1387_v28 }
 0x1a9   : > { %2437 = vrsqrt.f32 %v1538_v0  ;;  %v1478_v13 = vadd.f32 %v1446_v34, %v2827_v54 }
 0x1aa   : > { %2439 = vrsqrt.f32 %v1536_v3  ;;  %v1509_v36 = vmul.f32 5e-05, %v1477_v29  ;;  %v1381_v1 = vpop.permute.xlu0 %1380 }
 0x1ab   : > { %v1510_v23 = vmul.f32 5e-05, %v1478_v13  ;;  %v1443_v31 = vsel %vm1438_vm0, 0.0, %v1381_v1  ;;  %v1383_v55 = vpop.permute.xlu1 %1382 }
 0x1ac   : > { %v1541_v38 = vadd.f32 1.0, %v1509_v36  ;;  %v1475_v61 = vadd.f32 %v1443_v31, %v2837_v62  ;;  %v1444_v42 = vsel %vm1438_vm0, 0.0, %v1383_v55 }
 0x1ad   : > { %v1542_v15 = vadd.f32 1.0, %v1510_v23  ;;  %v1476_v32 = vadd.f32 %v1444_v42, %v2844_v8 }
 0x1ae   : > { %2441 = vrsqrt.f32 %v1541_v38  ;;  %v1507_v18 = vmul.f32 5e-05, %v1475_v61  ;;  %v1393_v54 = vpop.permute.xlu0 %1392 }
 0x1af   : > { %v3102_v49 = vpop.eup %2433  ;;  %2443 = vrsqrt.f32 %v1542_v15  ;;  %v1508_v0 = vmul.f32 5e-05, %v1476_v32  ;;  %v1449_v62 = vsel %vm1438_vm0, 0.0, %v1393_v54  ;;  %v1395_v28 = vpop.permute.xlu1 %1394 }
 0x1b0   : > { %v3104_v21 = vpop.eup %2435  ;;  %2445 = vrsqrt.f32 %v3102_v49  ;;  %v1539_v3 = vadd.f32 1.0, %v1507_v18  ;;  %v1481_v13 = vadd.f32 %v1449_v62, %v2857_v17  ;;  %v1601_v1 = vmul.f32 %v3102_v49, %v2775_v9 }
 0x1b1   : > { %2447 = vrsqrt.f32 %v3104_v21  ;;  %v1540_v34 = vadd.f32 1.0, %v1508_v0  ;;  %vm1647_vm1 = vcmp.eq.f32.partialorder %v3102_v49, inf  ;;  %vm1649_vm2 = vcmp.eq.f32.partialorder %v3102_v49, 0.0 }
 0x1b2   : > { %v1389_v29 = vpop.permute.xlu0 %1388  ;;  %v1650_v23 = vand.u32 2147483648, %v3102_v49  ;;  %v1450_v31 = vsel %vm1438_vm0, 0.0, %v1395_v28  ;;  %v1599_v17 = vmul.f32 %v3104_v21, %v2778_v11  ;;  %v1513_v55 = vmul.f32 5e-05, %v1481_v13 }
 0x1b3   : > { %v3110_v8 = vpop.eup %2437  ;;  %v1447_v9 = vsel %vm1438_vm0, 0.0, %v1389_v29  ;;  %v1391_v38 = vpop.permute.xlu1 %1390  ;;  %vm1633_vm3 = vcmp.eq.f32.partialorder %v3104_v21, inf  ;;  %vm1635_vm4 = vcmp.eq.f32.partialorder %v3104_v21, 0.0  ;;  %v1636_v61 = vand.u32 2147483648, %v3104_v21 }
 0x1b4   : > { %v3113_v36 = vpop.eup %2439  ;;  %2449 = vrsqrt.f32 %v3110_v8  ;;  %v1602_v11 = vmul.f32 %v3110_v8, %v2781_v12  ;;  %vm1654_vm5 = vcmp.eq.f32.partialorder %v3110_v8, inf  ;;  %v1545_v32 = vadd.f32 1.0, %v1513_v55 }
 0x1b5   : > { %2451 = vrsqrt.f32 %v3113_v36  ;;  %v1482_v18 = vadd.f32 %v1450_v31, %v2863_v26  ;;  %vm1656_vm6 = vcmp.eq.f32.partialorder %v3110_v8, 0.0  ;;  %v1479_v0 = vadd.f32 %v1447_v9, %v2871_v35 }
 0x1b6   : > { %2453 = vrsqrt.f32 %v1539_v3  ;;  %v1397_v42 = vpop.permute.xlu0 %1396  ;;  %v1448_v62 = vsel %vm1438_vm0, 0.0, %v1391_v38  ;;  %v1657_v3 = vand.u32 2147483648, %v3110_v8  ;;  %v1600_v12 = vmul.f32 %v3113_v36, %v2787_v16 }
 0x1b7   : > { %2455 = vrsqrt.f32 %v1540_v34  ;;  %v1451_v26 = vsel %vm1438_vm0, 0.0, %v1397_v42  ;;  %vm1640_vm7 = vcmp.eq.f32.partialorder %v3113_v36, inf  ;;  %vm1642_vm8 = vcmp.eq.f32.partialorder %v3113_v36, 0.0 }
 0x1b8   : > { %v3131_v15 = vpop.eup %2441  ;;  %v1643_v13 = vand.u32 2147483648, %v3113_v36  ;;  %v1514_v31 = vmul.f32 5e-05, %v1482_v18  ;;  %v1480_v16 = vadd.f32 %v1448_v62, %v2876_v47  ;;  %v1511_v38 = vmul.f32 5e-05, %v1479_v0 }
 0x1b9   : > { %v3137_v54 = vpop.eup %2443  ;;  %2457 = vrsqrt.f32 %v3131_v15  ;;  %v1605_v9 = vmul.f32 %v3131_v15, %v2807_v40  ;;  %v1483_v42 = vadd.f32 %v1451_v26, %v2893_v63  ;;  %vm1675_vm9 = vcmp.eq.f32.partialorder %v3131_v15, inf }
 0x1ba   : > { %v2446_v28 = vpop.eup %2445  ;;  %2459 = vrsqrt.f32 %v3137_v54  ;;  %v1546_v40 = vadd.f32 1.0, %v1514_v31  ;;  %vm1677_vm10 = vcmp.eq.f32.partialorder %v3131_v15, 0.0  ;;  %v1606_v31 = vmul.f32 %v3137_v54, %v2815_v45 }
 0x1bb   : > { %v2448_v29 = vpop.eup %2447  ;;  %v1646_v34 = vmul.f32 %v2446_v28, %v3102_v49  ;;  %2461 = vrsqrt.f32 %v1545_v32  ;;  %v1399_v28 = vpop.permute.xlu1 %1398  ;;  %vm1682_vm11 = vcmp.eq.f32.partialorder %v3137_v54, inf  ;;  %vm1684_vm12 = vcmp.eq.f32.partialorder %v3137_v54, 0.0 }
 0x1bc   : > { %v1632_v35 = vmul.f32 %v2448_v29, %v3104_v21  ;;  %2463 = vrsqrt.f32 %v1546_v40  ;;  %v1512_v29 = vmul.f32 5e-05, %v1480_v16 }
 0x1bd   : > { %v1648_v55 = vsel %vm1647_vm1, %v3102_v49, %v1646_v34 }
 0x1be   : > { %v2450_v44 = vpop.eup %2449  ;;  %v1651_v47 = vsel %vm1649_vm2, %v1650_v23, %v1648_v55  ;;  %v1634_v32 = vsel %vm1633_vm3, %v3104_v21, %v1632_v35  ;;  %v1543_v21 = vadd.f32 1.0, %v1511_v38  ;;  %v1678_v35 = vand.u32 2147483648, %v3131_v15 }
 0x1bf   : > { %v2452_v18 = vpop.eup %2451  ;;  %v1857_v63 = vmul.f32 %v1651_v47, %v1601_v1  ;;  %v1637_v0 = vsel %vm1635_vm4, %v1636_v61, %v1634_v32  ;;  %v1653_v62 = vmul.f32 %v2450_v44, %v3110_v8  ;;  %v1515_v44 = vmul.f32 5e-05, %v1483_v42 }
 0x1c0   : > { %v3178_v49 = vpop.eup %2453  ;;  %v1855_v23 = vmul.f32 %v1637_v0, %v1599_v17  ;;  %v1639_v26 = vmul.f32 %v2452_v18, %v3113_v36  ;;  %v1544_v40 = vadd.f32 1.0, %v1512_v29  ;;  %v1685_v18 = vand.u32 2147483648, %v3137_v54 }
 0x1c1   : > { %v3181_v34 = vpop.eup %2455  ;;  %1889 = vst [vmem:[%s3166_s28 + $0x10] sm:$0xff] %v1857_v63  ;;  %v1655_v1 = vsel %vm1654_vm5, %v3110_v8, %v1653_v62  ;;  %2465 = vrsqrt.f32 %v3178_v49  ;;  %v1401_v8 = vpop.permute.xlu0 %1400  ;;  %v1603_v62 = vmul.f32 %v3178_v49, %v2821_v46  ;;  %vm1661_vm13 = vcmp.eq.f32.partialorder %v3178_v49, inf }
 0x1c2   : > { %1887 = vst [vmem:[%s3166_s28] sm:$0xff] %v1855_v23  ;;  %v1658_v61 = vsel %vm1656_vm6, %v1657_v3, %v1655_v1  ;;  %v1641_v17 = vsel %vm1640_vm7, %v3113_v36, %v1639_v26  ;;  %2467 = vrsqrt.f32 %v3181_v34  ;;  %v1403_v3 = vpop.permute.xlu1 %1402  ;;  %v1453_v63 = vsel %vm1438_vm0, 0.0, %v1401_v8 }
 0x1c3   : > { %v2458_v16 = vpop.eup %2457  ;;  %v1858_v55 = vmul.f32 %v1658_v61, %v1602_v11  ;;  %v1644_v38 = vsel %vm1642_vm8, %v1643_v13, %v1641_v17  ;;  %2469 = vrsqrt.f32 %v1543_v21  ;;  %v1547_v11 = vadd.f32 1.0, %v1515_v44 }
 0x1c4   : > { %v2460_v42 = vpop.eup %2459  ;;  %v1856_v47 = vmul.f32 %v1644_v38, %v1600_v12  ;;  %v1674_v32 = vmul.f32 %v2458_v16, %v3131_v15  ;;  %v1452_v13 = vsel %vm1438_vm0, 0.0, %v1399_v28  ;;  %v1485_v44 = vadd.f32 %v1453_v63, %v2907_v27 }
 0x1c5   : > { %v3203_v45 = vpop.eup %2461  ;;  %1890 = vst [vmem:[%s3166_s28 + $0x18] sm:$0xff] %v1858_v55  ;;  %v1681_v36 = vmul.f32 %v2460_v42, %v3137_v54  ;;  %v1405_v23 = vpop.permute.xlu0 %1404  ;;  %v1454_v61 = vsel %vm1438_vm0, 0.0, %v1403_v3  ;;  %vm1663_vm14 = vcmp.eq.f32.partialorder %v3178_v49, 0.0  ;;  %v1664_v27 = vand.u32 2147483648, %v3178_v49 }
 0x1c6   : > { %1888 = vst [vmem:[%s3166_s28 + $0x8] sm:$0xff] %v1856_v47  ;;  %v1676_v12 = vsel %vm1675_vm9, %v3131_v15, %v1674_v32  ;;  %2471 = vrsqrt.f32 %v3203_v45  ;;  %v1407_v26 = vpop.permute.xlu1 %1406  ;;  %v1484_v15 = vadd.f32 %v1452_v13, %v2901_v10  ;;  %v3231_v46 = vpop.eup %2463  ;;  %vm1668_vm15 = vcmp.eq.f32.partialorder %v3181_v34, inf }
 0x1c7   : > { %v1679_v0 = vsel %vm1677_vm10, %v1678_v35, %v1676_v12  ;;  %v1683_v28 = vsel %vm1682_vm11, %v3137_v54, %v1681_v36  ;;  %2473 = vrsqrt.f32 %v1544_v40  ;;  %v1486_v35 = vadd.f32 %v1454_v61, %v2914_v30 }
 0x1c8   : > { %v1861_v29 = vmul.f32 %v1679_v0, %v1605_v9  ;;  %v1686_v1 = vsel %vm1684_vm12, %v1685_v18, %v1683_v28  ;;  %2475 = vrsqrt.f32 %v1547_v11  ;;  %v1516_v17 = vmul.f32 5e-05, %v1484_v15 }
 0x1c9   : > { %v1862_v21 = vmul.f32 %v1686_v1, %v1606_v31  ;;  %v1455_v54 = vsel %vm1438_vm0, 0.0, %v1405_v23  ;;  %v1456_v9 = vsel %vm1438_vm0, 0.0, %v1407_v26  ;;  %v1604_v31 = vmul.f32 %v3181_v34, %v2823_v50  ;;  %v1409_v13 = vpop.permute.xlu0 %1408 }
 0x1ca   : > { %1893 = vst [vmem:[%s3166_s28 + $0x30] sm:$0xff] %v1861_v29  ;;  %2477 = vrsqrt.f32 %v3231_v46  ;;  %v1548_v30 = vadd.f32 1.0, %v1516_v17  ;;  %v1517_v55 = vmul.f32 5e-05, %v1485_v44  ;;  %vm1670_vm1 = vcmp.eq.f32.partialorder %v3181_v34, 0.0 }
 0x1cb   : > { %v2466_v10 = vpop.eup %2465  ;;  %1894 = vst [vmem:[%s3166_s28 + $0x38] sm:$0xff] %v1862_v21  ;;  %v1518_v8 = vmul.f32 5e-05, %v1486_v35  ;;  %v1487_v3 = vadd.f32 %v1455_v54, %v2929_v60  ;;  %v1488_v42 = vadd.f32 %v1456_v9, %v2935_v20  ;;  %v1671_v11 = vand.u32 2147483648, %v3181_v34  ;;  %v1411_v29 = vpop.permute.xlu1 %1410 }
 0x1cc   : > { %v1660_v16 = vmul.f32 %v2466_v10, %v3178_v49  ;;  %v2468_v38 = vpop.eup %2467  ;;  %2479 = vrsqrt.f32 %v1548_v30  ;;  %v1549_v32 = vadd.f32 1.0, %v1517_v55  ;;  %v1609_v60 = vmul.f32 %v3203_v45, %v2839_v5 }
 0x1cd   : > { %v1667_v47 = vmul.f32 %v2468_v38, %v3181_v34  ;;  %v3254_v40 = vpop.eup %2469  ;;  %v1519_v20 = vmul.f32 5e-05, %v1487_v3  ;;  %vm1703_vm2 = vcmp.eq.f32.partialorder %v3203_v45, inf  ;;  %vm1705_vm3 = vcmp.eq.f32.partialorder %v3203_v45, 0.0  ;;  %v1425_v54 = vpop.permute.xlu0 %1424 }
 0x1ce   : > { %v1662_v50 = vsel %vm1661_vm13, %v3178_v49, %v1660_v16  ;;  %2481 = vrsqrt.f32 %v3254_v40  ;;  %v1706_v5 = vand.u32 2147483648, %v3203_v45  ;;  %v1550_v23 = vadd.f32 1.0, %v1518_v8 }
 0x1cf   : > { %v1665_v36 = vsel %vm1663_vm14, %v1664_v27, %v1662_v50  ;;  %v1669_v63 = vsel %vm1668_vm15, %v3181_v34, %v1667_v47  ;;  %2483 = vrsqrt.f32 %v1549_v32  ;;  %v1520_v26 = vmul.f32 5e-05, %v1488_v42  ;;  %v1427_v38 = vpop.permute.xlu1 %1426 }
 0x1d0   : > { %v2472_v12 = vpop.eup %2471  ;;  %v1859_v18 = vmul.f32 %v1665_v36, %v1603_v62  ;;  %v1672_v49 = vsel %vm1670_vm1, %v1671_v11, %v1669_v63  ;;  %v1610_v15 = vmul.f32 %v3231_v46, %v2851_v7  ;;  %v1551_v21 = vadd.f32 1.0, %v1519_v20 }
 0x1d1   : > { %v1702_v0 = vmul.f32 %v2472_v12, %v3203_v45  ;;  %v3271_v28 = vpop.eup %2473  ;;  %v1860_v62 = vmul.f32 %v1672_v49, %v1604_v31  ;;  %vm1710_vm4 = vcmp.eq.f32.partialorder %v3231_v46, inf  ;;  %vm1712_vm5 = vcmp.eq.f32.partialorder %v3231_v46, 0.0 }
 0x1d2   : > { %1891 = vst [vmem:[%s3166_s28 + $0x20] sm:$0xff] %v1859_v18  ;;  %v3274_v1 = vpop.eup %2475  ;;  %2485 = vrsqrt.f32 %v3271_v28  ;;  %v1457_v61 = vsel %vm1438_vm0, 0.0, %v1409_v13  ;;  %v1607_v7 = vmul.f32 %v3254_v40, %v2849_v14  ;;  %vm1689_vm6 = vcmp.eq.f32.partialorder %v3254_v40, inf  ;;  %v1421_v18 = vpop.permute.xlu0 %1420 }
 0x1d3   : > { %v1704_v34 = vsel %vm1703_vm2, %v3203_v45, %v1702_v0  ;;  %1892 = vst [vmem:[%s3166_s28 + $0x28] sm:$0xff] %v1860_v62  ;;  %v1713_v45 = vand.u32 2147483648, %v3231_v46  ;;  %2487 = vrsqrt.f32 %v3274_v1  ;;  %v1552_v10 = vadd.f32 1.0, %v1520_v26 }
 0x1d4   : > { %v1707_v44 = vsel %vm1705_vm3, %v1706_v5, %v1704_v34  ;;  %v2478_v17 = vpop.eup %2477  ;;  %2489 = vrsqrt.f32 %v1550_v23  ;;  %vm1691_vm7 = vcmp.eq.f32.partialorder %v3254_v40, 0.0  ;;  %v1489_v27 = vadd.f32 %v1457_v61, %v2949_v4  ;;  %v1423_v5 = vpop.permute.xlu1 %1422 }
 0x1d5   : > { %v1865_v35 = vmul.f32 %v1707_v44, %v1609_v60  ;;  %v1709_v9 = vmul.f32 %v2478_v17, %v3231_v46  ;;  %2491 = vrsqrt.f32 %v1551_v21  ;;  %v1458_v31 = vsel %vm1438_vm0, 0.0, %v1411_v29 }
 0x1d6   : > { %v3296_v16 = vpop.eup %2479  ;;  %v1692_v30 = vand.u32 2147483648, %v3254_v40  ;;  %2493 = vrsqrt.f32 %v1552_v10  ;;  %v1465_v55 = vsel %vm1438_vm0, 0.0, %v1425_v54  ;;  %v1608_v8 = vmul.f32 %v3271_v28, %v2859_v22 }
 0x1d7   : > { %1897 = vst [vmem:[%s3166_s28 + $0x50] sm:$0xff] %v1865_v35  ;;  %v1711_v14 = vsel %vm1710_vm4, %v3231_v46, %v1709_v9  ;;  %vm1696_vm8 = vcmp.eq.f32.partialorder %v3271_v28, inf  ;;  %2495 = vrsqrt.f32 %v3296_v16  ;;  %vm1698_vm9 = vcmp.eq.f32.partialorder %v3271_v28, 0.0 }
 0x1d8   : > { %v1714_v4 = vsel %vm1712_vm5, %v1713_v45, %v1711_v14  ;;  %v2482_v3 = vpop.eup %2481  ;;  %v1521_v50 = vmul.f32 5e-05, %v1489_v27  ;;  %v1490_v47 = vadd.f32 %v1458_v31, %v2962_v33  ;;  %v1699_v36 = vand.u32 2147483648, %v3271_v28 }
 0x1d9   : > { %v1866_v42 = vmul.f32 %v1714_v4, %v1610_v15  ;;  %v1688_v32 = vmul.f32 %v2482_v3, %v3254_v40  ;;  %v1497_v46 = vadd.f32 %v1465_v55, %v2974_v19  ;;  %v1466_v22 = vsel %vm1438_vm0, 0.0, %v1427_v38  ;;  %v3317_v11 = vpop.eup %2483  ;;  %v1413_v55 = vpop.permute.xlu0 %1412 }
 0x1da   : > { %v1611_v60 = vmul.f32 %v3274_v1, %v2879_v51  ;;  %vm1717_vm10 = vcmp.eq.f32.partialorder %v3274_v1, inf  ;;  %vm1719_vm11 = vcmp.eq.f32.partialorder %v3274_v1, 0.0  ;;  %v1553_v33 = vadd.f32 1.0, %v1521_v50 }
 0x1db   : > { %1898 = vst [vmem:[%s3166_s28 + $0x58] sm:$0xff] %v1866_v42  ;;  %v1690_v13 = vsel %vm1689_vm6, %v3254_v40, %v1688_v32  ;;  %v1720_v19 = vand.u32 2147483648, %v3274_v1  ;;  %v1612_v12 = vmul.f32 %v3296_v16, %v2889_v59  ;;  %2497 = vrsqrt.f32 %v3317_v11 }
 0x1dc   : > { %v2486_v20 = vpop.eup %2485  ;;  %v1693_v51 = vsel %vm1691_vm7, %v1692_v30, %v1690_v13  ;;  %v1522_v49 = vmul.f32 5e-05, %v1490_v47  ;;  %v1498_v0 = vadd.f32 %v1466_v22, %v2984_v25  ;;  %vm1724_vm12 = vcmp.eq.f32.partialorder %v3296_v16, inf  ;;  %v1415_v47 = vpop.permute.xlu1 %1414 }
 0x1dd   : > { %v1695_v63 = vmul.f32 %v2486_v20, %v3271_v28  ;;  %v2488_v62 = vpop.eup %2487  ;;  %v1863_v23 = vmul.f32 %v1693_v51, %v1607_v7  ;;  %2499 = vrsqrt.f32 %v1553_v33  ;;  %v1529_v26 = vmul.f32 5e-05, %v1497_v46 }
 0x1de   : > { %v3336_v59 = vpop.eup %2489  ;;  %v1716_v29 = vmul.f32 %v2488_v62, %v3274_v1  ;;  %vm1726_vm13 = vcmp.eq.f32.partialorder %v3296_v16, 0.0  ;;  %v1463_v25 = vsel %vm1438_vm0, 0.0, %v1421_v18  ;;  %v1727_v21 = vand.u32 2147483648, %v3296_v16 }
 0x1df   : > { %v1697_v40 = vsel %vm1696_vm8, %v3271_v28, %v1695_v63  ;;  %v3345_v34 = vpop.eup %2491  ;;  %1895 = vst [vmem:[%s3166_s28 + $0x40] sm:$0xff] %v1863_v23  ;;  %2501 = vrsqrt.f32 %v3336_v59  ;;  %v1464_v44 = vsel %vm1438_vm0, 0.0, %v1423_v5  ;;  %v1554_v45 = vadd.f32 1.0, %v1522_v49  ;;  %v1429_v63 = vpop.permute.xlu0 %1428  ;;  %v3603_v5 = vld [vmem:[#allocation4_spill] sm:$0xff] }
 0x1e0   : > { %v1700_v15 = vsel %vm1698_vm9, %v1699_v36, %v1697_v40  ;;  %v3354_v61 = vpop.eup %2493  ;;  %v1718_v35 = vsel %vm1717_vm10, %v3274_v1, %v1716_v29  ;;  %v1530_v7 = vmul.f32 5e-05, %v1498_v0  ;;  %2503 = vrsqrt.f32 %v3345_v34  ;;  %v1431_v40 = vpop.permute.xlu1 %1430 }
 0x1e1   : > { %v1864_v17 = vmul.f32 %v1700_v15, %v1608_v8  ;;  %v2496_v54 = vpop.eup %2495  ;;  %v1721_v28 = vsel %vm1719_vm11, %v1720_v19, %v1718_v35  ;;  %v1561_v9 = vadd.f32 1.0, %v1529_v26  ;;  %v1495_v10 = vadd.f32 %v1463_v25, %v2995_v48 }
 0x1e2   : > { %v1867_v27 = vmul.f32 %v1721_v28, %v1611_v60  ;;  %v1723_v31 = vmul.f32 %v2496_v54, %v3296_v16  ;;  %v1613_v14 = vmul.f32 %v3317_v11, %v2886_v56  ;;  %vm1731_vm14 = vcmp.eq.f32.partialorder %v3317_v11, inf  ;;  %v3602_v60 = vld [vmem:[#allocation3_spill] sm:$0xff] }
 0x1e3   : > { %1896 = vst [vmem:[%s3166_s28 + $0x48] sm:$0xff] %v1864_v17  ;;  %vm1733_vm15 = vcmp.eq.f32.partialorder %v3317_v11, 0.0  ;;  %v1734_v30 = vand.u32 2147483648, %v3317_v11  ;;  %v1614_v1 = vmul.f32 %v3336_v59, %v2895_v2  ;;  %2505 = vrsqrt.f32 %v3354_v61 }
 0x1e4   : > { %1899 = vst [vmem:[%s3166_s28 + $0x60] sm:$0xff] %v1867_v27  ;;  %v1725_v48 = vsel %vm1724_vm12, %v3296_v16, %v1723_v31  ;;  %vm1738_vm1 = vcmp.eq.f32.partialorder %v3336_v59, inf  ;;  %2507 = vrsqrt.f32 %v1554_v45  ;;  %v1562_v56 = vadd.f32 1.0, %v1530_v7  ;;  %v1417_v27 = vpop.permute.xlu0 %1416 }
 0x1e5   : > { %v2498_v38 = vpop.eup %2497  ;;  %v1728_v4 = vsel %vm1726_vm13, %v1727_v21, %v1725_v48  ;;  %2509 = vrsqrt.f32 %v1561_v9  ;;  %v1527_v8 = vmul.f32 5e-05, %v1495_v10  ;;  %v1496_v2 = vadd.f32 %v1464_v44, %v3007_v6 }
 0x1e6   : > { %v1868_v3 = vmul.f32 %v1728_v4, %v1612_v12  ;;  %v1730_v42 = vmul.f32 %v2498_v38, %v3317_v11  ;;  %2511 = vrsqrt.f32 %v1562_v56  ;;  %v1459_v50 = vsel %vm1438_vm0, 0.0, %v1413_v55 }
 0x1e7   : > { %v3384_v32 = vpop.eup %2499  ;;  %vm1740_vm2 = vcmp.eq.f32.partialorder %v3336_v59, 0.0  ;;  %v1559_v36 = vadd.f32 1.0, %v1527_v8  ;;  %v1528_v46 = vmul.f32 5e-05, %v1496_v2  ;;  %v1491_v16 = vadd.f32 %v1459_v50, %v3018_v43 }
 0x1e8   : > { %1900 = vst [vmem:[%s3166_s28 + $0x68] sm:$0xff] %v1868_v3  ;;  %v1732_v6 = vsel %vm1731_vm14, %v3317_v11, %v1730_v42  ;;  %v1741_v22 = vand.u32 2147483648, %v3336_v59  ;;  %v1615_v33 = vmul.f32 %v3345_v34, %v3602_v60  ;;  %2513 = vrsqrt.f32 %v3384_v32 }
 0x1e9   : > { %v2502_v20 = vpop.eup %2501  ;;  %v1735_v13 = vsel %vm1733_vm15, %v1734_v30, %v1732_v6  ;;  %vm1745_vm3 = vcmp.eq.f32.partialorder %v3345_v34, inf  ;;  %2515 = vrsqrt.f32 %v1559_v36  ;;  %v1460_v43 = vsel %vm1438_vm0, 0.0, %v1415_v47  ;;  %v3605_v6 = vld [vmem:[#allocation6_spill] sm:$0xff] }
 0x1ea   : > { %v1869_v19 = vmul.f32 %v1735_v13, %v1613_v14  ;;  %v1737_v12 = vmul.f32 %v2502_v20, %v3336_v59  ;;  %v1560_v18 = vadd.f32 1.0, %v1528_v46  ;;  %v1523_v51 = vmul.f32 5e-05, %v1491_v16  ;;  %v2504_v49 = vpop.eup %2503  ;;  %v1433_v20 = vpop.permute.xlu0 %1432 }
 0x1eb   : > { %vm1747_vm4 = vcmp.eq.f32.partialorder %v3345_v34, 0.0  ;;  %v1748_v0 = vand.u32 2147483648, %v3345_v34  ;;  %v1616_v11 = vmul.f32 %v3354_v61, %v3603_v5  ;;  %vm1752_vm5 = vcmp.eq.f32.partialorder %v3354_v61, inf }
 0x1ec   : > { %1901 = vst [vmem:[%s3166_s28 + $0x70] sm:$0xff] %v1869_v19  ;;  %v1739_v62 = vsel %vm1738_vm1, %v3336_v59, %v1737_v12  ;;  %v1744_v23 = vmul.f32 %v2504_v49, %v3345_v34  ;;  %2517 = vrsqrt.f32 %v1560_v18  ;;  %v1555_v26 = vadd.f32 1.0, %v1523_v51 }
 0x1ed   : > { %v2506_v29 = vpop.eup %2505  ;;  %v1742_v25 = vsel %vm1740_vm2, %v1741_v22, %v1739_v62  ;;  %vm1754_vm6 = vcmp.eq.f32.partialorder %v3354_v61, 0.0  ;;  %v1755_v15 = vand.u32 2147483648, %v3354_v61  ;;  %v1492_v21 = vadd.f32 %v1460_v43, %v3027_v57  ;;  %v3606_v62 = vld [vmem:[#allocation16_spill] sm:$0xff] }
 0x1ee   : > { %v3417_v44 = vpop.eup %2507  ;;  %v1870_v17 = vmul.f32 %v1742_v25, %v1614_v1  ;;  %v1746_v35 = vsel %vm1745_vm3, %v3345_v34, %v1744_v23  ;;  %v1751_v45 = vmul.f32 %v2506_v29, %v3354_v61  ;;  %2519 = vrsqrt.f32 %v1555_v26  ;;  %v3607_v25 = vld [vmem:[#allocation17_spill] sm:$0xff] }
 0x1ef   : > { %v3423_v7 = vpop.eup %2509  ;;  %v1749_v59 = vsel %vm1747_vm4, %v1748_v0, %v1746_v35  ;;  %2521 = vrsqrt.f32 %v3417_v44  ;;  %v1467_v57 = vsel %vm1438_vm0, 0.0, %v1429_v63  ;;  %v1468_v54 = vsel %vm1438_vm0, 0.0, %v1431_v40 }
 0x1f0   : > { %v3432_v28 = vpop.eup %2511  ;;  %1902 = vst [vmem:[%s3166_s28 + $0x78] sm:$0xff] %v1870_v17  ;;  %v1871_v9 = vmul.f32 %v1749_v59, %v1615_v33  ;;  %v1753_v10 = vsel %vm1752_vm5, %v3354_v61, %v1751_v45  ;;  %v1617_v34 = vmul.f32 %v3384_v32, %v2940_v24  ;;  %vm1759_vm7 = vcmp.eq.f32.partialorder %v3384_v32, inf }
 0x1f1   : > { %v1756_v31 = vsel %vm1754_vm6, %v1755_v15, %v1753_v10  ;;  %vm1761_vm8 = vcmp.eq.f32.partialorder %v3384_v32, 0.0  ;;  %2523 = vrsqrt.f32 %v3423_v7  ;;  %v1524_v14 = vmul.f32 5e-05, %v1492_v21 }
 0x1f2   : > { %v2514_v30 = vpop.eup %2513  ;;  %1903 = vst [vmem:[%s3166_s28 + $0x80] sm:$0xff] %v1871_v9  ;;  %v1872_v1 = vmul.f32 %v1756_v31, %v1616_v11  ;;  %v1762_v55 = vand.u32 2147483648, %v3384_v32  ;;  %v1499_v48 = vadd.f32 %v1467_v57, %v3035_v41  ;;  %v1500_v24 = vadd.f32 %v1468_v54, %v3043_v58  ;;  %v1419_v58 = vpop.permute.xlu1 %1418  ;;  %v3608_v9 = vld [vmem:[#allocation7_spill] sm:$0xff] }
 0x1f3   : > { %v3449_v56 = vpop.eup %2515  ;;  %v1758_v61 = vmul.f32 %v2514_v30, %v3384_v32  ;;  %v1618_v38 = vmul.f32 %v3417_v44, %v2944_v52  ;;  %2525 = vrsqrt.f32 %v3432_v28  ;;  %v1461_v4 = vsel %vm1438_vm0, 0.0, %v1417_v27  ;;  %v3604_v52 = vld [vmem:[#allocation5_spill] sm:$0xff] }
 0x1f4   : > { %1904 = vst [vmem:[%s3166_s28 + $0x88] sm:$0xff] %v1872_v1  ;;  %vm1766_vm9 = vcmp.eq.f32.partialorder %v3417_v44, inf  ;;  %vm1768_vm10 = vcmp.eq.f32.partialorder %v3417_v44, 0.0  ;;  %v1769_v41 = vand.u32 2147483648, %v3417_v44  ;;  %2527 = vrsqrt.f32 %v3449_v56  ;;  %v3609_v1 = vld [vmem:[#allocation18_spill] sm:$0xff] }
 0x1f5   : > { %v1760_v8 = vsel %vm1759_vm7, %v3384_v32, %v1758_v61  ;;  %v1625_v2 = vmul.f32 %v3423_v7, %v3604_v52  ;;  %vm1815_vm11 = vcmp.eq.f32.partialorder %v3423_v7, inf  ;;  %v1556_v3 = vadd.f32 1.0, %v1524_v14 }
 0x1f6   : > { %v3468_v42 = vpop.eup %2517  ;;  %v1763_v50 = vsel %vm1761_vm8, %v1762_v55, %v1760_v8  ;;  %vm1817_vm12 = vcmp.eq.f32.partialorder %v3423_v7, 0.0  ;;  %v1818_v47 = vand.u32 2147483648, %v3423_v7  ;;  %v1531_v36 = vmul.f32 5e-05, %v1499_v48  ;;  %v1435_v18 = vpop.permute.xlu1 %1434 }
 0x1f7   : > { %v1532_v46 = vmul.f32 5e-05, %v1500_v24  ;;  %v1873_v16 = vmul.f32 %v1763_v50, %v1617_v34  ;;  %v1626_v22 = vmul.f32 %v3432_v28, %v3605_v6  ;;  %2529 = vrsqrt.f32 %v3468_v42 }
 0x1f8   : > { %v1493_v60 = vadd.f32 %v1461_v4, %v3051_v37  ;;  %v3478_v33 = vpop.eup %2519  ;;  %vm1822_vm13 = vcmp.eq.f32.partialorder %v3432_v28, inf  ;;  %vm1824_vm14 = vcmp.eq.f32.partialorder %v3432_v28, 0.0  ;;  %2531 = vrsqrt.f32 %v1556_v3 }
 0x1f9   : > { %v1563_v32 = vadd.f32 1.0, %v1531_v36  ;;  %v2522_v13 = vpop.eup %2521  ;;  %1905 = vst [vmem:[%s3166_s28 + $0x90] sm:$0xff] %v1873_v16  ;;  %v1825_v43 = vand.u32 2147483648, %v3432_v28  ;;  %v1623_v19 = vmul.f32 %v3449_v56, %v2966_v53  ;;  %vm1801_vm15 = vcmp.eq.f32.partialorder %v3449_v56, inf }
 0x1fa   : > { %2533 = vrsqrt.f32 %v3478_v33  ;;  %v1765_v37 = vmul.f32 %v2522_v13, %v3417_v44  ;;  %vm1803_vm1 = vcmp.eq.f32.partialorder %v3449_v56, 0.0  ;;  %v1564_v12 = vadd.f32 1.0, %v1532_v46  ;;  %v3610_v46 = vld [vmem:[#allocation8_spill] sm:$0xff] }
 0x1fb   : > { %2535 = vrsqrt.f32 %v1563_v32  ;;  %v2524_v51 = vpop.eup %2523  ;;  %v1804_v63 = vand.u32 2147483648, %v3449_v56  ;;  %v1525_v49 = vmul.f32 5e-05, %v1493_v60  ;;  %v1462_v0 = vsel %vm1438_vm0, 0.0, %v1419_v58 }
 0x1fc   : > { %v1469_v53 = vsel %vm1438_vm0, 0.0, %v1433_v20  ;;  %v1767_v5 = vsel %vm1766_vm9, %v3417_v44, %v1765_v37  ;;  %v1814_v11 = vmul.f32 %v2524_v51, %v3423_v7  ;;  %2537 = vrsqrt.f32 %v1564_v12  ;;  %v3611_v12 = vld [vmem:[#allocation9_spill] sm:$0xff] }
 0x1fd   : > { %v1494_v23 = vadd.f32 %v1462_v0, %v3606_v62  ;;  %v2526_v26 = vpop.eup %2525  ;;  %v1770_v40 = vsel %vm1768_vm10, %v1769_v41, %v1767_v5  ;;  %v1557_v29 = vadd.f32 1.0, %v1525_v49  ;;  %v1501_v15 = vadd.f32 %v1469_v53, %v3607_v25  ;;  %v3612_v0 = vld [vmem:[#allocation10_spill] sm:$0xff] }
 0x1fe   : > { %v1470_v21 = vsel %vm1438_vm0, 0.0, %v1435_v18  ;;  %v2528_v17 = vpop.eup %2527  ;;  %v1874_v35 = vmul.f32 %v1770_v40, %v1618_v38  ;;  %v1816_v45 = vsel %vm1815_vm11, %v3423_v7, %v1814_v11  ;;  %v1821_v59 = vmul.f32 %v2526_v26, %v3432_v28 }
 0x1ff   : > { %v1526_v57 = vmul.f32 5e-05, %v1494_v23  ;;  %v1819_v44 = vsel %vm1817_vm12, %v1818_v47, %v1816_v45  ;;  %v1800_v54 = vmul.f32 %v2528_v17, %v3449_v56  ;;  %v1624_v10 = vmul.f32 %v3468_v42, %v3608_v9 }
 0x200   : > { %2539 = vrsqrt.f32 %v1557_v29  ;;  %1906 = vst [vmem:[%s3166_s28 + $0x98] sm:$0xff] %v1874_v35  ;;  %v1881_v39 = vmul.f32 %v1819_v44, %v1625_v2  ;;  %v1823_v34 = vsel %vm1822_vm13, %v3432_v28, %v1821_v59  ;;  %v1533_v31 = vmul.f32 5e-05, %v1501_v15 }
 0x201   : > { %v1558_v27 = vadd.f32 1.0, %v1526_v57  ;;  %v2530_v14 = vpop.eup %2529  ;;  %v1826_v7 = vsel %vm1824_vm14, %v1825_v43, %v1823_v34  ;;  %v1802_v30 = vsel %vm1801_vm15, %v3449_v56, %v1800_v54  ;;  %vm1808_vm0 = vcmp.eq.f32.partialorder %v3468_v42, inf }
 0x202   : > { %v1502_v55 = vadd.f32 %v1470_v21, %v3609_v1  ;;  %v2532_v48 = vpop.eup %2531  ;;  %1913 = vst [vmem:[%s3166_s28 + $0xd0] sm:$0xff] %v1881_v39  ;;  %v1882_v24 = vmul.f32 %v1826_v7, %v1626_v22  ;;  %v1805_v61 = vsel %vm1803_vm1, %v1804_v63, %v1802_v30  ;;  %v1807_v38 = vmul.f32 %v2530_v14, %v3468_v42  ;;  %v3613_v21 = vld [vmem:[#allocation11_spill] sm:$0xff]  ;;  %v3615_v30 = vld [vmem:[#allocation13_spill] sm:$0xff] }
 0x203   : > { %2541 = vrsqrt.f32 %v1558_v27  ;;  %v1879_v4 = vmul.f32 %v1805_v61, %v1623_v19  ;;  %vm1810_vm2 = vcmp.eq.f32.partialorder %v3468_v42, 0.0  ;;  %v1811_v41 = vand.u32 2147483648, %v3468_v42 }
 0x204   : > { %v2534_v28 = vpop.eup %2533  ;;  %2543 = vrsqrt.f32 %v2532_v48  ;;  %1914 = vst [vmem:[%s3166_s28 + $0xd8] sm:$0xff] %v1882_v24  ;;  %v1809_v8 = vsel %vm1808_vm0, %v3468_v42, %v1807_v38  ;;  %vm1773_vm3 = vcmp.eq.f32.partialorder %v3478_v33, inf  ;;  %v1565_v56 = vadd.f32 1.0, %v1533_v31 }
 0x205   : > { %v2536_v58 = vpop.eup %2535  ;;  %v1772_v52 = vmul.f32 %v2534_v28, %v3478_v33  ;;  %1911 = vst [vmem:[%s3166_s28 + $0xc0] sm:$0xff] %v1879_v4  ;;  %v1812_v2 = vsel %vm1810_vm2, %v1811_v41, %v1809_v8  ;;  %v1776_v3 = vand.u32 2147483648, %v3478_v33  ;;  %v1534_v50 = vmul.f32 5e-05, %v1502_v55  ;;  %v3616_v41 = vld [vmem:[#allocation14_spill] sm:$0xff] }
 0x206   : > { %2545 = vrsqrt.f32 %v2536_v58  ;;  %v2538_v47 = vpop.eup %2537  ;;  %v1880_v36 = vmul.f32 %v1812_v2, %v1624_v10  ;;  %v1619_v16 = vmul.f32 %v3478_v33, %v3610_v46  ;;  %vm1775_vm4 = vcmp.eq.f32.partialorder %v3478_v33, 0.0  ;;  %v3614_v10 = vld [vmem:[#allocation12_spill] sm:$0xff] }
 0x207   : > { %v1774_v42 = vsel %vm1773_vm3, %v3478_v33, %v1772_v52  ;;  %2547 = vrsqrt.f32 %v2538_v47  ;;  %v1566_v32 = vadd.f32 1.0, %v1534_v50  ;;  %vm1780_vm5 = vcmp.eq.f32.partialorder %v2532_v48, inf  ;;  %v3617_v50 = vld [vmem:[#allocation15_spill] sm:$0xff] }
 0x208   : > { %v1777_v6 = vsel %vm1775_vm4, %v1776_v3, %v1774_v42  ;;  %1912 = vst [vmem:[%s3166_s28 + $0xc8] sm:$0xff] %v1880_v36  ;;  %2549 = vrsqrt.f32 %v1565_v56  ;;  %v1783_v37 = vand.u32 2147483648, %v2532_v48  ;;  %v1620_v18 = vmul.f32 %v2532_v48, %v3611_v12 }
 0x209   : > { %v1875_v22 = vmul.f32 %v1777_v6, %v1619_v16  ;;  %vm1782_vm6 = vcmp.eq.f32.partialorder %v2532_v48, 0.0  ;;  %v1627_v53 = vmul.f32 %v2536_v58, %v3612_v0  ;;  %vm1829_vm7 = vcmp.eq.f32.partialorder %v2536_v58, inf }
 0x20a   : > { %v2540_v60 = vpop.eup %2539  ;;  %v1832_v5 = vand.u32 2147483648, %v2536_v58  ;;  %vm1831_vm8 = vcmp.eq.f32.partialorder %v2536_v58, 0.0  ;;  %vm1836_vm9 = vcmp.eq.f32.partialorder %v2538_v47, inf  ;;  %v1839_v29 = vand.u32 2147483648, %v2538_v47 }
 0x20b   : > { %1907 = vst [vmem:[%s3166_s28 + $0xa0] sm:$0xff] %v1875_v22  ;;  %2551 = vrsqrt.f32 %v2540_v60  ;;  %v1628_v17 = vmul.f32 %v2538_v47, %v3613_v21  ;;  %vm1838_vm10 = vcmp.eq.f32.partialorder %v2538_v47, 0.0  ;;  %vm1787_vm11 = vcmp.eq.f32.partialorder %v2540_v60, inf }
 0x20c   : > { %2553 = vrsqrt.f32 %v1566_v32  ;;  %v1790_v54 = vand.u32 2147483648, %v2540_v60  ;;  %v1621_v39 = vmul.f32 %v2540_v60, %v3614_v10  ;;  %vm1789_vm12 = vcmp.eq.f32.partialorder %v2540_v60, 0.0 }
 0x20d   : > { %v2542_v20 = vpop.eup %2541 }
 0x20e   : > { %v2544_v13 = vpop.eup %2543  ;;  %2555 = vrsqrt.f32 %v2542_v20  ;;  %vm1794_vm13 = vcmp.eq.f32.partialorder %v2542_v20, inf  ;;  %v1797_v7 = vand.u32 2147483648, %v2542_v20  ;;  %v1622_v1 = vmul.f32 %v2542_v20, %v3615_v30 }
 0x20f   : > { %v1779_v43 = vmul.f32 %v2544_v13, %v2532_v48  ;;  %vm1796_vm14 = vcmp.eq.f32.partialorder %v2542_v20, 0.0 }
 0x210   : > { %v2546_v19 = vpop.eup %2545 }
 0x211   : > { %v1781_v33 = vsel %vm1780_vm5, %v2532_v48, %v1779_v43  ;;  %v1828_v51 = vmul.f32 %v2546_v19, %v2536_v58  ;;  %v2548_v63 = vpop.eup %2547 }
 0x212   : > { %v1784_v49 = vsel %vm1782_vm6, %v1783_v37, %v1781_v33  ;;  %v2550_v11 = vpop.eup %2549  ;;  %v1835_v26 = vmul.f32 %v2548_v63, %v2538_v47 }
 0x213   : > { %v1876_v62 = vmul.f32 %v1784_v49, %v1620_v18  ;;  %v1830_v23 = vsel %vm1829_vm7, %v2536_v58, %v1828_v51  ;;  %2557 = vrsqrt.f32 %v2550_v11  ;;  %vm1843_vm15 = vcmp.eq.f32.partialorder %v2550_v11, inf }
 0x214   : > { %v1833_v40 = vsel %vm1831_vm8, %v1832_v5, %v1830_v23  ;;  %v1837_v35 = vsel %vm1836_vm9, %v2538_v47, %v1835_v26  ;;  %v1846_v28 = vand.u32 2147483648, %v2550_v11  ;;  %v1629_v58 = vmul.f32 %v2550_v11, %v3616_v41 }
 0x215   : > { %v2552_v25 = vpop.eup %2551  ;;  %1908 = vst [vmem:[%s3166_s28 + $0xa8] sm:$0xff] %v1876_v62  ;;  %v1883_v15 = vmul.f32 %v1833_v40, %v1627_v53  ;;  %v1840_v59 = vsel %vm1838_vm10, %v1839_v29, %v1837_v35  ;;  %vm1845_vm1 = vcmp.eq.f32.partialorder %v2550_v11, 0.0 }
 0x216   : > { %v2554_v45 = vpop.eup %2553  ;;  %v1786_v57 = vmul.f32 %v2552_v25, %v2540_v60  ;;  %v1884_v44 = vmul.f32 %v1840_v59, %v1628_v17 }
 0x217   : > { %1915 = vst [vmem:[%s3166_s28 + $0xe0] sm:$0xff] %v1883_v15  ;;  %2559 = vrsqrt.f32 %v2554_v45  ;;  %vm1850_vm0 = vcmp.eq.f32.partialorder %v2554_v45, inf  ;;  %v1853_v3 = vand.u32 2147483648, %v2554_v45  ;;  %v1630_v47 = vmul.f32 %v2554_v45, %v3617_v50 }
 0x218   : > { %v2556_v9 = vpop.eup %2555  ;;  %v1788_v34 = vsel %vm1787_vm11, %v2540_v60, %v1786_v57  ;;  %1916 = vst [vmem:[%s3166_s28 + $0xe8] sm:$0xff] %v1884_v44  ;;  %vm1852_vm2 = vcmp.eq.f32.partialorder %v2554_v45, 0.0 }
 0x219   : > { %v1791_v27 = vsel %vm1789_vm12, %v1790_v54, %v1788_v34  ;;  %v1793_v31 = vmul.f32 %v2556_v9, %v2542_v20 }
 0x21a   : > { %v1877_v14 = vmul.f32 %v1791_v27, %v1621_v39 }
 0x21b   : > { %v1795_v55 = vsel %vm1794_vm13, %v2542_v20, %v1793_v31 }
 0x21c   : > { %1909 = vst [vmem:[%s3166_s28 + $0xb0] sm:$0xff] %v1877_v14  ;;  %v1798_v48 = vsel %vm1796_vm14, %v1797_v7, %v1795_v55 }
 0x21d   : > { %v1878_v24 = vmul.f32 %v1798_v48, %v1622_v1  ;;  %v2558_v61 = vpop.eup %2557 }
 0x21e   : > { %v1842_v38 = vmul.f32 %v2558_v61, %v2550_v11 }
 0x21f   : > { %1910 = vst [vmem:[%s3166_s28 + $0xb8] sm:$0xff] %v1878_v24 }
 0x220   : > { %v1844_v8 = vsel %vm1843_vm15, %v2550_v11, %v1842_v38 }
 0x221   : > { %v2560_v4 = vpop.eup %2559  ;;  %v1847_v52 = vsel %vm1845_vm1, %v1846_v28, %v1844_v8 }
 0x222   : > { %v1849_v56 = vmul.f32 %v2560_v4, %v2554_v45  ;;  %v1885_v2 = vmul.f32 %v1847_v52, %v1629_v58 }
 0x224   : > { %v1851_v36 = vsel %vm1850_vm0, %v2554_v45, %v1849_v56  ;;  %1917 = vst [vmem:[%s3166_s28 + $0xf0] sm:$0xff] %v1885_v2 }
 0x225   : > { %v1854_v46 = vsel %vm1852_vm2, %v1853_v3, %v1851_v36 }
 0x226   : > { %v1886_v16 = vmul.f32 %v1854_v46, %v1630_v47 }
 0x228   : > { %1918 = vst [vmem:[%s3166_s28 + $0xf8] sm:$0xff] %v1886_v16 }
 0x229 PF: > { %s13_s14 = sadd.s32 1, %s2583_s14   ;;  %s3618_s12 = smov %s2579_s13 }
 0x22a   : > { %p10_p5 = scmp.ge.s32.totalorder %s13_s14, 4   ;;  %s3619_s13 = smov %s3621_s15 }
 0x22c   :  { %12 = sbr.rel (!%p10_p5) target bundleno = 2 (0x2), region = 76 }

// kernel: alexnet_forward.12
= control target key start
LH: loop header
LB: loop body
LE: loop exit
PB: predicated region body
PF: predicated region fallthrough
CT: control target
= control target key end

     0   :  { %s546_s15 = smov 0   ;;  %s643_s0 = inlined_call_operand.vmem [shape: f32[2,8,8,96], index: 0, kind: input, shape index: {}]   ;;  %s644_s1 = inlined_call_operand.vmem [shape: f32[2,8,7,96], index: 1, kind: input, shape index: {}]   ;;  %s645_s2 = inlined_call_operand.vmem [shape: f32[2,7,8,96], index: 2, kind: input, shape index: {}]   ;;  %s646_s3 = inlined_call_operand.vmem [shape: f32[2,7,7,96], index: 3, kind: input, shape index: {}]   ;;  %s647_s4 = inlined_call_operand.vmem [shape: f32[2,7,7,96], index: 4, kind: output, shape index: {}]  }
   0x1 LB: > { %s488_s16 = sadd.s32 4294967295, %s519_s15   ;;  %p492_p0 = scmp.ge.s32.totalorder %s519_s15, 1  ;;  %s519_s15 = sphi %s546_s15, %s14_s15  }
   0x2   : > { %p192_p1 = scmp.lt.s32.totalorder %s519_s15, 3 }
   0x4   : > { %p193_p2 = pnand %p492_p0, %p192_p1 }
   0x5   : > { %p233_p3 = scmp.lt.s32.totalorder (!%p193_p2), %s488_s16, 1  ;;  %vm389_vm0 = vcmask (!%p193_p2), 784384  }
   0x6   : > { %196 = sbr.rel (%p193_p2) target bundleno = 41 (0x29), region = 36 }
   0xd   : > { %s649_s16 = smov (!%p233_p3, %s488_s16), 1 }
   0xe   : > { %s502_s17 = sshll.u32 %s649_s16, 6  ;;  %s554_s18 = smul.u32 56, %s649_s16 }
   0xf   : > { %s559_s21 = scalar_lea.vmem %s643_s0, %s502_s17  ;;  %s573_s27 = scalar_lea.vmem %s644_s1, %s502_s17 }
  0x10   : > { %s565_s24 = scalar_lea.vmem %s645_s2, %s554_s18  ;;  %v258_v0 = vld [vmem:[%s559_s21] sm:$0xff]  ;;  %v259_v1 = vld [vmem:[%s559_s21 + $0x8] sm:$0xff]  ;;  %v260_v4 = vld [vmem:[%s559_s21 + $0x10] sm:$0xff]  ;;  %s601_s30 = scalar_lea.vmem %s646_s3, %s554_s18 }
  0x11   : > { %v295_v2 = vrot.slane %v258_v0, 1  ;;  %v296_v3 = vrot.slane %v259_v1, 1  ;;  %v576_v5 = vld [vmem:[%s565_s24] sm:$0xff]  ;;  %v297_v7 = vrot.slane %v260_v4, 1  ;;  %v261_v8 = vld [vmem:[%s559_s21 + $0x18] sm:$0xff]  ;;  %v580_v9 = vld [vmem:[%s565_s24 + $0x8] sm:$0xff]  ;;  %s617_s7 = scalar_lea.vmem %s647_s4, %s554_s18 }
  0x12   : > { %v298_v11 = vrot.slane %v261_v8, 1  ;;  %v583_v13 = vld [vmem:[%s565_s24 + $0x10] sm:$0xff]  ;;  %v262_v15 = vld [vmem:[%s559_s21 + $0x20] sm:$0xff]  ;;  %v361_v17 = vrot.slane %v576_v5, 1  ;;  %v263_v21 = vld [vmem:[%s559_s21 + $0x28] sm:$0xff]  ;;  %v362_v24 = vrot.slane %v580_v9, 1 }
  0x13   : > { %v309_v6 = vmax.f32 %v258_v0, %v295_v2  ;;  %v310_v10 = vmax.f32 %v259_v1, %v296_v3  ;;  %v311_v14 = vmax.f32 %v260_v4, %v297_v7  ;;  %v266_v16 = vld [vmem:[%s573_s27] sm:$0x7f]  ;;  %v299_v19 = vrot.slane %v262_v15, 1  ;;  %v267_v22 = vld [vmem:[%s573_s27 + $0x8] sm:$0x7f]  ;;  %v277_v26 = vld [vmem:[%s565_s24 + $0x18] sm:$0xff] }
  0x14   : > { %v312_v20 = vmax.f32 %v261_v8, %v298_v11  ;;  %v300_v27 = vrot.slane %v263_v21, 1  ;;  %v268_v28 = vld [vmem:[%s573_s27 + $0x10] sm:$0x7f]  ;;  %v363_v30 = vrot.slane %v583_v13, 1  ;;  %v269_v35 = vld [vmem:[%s573_s27 + $0x18] sm:$0x7f] }
  0x15   : > { %v316_v12 = vmax.f32 %v309_v6, %v259_v1  ;;  %v317_v18 = vmax.f32 %v310_v10, %v260_v4  ;;  %v318_v25 = vmax.f32 %v311_v14, %v261_v8  ;;  %v313_v32 = vmax.f32 %v262_v15, %v299_v19  ;;  %v264_v33 = vld [vmem:[%s559_s21 + $0x30] sm:$0xff]  ;;  %v265_v39 = vld [vmem:[%s559_s21 + $0x38] sm:$0xff]  ;;  %v270_v46 = vld [vmem:[%s573_s27 + $0x20] sm:$0x7f] }
  0x16   : > { %v319_v31 = vmax.f32 %v312_v20, %v262_v15  ;;  %v301_v37 = vrot.slane %v264_v33, 1  ;;  %v314_v38 = vmax.f32 %v263_v21, %v300_v27  ;;  %v364_v42 = vrot.slane %v277_v26, 1  ;;  %v278_v47 = vld [vmem:[%s565_s24 + $0x20] sm:$0xff]  ;;  %v271_v52 = vld [vmem:[%s573_s27 + $0x28] sm:$0x7f]  ;;  %v280_v14 = vld [vmem:[%s565_s24 + $0x30] sm:$0xff] }
  0x17   : > { %v326_v23 = vmax.f32 %v316_v12, %v296_v3  ;;  %v327_v29 = vmax.f32 %v317_v18, %v297_v7  ;;  %v328_v36 = vmax.f32 %v318_v25, %v298_v11  ;;  %v320_v43 = vmax.f32 %v313_v32, %v263_v21  ;;  %v279_v57 = vld [vmem:[%s565_s24 + $0x28] sm:$0xff]  ;;  %v281_v60 = vld [vmem:[%s601_s30] sm:$0x7f]  ;;  %v272_v1 = vld [vmem:[%s573_s27 + $0x30] sm:$0x7f] }
  0x18   : > { %v329_v41 = vmax.f32 %v319_v31, %v299_v19  ;;  %v321_v48 = vmax.f32 %v314_v38, %v264_v33  ;;  %v315_v49 = vmax.f32 %v264_v33, %v301_v37  ;;  %v324_v54 = vrot.slane %v265_v39, 1  ;;  %v282_v3 = vld [vmem:[%s601_s30 + $0x8] sm:$0x7f]  ;;  %v283_v8 = vld [vmem:[%s601_s30 + $0x10] sm:$0x7f] }
  0x19   : > { %v333_v34 = vmax.f32 %v326_v23, %v266_v16  ;;  %v334_v40 = vmax.f32 %v327_v29, %v267_v22  ;;  %v335_v45 = vmax.f32 %v328_v36, %v268_v28  ;;  %v330_v53 = vmax.f32 %v320_v43, %v300_v27  ;;  %v273_v12 = vld [vmem:[%s573_s27 + $0x38] sm:$0x7f]  ;;  %v285_v23 = vld [vmem:[%s601_s30 + $0x20] sm:$0x7f]  ;;  %v286_v29 = vld [vmem:[%s601_s30 + $0x28] sm:$0x7f] }
  0x1a   : > { %v336_v51 = vmax.f32 %v329_v41, %v269_v35  ;;  %v331_v58 = vmax.f32 %v321_v48, %v301_v37  ;;  %v322_v59 = vmax.f32 %v315_v49, %v265_v39  ;;  %v365_v0 = vrot.slane %v278_v47, 1  ;;  %v287_v33 = vld [vmem:[%s601_s30 + $0x30] sm:$0x7f] }
  0x1b   : > { %v340_v44 = vmax.f32 %v333_v34, %v267_v22  ;;  %v341_v50 = vmax.f32 %v334_v40, %v268_v28  ;;  %v342_v56 = vmax.f32 %v335_v45, %v269_v35  ;;  %v337_v63 = vmax.f32 %v330_v53, %v270_v46 }
  0x1c   : > { %v343_v62 = vmax.f32 %v336_v51, %v270_v46  ;;  %v332_v6 = vmax.f32 %v322_v59, %v324_v54  ;;  %v366_v11 = vrot.slane %v279_v57, 1 }
  0x1d   : > { %v347_v55 = vmax.f32 %v340_v44, %v576_v5  ;;  %v348_v61 = vmax.f32 %v341_v50, %v580_v9  ;;  %v349_v4 = vmax.f32 %v342_v56, %v583_v13  ;;  %v338_v5 = vmax.f32 %v331_v58, %v271_v52  ;;  %v284_v13 = vld [vmem:[%s601_s30 + $0x18] sm:$0x7f] }
  0x1e   : > { %v350_v9 = vmax.f32 %v343_v62, %v277_v26  ;;  %v344_v10 = vmax.f32 %v337_v63, %v271_v52  ;;  %v339_v18 = vmax.f32 %v332_v6, %v272_v1  ;;  %v367_v26 = vrot.slane %v280_v14, 1 }
  0x1f   : > { %v375_v2 = vmax.f32 %v347_v55, %v361_v17  ;;  %v376_v7 = vmax.f32 %v348_v61, %v362_v24  ;;  %v377_v16 = vmax.f32 %v349_v4, %v363_v30  ;;  %v345_v17 = vmax.f32 %v338_v5, %v272_v1 }
  0x20   : > { %v378_v20 = vmax.f32 %v350_v9, %v364_v42  ;;  %v351_v21 = vmax.f32 %v344_v10, %v278_v47  ;;  %v346_v25 = vmax.f32 %v339_v18, %v273_v12 }
  0x21   : > { %v382_v15 = vmax.f32 %v375_v2, %v281_v60  ;;  %v383_v19 = vmax.f32 %v376_v7, %v282_v3  ;;  %v384_v22 = vmax.f32 %v377_v16, %v283_v8  ;;  %v352_v24 = vmax.f32 %v345_v17, %v279_v57 }
  0x22   : > { %v385_v27 = vmax.f32 %v378_v20, %v284_v13  ;;  %v379_v28 = vmax.f32 %v351_v21, %v365_v0  ;;  %v353_v31 = vmax.f32 %v346_v25, %v280_v14 }
  0x23   : > { %390 = vst.msk [vmem:[%s617_s7] sm:$0x7f] %vm389_vm0, %v382_v15  ;;  %391 = vst.msk [vmem:[%s617_s7 + $0x8] sm:$0x7f] %vm389_vm0, %v383_v19  ;;  %v380_v30 = vmax.f32 %v352_v24, %v366_v11 }
  0x24   : > { %392 = vst.msk [vmem:[%s617_s7 + $0x10] sm:$0x7f] %vm389_vm0, %v384_v22  ;;  %393 = vst.msk [vmem:[%s617_s7 + $0x18] sm:$0x7f] %vm389_vm0, %v385_v27  ;;  %v386_v32 = vmax.f32 %v379_v28, %v285_v23  ;;  %v381_v35 = vmax.f32 %v353_v31, %v367_v26 }
  0x25   : > { %v387_v34 = vmax.f32 %v380_v30, %v286_v29 }
  0x26   : > { %394 = vst.msk [vmem:[%s617_s7 + $0x20] sm:$0x7f] %vm389_vm0, %v386_v32  ;;  %v388_v36 = vmax.f32 %v381_v35, %v287_v33 }
  0x27   : > { %395 = vst.msk [vmem:[%s617_s7 + $0x28] sm:$0x7f] %vm389_vm0, %v387_v34 }
  0x28   : > { %396 = vst.msk [vmem:[%s617_s7 + $0x30] sm:$0x7f] %vm389_vm0, %v388_v36 }
  0x29 PF: > { %s14_s15 = sadd.s32 1, %s519_s15  }
  0x2a   : > { %p11_p4 = scmp.ge.s32.totalorder %s14_s15, 4  }
  0x2c   :  { %13 = sbr.rel (!%p11_p4) target bundleno = 1 (0x1), region = 75 }

// kernel: alexnet_forward.13
= control target key start
LH: loop header
LB: loop body
LE: loop exit
PB: predicated region body
PF: predicated region fallthrough
CT: control target
= control target key end

     0   :  { %s2474_s12 = smov 0   ;;  %s2476_s13 = smov 0   ;;  %s3488_s0 = inlined_call_operand.vmem [shape: bf16[112,2560], index: 0, kind: input, shape index: {}]   ;;  %s3489_s1 = inlined_call_operand.vmem [shape: bf16[2560,256], index: 1, kind: input, shape index: {}]   ;;  %s3490_s2 = inlined_call_operand.vmem [shape: f32[1,256], index: 2, kind: input, shape index: {}]   ;;  %s3491_s3 = inlined_call_operand.vmem [shape: f32[112,256], index: 3, kind: output, shape index: {}]  }
   0x1   :  { %s2478_s14 = smov 0   ;;  %s2480_s15 = smov 0  }
   0x2   :  { %s2482_s16 = smov 0  }
   0x3 LB: > { %s25_s17 = sadd.s32 1, %s2446_s15  ;;  %p48_p1 = scmp.ne.s32.totalorder %s2438_s13, %s2434_s12  ;;  %s2450_s16 = sphi %s2482_s16, %s13_s16   ;;  %s2446_s15 = sphi %s2480_s15, %s3563_s15   ;;  %s2442_s14 = sphi %s2478_s14, %s3562_s14   ;;  %s2438_s13 = sphi %s2476_s13, %s3561_s13   ;;  %s2434_s12 = sphi %s2474_s12, %s3560_s12  }
   0x4   : > { %p26_p0 = scmp.ge.s32.totalorder %s25_s17, 5  ;;  %p49_p2 = scmp.eq.s32.totalorder %s2450_s16, 0 }
   0x5   : > { %s41_s19 = sadd.s32 1, %s2438_s13  ;;  %p1983_p5 = scmp.ge.s32.totalorder %s2450_s16, 5 }
   0x6   : > { %s3565_s17 = smov (%p26_p0, %s25_s17), 0  ;;  %p50_p3 = por %p49_p2, %p48_p1 }
   0x7   : > { %s37_s18 = ssub.s32 %s2446_s15, %s3565_s17  ;;  %164 = sbr.rel (%p1983_p5) target bundleno = 33 (0x21), region = 20 }
   0x8   : > { %p39_p4 = scmp.eq.s32.totalorder %s37_s18, 0 }
   0xa   : > { %s2509_s20 = scalar_select %p39_p4, %s2438_s13, %s41_s19  }
   0xe   : > { %167 = sbr.rel (!%p50_p3) target bundleno = 33 (0x21), region = 24  ;;  %s169_s21 = sand.u32 (%p50_p3), 1, %s2438_s13  }
   0xf   : > { %s2088_s22 = sshll.u32 (%p50_p3), %s2446_s15, 4  ;;  %s2118_s23 = smul.u32 (%p50_p3), 224, %s169_s21 }
  0x10   : > { %s2517_s26 = scalar_lea.vmem (%p50_p3), %s3488_s0, %s2088_s22 }
  0x11   : > { %v190_v0 = vld [vmem:[%s2517_s26] sm:$0xff] (%p50_p3)  ;;  %v192_v1 = vld [vmem:[%s2517_s26 + $0x8] sm:$0xff] (%p50_p3)  ;;  %v194_v2 = vld [vmem:[%s2517_s26 + $0x50] sm:$0xff] (%p50_p3)  ;;  %s2525_s27 = scalar_lea.vmem (%p50_p3), [#allocation3], %s2118_s23 }
  0x12   : > { %v196_v3 = vld [vmem:[%s2517_s26 + $0x58] sm:$0xff] (%p50_p3)  ;;  %v198_v4 = vld [vmem:[%s2517_s26 + $0xa0] sm:$0xff] (%p50_p3)  ;;  %v200_v5 = vld [vmem:[%s2517_s26 + $0xa8] sm:$0xff] (%p50_p3)  ;;  %191 = vst [vmem:[%s2525_s27] sm:$0xff] (%p50_p3), %v190_v0 }
  0x13   : > { %193 = vst [vmem:[%s2525_s27 + $0x8] sm:$0xff] (%p50_p3), %v192_v1  ;;  %195 = vst [vmem:[%s2525_s27 + $0x10] sm:$0xff] (%p50_p3), %v194_v2  ;;  %v202_v6 = vld [vmem:[%s2517_s26 + $0xf0] sm:$0xff] (%p50_p3)  ;;  %v204_v7 = vld [vmem:[%s2517_s26 + $0xf8] sm:$0xff] (%p50_p3) }
  0x14   : > { %197 = vst [vmem:[%s2525_s27 + $0x18] sm:$0xff] (%p50_p3), %v196_v3  ;;  %199 = vst [vmem:[%s2525_s27 + $0x20] sm:$0xff] (%p50_p3), %v198_v4  ;;  %v206_v8 = vld [vmem:[%s2517_s26 + $0x140] sm:$0xff] (%p50_p3)  ;;  %v208_v9 = vld [vmem:[%s2517_s26 + $0x148] sm:$0xff] (%p50_p3) }
  0x15   : > { %201 = vst [vmem:[%s2525_s27 + $0x28] sm:$0xff] %v200_v5  ;;  %203 = vst [vmem:[%s2525_s27 + $0x30] sm:$0xff] %v202_v6  ;;  %v210_v10 = vld [vmem:[%s2517_s26 + $0x190] sm:$0xff]  ;;  %v212_v11 = vld [vmem:[%s2517_s26 + $0x198] sm:$0xff] }
  0x16   : > { %205 = vst [vmem:[%s2525_s27 + $0x38] sm:$0xff] %v204_v7  ;;  %207 = vst [vmem:[%s2525_s27 + $0x40] sm:$0xff] %v206_v8  ;;  %v214_v12 = vld [vmem:[%s2517_s26 + $0x1e0] sm:$0xff]  ;;  %v216_v13 = vld [vmem:[%s2517_s26 + $0x1e8] sm:$0xff] }
  0x17   : > { %209 = vst [vmem:[%s2525_s27 + $0x48] sm:$0xff] %v208_v9  ;;  %211 = vst [vmem:[%s2525_s27 + $0x50] sm:$0xff] %v210_v10  ;;  %v218_v14 = vld [vmem:[%s2517_s26 + $0x230] sm:$0xff]  ;;  %v220_v15 = vld [vmem:[%s2517_s26 + $0x238] sm:$0xff] }
  0x18   : > { %213 = vst [vmem:[%s2525_s27 + $0x58] sm:$0xff] %v212_v11  ;;  %215 = vst [vmem:[%s2525_s27 + $0x60] sm:$0xff] %v214_v12  ;;  %v222_v16 = vld [vmem:[%s2517_s26 + $0x280] sm:$0xff]  ;;  %v224_v17 = vld [vmem:[%s2517_s26 + $0x288] sm:$0xff] }
  0x19   : > { %217 = vst [vmem:[%s2525_s27 + $0x68] sm:$0xff] %v216_v13  ;;  %219 = vst [vmem:[%s2525_s27 + $0x70] sm:$0xff] %v218_v14  ;;  %v226_v18 = vld [vmem:[%s2517_s26 + $0x2d0] sm:$0xff]  ;;  %v228_v19 = vld [vmem:[%s2517_s26 + $0x2d8] sm:$0xff] }
  0x1a   : > { %221 = vst [vmem:[%s2525_s27 + $0x78] sm:$0xff] %v220_v15  ;;  %223 = vst [vmem:[%s2525_s27 + $0x80] sm:$0xff] %v222_v16  ;;  %v230_v20 = vld [vmem:[%s2517_s26 + $0x320] sm:$0xff]  ;;  %v232_v21 = vld [vmem:[%s2517_s26 + $0x328] sm:$0xff] }
  0x1b   : > { %225 = vst [vmem:[%s2525_s27 + $0x88] sm:$0xff] %v224_v17  ;;  %227 = vst [vmem:[%s2525_s27 + $0x90] sm:$0xff] %v226_v18  ;;  %v234_v22 = vld [vmem:[%s2517_s26 + $0x370] sm:$0xff]  ;;  %v236_v23 = vld [vmem:[%s2517_s26 + $0x378] sm:$0xff] }
  0x1c   : > { %229 = vst [vmem:[%s2525_s27 + $0x98] sm:$0xff] %v228_v19  ;;  %231 = vst [vmem:[%s2525_s27 + $0xa0] sm:$0xff] %v230_v20  ;;  %v238_v24 = vld [vmem:[%s2517_s26 + $0x3c0] sm:$0xff]  ;;  %v240_v25 = vld [vmem:[%s2517_s26 + $0x3c8] sm:$0xff] }
  0x1d   : > { %233 = vst [vmem:[%s2525_s27 + $0xa8] sm:$0xff] %v232_v21  ;;  %235 = vst [vmem:[%s2525_s27 + $0xb0] sm:$0xff] %v234_v22  ;;  %v242_v26 = vld [vmem:[%s2517_s26 + $0x410] sm:$0xff]  ;;  %v244_v27 = vld [vmem:[%s2517_s26 + $0x418] sm:$0xff] }
  0x1e   : > { %237 = vst [vmem:[%s2525_s27 + $0xb8] sm:$0xff] %v236_v23  ;;  %239 = vst [vmem:[%s2525_s27 + $0xc0] sm:$0xff] %v238_v24 }
  0x1f   : > { %241 = vst [vmem:[%s2525_s27 + $0xc8] sm:$0xff] %v240_v25  ;;  %243 = vst [vmem:[%s2525_s27 + $0xd0] sm:$0xff] %v242_v26 }
  0x20   : > { %245 = vst [vmem:[%s2525_s27 + $0xd8] sm:$0xff] %v244_v27 }
  0x21 PF: > { %p1986_p6 = scmp.ge.s32.totalorder %s2450_s16, 1  ;;  %p265_p7 = scmp.lt.s32.totalorder %s2450_s16, 6 }
  0x23   : > { %p266_p8 = pnand %p1986_p6, %p265_p7 }
  0x24   : > { %s272_s28 = sand.u32 (!%p266_p8), 1, %s2434_s12   ;;  %s1987_s29 = sshll.u32 (!%p266_p8), %s2442_s14, 6 }
  0x25   : > { %269 = sbr.rel (%p266_p8) target bundleno = 670 (0x29e), region = 51  ;;  %p318_p9 = scmp.lt.s32.totalorder (!%p266_p8), %s1987_s29, 319 }
  0x26   : > { %s2119_s30 = smul.u32 (!%p266_p8), 224, %s272_s28  ;;  %p1990_p10 = scmp.ne.s32.totalorder (!%p266_p8), %s2442_s14, 0 }
  0x28   : > { %s2586_s8 = scalar_lea.vmem (!%p266_p8), [#allocation3], %s2119_s30 }
  0x2c   : > { %s3567_s29 = smov (!%p318_p9, %s1987_s29), 319  ;;  %348 = sbr.rel (%p1990_p10) target bundleno = 60 (0x3c), region = 59 }
  0x2d   : > { %s2089_s4 = sshll.u32 %s3567_s29, 3  ;;  %v2452_v28 = vmov (!%p1990_p10), 0.0  }
  0x2e   : > { %s2584_s7 = scalar_lea.vmem %s3489_s1, %s2089_s4  ;;  %349 = vst [vmem:[#allocation2] sm:$0xff] (!%p1990_p10), %v2452_v28  ;;  %350 = vst [vmem:[#allocation2 + $0x8] sm:$0xff] (!%p1990_p10), %v2452_v28 }
  0x2f   : > { %351 = vst [vmem:[#allocation2 + $0x10] sm:$0xff] (!%p1990_p10), %v2452_v28  ;;  %352 = vst [vmem:[#allocation2 + $0x18] sm:$0xff] (!%p1990_p10), %v2452_v28 }
  0x30   : > { %353 = vst [vmem:[#allocation2 + $0x20] sm:$0xff] (!%p1990_p10), %v2452_v28  ;;  %354 = vst [vmem:[#allocation2 + $0x28] sm:$0xff] (!%p1990_p10), %v2452_v28 }
  0x31   : > { %355 = vst [vmem:[#allocation2 + $0x30] sm:$0xff] (!%p1990_p10), %v2452_v28  ;;  %356 = vst [vmem:[#allocation2 + $0x38] sm:$0xff] (!%p1990_p10), %v2452_v28 }
  0x32   : > { %357 = vst [vmem:[#allocation2 + $0x40] sm:$0xff] (!%p1990_p10), %v2452_v28  ;;  %358 = vst [vmem:[#allocation2 + $0x48] sm:$0xff] (!%p1990_p10), %v2452_v28 }
  0x33   : > { %359 = vst [vmem:[#allocation2 + $0x50] sm:$0xff] %v2452_v28  ;;  %360 = vst [vmem:[#allocation2 + $0x58] sm:$0xff] %v2452_v28 }
  0x34   : > { %361 = vst [vmem:[#allocation2 + $0x60] sm:$0xff] %v2452_v28  ;;  %362 = vst [vmem:[#allocation2 + $0x68] sm:$0xff] %v2452_v28 }
  0x35   : > { %363 = vst [vmem:[#allocation2 + $0x70] sm:$0xff] %v2452_v28  ;;  %364 = vst [vmem:[#allocation2 + $0x78] sm:$0xff] %v2452_v28 }
  0x36   : > { %365 = vst [vmem:[#allocation2 + $0x80] sm:$0xff] %v2452_v28  ;;  %366 = vst [vmem:[#allocation2 + $0x88] sm:$0xff] %v2452_v28 }
  0x37   : > { %367 = vst [vmem:[#allocation2 + $0x90] sm:$0xff] %v2452_v28  ;;  %368 = vst [vmem:[#allocation2 + $0x98] sm:$0xff] %v2452_v28 }
  0x38   : > { %369 = vst [vmem:[#allocation2 + $0xa0] sm:$0xff] %v2452_v28  ;;  %370 = vst [vmem:[#allocation2 + $0xa8] sm:$0xff] %v2452_v28 }
  0x39   : > { %371 = vst [vmem:[#allocation2 + $0xb0] sm:$0xff] %v2452_v28  ;;  %372 = vst [vmem:[#allocation2 + $0xb8] sm:$0xff] %v2452_v28 }
  0x3a   : > { %373 = vst [vmem:[#allocation2 + $0xc0] sm:$0xff] %v2452_v28  ;;  %374 = vst [vmem:[#allocation2 + $0xc8] sm:$0xff] %v2452_v28 }
  0x3b   : > { %375 = vst [vmem:[#allocation2 + $0xd0] sm:$0xff] %v2452_v28  ;;  %376 = vst [vmem:[#allocation2 + $0xd8] sm:$0xff] %v2452_v28 }
  0x3c PF: > { %v2162_v29 = vld [vmem:[%s2584_s7 + $0x4] ss:$8 sps:$4 sm:$0xff]   ;;  %v2166_v31 = vld [vmem:[%s2584_s7] ss:$8 sps:$4 sm:$0xff]   ;;  %v2168_v33 = vld [vmem:[%s2584_s7 + $0x14] ss:$8 sps:$4 sm:$0xff]  }
  0x3d   : > { %v2164_v30 = vld [vmem:[%s2584_s7 + $0x104] ss:$8 sps:$4 sm:$0xff]   ;;  %957 = vmatprep.subr.bf16.mxu1 %v2162_v29  ;;  %v2167_v32 = vld [vmem:[%s2584_s7 + $0x100] ss:$8 sps:$4 sm:$0xff]   ;;  %v2170_v34 = vld [vmem:[%s2584_s7 + $0x114] ss:$8 sps:$4 sm:$0xff]  }
  0x3e   : > { %1060 = vmatprep.subr.bf16.mxu0 %v2164_v30  ;;  %958 = vmatpush1.bf16.msra.mxu1 %v2166_v31  ;;  %v2172_v35 = vld [vmem:[%s2584_s7 + $0x10] ss:$8 sps:$4 sm:$0xff]   ;;  %v2174_v37 = vld [vmem:[%s2584_s7 + $0x24] ss:$8 sps:$4 sm:$0xff]   ;;  %v2178_v39 = vld [vmem:[%s2584_s7 + $0x20] ss:$8 sps:$4 sm:$0xff]  }
  0x3f   : > { %1061 = vmatpush1.bf16.msra.mxu0 %v2167_v32  ;;  %959 = vmatprep.subr.bf16.mxu1 %v2168_v33  ;;  %v2173_v36 = vld [vmem:[%s2584_s7 + $0x110] ss:$8 sps:$4 sm:$0xff]   ;;  %v2176_v38 = vld [vmem:[%s2584_s7 + $0x124] ss:$8 sps:$4 sm:$0xff]   ;;  %v2179_v40 = vld [vmem:[%s2584_s7 + $0x120] ss:$8 sps:$4 sm:$0xff]  }
  0x40   : > { %1062 = vmatprep.subr.bf16.mxu0 %v2170_v34  ;;  %v2180_v41 = vld [vmem:[%s2584_s7 + $0x34] ss:$8 sps:$4 sm:$0xff]   ;;  %v2184_v43 = vld [vmem:[%s2584_s7 + $0x30] ss:$8 sps:$4 sm:$0xff]   ;;  %v2186_v45 = vld [vmem:[%s2584_s7 + $0x44] ss:$8 sps:$4 sm:$0xff]  }
  0x41   : > { %v2182_v42 = vld [vmem:[%s2584_s7 + $0x134] ss:$8 sps:$4 sm:$0xff]   ;;  %v2185_v44 = vld [vmem:[%s2584_s7 + $0x130] ss:$8 sps:$4 sm:$0xff]   ;;  %v2188_v46 = vld [vmem:[%s2584_s7 + $0x144] ss:$8 sps:$4 sm:$0xff]  }
  0x42   : > { %960 = vmatpush1.bf16.msra.mxu1 %v2172_v35  ;;  %v2190_v47 = vld [vmem:[%s2584_s7 + $0x40] ss:$8 sps:$4 sm:$0xff]   ;;  %v2192_v49 = vld [vmem:[%s2584_s7 + $0x54] ss:$8 sps:$4 sm:$0xff]   ;;  %v2196_v51 = vld [vmem:[%s2584_s7 + $0x50] ss:$8 sps:$4 sm:$0xff]  }
  0x43   : > { %1063 = vmatpush1.bf16.msra.mxu0 %v2173_v36  ;;  %961 = vmatprep.subr.bf16.mxu1 %v2174_v37  ;;  %v2191_v48 = vld [vmem:[%s2584_s7 + $0x140] ss:$8 sps:$4 sm:$0xff]   ;;  %v2194_v50 = vld [vmem:[%s2584_s7 + $0x154] ss:$8 sps:$4 sm:$0xff]   ;;  %v2197_v52 = vld [vmem:[%s2584_s7 + $0x150] ss:$8 sps:$4 sm:$0xff]  }
  0x44   : > { %1064 = vmatprep.subr.bf16.mxu0 %v2176_v38  ;;  %v2198_v53 = vld [vmem:[%s2584_s7 + $0x64] ss:$8 sps:$4 sm:$0xff]   ;;  %v2202_v55 = vld [vmem:[%s2584_s7 + $0x60] ss:$8 sps:$4 sm:$0xff]   ;;  %v2204_v57 = vld [vmem:[%s2584_s7 + $0x74] ss:$8 sps:$4 sm:$0xff]  }
  0x45   : > { %v2200_v54 = vld [vmem:[%s2584_s7 + $0x164] ss:$8 sps:$4 sm:$0xff]   ;;  %v2203_v56 = vld [vmem:[%s2584_s7 + $0x160] ss:$8 sps:$4 sm:$0xff]   ;;  %v2206_v58 = vld [vmem:[%s2584_s7 + $0x174] ss:$8 sps:$4 sm:$0xff]  }
  0x46   : > { %962 = vmatpush1.bf16.msra.mxu1 %v2178_v39  ;;  %v2208_v59 = vld [vmem:[%s2584_s7 + $0x70] ss:$8 sps:$4 sm:$0xff]   ;;  %v2210_v61 = vld [vmem:[%s2584_s7 + $0x84] ss:$8 sps:$4 sm:$0xff]   ;;  %v2214_v63 = vld [vmem:[%s2584_s7 + $0x80] ss:$8 sps:$4 sm:$0xff]  }
  0x47   : > { %1065 = vmatpush1.bf16.msra.mxu0 %v2179_v40  ;;  %963 = vmatprep.subr.bf16.mxu1 %v2180_v41  ;;  %v2209_v60 = vld [vmem:[%s2584_s7 + $0x170] ss:$8 sps:$4 sm:$0xff]   ;;  %v2212_v62 = vld [vmem:[%s2584_s7 + $0x184] ss:$8 sps:$4 sm:$0xff]   ;;  %v2215_v0 = vld [vmem:[%s2584_s7 + $0x180] ss:$8 sps:$4 sm:$0xff]  }
  0x48   : > { %1066 = vmatprep.subr.bf16.mxu0 %v2182_v42  ;;  %v2216_v1 = vld [vmem:[%s2584_s7 + $0x94] ss:$8 sps:$4 sm:$0xff]   ;;  %v2220_v3 = vld [vmem:[%s2584_s7 + $0x90] ss:$8 sps:$4 sm:$0xff]   ;;  %v2222_v5 = vld [vmem:[%s2584_s7 + $0xa4] ss:$8 sps:$4 sm:$0xff]  }
  0x49   : > { %v2218_v2 = vld [vmem:[%s2584_s7 + $0x194] ss:$8 sps:$4 sm:$0xff]   ;;  %v2221_v4 = vld [vmem:[%s2584_s7 + $0x190] ss:$8 sps:$4 sm:$0xff]   ;;  %v2224_v6 = vld [vmem:[%s2584_s7 + $0x1a4] ss:$8 sps:$4 sm:$0xff]  }
  0x4a   : > { %964 = vmatpush1.bf16.msra.mxu1 %v2184_v43  ;;  %v2226_v7 = vld [vmem:[%s2584_s7 + $0xa0] ss:$8 sps:$4 sm:$0xff]   ;;  %v2228_v9 = vld [vmem:[%s2584_s7 + $0xb4] ss:$8 sps:$4 sm:$0xff]   ;;  %v2232_v11 = vld [vmem:[%s2584_s7 + $0xb0] ss:$8 sps:$4 sm:$0xff]  }
  0x4b   : > { %1067 = vmatpush1.bf16.msra.mxu0 %v2185_v44  ;;  %965 = vmatprep.subr.bf16.mxu1 %v2186_v45  ;;  %v2227_v8 = vld [vmem:[%s2584_s7 + $0x1a0] ss:$8 sps:$4 sm:$0xff]   ;;  %v2230_v10 = vld [vmem:[%s2584_s7 + $0x1b4] ss:$8 sps:$4 sm:$0xff]   ;;  %v2233_v12 = vld [vmem:[%s2584_s7 + $0x1b0] ss:$8 sps:$4 sm:$0xff]  }
  0x4c   : > { %1068 = vmatprep.subr.bf16.mxu0 %v2188_v46  ;;  %v2234_v13 = vld [vmem:[%s2584_s7 + $0xc4] ss:$8 sps:$4 sm:$0xff]   ;;  %v2238_v17 = vld [vmem:[%s2584_s7 + $0xc0] ss:$8 sps:$4 sm:$0xff]   ;;  %v2240_v19 = vld [vmem:[%s2584_s7 + $0xd4] ss:$8 sps:$4 sm:$0xff]  }
  0x4d   : > { %v2260_v14 = vld [vmem:[%s2586_s8 + $0x4] ss:$16 sps:$4 sm:$0xff]   ;;  %v2263_v16 = vld [vmem:[%s2586_s8 + $0xc] ss:$16 sps:$4 sm:$0xff]   ;;  %v2239_v18 = vld [vmem:[%s2584_s7 + $0x1c0] ss:$8 sps:$4 sm:$0xff]  }
  0x4e   : > { %966 = vmatpush1.bf16.msra.mxu1 %v2190_v47  ;;  %v2236_v15 = vld [vmem:[%s2584_s7 + $0x1c4] ss:$8 sps:$4 sm:$0xff]   ;;  %989 = vmatprep.mubr.bf16.mxu1 %v2260_v14  ;;  %v2242_v20 = vld [vmem:[%s2584_s7 + $0x1d4] ss:$8 sps:$4 sm:$0xff]   ;;  %v2244_v21 = vld [vmem:[%s2584_s7 + $0xd0] ss:$8 sps:$4 sm:$0xff]  }
  0x4f   : > { %1069 = vmatpush1.bf16.msra.mxu0 %v2191_v48  ;;  %967 = vmatprep.subr.bf16.mxu1 %v2192_v49  ;;  %v2245_v22 = vld [vmem:[%s2584_s7 + $0x1d0] ss:$8 sps:$4 sm:$0xff]   ;;  %v2246_v23 = vld [vmem:[%s2584_s7 + $0xe4] ss:$8 sps:$4 sm:$0xff]   ;;  %v2250_v25 = vld [vmem:[%s2584_s7 + $0xe0] ss:$8 sps:$4 sm:$0xff]  }
  0x50   : > { %1070 = vmatprep.subr.bf16.mxu0 %v2194_v50  ;;  %1092 = vmatprep.mubr.bf16.mxu0 %v2263_v16  ;;  %v2248_v24 = vld [vmem:[%s2584_s7 + $0x1e4] ss:$8 sps:$4 sm:$0xff]   ;;  %v2251_v26 = vld [vmem:[%s2584_s7 + $0x1e0] ss:$8 sps:$4 sm:$0xff]   ;;  %v2252_v27 = vld [vmem:[%s2584_s7 + $0xf4] ss:$8 sps:$4 sm:$0xff]  }
  0x51   : > { %v2254_v28 = vld [vmem:[%s2584_s7 + $0x1f4] ss:$8 sps:$4 sm:$0xff]   ;;  %v2256_v29 = vld [vmem:[%s2584_s7 + $0xf0] ss:$8 sps:$4 sm:$0xff]   ;;  %v381_v14 = vld [vmem:[#allocation2 + $0x20] sm:$0xff]  ;;  %p2083_p11 = scmp.ne.s32.totalorder %s2442_s14, 4 }
  0x52   : > { %968 = vmatpush1.bf16.msra.mxu1 %v2196_v51  ;;  %v2257_v30 = vld [vmem:[%s2584_s7 + $0x1f0] ss:$8 sps:$4 sm:$0xff]   ;;  %v2264_v33 = vld [vmem:[%s2586_s8 + $0x24] ss:$16 sps:$4 sm:$0xff]   ;;  %v2266_v34 = vld [vmem:[%s2586_s8 + $0x2c] ss:$16 sps:$4 sm:$0xff]  }
  0x53   : > { %1071 = vmatpush1.bf16.msra.mxu0 %v2197_v52  ;;  %969 = vmatprep.subr.bf16.mxu1 %v2198_v53  ;;  %v2258_v31 = vld [vmem:[%s2586_s8] ss:$16 sps:$4 sm:$0xff]   ;;  %v2261_v32 = vld [vmem:[%s2586_s8 + $0x8] ss:$16 sps:$4 sm:$0xff]   ;;  %v2270_v37 = vld [vmem:[%s2586_s8 + $0x44] ss:$16 sps:$4 sm:$0xff]  }
  0x54   : > { %1072 = vmatprep.subr.bf16.mxu0 %v2200_v54  ;;  %v2268_v35 = vld [vmem:[%s2586_s8 + $0x20] ss:$16 sps:$4 sm:$0xff]   ;;  %v2269_v36 = vld [vmem:[%s2586_s8 + $0x28] ss:$16 sps:$4 sm:$0xff]   ;;  %v2272_v38 = vld [vmem:[%s2586_s8 + $0x4c] ss:$16 sps:$4 sm:$0xff]  }
  0x55   : > { %v2274_v39 = vld [vmem:[%s2586_s8 + $0x40] ss:$16 sps:$4 sm:$0xff]   ;;  %v2275_v40 = vld [vmem:[%s2586_s8 + $0x48] ss:$16 sps:$4 sm:$0xff]   ;;  %v2276_v41 = vld [vmem:[%s2586_s8 + $0x64] ss:$16 sps:$4 sm:$0xff]  }
  0x56   : > { %970 = vmatpush1.bf16.msra.mxu1 %v2202_v55  ;;  %v2278_v42 = vld [vmem:[%s2586_s8 + $0x6c] ss:$16 sps:$4 sm:$0xff]   ;;  %v2280_v43 = vld [vmem:[%s2586_s8 + $0x60] ss:$16 sps:$4 sm:$0xff]   ;;  %v2281_v44 = vld [vmem:[%s2586_s8 + $0x68] ss:$16 sps:$4 sm:$0xff]  }
  0x57   : > { %1073 = vmatpush1.bf16.msra.mxu0 %v2203_v56  ;;  %971 = vmatprep.subr.bf16.mxu1 %v2204_v57  ;;  %v2282_v45 = vld [vmem:[%s2586_s8 + $0x84] ss:$16 sps:$4 sm:$0xff]   ;;  %v2284_v46 = vld [vmem:[%s2586_s8 + $0x8c] ss:$16 sps:$4 sm:$0xff]   ;;  %v2286_v47 = vld [vmem:[%s2586_s8 + $0x80] ss:$16 sps:$4 sm:$0xff]  }
  0x58   : > { %1074 = vmatprep.subr.bf16.mxu0 %v2206_v58  ;;  %v2287_v48 = vld [vmem:[%s2586_s8 + $0x88] ss:$16 sps:$4 sm:$0xff]   ;;  %v2288_v49 = vld [vmem:[%s2586_s8 + $0xa4] ss:$16 sps:$4 sm:$0xff]   ;;  %v2290_v50 = vld [vmem:[%s2586_s8 + $0xac] ss:$16 sps:$4 sm:$0xff]  }
  0x59   : > { %v2292_v51 = vld [vmem:[%s2586_s8 + $0xa0] ss:$16 sps:$4 sm:$0xff]   ;;  %v2293_v52 = vld [vmem:[%s2586_s8 + $0xa8] ss:$16 sps:$4 sm:$0xff]   ;;  %v2294_v53 = vld [vmem:[%s2586_s8 + $0xc4] ss:$16 sps:$4 sm:$0xff]  }
  0x5a   : > { %972 = vmatpush1.bf16.msra.mxu1 %v2208_v59  ;;  %v2296_v54 = vld [vmem:[%s2586_s8 + $0xcc] ss:$16 sps:$4 sm:$0xff]   ;;  %v2298_v55 = vld [vmem:[%s2586_s8 + $0xc0] ss:$16 sps:$4 sm:$0xff]   ;;  %v2299_v56 = vld [vmem:[%s2586_s8 + $0xc8] ss:$16 sps:$4 sm:$0xff]  }
  0x5b   : > { %1075 = vmatpush1.bf16.msra.mxu0 %v2209_v60  ;;  %973 = vmatprep.subr.bf16.mxu1 %v2210_v61  ;;  %v377_v58 = vld [vmem:[#allocation2] sm:$0xff] }
  0x5c   : > { %1076 = vmatprep.subr.bf16.mxu0 %v2212_v62  ;;  %v378_v62 = vld [vmem:[#allocation2 + $0x8] sm:$0xff] }
  0x5e   : > { %974 = vmatpush1.bf16.msra.mxu1 %v2214_v63 }
  0x5f   : > { %1077 = vmatpush1.bf16.msra.mxu0 %v2215_v0  ;;  %975 = vmatprep.subr.bf16.mxu1 %v2216_v1 }
  0x60   : > { %1078 = vmatprep.subr.bf16.mxu0 %v2218_v2  ;;  %v379_v2 = vld [vmem:[#allocation2 + $0x10] sm:$0xff] }
  0x62   : > { %976 = vmatpush1.bf16.msra.mxu1 %v2220_v3 }
  0x63   : > { %1079 = vmatpush1.bf16.msra.mxu0 %v2221_v4  ;;  %977 = vmatprep.subr.bf16.mxu1 %v2222_v5 }
  0x64   : > { %1080 = vmatprep.subr.bf16.mxu0 %v2224_v6 }
  0x66   : > { %978 = vmatpush1.bf16.msra.mxu1 %v2226_v7  ;;  %v380_v7 = vld [vmem:[#allocation2 + $0x18] sm:$0xff] }
  0x67   : > { %1081 = vmatpush1.bf16.msra.mxu0 %v2227_v8  ;;  %979 = vmatprep.subr.bf16.mxu1 %v2228_v9 }
  0x68   : > { %1082 = vmatprep.subr.bf16.mxu0 %v2230_v10 }
  0x6a   : > { %980 = vmatpush1.bf16.msra.mxu1 %v2232_v11 }
  0x6b   : > { %1083 = vmatpush1.bf16.msra.mxu0 %v2233_v12  ;;  %981 = vmatprep.subr.bf16.mxu1 %v2234_v13 }
  0x6c   : > { %1084 = vmatprep.subr.bf16.mxu0 %v2236_v15 }
  0x6e   : > { %982 = vmatpush1.bf16.msra.mxu1 %v2238_v17 }
  0x6f   : > { %1085 = vmatpush1.bf16.msra.mxu0 %v2239_v18  ;;  %983 = vmatprep.subr.bf16.mxu1 %v2240_v19  ;;  %v382_v18 = vld [vmem:[#allocation2 + $0x28] sm:$0xff] }
  0x70   : > { %1086 = vmatprep.subr.bf16.mxu0 %v2242_v20 }
  0x72   : > { %984 = vmatpush1.bf16.msra.mxu1 %v2244_v21 }
  0x73   : > { %1087 = vmatpush1.bf16.msra.mxu0 %v2245_v22  ;;  %985 = vmatprep.subr.bf16.mxu1 %v2246_v23  ;;  %v383_v22 = vld [vmem:[#allocation2 + $0x30] sm:$0xff] }
  0x74   : > { %1088 = vmatprep.subr.bf16.mxu0 %v2248_v24 }
  0x76   : > { %986 = vmatpush1.bf16.msra.mxu1 %v2250_v25 }
  0x77   : > { %1089 = vmatpush1.bf16.msra.mxu0 %v2251_v26  ;;  %987 = vmatprep.subr.bf16.mxu1 %v2252_v27  ;;  %v384_v27 = vld [vmem:[#allocation2 + $0x38] sm:$0xff] }
  0x78   : > { %1090 = vmatprep.subr.bf16.mxu0 %v2254_v28 }
  0x7a   : > { %988 = vmatpush1.bf16.msra.mxu1 %v2256_v29 }
  0x7b   : > { %1091 = vmatpush1.bf16.msra.mxu0 %v2257_v30 }
  0x7d   : > { %990 = vmatmul.mubr.bf16.vlgmr.msra.gmra.mrb[0].mxu1 %v2258_v31 }
  0x7e   : > { %1093 = vmatmul.mubr.bf16.vlgmr.msra.gmra.mrb[0].mxu0 %v2261_v32  ;;  %999 = vmatprep.mubr.bf16.mxu1 %v2264_v33 }
  0x7f   : > { %1102 = vmatprep.mubr.bf16.mxu0 %v2266_v34  ;;  %v385_v34 = vld [vmem:[#allocation2 + $0x40] sm:$0xff] }
  0x85   : > { %1000 = vmatmul.mubr.bf16.gmra.mrb[4].mxu1 %v2268_v35 }
  0x86   : > { %1103 = vmatmul.mubr.bf16.gmra.mrb[4].mxu0 %v2269_v36  ;;  %1009 = vmatprep.mubr.bf16.mxu1 %v2270_v37 }
  0x87   : > { %1112 = vmatprep.mubr.bf16.mxu0 %v2272_v38  ;;  %v386_v38 = vld [vmem:[#allocation2 + $0x48] sm:$0xff] }
  0x8d   : > { %1010 = vmatmul.mubr.bf16.gmra.mrb[8].mxu1 %v2274_v39 }
  0x8e   : > { %1113 = vmatmul.mubr.bf16.gmra.mrb[8].mxu0 %v2275_v40  ;;  %1019 = vmatprep.mubr.bf16.mxu1 %v2276_v41 }
  0x8f   : > { %1122 = vmatprep.mubr.bf16.mxu0 %v2278_v42  ;;  %v387_v42 = vld [vmem:[#allocation2 + $0x50] sm:$0xff] }
  0x95   : > { %1020 = vmatmul.mubr.bf16.gmra.mrb[12].mxu1 %v2280_v43 }
  0x96   : > { %1123 = vmatmul.mubr.bf16.gmra.mrb[12].mxu0 %v2281_v44  ;;  %1029 = vmatprep.mubr.bf16.mxu1 %v2282_v45 }
  0x97   : > { %1132 = vmatprep.mubr.bf16.mxu0 %v2284_v46 }
  0x9d   : > { %1030 = vmatmul.mubr.bf16.gmra.mrb[16].mxu1 %v2286_v47  ;;  %v388_v47 = vld [vmem:[#allocation2 + $0x58] sm:$0xff] }
  0x9e   : > { %1133 = vmatmul.mubr.bf16.gmra.mrb[16].mxu0 %v2287_v48  ;;  %1039 = vmatprep.mubr.bf16.mxu1 %v2288_v49 }
  0x9f   : > { %1142 = vmatprep.mubr.bf16.mxu0 %v2290_v50 }
  0xa5   : > { %1040 = vmatmul.mubr.bf16.gmra.mrb[20].mxu1 %v2292_v51 }
  0xa6   : > { %1143 = vmatmul.mubr.bf16.gmra.mrb[20].mxu0 %v2293_v52  ;;  %1049 = vmatprep.mubr.bf16.mxu1 %v2294_v53 }
  0xa7   : > { %1152 = vmatprep.mubr.bf16.mxu0 %v2296_v54  ;;  %v389_v54 = vld [vmem:[#allocation2 + $0x60] sm:$0xff] }
  0xad   : > { %1050 = vmatmul.mubr.bf16.gmra.mrb[24].mxu1 %v2298_v55 }
  0xae   : > { %1153 = vmatmul.mubr.bf16.gmra.mrb[24].mxu0 %v2299_v56 }
 0x150   : > { %v991_v57 = vpop.f32.mrb[0].mxu1 }
 0x151   : > { %v1094_v59 = vpop.f32.mrb[0].mxu0  ;;  %v993_v61 = vpop.f32.mrb[1].mxu1 }
 0x152   : > { %v1095_v60 = vadd.f32 %v1094_v59, %v991_v57  ;;  %v1096_v63 = vpop.f32.mrb[1].mxu0  ;;  %v995_v1 = vpop.f32.mrb[2].mxu1 }
 0x153   : > { %v1097_v0 = vadd.f32 %v1096_v63, %v993_v61  ;;  %v1098_v3 = vpop.f32.mrb[2].mxu0  ;;  %v997_v6 = vpop.f32.mrb[3].mxu1 }
 0x154   : > { %v1163_v4 = vadd.f32 %v1095_v60, %v377_v58  ;;  %v1099_v5 = vadd.f32 %v1098_v3, %v995_v1  ;;  %v1100_v8 = vpop.f32.mrb[3].mxu0  ;;  %v390_v58 = vld [vmem:[#allocation2 + $0x68] sm:$0xff]  ;;  %v392_v3 = vld [vmem:[#allocation2 + $0x78] sm:$0xff] }
 0x155   : > { %v1164_v9 = vadd.f32 %v1097_v0, %v378_v62  ;;  %v1101_v10 = vadd.f32 %v1100_v8, %v997_v6  ;;  %v391_v62 = vld [vmem:[#allocation2 + $0x70] sm:$0xff] }
 0x156   : > { %1191 = vst [vmem:[#allocation2] sm:$0xff] %v1163_v4  ;;  %v1165_v11 = vadd.f32 %v1099_v5, %v379_v2 }
 0x157   : > { %1192 = vst [vmem:[#allocation2 + $0x8] sm:$0xff] %v1164_v9  ;;  %v1166_v12 = vadd.f32 %v1101_v10, %v380_v7  ;;  %v393_v10 = vld [vmem:[#allocation2 + $0x80] sm:$0xff] }
 0x158   : > { %1193 = vst [vmem:[#allocation2 + $0x10] sm:$0xff] %v1165_v11  ;;  %v1001_v13 = vpop.f32.mrb[4].mxu1 }
 0x159   : > { %1194 = vst [vmem:[#allocation2 + $0x18] sm:$0xff] %v1166_v12  ;;  %v1104_v15 = vpop.f32.mrb[4].mxu0  ;;  %v1003_v17 = vpop.f32.mrb[5].mxu1 }
 0x15a   : > { %v1105_v16 = vadd.f32 %v1104_v15, %v1001_v13  ;;  %v1106_v19 = vpop.f32.mrb[5].mxu0  ;;  %v1005_v21 = vpop.f32.mrb[6].mxu1 }
 0x15b   : > { %v1107_v20 = vadd.f32 %v1106_v19, %v1003_v17  ;;  %v1108_v23 = vpop.f32.mrb[6].mxu0  ;;  %v1007_v26 = vpop.f32.mrb[7].mxu1 }
 0x15c   : > { %v1167_v24 = vadd.f32 %v1105_v16, %v381_v14  ;;  %v1109_v25 = vadd.f32 %v1108_v23, %v1005_v21  ;;  %v1110_v28 = vpop.f32.mrb[7].mxu0  ;;  %v394_v14 = vld [vmem:[#allocation2 + $0x88] sm:$0xff]  ;;  %v396_v23 = vld [vmem:[#allocation2 + $0x98] sm:$0xff] }
 0x15d   : > { %v1168_v29 = vadd.f32 %v1107_v20, %v382_v18  ;;  %v1111_v30 = vadd.f32 %v1110_v28, %v1007_v26  ;;  %v395_v18 = vld [vmem:[#allocation2 + $0x90] sm:$0xff] }
 0x15e   : > { %1195 = vst [vmem:[#allocation2 + $0x20] sm:$0xff] %v1167_v24  ;;  %v1169_v31 = vadd.f32 %v1109_v25, %v383_v22 }
 0x15f   : > { %1196 = vst [vmem:[#allocation2 + $0x28] sm:$0xff] %v1168_v29  ;;  %v1170_v32 = vadd.f32 %v1111_v30, %v384_v27  ;;  %v397_v30 = vld [vmem:[#allocation2 + $0xa0] sm:$0xff] }
 0x160   : > { %1197 = vst [vmem:[#allocation2 + $0x30] sm:$0xff] %v1169_v31  ;;  %v1011_v33 = vpop.f32.mrb[8].mxu1 }
 0x161   : > { %1198 = vst [vmem:[#allocation2 + $0x38] sm:$0xff] %v1170_v32  ;;  %v1114_v35 = vpop.f32.mrb[8].mxu0  ;;  %v1013_v37 = vpop.f32.mrb[9].mxu1 }
 0x162   : > { %v1115_v36 = vadd.f32 %v1114_v35, %v1011_v33  ;;  %v1116_v39 = vpop.f32.mrb[9].mxu0  ;;  %v1015_v41 = vpop.f32.mrb[10].mxu1 }
 0x163   : > { %v1117_v40 = vadd.f32 %v1116_v39, %v1013_v37  ;;  %v1118_v43 = vpop.f32.mrb[10].mxu0  ;;  %v1017_v46 = vpop.f32.mrb[11].mxu1 }
 0x164   : > { %v1171_v44 = vadd.f32 %v1115_v36, %v385_v34  ;;  %v1119_v45 = vadd.f32 %v1118_v43, %v1015_v41  ;;  %v1120_v48 = vpop.f32.mrb[11].mxu0  ;;  %v398_v34 = vld [vmem:[#allocation2 + $0xa8] sm:$0xff]  ;;  %v400_v43 = vld [vmem:[#allocation2 + $0xb8] sm:$0xff] }
 0x165   : > { %v1172_v49 = vadd.f32 %v1117_v40, %v386_v38  ;;  %v1121_v50 = vadd.f32 %v1120_v48, %v1017_v46  ;;  %v399_v38 = vld [vmem:[#allocation2 + $0xb0] sm:$0xff] }
 0x166   : > { %1199 = vst [vmem:[#allocation2 + $0x40] sm:$0xff] %v1171_v44  ;;  %v1173_v51 = vadd.f32 %v1119_v45, %v387_v42 }
 0x167   : > { %1200 = vst [vmem:[#allocation2 + $0x48] sm:$0xff] %v1172_v49  ;;  %v1174_v52 = vadd.f32 %v1121_v50, %v388_v47  ;;  %v401_v50 = vld [vmem:[#allocation2 + $0xc0] sm:$0xff] }
 0x168   : > { %1201 = vst [vmem:[#allocation2 + $0x50] sm:$0xff] %v1173_v51  ;;  %v1021_v53 = vpop.f32.mrb[12].mxu1 }
 0x169   : > { %1202 = vst [vmem:[#allocation2 + $0x58] sm:$0xff] %v1174_v52  ;;  %v1124_v55 = vpop.f32.mrb[12].mxu0  ;;  %v1023_v57 = vpop.f32.mrb[13].mxu1 }
 0x16a   : > { %v1125_v56 = vadd.f32 %v1124_v55, %v1021_v53  ;;  %v1126_v59 = vpop.f32.mrb[13].mxu0  ;;  %v1025_v61 = vpop.f32.mrb[14].mxu1 }
 0x16b   : > { %v1127_v60 = vadd.f32 %v1126_v59, %v1023_v57  ;;  %v1128_v63 = vpop.f32.mrb[14].mxu0  ;;  %v1027_v2 = vpop.f32.mrb[15].mxu1 }
 0x16c   : > { %v1175_v0 = vadd.f32 %v1125_v56, %v389_v54  ;;  %v1129_v1 = vadd.f32 %v1128_v63, %v1025_v61  ;;  %v1130_v4 = vpop.f32.mrb[15].mxu0  ;;  %v402_v54 = vld [vmem:[#allocation2 + $0xc8] sm:$0xff]  ;;  %v404_v63 = vld [vmem:[#allocation2 + $0xd8] sm:$0xff] }
 0x16d   : > { %v1176_v5 = vadd.f32 %v1127_v60, %v390_v58  ;;  %v1131_v6 = vadd.f32 %v1130_v4, %v1027_v2  ;;  %v403_v58 = vld [vmem:[#allocation2 + $0xd0] sm:$0xff] }
 0x16e   : > { %1203 = vst [vmem:[#allocation2 + $0x60] sm:$0xff] %v1175_v0  ;;  %v1177_v7 = vadd.f32 %v1129_v1, %v391_v62 }
 0x16f   : > { %1204 = vst [vmem:[#allocation2 + $0x68] sm:$0xff] %v1176_v5  ;;  %v1178_v8 = vadd.f32 %v1131_v6, %v392_v3 }
 0x170   : > { %1205 = vst [vmem:[#allocation2 + $0x70] sm:$0xff] %v1177_v7  ;;  %v1031_v9 = vpop.f32.mrb[16].mxu1 }
 0x171   : > { %1206 = vst [vmem:[#allocation2 + $0x78] sm:$0xff] %v1178_v8  ;;  %v1134_v11 = vpop.f32.mrb[16].mxu0  ;;  %v1033_v13 = vpop.f32.mrb[17].mxu1 }
 0x172   : > { %v1135_v12 = vadd.f32 %v1134_v11, %v1031_v9  ;;  %v1136_v15 = vpop.f32.mrb[17].mxu0  ;;  %v1035_v17 = vpop.f32.mrb[18].mxu1 }
 0x173   : > { %v1137_v16 = vadd.f32 %v1136_v15, %v1033_v13  ;;  %v1138_v19 = vpop.f32.mrb[18].mxu0  ;;  %v1037_v22 = vpop.f32.mrb[19].mxu1 }
 0x174   : > { %v1179_v20 = vadd.f32 %v1135_v12, %v393_v10  ;;  %v1139_v21 = vadd.f32 %v1138_v19, %v1035_v17  ;;  %v1140_v24 = vpop.f32.mrb[19].mxu0 }
 0x175   : > { %v1180_v25 = vadd.f32 %v1137_v16, %v394_v14  ;;  %v1141_v26 = vadd.f32 %v1140_v24, %v1037_v22 }
 0x176   : > { %1207 = vst [vmem:[#allocation2 + $0x80] sm:$0xff] %v1179_v20  ;;  %v1181_v27 = vadd.f32 %v1139_v21, %v395_v18 }
 0x177   : > { %1208 = vst [vmem:[#allocation2 + $0x88] sm:$0xff] %v1180_v25  ;;  %v1182_v28 = vadd.f32 %v1141_v26, %v396_v23 }
 0x178   : > { %1209 = vst [vmem:[#allocation2 + $0x90] sm:$0xff] %v1181_v27  ;;  %v1041_v29 = vpop.f32.mrb[20].mxu1 }
 0x179   : > { %1210 = vst [vmem:[#allocation2 + $0x98] sm:$0xff] %v1182_v28  ;;  %v1144_v31 = vpop.f32.mrb[20].mxu0  ;;  %v1043_v33 = vpop.f32.mrb[21].mxu1 }
 0x17a   : > { %v1145_v32 = vadd.f32 %v1144_v31, %v1041_v29  ;;  %v1146_v35 = vpop.f32.mrb[21].mxu0  ;;  %v1045_v37 = vpop.f32.mrb[22].mxu1 }
 0x17b   : > { %v1147_v36 = vadd.f32 %v1146_v35, %v1043_v33  ;;  %v1148_v39 = vpop.f32.mrb[22].mxu0  ;;  %v1047_v42 = vpop.f32.mrb[23].mxu1 }
 0x17c   : > { %v1183_v40 = vadd.f32 %v1145_v32, %v397_v30  ;;  %v1149_v41 = vadd.f32 %v1148_v39, %v1045_v37  ;;  %v1150_v44 = vpop.f32.mrb[23].mxu0 }
 0x17d   : > { %v1184_v45 = vadd.f32 %v1147_v36, %v398_v34  ;;  %v1151_v46 = vadd.f32 %v1150_v44, %v1047_v42 }
 0x17e   : > { %1211 = vst [vmem:[#allocation2 + $0xa0] sm:$0xff] %v1183_v40  ;;  %v1185_v47 = vadd.f32 %v1149_v41, %v399_v38 }
 0x17f   : > { %1212 = vst [vmem:[#allocation2 + $0xa8] sm:$0xff] %v1184_v45  ;;  %v1186_v48 = vadd.f32 %v1151_v46, %v400_v43 }
 0x180   : > { %1213 = vst [vmem:[#allocation2 + $0xb0] sm:$0xff] %v1185_v47  ;;  %v1051_v49 = vpop.f32.mrb[24].mxu1 }
 0x181   : > { %1214 = vst [vmem:[#allocation2 + $0xb8] sm:$0xff] %v1186_v48  ;;  %v1154_v51 = vpop.f32.mrb[24].mxu0  ;;  %v1053_v53 = vpop.f32.mrb[25].mxu1 }
 0x182   : > { %v1155_v52 = vadd.f32 %v1154_v51, %v1051_v49  ;;  %v1156_v55 = vpop.f32.mrb[25].mxu0  ;;  %v1055_v57 = vpop.f32.mrb[26].mxu1 }
 0x183   : > { %v1157_v56 = vadd.f32 %v1156_v55, %v1053_v53  ;;  %v1158_v59 = vpop.f32.mrb[26].mxu0  ;;  %v1057_v62 = vpop.f32.mrb[27].mxu1  ;;  %1222 = sbr.rel (%p2083_p11) target bundleno = 670 (0x29e), region = 63 }
 0x184   : > { %v1187_v60 = vadd.f32 %v1155_v52, %v401_v50  ;;  %v1159_v61 = vadd.f32 %v1158_v59, %v1055_v57  ;;  %v1160_v0 = vpop.f32.mrb[27].mxu0 }
 0x185   : > { %v1188_v1 = vadd.f32 %v1157_v56, %v402_v54  ;;  %v1161_v2 = vadd.f32 %v1160_v0, %v1057_v62 }
 0x186   : > { %1215 = vst [vmem:[#allocation2 + $0xc0] sm:$0xff] %v1187_v60  ;;  %v1189_v3 = vadd.f32 %v1159_v61, %v403_v58 }
 0x187   : > { %1216 = vst [vmem:[#allocation2 + $0xc8] sm:$0xff] %v1188_v1  ;;  %v1190_v4 = vadd.f32 %v1161_v2, %v404_v63 }
 0x188   : > { %1217 = vst [vmem:[#allocation2 + $0xd0] sm:$0xff] %v1189_v3 }
 0x189   : > { %1218 = vst [vmem:[#allocation2 + $0xd8] sm:$0xff] %v1190_v4 }
 0x18a   : > { %v3492_v5 = vlaneseq  ;;  %v1251_v7 = vld [vmem:[%s3490_s2] sm:$0x3]  ;;  %v1229_v11 = vld [vmem:[#allocation2 + $0x30] sm:$0xff]  ;;  %s2453_s11 = smov 1   ;;  %v1226_v62 = vld [vmem:[#allocation2 + $0x18] sm:$0xff] }
 0x18b   : > { %v1227_v8 = vld [vmem:[#allocation2 + $0x20] sm:$0xff]  ;;  %v1225_v12 = vld [vmem:[#allocation2 + $0x10] sm:$0xff]  ;;  %v1224_v63 = vld [vmem:[#allocation2 + $0x8] sm:$0xff] }
 0x18c   : > { %v1254_v6 = vshrl.u32 %v3492_v5, 7  ;;  %v1223_v10 = vld [vmem:[#allocation2] sm:$0xff]  ;;  %v1233_v14 = vld [vmem:[#allocation2 + $0x50] sm:$0xff] }
 0x18d   : > { %v1231_v15 = vld [vmem:[#allocation2 + $0x40] sm:$0xff]  ;;  %v1237_v26 = vld [vmem:[#allocation2 + $0x70] sm:$0xff] }
 0x18e   : > { %v1255_v9 = vsub.s32 0, %v1254_v6  ;;  %v1235_v27 = vld [vmem:[#allocation2 + $0x60] sm:$0xff]  ;;  %v1241_v36 = vld [vmem:[#allocation2 + $0x90] sm:$0xff]  ;;  %v1259_v46 = vsub.s32 1, %v1254_v6 }
 0x18f   : > { %v1239_v37 = vld [vmem:[#allocation2 + $0x80] sm:$0xff]  ;;  %v1245_v44 = vld [vmem:[#allocation2 + $0xb0] sm:$0xff] }
 0x190   : > { %v1256_v13 = vrot.slane %v1251_v7, %v1255_v9  ;;  %v1243_v45 = vld [vmem:[#allocation2 + $0xa0] sm:$0xff]  ;;  %v1249_v53 = vld [vmem:[#allocation2 + $0xd0] sm:$0xff]  ;;  %v2750_v55 = vrot.slane %v1251_v7, %v1259_v46  ;;  %v1230_v7 = vld [vmem:[#allocation2 + $0x38] sm:$0xff] }
 0x191   : > { %v1247_v54 = vld [vmem:[#allocation2 + $0xc0] sm:$0xff]  ;;  %v1240_v46 = vld [vmem:[#allocation2 + $0x88] sm:$0xff] }
 0x192   : > { %v1267_v16 = vadd.f32 %v1256_v13, %v1227_v8  ;;  %v1263_v17 = vadd.f32 %v1256_v13, %v1223_v10  ;;  %v1269_v18 = vadd.f32 %v1256_v13, %v1229_v11  ;;  %v1265_v19 = vadd.f32 %v1256_v13, %v1225_v12  ;;  %v1228_v8 = vld [vmem:[#allocation2 + $0x28] sm:$0xff] }
 0x193   : > { %v1273_v20 = vadd.f32 %v1256_v13, %v1233_v14  ;;  %v1271_v21 = vadd.f32 %v1256_v13, %v1231_v15  ;;  %v1277_v31 = vadd.f32 %v1256_v13, %v1237_v26  ;;  %v1275_v32 = vadd.f32 %v1256_v13, %v1235_v27  ;;  %v1234_v15 = vld [vmem:[#allocation2 + $0x58] sm:$0xff] }
 0x194   : > { %v2686_v22 = vmax.f32 %v1267_v16, 0.0  ;;  %v2688_v23 = vmax.f32 %v1263_v17, 0.0  ;;  %v2690_v24 = vmax.f32 %v1269_v18, 0.0  ;;  %v2692_v25 = vmax.f32 %v1265_v19, 0.0  ;;  %v1232_v16 = vld [vmem:[#allocation2 + $0x48] sm:$0xff]  ;;  %v1238_v27 = vld [vmem:[#allocation2 + $0x78] sm:$0xff] }
 0x195   : > { %v2702_v30 = vmax.f32 %v1273_v20, 0.0  ;;  %v2716_v35 = vmax.f32 %v1271_v21, 0.0  ;;  %v2722_v39 = vmax.f32 %v1277_v31, 0.0  ;;  %v2724_v40 = vmax.f32 %v1275_v32, 0.0  ;;  %v1236_v31 = vld [vmem:[#allocation2 + $0x68] sm:$0xff] }
 0x196   : > { %v2696_v28 = vmul.f32 %v2686_v22, %v2686_v22  ;;  %v2700_v29 = vmul.f32 %v2688_v23, %v2688_v23  ;;  %v2710_v33 = vmul.f32 %v2690_v24, %v2690_v24  ;;  %v2714_v34 = vmul.f32 %v2692_v25, %v2692_v25 }
 0x197   : > { %v2720_v38 = vmul.f32 %v2702_v30, %v2702_v30  ;;  %3515 = vst [vmem:[#allocation4_spill] sm:$0xff] %v2724_v40  ;;  %v2732_v41 = vmul.f32 %v2716_v35, %v2716_v35  ;;  %v1281_v42 = vadd.f32 %v1256_v13, %v1241_v36  ;;  %v1279_v43 = vadd.f32 %v1256_v13, %v1239_v37 }
 0x198   : > { %1351 = vrot.lane.b32.xlu1 %v2696_v28, %s2453_s11  ;;  %1347 = vrot.lane.b32.xlu0 %v2700_v29, %s2453_s11  ;;  %v2736_v47 = vmul.f32 %v2722_v39, %v2722_v39  ;;  %v2740_v48 = vmul.f32 %v2724_v40, %v2724_v40  ;;  %v1285_v51 = vadd.f32 %v1256_v13, %v1245_v44 }
 0x199   : > { %v2746_v49 = vmax.f32 %v1281_v42, 0.0  ;;  %v2748_v50 = vmax.f32 %v1279_v43, 0.0  ;;  %v1283_v52 = vadd.f32 %v1256_v13, %v1243_v45  ;;  %v1289_v56 = vadd.f32 %v1256_v13, %v1249_v53  ;;  %v1242_v45 = vld [vmem:[#allocation2 + $0x98] sm:$0xff] }
 0x19a   : > { %v1287_v57 = vadd.f32 %v1256_v13, %v1247_v54  ;;  %v2764_v60 = vmax.f32 %v1285_v51, 0.0  ;;  %v1266_v1 = vadd.f32 %v2750_v55, %v1226_v62  ;;  %v1264_v2 = vadd.f32 %v2750_v55, %v1224_v63  ;;  %v1246_v62 = vld [vmem:[#allocation2 + $0xb8] sm:$0xff]  ;;  %v1244_v63 = vld [vmem:[#allocation2 + $0xa8] sm:$0xff] }
 0x19b   : > { %3516 = vst [vmem:[#allocation5_spill] sm:$0xff] %v2746_v49  ;;  %3517 = vst [vmem:[#allocation6_spill] sm:$0xff] %v2748_v50  ;;  %v2758_v58 = vmul.f32 %v2746_v49, %v2746_v49  ;;  %v2762_v59 = vmul.f32 %v2748_v50, %v2748_v50  ;;  %v2766_v61 = vmax.f32 %v1283_v52, 0.0  ;;  %v2768_v0 = vmax.f32 %v1289_v56, 0.0 }
 0x19c   : > { %1353 = vrot.lane.b32.xlu1 %v2710_v33, %s2453_s11  ;;  %1349 = vrot.lane.b32.xlu0 %v2714_v34, %s2453_s11  ;;  %3518 = vst [vmem:[#allocation7_spill] sm:$0xff] %v2764_v60  ;;  %v2778_v3 = vmul.f32 %v2764_v60, %v2764_v60  ;;  %v2784_v6 = vmax.f32 %v1287_v57, 0.0  ;;  %v2790_v10 = vmax.f32 %v1266_v1, 0.0  ;;  %v2792_v11 = vmax.f32 %v1264_v2, 0.0 }
 0x19d   : > { %3519 = vst [vmem:[#allocation8_spill] sm:$0xff] %v2766_v61  ;;  %3520 = vst [vmem:[#allocation9_spill] sm:$0xff] %v2768_v0  ;;  %v2782_v4 = vmul.f32 %v2766_v61, %v2766_v61  ;;  %v2788_v9 = vmul.f32 %v2768_v0, %v2768_v0  ;;  %v1270_v13 = vadd.f32 %v2750_v55, %v1230_v7 }
 0x19e   : > { %3522 = vst [vmem:[#allocation11_spill] sm:$0xff] %v2784_v6  ;;  %v2800_v12 = vmul.f32 %v2784_v6, %v2784_v6  ;;  %v1268_v14 = vadd.f32 %v2750_v55, %v1228_v8  ;;  %v2806_v17 = vmul.f32 %v2790_v10, %v2790_v10  ;;  %v2810_v18 = vmul.f32 %v2792_v11, %v2792_v11 }
 0x19f   : > { %3521 = vst [vmem:[#allocation10_spill] sm:$0xff] %v2782_v4  ;;  %3523 = vst [vmem:[#allocation12_spill] sm:$0xff] %v2788_v9  ;;  %v2816_v19 = vmax.f32 %v1270_v13, 0.0  ;;  %v1274_v21 = vadd.f32 %v2750_v55, %v1234_v15  ;;  %v1272_v26 = vadd.f32 %v2750_v55, %v1232_v16  ;;  %v1278_v32 = vadd.f32 %v2750_v55, %v1238_v27  ;;  %v1250_v15 = vld [vmem:[#allocation2 + $0xd8] sm:$0xff]  ;;  %v1248_v16 = vld [vmem:[#allocation2 + $0xc8] sm:$0xff] }
 0x1a0   : > { %1357 = vrot.lane.b32.xlu1 %v2720_v38, %s2453_s11  ;;  %1355 = vrot.lane.b32.xlu0 %v2732_v41, %s2453_s11  ;;  %3524 = vst [vmem:[#allocation13_spill] sm:$0xff] %v2800_v12  ;;  %v2818_v20 = vmax.f32 %v1268_v14, 0.0  ;;  %v1276_v36 = vadd.f32 %v2750_v55, %v1236_v31  ;;  %v1282_v52 = vadd.f32 %v2750_v55, %v1242_v45 }
 0x1a1   : > { %v2830_v37 = vmul.f32 %v2816_v19, %v2816_v19  ;;  %v2836_v43 = vmax.f32 %v1274_v21, 0.0  ;;  %v2838_v44 = vmax.f32 %v1272_v26, 0.0  ;;  %v2840_v51 = vmax.f32 %v1278_v32, 0.0 }
 0x1a2   : > { %v2834_v42 = vmul.f32 %v2818_v20, %v2818_v20  ;;  %v1280_v53 = vadd.f32 %v2750_v55, %v1240_v46  ;;  %v2856_v57 = vmax.f32 %v1276_v36, 0.0  ;;  %v2862_v2 = vmax.f32 %v1282_v52, 0.0 }
 0x1a3   : > { %v2850_v54 = vmul.f32 %v2836_v43, %v2836_v43  ;;  %v2854_v56 = vmul.f32 %v2838_v44, %v2838_v44  ;;  %v2860_v1 = vmul.f32 %v2840_v51, %v2840_v51  ;;  %v1286_v13 = vadd.f32 %v2750_v55, %v1246_v62 }
 0x1a4   : > { %1361 = vrot.lane.b32.xlu1 %v2736_v47, %s2453_s11  ;;  %1359 = vrot.lane.b32.xlu0 %v2740_v48, %s2453_s11  ;;  %3525 = vst [vmem:[#allocation14_spill] sm:$0xff] %v2856_v57  ;;  %3526 = vst [vmem:[#allocation15_spill] sm:$0xff] %v2862_v2  ;;  %v2864_v7 = vmax.f32 %v1280_v53, 0.0  ;;  %v2872_v8 = vmul.f32 %v2856_v57, %v2856_v57  ;;  %v1284_v14 = vadd.f32 %v2750_v55, %v1244_v63 }
 0x1a5   : > { %v2878_v21 = vmul.f32 %v2862_v2, %v2862_v2  ;;  %v2888_v27 = vmax.f32 %v1286_v13, 0.0  ;;  %v1290_v32 = vadd.f32 %v2750_v55, %v1250_v15  ;;  %v1288_v36 = vadd.f32 %v2750_v55, %v1248_v16 }
 0x1a6   : > { %3527 = vst [vmem:[#allocation16_spill] sm:$0xff] %v2864_v7  ;;  %v2882_v26 = vmul.f32 %v2864_v7, %v2864_v7  ;;  %v2890_v31 = vmax.f32 %v1284_v14, 0.0 }
 0x1a7   : > { %3528 = vst [vmem:[#allocation17_spill] sm:$0xff] %v2888_v27  ;;  %v2900_v45 = vmul.f32 %v2888_v27, %v2888_v27  ;;  %v2906_v52 = vmax.f32 %v1290_v32, 0.0  ;;  %v2908_v53 = vmax.f32 %v1288_v36, 0.0 }
 0x1a8   : > { %1365 = vrot.lane.b32.xlu1 %v2758_v58, %s2453_s11  ;;  %1363 = vrot.lane.b32.xlu0 %v2762_v59, %s2453_s11  ;;  %3529 = vst [vmem:[#allocation18_spill] sm:$0xff] %v2890_v31  ;;  %v2904_v46 = vmul.f32 %v2890_v31, %v2890_v31  ;;  %v3535_v31 = vlaneseq }
 0x1a9   : > { %3531 = vst [vmem:[#allocation20_spill] sm:$0xff] %v2906_v52  ;;  %3532 = vst [vmem:[#allocation21_spill] sm:$0xff] %v2908_v53  ;;  %v2916_v55 = vmul.f32 %v2906_v52, %v2906_v52  ;;  %v2920_v62 = vmul.f32 %v2908_v53, %v2908_v53 }
 0x1aa   : > { %3530 = vst [vmem:[#allocation19_spill] sm:$0xff] %v2904_v46  ;;  %v2941_v61 = vand.u32 127, %v3535_v31 }
 0x1ab   : > { %3533 = vst [vmem:[#allocation22_spill] sm:$0xff] %v2916_v55  ;;  %3534 = vst [vmem:[#allocation23_spill] sm:$0xff] %v2920_v62 }
 0x1ac   : > { %1369 = vrot.lane.b32.xlu1 %v2778_v3, %s2453_s11  ;;  %1367 = vrot.lane.b32.xlu0 %v2782_v4, %s2453_s11  ;;  %vm1405_vm0 = vcmp.lt.s32.totalorder %v2941_v61, 1  ;;  %vm1435_vm1 = vcmp.eq.s32.totalorder %v2941_v61, 0 }
 0x1b0   : > { %1373 = vrot.lane.b32.xlu1 %v2788_v9, %s2453_s11  ;;  %1371 = vrot.lane.b32.xlu0 %v2800_v12, %s2453_s11 }
 0x1b4   : > { %1377 = vrot.lane.b32.xlu1 %v2806_v17, %s2453_s11  ;;  %1375 = vrot.lane.b32.xlu0 %v2810_v18, %s2453_s11 }
 0x1b8   : > { %1381 = vrot.lane.b32.xlu1 %v2830_v37, %s2453_s11  ;;  %1379 = vrot.lane.b32.xlu0 %v2834_v42, %s2453_s11 }
 0x1bc   : > { %1385 = vrot.lane.b32.xlu1 %v2850_v54, %s2453_s11  ;;  %1383 = vrot.lane.b32.xlu0 %v2854_v56, %s2453_s11 }
 0x1c0   : > { %1389 = vrot.lane.b32.xlu1 %v2860_v1, %s2453_s11  ;;  %1387 = vrot.lane.b32.xlu0 %v2872_v8, %s2453_s11 }
 0x1c4   : > { %1393 = vrot.lane.b32.xlu1 %v2878_v21, %s2453_s11  ;;  %1391 = vrot.lane.b32.xlu0 %v2882_v26, %s2453_s11 }
 0x1c8   : > { %1397 = vrot.lane.b32.xlu1 %v2900_v45, %s2453_s11  ;;  %1395 = vrot.lane.b32.xlu0 %v2904_v46, %s2453_s11 }
 0x1cc   : > { %1401 = vrot.lane.b32.xlu1 %v2916_v55, %s2453_s11  ;;  %1399 = vrot.lane.b32.xlu0 %v2920_v62, %s2453_s11 }
 0x20a   : > { %v1352_v63 = vpop.permute.xlu1 %1351  ;;  %v1348_v13 = vpop.permute.xlu0 %1347 }
 0x20e   : > { %v1354_v14 = vpop.permute.xlu1 %1353  ;;  %v1350_v15 = vpop.permute.xlu0 %1349 }
 0x212   : > { %v1358_v16 = vpop.permute.xlu1 %1357  ;;  %v2926_v32 = vpop.permute.xlu0 %1355 }
 0x216   : > { %v2928_v36 = vpop.permute.xlu1 %1361  ;;  %v2930_v5 = vpop.permute.xlu0 %1359 }
 0x21a   : > { %v2932_v6 = vpop.permute.xlu1 %1365  ;;  %v2934_v53 = vpop.permute.xlu0 %1363 }
 0x21e   : > { %v2936_v52 = vpop.permute.xlu1 %1369  ;;  %v2938_v0 = vpop.permute.xlu0 %1367 }
 0x222   : > { %v2943_v27 = vpop.permute.xlu1 %1373  ;;  %v2945_v60 = vpop.permute.xlu0 %1371 }
 0x223   : > { %3536 = vst [vmem:[#allocation24_spill] sm:$0xff] %v2943_v27  ;;  %3537 = vst [vmem:[#allocation25_spill] sm:$0xff] %v2945_v60 }
 0x226   : > { %v1378_v12 = vpop.permute.xlu1 %1377  ;;  %v1376_v62 = vpop.permute.xlu0 %1375 }
 0x227   : > { %v1407_v50 = vsel %vm1405_vm0, %v1350_v15, %v1378_v12  ;;  %v1421_v55 = vsel %vm1405_vm0, %v1378_v12, %v1350_v15  ;;  %v1406_v31 = vsel %vm1405_vm0, %v1348_v13, %v1376_v62  ;;  %v1420_v9 = vsel %vm1405_vm0, %v1376_v62, %v1348_v13 }
 0x228   : > { %v1439_v60 = vsel %vm1435_vm1, 0.0, %v1421_v55  ;;  %v1468_v7 = vadd.f32 %v1407_v50, %v2806_v17  ;;  %v1437_v2 = vsel %vm1435_vm1, 0.0, %v1420_v9  ;;  %v1466_v49 = vadd.f32 %v1406_v31, %v2810_v18 }
 0x229   : > { %v1467_v4 = vadd.f32 %v1439_v60, %v2714_v34  ;;  %v1465_v12 = vadd.f32 %v1437_v2, %v2700_v29 }
 0x22a   : > { %v1496_v15 = vmul.f32 5e-05, %v1468_v7  ;;  %v1494_v57 = vmul.f32 5e-05, %v1466_v49  ;;  %v1382_v40 = vpop.permute.xlu1 %1381  ;;  %v1380_v27 = vpop.permute.xlu0 %1379 }
 0x22b   : > { %v1495_v46 = vmul.f32 5e-05, %v1467_v4  ;;  %v1493_v62 = vmul.f32 5e-05, %v1465_v12  ;;  %v1409_v55 = vsel %vm1405_vm0, %v1354_v14, %v1382_v40  ;;  %v1423_v50 = vsel %vm1405_vm0, %v1382_v40, %v1354_v14 }
 0x22c   : > { %v1524_v17 = vadd.f32 1.0, %v1496_v15  ;;  %v1522_v9 = vadd.f32 1.0, %v1494_v57  ;;  %v1443_v18 = vsel %vm1435_vm1, 0.0, %v1423_v50  ;;  %v1472_v34 = vadd.f32 %v1409_v55, %v2830_v37 }
 0x22d   : > { %v1523_v29 = vadd.f32 1.0, %v1495_v46  ;;  %v1521_v60 = vadd.f32 1.0, %v1493_v62  ;;  %v1471_v49 = vadd.f32 %v1443_v18, %v2710_v33  ;;  %v1408_v4 = vsel %vm1405_vm0, %v1352_v63, %v1380_v27 }
 0x22e   : > { %2300 = vrsqrt.f32 %v1524_v17  ;;  %v1500_v2 = vmul.f32 5e-05, %v1472_v34  ;;  %v1422_v7 = vsel %vm1405_vm0, %v1380_v27, %v1352_v63  ;;  %v1470_v40 = vadd.f32 %v1408_v4, %v2834_v42  ;;  %v1386_v57 = vpop.permute.xlu1 %1385  ;;  %v1384_v12 = vpop.permute.xlu0 %1383 }
 0x22f   : > { %2302 = vrsqrt.f32 %v1523_v29  ;;  %v1499_v13 = vmul.f32 5e-05, %v1471_v49  ;;  %v1441_v37 = vsel %vm1435_vm1, 0.0, %v1422_v7  ;;  %v1411_v46 = vsel %vm1405_vm0, %v1358_v16, %v1386_v57 }
 0x230   : > { %2304 = vrsqrt.f32 %v1521_v60  ;;  %v1528_v33 = vadd.f32 1.0, %v1500_v2  ;;  %v1469_v14 = vadd.f32 %v1441_v37, %v2696_v28  ;;  %v1498_v31 = vmul.f32 5e-05, %v1470_v40 }
 0x231   : > { %2306 = vrsqrt.f32 %v1522_v9  ;;  %v1527_v15 = vadd.f32 1.0, %v1499_v13  ;;  %v1425_v42 = vsel %vm1405_vm0, %v1386_v57, %v1358_v16  ;;  %v1476_v27 = vadd.f32 %v1411_v46, %v2850_v54 }
 0x232   : > { %2308 = vrsqrt.f32 %v1528_v33  ;;  %v1497_v63 = vmul.f32 5e-05, %v1469_v14  ;;  %v1526_v62 = vadd.f32 1.0, %v1498_v31  ;;  %v1447_v55 = vsel %vm1435_vm1, 0.0, %v1425_v42  ;;  %v1390_v18 = vpop.permute.xlu1 %1389 }
 0x233   : > { %2310 = vrsqrt.f32 %v1527_v15  ;;  %v1475_v50 = vadd.f32 %v1447_v55, %v2720_v38  ;;  %v1504_v17 = vmul.f32 5e-05, %v1476_v27  ;;  %v1410_v28 = vsel %vm1405_vm0, %v2926_v32, %v1384_v12 }
 0x234   : > { %v1525_v9 = vadd.f32 1.0, %v1497_v63  ;;  %2312 = vrsqrt.f32 %v1526_v62  ;;  %v1424_v54 = vsel %vm1405_vm0, %v1384_v12, %v2926_v32  ;;  %v1474_v16 = vadd.f32 %v1410_v28, %v2854_v56 }
 0x235   : > { %v1532_v34 = vadd.f32 1.0, %v1504_v17  ;;  %v1445_v29 = vsel %vm1435_vm1, 0.0, %v1424_v54  ;;  %v1427_v38 = vsel %vm1405_vm0, %v1390_v18, %v2928_v36  ;;  %v1503_v49 = vmul.f32 5e-05, %v1475_v50 }
 0x236   : > { %2314 = vrsqrt.f32 %v1525_v9  ;;  %v1473_v4 = vadd.f32 %v1445_v29, %v2732_v41  ;;  %v1502_v2 = vmul.f32 5e-05, %v1474_v16  ;;  %v1413_v56 = vsel %vm1405_vm0, %v2928_v36, %v1390_v18 }
 0x237   : > { %2316 = vrsqrt.f32 %v1532_v34  ;;  %v1451_v40 = vsel %vm1435_vm1, 0.0, %v1427_v38  ;;  %v1531_v13 = vadd.f32 1.0, %v1503_v49  ;;  %v1480_v33 = vadd.f32 %v1413_v56, %v2860_v1 }
 0x238   : > { %v3001_v60 = vpop.eup %2300  ;;  %v1501_v37 = vmul.f32 5e-05, %v1473_v4  ;;  %v1530_v46 = vadd.f32 1.0, %v1502_v2  ;;  %v1479_v31 = vadd.f32 %v1451_v40, %v2736_v47 }
 0x239   : > { %v3004_v32 = vpop.eup %2302  ;;  %2318 = vrsqrt.f32 %v3001_v60  ;;  %v1580_v36 = vmul.f32 %v3001_v60, %v2790_v10  ;;  %vm1628_vm2 = vcmp.eq.f32.partialorder %v3001_v60, inf  ;;  %vm1630_vm4 = vcmp.eq.f32.partialorder %v3001_v60, 0.0 }
 0x23a   : > { %v3010_v7 = vpop.eup %2304  ;;  %2320 = vrsqrt.f32 %v3004_v32  ;;  %v1579_v15 = vmul.f32 %v3004_v32, %v2692_v25  ;;  %vm1621_vm3 = vcmp.eq.f32.partialorder %v3004_v32, inf  ;;  %v1624_v1 = vand.u32 2147483648, %v3004_v32 }
 0x23b   : > { %v3015_v57 = vpop.eup %2306  ;;  %2322 = vrsqrt.f32 %v3010_v7  ;;  %vm1623_vm5 = vcmp.eq.f32.partialorder %v3004_v32, 0.0  ;;  %v1631_v10 = vand.u32 2147483648, %v3001_v60  ;;  %v1577_v47 = vmul.f32 %v3010_v7, %v2688_v23 }
 0x23c   : > { %v3018_v41 = vpop.eup %2308  ;;  %2324 = vrsqrt.f32 %v3015_v57  ;;  %v3042_v42 = vmul.f32 %v3015_v57, %v2792_v11  ;;  %vm1607_vm6 = vcmp.eq.f32.partialorder %v3010_v7, inf  ;;  %vm1609_vm7 = vcmp.eq.f32.partialorder %v3010_v7, 0.0 }
 0x23d   : > { %v3021_v14 = vpop.eup %2310  ;;  %v1610_v27 = vand.u32 2147483648, %v3010_v7  ;;  %vm1614_vm8 = vcmp.eq.f32.partialorder %v3015_v57, inf  ;;  %v1617_v23 = vand.u32 2147483648, %v3015_v57  ;;  %vm1616_vm9 = vcmp.eq.f32.partialorder %v3015_v57, 0.0 }
 0x23e   : > { %v3028_v12 = vpop.eup %2312  ;;  %2326 = vrsqrt.f32 %v3021_v14  ;;  %v3057_v11 = vmul.f32 %v3021_v14, %v2690_v24  ;;  %v3063_v62 = vmul.f32 %v3018_v41, %v2816_v19  ;;  %vm1649_vm10 = vcmp.eq.f32.partialorder %v3021_v14, inf }
 0x23f   : > { %2328 = vrsqrt.f32 %v3018_v41  ;;  %v1652_v55 = vand.u32 2147483648, %v3021_v14  ;;  %v1659_v50 = vand.u32 2147483648, %v3018_v41  ;;  %vm1651_vm11 = vcmp.eq.f32.partialorder %v3021_v14, 0.0 }
 0x240   : > { %v3045_v25 = vpop.eup %2314  ;;  %2330 = vrsqrt.f32 %v3028_v12  ;;  %vm1656_vm12 = vcmp.eq.f32.partialorder %v3018_v41, inf  ;;  %v3076_v28 = vmul.f32 %v3028_v12, %v2818_v20  ;;  %vm1658_vm13 = vcmp.eq.f32.partialorder %v3018_v41, 0.0 }
 0x241   : > { %v3051_v63 = vpop.eup %2316  ;;  %2332 = vrsqrt.f32 %v3045_v25  ;;  %v3072_v24 = vmul.f32 %v3045_v25, %v2686_v22  ;;  %v1638_v19 = vand.u32 2147483648, %v3045_v25  ;;  %vm1642_vm14 = vcmp.eq.f32.partialorder %v3028_v12, inf }
 0x242   : > { %2334 = vrsqrt.f32 %v1531_v13  ;;  %v1529_v16 = vadd.f32 1.0, %v1501_v37  ;;  %vm1635_vm15 = vcmp.eq.f32.partialorder %v3045_v25, inf  ;;  %v1507_v20 = vmul.f32 5e-05, %v1479_v31 }
 0x243   : > { %v2319_v17 = vpop.eup %2318  ;;  %2336 = vrsqrt.f32 %v3051_v63  ;;  %v1508_v34 = vmul.f32 5e-05, %v1480_v33  ;;  %v1645_v49 = vand.u32 2147483648, %v3028_v12 }
 0x244   : > { %v2321_v9 = vpop.eup %2320  ;;  %v1627_v54 = vmul.f32 %v2319_v17, %v3001_v60  ;;  %2338 = vrsqrt.f32 %v1530_v46  ;;  %v1535_v40 = vadd.f32 1.0, %v1507_v20 }
 0x245   : > { %v2323_v18 = vpop.eup %2322  ;;  %v1620_v22 = vmul.f32 %v2321_v9, %v3004_v32  ;;  %2340 = vrsqrt.f32 %v1529_v16  ;;  %v1536_v13 = vadd.f32 1.0, %v1508_v34  ;;  %v1388_v9 = vpop.permute.xlu0 %1387 }
 0x246   : > { %v1629_v29 = vsel %vm1628_vm2, %v3001_v60, %v1627_v54  ;;  %v1606_v38 = vmul.f32 %v2323_v18, %v3010_v7  ;;  %v2325_v4 = vpop.eup %2324  ;;  %2342 = vrsqrt.f32 %v1535_v40  ;;  %vm1644_vm2 = vcmp.eq.f32.partialorder %v3028_v12, 0.0 }
 0x247   : > { %v1622_v2 = vsel %vm1621_vm3, %v3004_v32, %v1620_v22  ;;  %v1632_v56 = vsel %vm1630_vm4, %v1631_v10, %v1629_v29  ;;  %v1613_v17 = vmul.f32 %v2325_v4, %v3015_v57  ;;  %2344 = vrsqrt.f32 %v1536_v13  ;;  %v1394_v13 = vpop.permute.xlu1 %1393 }
 0x248   : > { %v2327_v37 = vpop.eup %2326  ;;  %v1625_v46 = vsel %vm1623_vm5, %v1624_v1, %v1622_v2  ;;  %v1804_v33 = vmul.f32 %v1632_v56, %v1580_v36  ;;  %v1608_v31 = vsel %vm1607_vm6, %v3010_v7, %v1606_v38  ;;  %vm1637_vm3 = vcmp.eq.f32.partialorder %v3045_v25, 0.0 }
 0x249   : > { %v2329_v54 = vpop.eup %2328  ;;  %v1803_v16 = vmul.f32 %v1625_v46, %v1579_v15  ;;  %v1611_v60 = vsel %vm1609_vm7, %v1610_v27, %v1608_v31  ;;  %v1648_v10 = vmul.f32 %v2327_v37, %v3021_v14  ;;  %v1615_v32 = vsel %vm1614_vm8, %v3015_v57, %v1613_v17 }
 0x24a   : > { %v2331_v18 = vpop.eup %2330  ;;  %1832 = vst [vmem:[%s3491_s3 + $0x18] sm:$0xff] %v1804_v33  ;;  %v1801_v36 = vmul.f32 %v1611_v60, %v1577_v47  ;;  %v1655_v1 = vmul.f32 %v2329_v54, %v3018_v41  ;;  %v1618_v7 = vsel %vm1616_vm9, %v1617_v23, %v1615_v32  ;;  %v1426_v47 = vsel %vm1405_vm0, %v1388_v9, %v2930_v5 }
 0x24b   : > { %v2333_v15 = vpop.eup %2332  ;;  %1831 = vst [vmem:[%s3491_s3 + $0x10] sm:$0xff] %v1803_v16  ;;  %v1650_v27 = vsel %vm1649_vm10, %v3021_v14, %v1648_v10  ;;  %v1641_v22 = vmul.f32 %v2331_v18, %v3028_v12  ;;  %v1802_v20 = vmul.f32 %v1618_v7, %v3042_v42  ;;  %vm1684_vm4 = vcmp.eq.f32.partialorder %v3051_v63, inf  ;;  %v1398_v7 = vpop.permute.xlu1 %1397 }
 0x24c   : > { %1829 = vst [vmem:[%s3491_s3] sm:$0xff] %v1801_v36  ;;  %v1653_v57 = vsel %vm1651_vm11, %v1652_v55, %v1650_v27  ;;  %v1657_v23 = vsel %vm1656_vm12, %v3018_v41, %v1655_v1  ;;  %v1634_v34 = vmul.f32 %v2333_v15, %v3045_v25  ;;  %v3133_v29 = vpop.eup %2334  ;;  %vm1686_vm5 = vcmp.eq.f32.partialorder %v3051_v63, 0.0 }
 0x24d   : > { %v1660_v38 = vsel %vm1658_vm13, %v1659_v50, %v1657_v23  ;;  %v1807_v42 = vmul.f32 %v1653_v57, %v3057_v11  ;;  %v1643_v4 = vsel %vm1642_vm14, %v3028_v12, %v1641_v22  ;;  %v2337_v14 = vpop.eup %2336  ;;  %1830 = vst [vmem:[%s3491_s3 + $0x8] sm:$0xff] %v1802_v20  ;;  %2346 = vrsqrt.f32 %v3133_v29 }
 0x24e   : > { %v1808_v55 = vmul.f32 %v1660_v38, %v3063_v62  ;;  %v1636_v41 = vsel %vm1635_vm15, %v3045_v25, %v1634_v34  ;;  %v1646_v11 = vsel %vm1644_vm2, %v1645_v49, %v1643_v4  ;;  %v3150_v50 = vpop.eup %2338  ;;  %v1449_v62 = vsel %vm1435_vm1, 0.0, %v1426_v47 }
 0x24f   : > { %1835 = vst [vmem:[%s3491_s3 + $0x30] sm:$0xff] %v1807_v42  ;;  %v1639_v12 = vsel %vm1637_vm3, %v1638_v19, %v1636_v41  ;;  %v1806_v2 = vmul.f32 %v1646_v11, %v3076_v28  ;;  %v3161_v56 = vpop.eup %2340  ;;  %v1683_v40 = vmul.f32 %v2337_v14, %v3051_v63  ;;  %v1412_v25 = vsel %vm1405_vm0, %v2930_v5, %v1388_v9 }
 0x250   : > { %1836 = vst [vmem:[%s3491_s3 + $0x38] sm:$0xff] %v1808_v55  ;;  %v1805_v49 = vmul.f32 %v1639_v12, %v3072_v24  ;;  %v1588_v28 = vmul.f32 %v3051_v63, %v2836_v43  ;;  %v1687_v19 = vand.u32 2147483648, %v3051_v63  ;;  %2348 = vrsqrt.f32 %v3161_v56  ;;  %v3186_v43 = vpop.eup %2342 }
 0x251   : > { %1834 = vst [vmem:[%s3491_s3 + $0x28] sm:$0xff] %v1806_v2  ;;  %v1685_v24 = vsel %vm1684_vm4, %v3051_v63, %v1683_v40  ;;  %2350 = vrsqrt.f32 %v3150_v50  ;;  %v1477_v5 = vadd.f32 %v1449_v62, %v2740_v48  ;;  %v1587_v37 = vmul.f32 %v3133_v29, %v2702_v30  ;;  %v3192_v31 = vpop.eup %2344  ;;  %v1392_v30 = vpop.permute.xlu0 %1391 }
 0x252   : > { %1833 = vst [vmem:[%s3491_s3 + $0x20] sm:$0xff] %v1805_v49  ;;  %vm1677_vm6 = vcmp.eq.f32.partialorder %v3133_v29, inf  ;;  %v1680_v46 = vand.u32 2147483648, %v3133_v29  ;;  %v1688_v33 = vsel %vm1686_vm5, %v1687_v19, %v1685_v24  ;;  %vm1679_vm7 = vcmp.eq.f32.partialorder %v3133_v29, 0.0 }
 0x253   : > { %v1812_v63 = vmul.f32 %v1688_v33, %v1588_v28  ;;  %v3197_v17 = vmul.f32 %v3161_v56, %v2716_v35  ;;  %v3201_v48 = vmul.f32 %v3150_v50, %v2838_v44  ;;  %2352 = vrsqrt.f32 %v3186_v43 }
 0x254   : > { %vm1663_vm8 = vcmp.eq.f32.partialorder %v3161_v56, inf  ;;  %v1666_v9 = vand.u32 2147483648, %v3161_v56  ;;  %v1673_v54 = vand.u32 2147483648, %v3150_v50  ;;  %v3209_v16 = vmul.f32 %v3186_v43, %v2722_v39 }
 0x255   : > { %2354 = vrsqrt.f32 %v3192_v31  ;;  %1840 = vst [vmem:[%s3491_s3 + $0x58] sm:$0xff] %v1812_v63  ;;  %vm1665_vm9 = vcmp.eq.f32.partialorder %v3161_v56, 0.0  ;;  %vm1670_vm10 = vcmp.eq.f32.partialorder %v3150_v50, inf  ;;  %v3219_v35 = vmul.f32 %v3192_v31, %v2840_v51 }
 0x256   : > { %v1708_v44 = vand.u32 2147483648, %v3186_v43  ;;  %v1715_v60 = vand.u32 2147483648, %v3192_v31  ;;  %v1478_v39 = vadd.f32 %v1412_v25, %v2872_v8  ;;  %vm1672_vm11 = vcmp.eq.f32.partialorder %v3150_v50, 0.0 }
 0x257   : > { %v1505_v10 = vmul.f32 5e-05, %v1477_v5  ;;  %v1415_v18 = vsel %vm1405_vm0, %v2932_v6, %v1394_v13  ;;  %v1429_v32 = vsel %vm1405_vm0, %v1394_v13, %v2932_v6  ;;  %v1414_v51 = vsel %vm1405_vm0, %v2934_v53, %v1392_v30  ;;  %v2347_v27 = vpop.eup %2346 }
 0x258   : > { %vm1705_vm12 = vcmp.eq.f32.partialorder %v3186_v43, inf  ;;  %v1506_v36 = vmul.f32 5e-05, %v1478_v39  ;;  %v1455_v8 = vsel %vm1435_vm1, 0.0, %v1429_v32  ;;  %v1484_v1 = vadd.f32 %v1415_v18, %v2878_v21 }
 0x259   : > { %v1428_v15 = vsel %vm1405_vm0, %v1392_v30, %v2934_v53  ;;  %vm1707_vm13 = vcmp.eq.f32.partialorder %v3186_v43, 0.0  ;;  %vm1712_vm14 = vcmp.eq.f32.partialorder %v3192_v31, inf  ;;  %v1533_v6 = vadd.f32 1.0, %v1505_v10 }
 0x25a   : > { %v1483_v22 = vadd.f32 %v1455_v8, %v2758_v58  ;;  %v1453_v47 = vsel %vm1435_vm1, 0.0, %v1428_v15  ;;  %v1482_v20 = vadd.f32 %v1414_v51, %v2882_v26  ;;  %v1676_v21 = vmul.f32 %v2347_v27, %v3133_v29  ;;  %v2349_v34 = vpop.eup %2348  ;;  %v3538_v51 = vld [vmem:[#allocation19_spill] sm:$0xff]  ;;  %v3539_v8 = vld [vmem:[#allocation24_spill] sm:$0xff] }
 0x25b   : > { %vm1714_vm15 = vcmp.eq.f32.partialorder %v3192_v31, 0.0  ;;  %v1534_v57 = vadd.f32 1.0, %v1506_v36  ;;  %v1512_v53 = vmul.f32 5e-05, %v1484_v1  ;;  %v1481_v23 = vadd.f32 %v1453_v47, %v2762_v59  ;;  %v2351_v4 = vpop.eup %2350 }
 0x25c   : > { %2356 = vrsqrt.f32 %v1533_v6  ;;  %v1511_v38 = vmul.f32 5e-05, %v1483_v22  ;;  %v1510_v42 = vmul.f32 5e-05, %v1482_v20  ;;  %v1417_v58 = vsel %vm1405_vm0, %v2936_v52, %v1398_v7  ;;  %v3541_v6 = vld [vmem:[#allocation14_spill] sm:$0xff] }
 0x25d   : > { %v1678_v26 = vsel %vm1677_vm6, %v3133_v29, %v1676_v21  ;;  %v1662_v14 = vmul.f32 %v2349_v34, %v3161_v56  ;;  %2358 = vrsqrt.f32 %v1534_v57  ;;  %v1540_v55 = vadd.f32 1.0, %v1512_v53  ;;  %v2353_v2 = vpop.eup %2352  ;;  %v3542_v20 = vld [vmem:[#allocation10_spill] sm:$0xff]  ;;  %v3543_v34 = vld [vmem:[#allocation5_spill] sm:$0xff] }
 0x25e   : > { %v1681_v59 = vsel %vm1679_vm7, %v1680_v46, %v1678_v26  ;;  %v1669_v41 = vmul.f32 %v2351_v4, %v3150_v50  ;;  %v1539_v11 = vadd.f32 1.0, %v1511_v38  ;;  %v1509_v12 = vmul.f32 5e-05, %v1481_v23 }
 0x25f   : > { %v1811_v62 = vmul.f32 %v1681_v59, %v1587_v37  ;;  %v1664_v49 = vsel %vm1663_vm8, %v3161_v56, %v1662_v14  ;;  %2360 = vrsqrt.f32 %v1540_v55  ;;  %v1538_v40 = vadd.f32 1.0, %v1510_v42  ;;  %v2355_v25 = vpop.eup %2354  ;;  %v3544_v42 = vld [vmem:[#allocation15_spill] sm:$0xff]  ;;  %v3545_v55 = vld [vmem:[#allocation16_spill] sm:$0xff] }
 0x260   : > { %v1667_v28 = vsel %vm1665_vm9, %v1666_v9, %v1664_v49  ;;  %v1671_v29 = vsel %vm1670_vm10, %v3150_v50, %v1669_v41  ;;  %v1704_v19 = vmul.f32 %v2353_v2, %v3186_v43  ;;  %2362 = vrsqrt.f32 %v1539_v11 }
 0x261   : > { %1839 = vst [vmem:[%s3491_s3 + $0x50] sm:$0xff] %v1811_v62  ;;  %v1674_v24 = vsel %vm1672_vm11, %v1673_v54, %v1671_v29  ;;  %v1809_v5 = vmul.f32 %v1667_v28, %v3197_v17  ;;  %v1711_v13 = vmul.f32 %v2355_v25, %v3192_v31  ;;  %v1537_v56 = vadd.f32 1.0, %v1509_v12  ;;  %v3546_v12 = vld [vmem:[#allocation25_spill] sm:$0xff] }
 0x262   : > { %v1810_v37 = vmul.f32 %v1674_v24, %v3201_v48  ;;  %v1706_v46 = vsel %vm1705_vm12, %v3186_v43, %v1704_v19  ;;  %2364 = vrsqrt.f32 %v1538_v40  ;;  %v1431_v33 = vsel %vm1405_vm0, %v1398_v7, %v2936_v52  ;;  %v1396_v48 = vpop.permute.xlu0 %1395  ;;  %v3547_v24 = vld [vmem:[#allocation12_spill] sm:$0xff] }
 0x263   : > { %1837 = vst [vmem:[%s3491_s3 + $0x40] sm:$0xff] %v1809_v5  ;;  %v1709_v50 = vsel %vm1707_vm13, %v1708_v44, %v1706_v46  ;;  %v1713_v63 = vsel %vm1712_vm14, %v3192_v31, %v1711_v13  ;;  %2366 = vrsqrt.f32 %v1537_v56  ;;  %v1459_v17 = vsel %vm1435_vm1, 0.0, %v1431_v33  ;;  %v3548_v13 = vld [vmem:[#allocation22_spill] sm:$0xff] }
 0x264   : > { %1838 = vst [vmem:[%s3491_s3 + $0x48] sm:$0xff] %v1810_v37  ;;  %v1716_v52 = vsel %vm1714_vm15, %v1715_v60, %v1713_v63  ;;  %v1815_v43 = vmul.f32 %v1709_v50, %v3209_v16  ;;  %v1487_v30 = vadd.f32 %v1459_v17, %v2778_v3  ;;  %v1488_v9 = vadd.f32 %v1417_v58, %v2900_v45  ;;  %v1402_v16 = vpop.permute.xlu1 %1401  ;;  %v3549_v46 = vld [vmem:[#allocation6_spill] sm:$0xff]  ;;  %v3550_v50 = vld [vmem:[#allocation23_spill] sm:$0xff] }
 0x265   : > { %v1816_v54 = vmul.f32 %v1716_v52, %v3219_v35  ;;  %v1430_v31 = vsel %vm1405_vm0, %v1396_v48, %v2938_v0  ;;  %v1416_v45 = vsel %vm1405_vm0, %v2938_v0, %v1396_v48  ;;  %v1419_v1 = vsel %vm1405_vm0, %v3539_v8, %v1402_v16  ;;  %v3540_v0 = vld [vmem:[#allocation4_spill] sm:$0xff] }
 0x266   : > { %v3304_v44 = vpop.eup %2356  ;;  %1843 = vst [vmem:[%s3491_s3 + $0x70] sm:$0xff] %v1815_v43  ;;  %v1515_v39 = vmul.f32 5e-05, %v1487_v30  ;;  %v1516_v3 = vmul.f32 5e-05, %v1488_v9  ;;  %v1457_v18 = vsel %vm1435_vm1, 0.0, %v1430_v31  ;;  %v1486_v36 = vadd.f32 %v1416_v45, %v3538_v51  ;;  %v1400_v23 = vpop.permute.xlu0 %1399 }
 0x267   : > { %v3312_v60 = vpop.eup %2358  ;;  %1844 = vst [vmem:[%s3491_s3 + $0x78] sm:$0xff] %v1816_v54  ;;  %2368 = vrsqrt.f32 %v3304_v44  ;;  %v1589_v15 = vmul.f32 %v3304_v44, %v3540_v0  ;;  %vm1691_vm2 = vcmp.eq.f32.partialorder %v3304_v44, inf  ;;  %vm1693_vm3 = vcmp.eq.f32.partialorder %v3304_v44, 0.0 }
 0x268   : > { %2370 = vrsqrt.f32 %v3312_v60  ;;  %v1543_v10 = vadd.f32 1.0, %v1515_v39  ;;  %v1544_v7 = vadd.f32 1.0, %v1516_v3  ;;  %v1590_v22 = vmul.f32 %v3312_v60, %v3541_v6 }
 0x269   : > { %v3322_v35 = vpop.eup %2360  ;;  %v1694_v47 = vand.u32 2147483648, %v3304_v44  ;;  %v1485_v21 = vadd.f32 %v1457_v18, %v3542_v20  ;;  %vm1698_vm4 = vcmp.eq.f32.partialorder %v3312_v60, inf  ;;  %vm1700_vm5 = vcmp.eq.f32.partialorder %v3312_v60, 0.0 }
 0x26a   : > { %v3326_v32 = vpop.eup %2362  ;;  %2372 = vrsqrt.f32 %v3322_v35  ;;  %v1701_v53 = vand.u32 2147483648, %v3312_v60  ;;  %v1596_v58 = vmul.f32 %v3322_v35, %v3544_v42  ;;  %vm1740_vm6 = vcmp.eq.f32.partialorder %v3322_v35, inf }
 0x26b   : > { %2374 = vrsqrt.f32 %v3326_v32  ;;  %v1595_v38 = vmul.f32 %v3326_v32, %v3543_v34  ;;  %vm1733_vm7 = vcmp.eq.f32.partialorder %v3326_v32, inf  ;;  %v1736_v4 = vand.u32 2147483648, %v3326_v32 }
 0x26c   : > { %v3337_v27 = vpop.eup %2364  ;;  %2376 = vrsqrt.f32 %v1543_v10  ;;  %vm1742_vm8 = vcmp.eq.f32.partialorder %v3322_v35, 0.0  ;;  %v1743_v26 = vand.u32 2147483648, %v3322_v35  ;;  %v1513_v14 = vmul.f32 5e-05, %v1485_v21 }
 0x26d   : > { %v3344_v57 = vpop.eup %2366  ;;  %2378 = vrsqrt.f32 %v3337_v27  ;;  %vm1735_vm9 = vcmp.eq.f32.partialorder %v3326_v32, 0.0  ;;  %v3363_v59 = vmul.f32 %v3337_v27, %v3545_v55  ;;  %v1514_v41 = vmul.f32 5e-05, %v1486_v36 }
 0x26e   : > { %2380 = vrsqrt.f32 %v3344_v57  ;;  %v1433_v11 = vsel %vm1405_vm0, %v1402_v16, %v3539_v8  ;;  %v1418_v2 = vsel %vm1405_vm0, %v3546_v12, %v1400_v23  ;;  %vm1726_vm10 = vcmp.eq.f32.partialorder %v3337_v27, inf }
 0x26f   : > { %2382 = vrsqrt.f32 %v1544_v7  ;;  %v1541_v49 = vadd.f32 1.0, %v1513_v14  ;;  %v1463_v40 = vsel %vm1435_vm1, 0.0, %v1433_v11  ;;  %v1432_v25 = vsel %vm1405_vm0, %v1400_v23, %v3546_v12  ;;  %v3552_v12 = vld [vmem:[#allocation7_spill] sm:$0xff] }
 0x270   : > { %vm1728_vm11 = vcmp.eq.f32.partialorder %v3337_v27, 0.0  ;;  %v1542_v19 = vadd.f32 1.0, %v1514_v41  ;;  %v1491_v5 = vadd.f32 %v1463_v40, %v3547_v24  ;;  %v1492_v56 = vadd.f32 %v1419_v1, %v3548_v13 }
 0x271   : > { %v2369_v62 = vpop.eup %2368  ;;  %v1593_v33 = vmul.f32 %v3344_v57, %v3549_v46  ;;  %2384 = vrsqrt.f32 %v1541_v49  ;;  %v1490_v63 = vadd.f32 %v1418_v2, %v3550_v50  ;;  %v1729_v52 = vand.u32 2147483648, %v3337_v27 }
 0x272   : > { %v2371_v28 = vpop.eup %2370  ;;  %v1690_v29 = vmul.f32 %v2369_v62, %v3304_v44  ;;  %2386 = vrsqrt.f32 %v1542_v19  ;;  %v1461_v43 = vsel %vm1435_vm1, 0.0, %v1432_v25  ;;  %v1519_v31 = vmul.f32 5e-05, %v1491_v5  ;;  %v3553_v5 = vld [vmem:[#allocation17_spill] sm:$0xff] }
 0x273   : > { %v1697_v37 = vmul.f32 %v2371_v28, %v3312_v60  ;;  %v1520_v61 = vmul.f32 5e-05, %v1492_v56  ;;  %v1518_v36 = vmul.f32 5e-05, %v1490_v63  ;;  %vm1719_vm0 = vcmp.eq.f32.partialorder %v3344_v57, inf }
 0x274   : > { %v2373_v17 = vpop.eup %2372  ;;  %v1692_v48 = vsel %vm1691_vm2, %v3304_v44, %v1690_v29  ;;  %v1547_v21 = vadd.f32 1.0, %v1519_v31  ;;  %vm1721_vm1 = vcmp.eq.f32.partialorder %v3344_v57, 0.0  ;;  %v3555_v31 = vld [vmem:[#allocation18_spill] sm:$0xff] }
 0x275   : > { %v2375_v30 = vpop.eup %2374  ;;  %v1695_v9 = vsel %vm1693_vm3, %v1694_v47, %v1692_v48  ;;  %v1699_v54 = vsel %vm1698_vm4, %v3312_v60, %v1697_v37  ;;  %v1739_v39 = vmul.f32 %v2373_v17, %v3322_v35  ;;  %v1546_v55 = vadd.f32 1.0, %v1518_v36 }
 0x276   : > { %v2377_v3 = vpop.eup %2376  ;;  %v1702_v45 = vsel %vm1700_vm5, %v1701_v53, %v1699_v54  ;;  %v1813_v16 = vmul.f32 %v1695_v9, %v1589_v15  ;;  %v1732_v10 = vmul.f32 %v2375_v30, %v3326_v32  ;;  %v3551_v15 = vld [vmem:[#allocation13_spill] sm:$0xff] }
 0x277   : > { %v2379_v18 = vpop.eup %2378  ;;  %v1814_v51 = vmul.f32 %v1702_v45, %v1590_v22  ;;  %v1741_v44 = vsel %vm1740_vm6, %v3322_v35, %v1739_v39  ;;  %2388 = vrsqrt.f32 %v2377_v3  ;;  %v1489_v7 = vadd.f32 %v1461_v43, %v3551_v15 }
 0x278   : > { %v2381_v8 = vpop.eup %2380  ;;  %1841 = vst [vmem:[%s3491_s3 + $0x60] sm:$0xff] %v1813_v16  ;;  %v1734_v60 = vsel %vm1733_vm7, %v3326_v32, %v1732_v10  ;;  %v1744_v1 = vsel %vm1742_vm8, %v1743_v26, %v1741_v44  ;;  %v1725_v0 = vmul.f32 %v2379_v18, %v3337_v27  ;;  %v1722_v35 = vand.u32 2147483648, %v3344_v57 }
 0x279   : > { %v2383_v6 = vpop.eup %2382  ;;  %1842 = vst [vmem:[%s3491_s3 + $0x68] sm:$0xff] %v1814_v51  ;;  %v1737_v22 = vsel %vm1735_vm9, %v1736_v4, %v1734_v60  ;;  %v1820_v47 = vmul.f32 %v1744_v1, %v1596_v58  ;;  %v1718_v20 = vmul.f32 %v2381_v8, %v3344_v57  ;;  %v1548_v58 = vadd.f32 1.0, %v1520_v61  ;;  %v3556_v60 = vld [vmem:[#allocation9_spill] sm:$0xff] }
 0x27a   : > { %v1819_v53 = vmul.f32 %v1737_v22, %v1595_v38  ;;  %v1727_v23 = vsel %vm1726_vm10, %v3337_v27, %v1725_v0  ;;  %2390 = vrsqrt.f32 %v2383_v6  ;;  %v1517_v14 = vmul.f32 5e-05, %v1489_v7 }
 0x27b   : > { %1848 = vst [vmem:[%s3491_s3 + $0x98] sm:$0xff] %v1820_v47  ;;  %v1720_v32 = vsel %vm1719_vm0, %v3344_v57, %v1718_v20  ;;  %v1730_v34 = vsel %vm1728_vm11, %v1729_v52, %v1727_v23  ;;  %v2385_v4 = vpop.eup %2384  ;;  %2392 = vrsqrt.f32 %v1547_v21  ;;  %vm1761_vm12 = vcmp.eq.f32.partialorder %v2377_v3, inf  ;;  %v3557_v20 = vld [vmem:[#allocation20_spill] sm:$0xff] }
 0x27c   : > { %1847 = vst [vmem:[%s3491_s3 + $0x90] sm:$0xff] %v1819_v53  ;;  %v1723_v38 = vsel %vm1721_vm1, %v1722_v35, %v1720_v32  ;;  %v1818_v42 = vmul.f32 %v1730_v34, %v3363_v59  ;;  %v2387_v41 = vpop.eup %2386  ;;  %2394 = vrsqrt.f32 %v2385_v4  ;;  %v1545_v27 = vadd.f32 1.0, %v1517_v14  ;;  %v3558_v32 = vld [vmem:[#allocation11_spill] sm:$0xff] }
 0x27d   : > { %v1817_v26 = vmul.f32 %v1723_v38, %v1593_v33  ;;  %2396 = vrsqrt.f32 %v2387_v41  ;;  %v1764_v11 = vand.u32 2147483648, %v2377_v3  ;;  %v1599_v2 = vmul.f32 %v2377_v3, %v3552_v12  ;;  %v3554_v33 = vld [vmem:[#allocation8_spill] sm:$0xff] }
 0x27e   : > { %1846 = vst [vmem:[%s3491_s3 + $0x88] sm:$0xff] %v1818_v42  ;;  %2398 = vrsqrt.f32 %v1548_v58  ;;  %vm1763_vm13 = vcmp.eq.f32.partialorder %v2377_v3, 0.0  ;;  %vm1768_vm14 = vcmp.eq.f32.partialorder %v2383_v6, inf  ;;  %v1771_v19 = vand.u32 2147483648, %v2383_v6 }
 0x27f   : > { %1845 = vst [vmem:[%s3491_s3 + $0x80] sm:$0xff] %v1817_v26  ;;  %2400 = vrsqrt.f32 %v1546_v55  ;;  %v1600_v13 = vmul.f32 %v2383_v6, %v3553_v5  ;;  %vm1770_vm15 = vcmp.eq.f32.partialorder %v2383_v6, 0.0  ;;  %v1597_v50 = vmul.f32 %v2385_v4, %v3554_v33  ;;  %v3559_v55 = vld [vmem:[#allocation21_spill] sm:$0xff] }
 0x280   : > { %2402 = vrsqrt.f32 %v1545_v27  ;;  %vm1747_vm2 = vcmp.eq.f32.partialorder %v2385_v4, inf  ;;  %vm1749_vm3 = vcmp.eq.f32.partialorder %v2385_v4, 0.0  ;;  %v1750_v52 = vand.u32 2147483648, %v2385_v4 }
 0x281   : > { %v2389_v57 = vpop.eup %2388  ;;  %vm1754_vm4 = vcmp.eq.f32.partialorder %v2387_v41, inf  ;;  %v1757_v54 = vand.u32 2147483648, %v2387_v41  ;;  %vm1756_vm5 = vcmp.eq.f32.partialorder %v2387_v41, 0.0 }
 0x282   : > { %v1760_v59 = vmul.f32 %v2389_v57, %v2377_v3 }
 0x284   : > { %v1762_v62 = vsel %vm1761_vm12, %v2377_v3, %v1760_v59  ;;  %v2391_v49 = vpop.eup %2390  ;;  %v1598_v3 = vmul.f32 %v2387_v41, %v3555_v31 }
 0x285   : > { %v1765_v40 = vsel %vm1763_vm13, %v1764_v11, %v1762_v62  ;;  %v1767_v25 = vmul.f32 %v2391_v49, %v2383_v6  ;;  %v2393_v29 = vpop.eup %2392 }
 0x286   : > { %v1823_v28 = vmul.f32 %v1765_v40, %v1599_v2  ;;  %v2395_v24 = vpop.eup %2394  ;;  %2404 = vrsqrt.f32 %v2393_v29  ;;  %vm1789_vm6 = vcmp.eq.f32.partialorder %v2393_v29, inf  ;;  %v1792_v36 = vand.u32 2147483648, %v2393_v29 }
 0x287   : > { %v1769_v56 = vsel %vm1768_vm14, %v2383_v6, %v1767_v25  ;;  %v2397_v37 = vpop.eup %2396  ;;  %v1746_v63 = vmul.f32 %v2395_v24, %v2385_v4  ;;  %v1603_v1 = vmul.f32 %v2393_v29, %v3556_v60  ;;  %vm1791_vm7 = vcmp.eq.f32.partialorder %v2393_v29, 0.0 }
 0x288   : > { %1851 = vst [vmem:[%s3491_s3 + $0xb0] sm:$0xff] %v1823_v28  ;;  %v1772_v46 = vsel %vm1770_vm15, %v1771_v19, %v1769_v56  ;;  %v2399_v17 = vpop.eup %2398  ;;  %v1753_v43 = vmul.f32 %v2397_v37, %v2387_v41 }
 0x289   : > { %v1824_v48 = vmul.f32 %v1772_v46, %v1600_v13  ;;  %v2401_v30 = vpop.eup %2400  ;;  %v1748_v9 = vsel %vm1747_vm2, %v2385_v4, %v1746_v63  ;;  %2406 = vrsqrt.f32 %v2399_v17  ;;  %vm1796_vm8 = vcmp.eq.f32.partialorder %v2399_v17, inf }
 0x28a   : > { %v2403_v39 = vpop.eup %2402  ;;  %v1751_v45 = vsel %vm1749_vm3, %v1750_v52, %v1748_v9  ;;  %v1755_v16 = vsel %vm1754_vm4, %v2387_v41, %v1753_v43  ;;  %v1799_v6 = vand.u32 2147483648, %v2399_v17  ;;  %v1604_v21 = vmul.f32 %v2399_v17, %v3557_v20 }
 0x28b   : > { %1852 = vst [vmem:[%s3491_s3 + $0xb8] sm:$0xff] %v1824_v48  ;;  %v1758_v10 = vsel %vm1756_vm5, %v1757_v54, %v1755_v16  ;;  %v1821_v61 = vmul.f32 %v1751_v45, %v1597_v50  ;;  %2408 = vrsqrt.f32 %v2403_v39  ;;  %vm1798_vm9 = vcmp.eq.f32.partialorder %v2399_v17, 0.0 }
 0x28c   : > { %v1822_v18 = vmul.f32 %v1758_v10, %v1598_v3  ;;  %2410 = vrsqrt.f32 %v2401_v30  ;;  %v1601_v34 = vmul.f32 %v2403_v39, %v3558_v32  ;;  %vm1775_vm10 = vcmp.eq.f32.partialorder %v2403_v39, inf }
 0x28d   : > { %1849 = vst [vmem:[%s3491_s3 + $0xa0] sm:$0xff] %v1821_v61  ;;  %v1778_v58 = vand.u32 2147483648, %v2403_v39  ;;  %vm1777_vm11 = vcmp.eq.f32.partialorder %v2403_v39, 0.0  ;;  %vm1782_vm0 = vcmp.eq.f32.partialorder %v2401_v30, inf  ;;  %v1785_v14 = vand.u32 2147483648, %v2401_v30 }
 0x28e   : > { %1850 = vst [vmem:[%s3491_s3 + $0xa8] sm:$0xff] %v1822_v18  ;;  %v1602_v41 = vmul.f32 %v2401_v30, %v3559_v55  ;;  %vm1784_vm1 = vcmp.eq.f32.partialorder %v2401_v30, 0.0 }
 0x290   : > { %v2405_v51 = vpop.eup %2404 }
 0x291   : > { %v1788_v44 = vmul.f32 %v2405_v51, %v2393_v29 }
 0x293   : > { %v2407_v8 = vpop.eup %2406  ;;  %v1790_v0 = vsel %vm1789_vm6, %v2393_v29, %v1788_v44 }
 0x294   : > { %v1793_v15 = vsel %vm1791_vm7, %v1792_v36, %v1790_v0  ;;  %v1795_v7 = vmul.f32 %v2407_v8, %v2399_v17 }
 0x295   : > { %v1827_v22 = vmul.f32 %v1793_v15, %v1603_v1  ;;  %v2409_v47 = vpop.eup %2408 }
 0x296   : > { %v1797_v53 = vsel %vm1796_vm8, %v2399_v17, %v1795_v7  ;;  %v2411_v35 = vpop.eup %2410  ;;  %v1774_v38 = vmul.f32 %v2409_v47, %v2403_v39 }
 0x297   : > { %v1800_v23 = vsel %vm1798_vm9, %v1799_v6, %v1797_v53  ;;  %1855 = vst [vmem:[%s3491_s3 + $0xd0] sm:$0xff] %v1827_v22  ;;  %v1781_v4 = vmul.f32 %v2411_v35, %v2401_v30 }
 0x298   : > { %v1828_v42 = vmul.f32 %v1800_v23, %v1604_v21  ;;  %v1776_v26 = vsel %vm1775_vm10, %v2403_v39, %v1774_v38 }
 0x299   : > { %v1779_v27 = vsel %vm1777_vm11, %v1778_v58, %v1776_v26  ;;  %v1783_v57 = vsel %vm1782_vm0, %v2401_v30, %v1781_v4 }
 0x29a   : > { %1856 = vst [vmem:[%s3491_s3 + $0xd8] sm:$0xff] %v1828_v42  ;;  %v1786_v59 = vsel %vm1784_vm1, %v1785_v14, %v1783_v57  ;;  %v1825_v11 = vmul.f32 %v1779_v27, %v1601_v34 }
 0x29b   : > { %v1826_v12 = vmul.f32 %v1786_v59, %v1602_v41 }
 0x29c   : > { %1853 = vst [vmem:[%s3491_s3 + $0xc0] sm:$0xff] %v1825_v11 }
 0x29d   : > { %1854 = vst [vmem:[%s3491_s3 + $0xc8] sm:$0xff] %v1826_v12 }
 0x29e PF: > { %s13_s16 = sadd.s32 1, %s2450_s16   ;;  %s3560_s12 = smov %s2438_s13 }
 0x29f   : > { %p10_p12 = scmp.ge.s32.totalorder %s13_s16, 7   ;;  %s3561_s13 = smov %s2509_s20 }
 0x2a0   : > { %s3562_s14 = smov %s2446_s15  ;;  %s3563_s15 = smov %s3565_s17 }
 0x2a1   :  { %12 = sbr.rel (!%p10_p12) target bundleno = 3 (0x3), region = 104 }

// kernel: alexnet_forward.14
= control target key start
LH: loop header
LB: loop body
LE: loop exit
PB: predicated region body
PF: predicated region fallthrough
CT: control target
= control target key end

     0   :  { %s481_s15 = smov 0   ;;  %s512_s0 = inlined_call_operand.vmem [shape: f32[2,4,4,256], index: 0, kind: input, shape index: {}]   ;;  %s513_s1 = inlined_call_operand.vmem [shape: f32[2,4,3,256], index: 1, kind: input, shape index: {}]   ;;  %s514_s2 = inlined_call_operand.vmem [shape: f32[2,3,4,256], index: 2, kind: input, shape index: {}]   ;;  %s515_s3 = inlined_call_operand.vmem [shape: f32[2,3,3,256], index: 3, kind: input, shape index: {}]   ;;  %s516_s4 = inlined_call_operand.vmem [shape: f32[2,3,3,256], index: 4, kind: output, shape index: {}]  }
   0x1 LB: > { %s418_s16 = sadd.s32 4294967295, %s454_s15   ;;  %p422_p0 = scmp.ge.s32.totalorder %s454_s15, 1  ;;  %s454_s15 = sphi %s481_s15, %s14_s15  }
   0x2   : > { %p192_p1 = scmp.lt.s32.totalorder %s454_s15, 3 }
   0x4   : > { %p193_p2 = pnand %p422_p0, %p192_p1 }
   0x5   : > { %p233_p3 = scmp.lt.s32.totalorder (!%p193_p2), %s418_s16, 1 }
   0x6   : > { %196 = sbr.rel (%p193_p2) target bundleno = 38 (0x26), region = 36 }
   0xd   : > { %s518_s16 = smov (!%p233_p3, %s418_s16), 1 }
   0xe   : > { %s437_s17 = sshll.u32 %s518_s16, 5  ;;  %s492_s21 = smul.u32 24, %s518_s16 }
   0xf   : > { %s237_s20 = scalar_lea.vmem %s512_s0, %s437_s17  ;;  %s242_s24 = scalar_lea.vmem %s513_s1, %s437_s17 }
  0x10   : > { %v258_v0 = vld [vmem:[%s237_s20] sm:$0xff]  ;;  %v259_v1 = vld [vmem:[%s237_s20 + $0x8] sm:$0xff]  ;;  %v260_v2 = vld [vmem:[%s237_s20 + $0x10] sm:$0xff]  ;;  %s247_s27 = scalar_lea.vmem %s514_s2, %s492_s21  ;;  %s252_s30 = scalar_lea.vmem %s515_s3, %s492_s21 }
  0x11   : > { %v430_v3 = vrot.slane %v258_v0, 9  ;;  %v277_v4 = vrot.slane %v259_v1, 5  ;;  %v279_v6 = vrot.slane %v260_v2, 5  ;;  %v261_v8 = vld [vmem:[%s237_s20 + $0x18] sm:$0xff]  ;;  %v262_v11 = vld [vmem:[%s242_s24] sm:$0x77]  ;;  %s257_s7 = scalar_lea.vmem %s516_s4, %s492_s21 }
  0x12   : > { %v431_v15 = vrot.slane %v261_v8, 9  ;;  %v266_v16 = vld [vmem:[%s247_s27] sm:$0xff]  ;;  %v263_v18 = vld [vmem:[%s242_s24 + $0x8] sm:$0x77]  ;;  %v264_v21 = vld [vmem:[%s242_s24 + $0x10] sm:$0x77] }
  0x13   : > { %v284_v5 = vmax.f32 %v258_v0, %v430_v3  ;;  %v278_v7 = vrot.slane %v277_v4, 4  ;;  %v280_v10 = vrot.slane %v279_v6, 4  ;;  %v432_v24 = vrot.slane %v266_v16, 9  ;;  %v267_v25 = vld [vmem:[%s247_s27 + $0x8] sm:$0xff]  ;;  %v265_v28 = vld [vmem:[%s242_s24 + $0x18] sm:$0x77] }
  0x14   : > { %v268_v29 = vld [vmem:[%s247_s27 + $0x10] sm:$0xff]  ;;  %v269_v32 = vld [vmem:[%s252_s30] sm:$0x77]  ;;  %v433_v34 = vrot.slane %v267_v25, 9  ;;  %v270_v40 = vld [vmem:[%s252_s30 + $0x8] sm:$0x77] }
  0x15   : > { %v287_v9 = vmax.f32 %v284_v5, %v259_v1  ;;  %v285_v12 = vmax.f32 %v259_v1, %v278_v7  ;;  %v286_v14 = vmax.f32 %v260_v2, %v280_v10  ;;  %v434_v37 = vrot.slane %v268_v29, 9  ;;  %v271_v43 = vld [vmem:[%s252_s30 + $0x10] sm:$0x77] }
  0x17   : > { %v294_v13 = vmax.f32 %v287_v9, %v278_v7  ;;  %v288_v17 = vmax.f32 %v285_v12, %v260_v2  ;;  %v289_v20 = vmax.f32 %v286_v14, %v261_v8 }
  0x19   : > { %v297_v19 = vmax.f32 %v294_v13, %v262_v11  ;;  %v295_v22 = vmax.f32 %v288_v17, %v280_v10  ;;  %v296_v26 = vmax.f32 %v289_v20, %v431_v15 }
  0x1b   : > { %v300_v23 = vmax.f32 %v297_v19, %v263_v18  ;;  %v298_v27 = vmax.f32 %v295_v22, %v263_v18  ;;  %v299_v31 = vmax.f32 %v296_v26, %v264_v21 }
  0x1d   : > { %v303_v30 = vmax.f32 %v300_v23, %v266_v16  ;;  %v301_v33 = vmax.f32 %v298_v27, %v264_v21  ;;  %v302_v36 = vmax.f32 %v299_v31, %v265_v28 }
  0x1f   : > { %v318_v35 = vmax.f32 %v303_v30, %v432_v24  ;;  %v304_v38 = vmax.f32 %v301_v33, %v267_v25  ;;  %v305_v41 = vmax.f32 %v302_v36, %v268_v29 }
  0x21   : > { %v321_v39 = vmax.f32 %v318_v35, %v269_v32  ;;  %v319_v42 = vmax.f32 %v304_v38, %v433_v34  ;;  %v320_v44 = vmax.f32 %v305_v41, %v434_v37 }
  0x23   : > { %324 = vst [vmem:[%s257_s7] sm:$0x77] %v321_v39  ;;  %v322_v45 = vmax.f32 %v319_v42, %v270_v40  ;;  %v323_v46 = vmax.f32 %v320_v44, %v271_v43 }
  0x25   : > { %325 = vst [vmem:[%s257_s7 + $0x8] sm:$0x77] %v322_v45  ;;  %326 = vst [vmem:[%s257_s7 + $0x10] sm:$0x77] %v323_v46 }
  0x26 PF: > { %s14_s15 = sadd.s32 1, %s454_s15  }
  0x27   : > { %p11_p4 = scmp.ge.s32.totalorder %s14_s15, 4  }
  0x29   :  { %13 = sbr.rel (!%p11_p4) target bundleno = 1 (0x1), region = 75 }

// kernel: alexnet_forward.15
= control target key start
LH: loop header
LB: loop body
LE: loop exit
PB: predicated region body
PF: predicated region fallthrough
CT: control target
= control target key end

     0   :  { %s2146_s0 = inlined_call_operand.vmem [shape: bf16[32,2560], index: 0, kind: input, shape index: {}]   ;;  %s2147_s1 = inlined_call_operand.vmem [shape: bf16[2560,512], index: 1, kind: input, shape index: {}]   ;;  %s2148_s2 = inlined_call_operand.vmem [shape: f32[1,512], index: 2, kind: input, shape index: {}]   ;;  %s2149_s3 = inlined_call_operand.vmem [shape: f32[32,512], index: 3, kind: output, shape index: {}]  }
   0x1   :  { %2151 = sst [smem:[#allocation7_spill]] %s2146_s0 }
   0x2   :  { %2152 = sst [smem:[#allocation8_spill]] %s2147_s1 }
   0x3   :  { %s1748_s12 = smov 0   ;;  %s1750_s13 = smov 0  }
   0x4   :  { %s1752_s14 = smov 0   ;;  %s1754_s15 = smov 0  }
   0x5   :  { %s1756_s16 = smov 0   ;;  %s1758_s17 = smov 0  }
   0x6   :  { %s1760_s18 = smov 0   ;;  %s1762_s19 = smov 0  }
   0x7   :  { %s1764_s20 = smov 0   ;;  %s1766_s21 = smov 0  }
   0x8   :  { %s1768_s22 = smov 0  }
   0x9 LB: > { %s1335_s23 = sadd.s32 4294967295, %s1725_s22   ;;  %s25_s24 = sadd.s32 1, %s1717_s20  ;;  %s1725_s22 = sphi %s1768_s22, %s13_s22   ;;  %s1721_s21 = sphi %s1766_s21, %s2169_s21   ;;  %s1717_s20 = sphi %s1764_s20, %s2168_s20   ;;  %s1713_s19 = sphi %s1762_s19, %s2167_s19   ;;  %s1709_s18 = sphi %s1760_s18, %s2166_s18   ;;  %s1705_s17 = sphi %s1758_s17, %s2165_s17   ;;  %s1701_s16 = sphi %s1756_s16, %s2164_s16   ;;  %s1697_s15 = sphi %s1754_s15, %s2163_s15   ;;  %s1693_s14 = sphi %s1752_s14, %s2162_s14   ;;  %s1689_s13 = sphi %s1750_s13, %s2161_s13   ;;  %s1685_s12 = sphi %s1748_s12, %s2160_s12  }
   0xa   : > { %p26_p0 = scmp.ge.s32.totalorder %s25_s24, 5  ;;  %s28_s25 = sadd.s32 1, %s1721_s21 }
   0xb   : > { %s41_s26 = sadd.s32 1, %s1705_s17  ;;  %p48_p1 = scmp.ne.s32.totalorder %s1705_s17, %s1701_s16 }
   0xc   : > { %s2171_s24 = smov (%p26_p0, %s25_s24), 0  ;;  %s2173_s25 = smov (!%p26_p0, %s28_s25), %s1721_s21 }
   0xd   : > { %s37_s27 = ssub.s32 %s1717_s20, %s2171_s24  ;;  %p49_p2 = scmp.eq.s32.totalorder %s1725_s22, 0 }
   0xe   : > { %p30_p3 = scmp.ge.s32.totalorder %s2173_s25, 2  ;;  %p39_p4 = scmp.eq.s32.totalorder %s37_s27, 0 }
   0xf   : > { %p1815_p5 = por %p49_p2, %p48_p1  ;;  %s69_s29 = sadd.s32 1, %s1697_s15 }
  0x10   : > { %s2175_s25 = smov (%p30_p3, %s2173_s25), 0  ;;  %p76_p6 = scmp.ne.s32.totalorder %s1697_s15, %s1693_s14 }
  0x11   : > { %2154 = sst [smem:[#allocation6_spill]] %s2175_s25  ;;  %s65_s4 = ssub.s32 %s1721_s21, %s2175_s25 }
  0x12   : > { %s1823_s30 = scalar_select %p39_p4, %s1705_s17, %s41_s26  }
  0x13   : > { %s66_s5 = sor.u32 %s65_s4, %s37_s27  ;;  %p121_p7 = scmp.eq.s32.totalorder %s65_s4, 0 }
  0x14   : > { %p67_p8 = scmp.eq.s32.totalorder %s66_s5, 0  ;;  %p1829_p9 = por %p76_p6, %p49_p2 }
  0x15   : > { %s123_s7 = sadd.s32 1, %s1689_s13  ;;  %p133_p10 = scmp.ne.s32.totalorder %s1689_s13, %s1685_s12 }
  0x16   : > { %s1837_s8 = scalar_select %p67_p8, %s1697_s15, %s69_s29  }
  0x17   : > { %s1840_s9 = scalar_select %p121_p7, %s1689_s13, %s123_s7  }
  0x18   : > { %p134_p11 = scmp.eq.s32.totalorder %s1335_s23, 9  ;;  %p1338_p13 = scmp.ge.s32.totalorder %s1725_s22, 10 }
  0x1a   : > { %p1842_p12 = por %p134_p11, %p133_p10  ;;  %156 = sbr.rel (%p1338_p13) target bundleno = 89 (0x59), region = 16 }
  0x21   : > { %159 = sbr.rel (!%p1815_p5) target bundleno = 47 (0x2f), region = 20  ;;  %s161_s11 = sand.u32 (%p1815_p5), 1, %s1705_s17  }
  0x22   : > { %s1431_s26 = sshll.u32 (%p1815_p5), %s1717_s20, 4  ;;  %s1339_s27 = sshll.u32 (%p1815_p5), %s161_s11, 6 }
  0x23   : > { %s2157_s0 = sld [smem:[#allocation7_spill]] (%p1815_p5)  ;;  %s163_s23 = scalar_lea.vmem (%p1815_p5), [#allocation3], %s1339_s27 }
  0x29   : > { %s169_s5 = scalar_lea.vmem %s2157_s0, %s1431_s26 }
  0x2a   : > { %v182_v0 = vld [vmem:[%s169_s5] sm:$0xff]  ;;  %v184_v1 = vld [vmem:[%s169_s5 + $0x8] sm:$0xff]  ;;  %v186_v2 = vld [vmem:[%s169_s5 + $0x50] sm:$0xff] }
  0x2b   : > { %183 = vst [vmem:[%s163_s23] sm:$0xff] %v182_v0  ;;  %185 = vst [vmem:[%s163_s23 + $0x8] sm:$0xff] %v184_v1  ;;  %v188_v3 = vld [vmem:[%s169_s5 + $0x58] sm:$0xff]  ;;  %v190_v4 = vld [vmem:[%s169_s5 + $0xa0] sm:$0xff] }
  0x2c   : > { %187 = vst [vmem:[%s163_s23 + $0x10] sm:$0xff] %v186_v2  ;;  %v192_v5 = vld [vmem:[%s169_s5 + $0xa8] sm:$0xff]  ;;  %189 = vst [vmem:[%s163_s23 + $0x18] sm:$0xff] %v188_v3  ;;  %v194_v6 = vld [vmem:[%s169_s5 + $0xf0] sm:$0xff] }
  0x2d   : > { %191 = vst [vmem:[%s163_s23 + $0x20] sm:$0xff] %v190_v4  ;;  %193 = vst [vmem:[%s163_s23 + $0x28] sm:$0xff] %v192_v5  ;;  %v196_v7 = vld [vmem:[%s169_s5 + $0xf8] sm:$0xff] }
  0x2e   : > { %195 = vst [vmem:[%s163_s23 + $0x30] sm:$0xff] %v194_v6  ;;  %197 = vst [vmem:[%s163_s23 + $0x38] sm:$0xff] %v196_v7 }
  0x2f PF: > { %203 = sbr.rel (!%p1829_p9) target bundleno = 89 (0x59), region = 43  ;;  %s205_s28 = sand.u32 (%p1829_p9), 1, %s1697_s15  }
  0x30   : > { %s1344_s7 = sshll.u32 (%p1829_p9), %s1721_s21, 1  ;;  %s1342_s11 = sshll.u32 (%p1829_p9), %s205_s28, 9 }
  0x31   : > { %s1432_s26 = sshll.u32 (%p1829_p9), %s1717_s20, 8  ;;  %s2158_s1 = sld [smem:[#allocation8_spill]] (%p1829_p9) }
  0x32   : > { %s211_s27 = sadd.s32 (%p1829_p9), %s1432_s26, %s1344_s7  ;;  %s1867_s6 = scalar_lea.vmem (%p1829_p9), [#allocation4], %s1342_s11 }
  0x33   : > { %s1346_s29 = sshll.u32 (%p1829_p9), %s211_s27, 2 }
  0x37   : > { %s1862_s25 = scalar_lea.vmem %s2158_s1, %s1346_s29 }
  0x38   : > { %v367_v8 = vld [vmem:[%s1862_s25] sm:$0xff]  ;;  %v369_v9 = vld [vmem:[%s1862_s25 + $0x10] sm:$0xff] }
  0x39   : > { %v371_v10 = vld [vmem:[%s1862_s25 + $0x20] sm:$0xff]  ;;  %368 = vst [vmem:[%s1867_s6] sm:$0xff] %v367_v8  ;;  %370 = vst [vmem:[%s1867_s6 + $0x8] sm:$0xff] %v369_v9  ;;  %v373_v11 = vld [vmem:[%s1862_s25 + $0x30] sm:$0xff] }
  0x3a   : > { %372 = vst [vmem:[%s1867_s6 + $0x10] sm:$0xff] %v371_v10  ;;  %v375_v12 = vld [vmem:[%s1862_s25 + $0x40] sm:$0xff]  ;;  %v377_v13 = vld [vmem:[%s1862_s25 + $0x50] sm:$0xff]  ;;  %374 = vst [vmem:[%s1867_s6 + $0x18] sm:$0xff] %v373_v11 }
  0x3b   : > { %376 = vst [vmem:[%s1867_s6 + $0x20] sm:$0xff] %v375_v12  ;;  %378 = vst [vmem:[%s1867_s6 + $0x28] sm:$0xff] %v377_v13  ;;  %v379_v14 = vld [vmem:[%s1862_s25 + $0x60] sm:$0xff]  ;;  %v381_v15 = vld [vmem:[%s1862_s25 + $0x70] sm:$0xff] }
  0x3c   : > { %v383_v16 = vld [vmem:[%s1862_s25 + $0x80] sm:$0xff]  ;;  %380 = vst [vmem:[%s1867_s6 + $0x30] sm:$0xff] %v379_v14  ;;  %382 = vst [vmem:[%s1867_s6 + $0x38] sm:$0xff] %v381_v15  ;;  %v385_v17 = vld [vmem:[%s1862_s25 + $0x90] sm:$0xff] }
  0x3d   : > { %384 = vst [vmem:[%s1867_s6 + $0x40] sm:$0xff] %v383_v16  ;;  %v387_v18 = vld [vmem:[%s1862_s25 + $0xa0] sm:$0xff]  ;;  %v389_v19 = vld [vmem:[%s1862_s25 + $0xb0] sm:$0xff]  ;;  %386 = vst [vmem:[%s1867_s6 + $0x48] sm:$0xff] %v385_v17 }
  0x3e   : > { %388 = vst [vmem:[%s1867_s6 + $0x50] sm:$0xff] %v387_v18  ;;  %390 = vst [vmem:[%s1867_s6 + $0x58] sm:$0xff] %v389_v19  ;;  %v391_v20 = vld [vmem:[%s1862_s25 + $0xc0] sm:$0xff]  ;;  %v393_v21 = vld [vmem:[%s1862_s25 + $0xd0] sm:$0xff] }
  0x3f   : > { %v395_v22 = vld [vmem:[%s1862_s25 + $0xe0] sm:$0xff]  ;;  %392 = vst [vmem:[%s1867_s6 + $0x60] sm:$0xff] %v391_v20  ;;  %394 = vst [vmem:[%s1867_s6 + $0x68] sm:$0xff] %v393_v21  ;;  %v397_v23 = vld [vmem:[%s1862_s25 + $0xf0] sm:$0xff] }
  0x40   : > { %396 = vst [vmem:[%s1867_s6 + $0x70] sm:$0xff] %v395_v22  ;;  %v399_v24 = vld [vmem:[%s1862_s25 + $0x100] sm:$0xff]  ;;  %v401_v25 = vld [vmem:[%s1862_s25 + $0x110] sm:$0xff]  ;;  %398 = vst [vmem:[%s1867_s6 + $0x78] sm:$0xff] %v397_v23 }
  0x41   : > { %400 = vst [vmem:[%s1867_s6 + $0x80] sm:$0xff] %v399_v24  ;;  %402 = vst [vmem:[%s1867_s6 + $0x88] sm:$0xff] %v401_v25  ;;  %v403_v26 = vld [vmem:[%s1862_s25 + $0x120] sm:$0xff]  ;;  %v405_v27 = vld [vmem:[%s1862_s25 + $0x130] sm:$0xff] }
  0x42   : > { %v407_v28 = vld [vmem:[%s1862_s25 + $0x140] sm:$0xff]  ;;  %404 = vst [vmem:[%s1867_s6 + $0x90] sm:$0xff] %v403_v26  ;;  %406 = vst [vmem:[%s1867_s6 + $0x98] sm:$0xff] %v405_v27  ;;  %v409_v29 = vld [vmem:[%s1862_s25 + $0x150] sm:$0xff] }
  0x43   : > { %408 = vst [vmem:[%s1867_s6 + $0xa0] sm:$0xff] %v407_v28  ;;  %v411_v30 = vld [vmem:[%s1862_s25 + $0x160] sm:$0xff]  ;;  %v413_v31 = vld [vmem:[%s1862_s25 + $0x170] sm:$0xff]  ;;  %410 = vst [vmem:[%s1867_s6 + $0xa8] sm:$0xff] %v409_v29 }
  0x44   : > { %412 = vst [vmem:[%s1867_s6 + $0xb0] sm:$0xff] %v411_v30  ;;  %414 = vst [vmem:[%s1867_s6 + $0xb8] sm:$0xff] %v413_v31  ;;  %v415_v32 = vld [vmem:[%s1862_s25 + $0x180] sm:$0xff]  ;;  %v417_v33 = vld [vmem:[%s1862_s25 + $0x190] sm:$0xff] }
  0x45   : > { %v419_v34 = vld [vmem:[%s1862_s25 + $0x1a0] sm:$0xff]  ;;  %416 = vst [vmem:[%s1867_s6 + $0xc0] sm:$0xff] %v415_v32  ;;  %418 = vst [vmem:[%s1867_s6 + $0xc8] sm:$0xff] %v417_v33  ;;  %v421_v35 = vld [vmem:[%s1862_s25 + $0x1b0] sm:$0xff] }
  0x46   : > { %420 = vst [vmem:[%s1867_s6 + $0xd0] sm:$0xff] %v419_v34  ;;  %v423_v36 = vld [vmem:[%s1862_s25 + $0x1c0] sm:$0xff]  ;;  %v425_v37 = vld [vmem:[%s1862_s25 + $0x1d0] sm:$0xff]  ;;  %422 = vst [vmem:[%s1867_s6 + $0xd8] sm:$0xff] %v421_v35 }
  0x47   : > { %424 = vst [vmem:[%s1867_s6 + $0xe0] sm:$0xff] %v423_v36  ;;  %426 = vst [vmem:[%s1867_s6 + $0xe8] sm:$0xff] %v425_v37  ;;  %v427_v38 = vld [vmem:[%s1862_s25 + $0x1e0] sm:$0xff]  ;;  %v429_v39 = vld [vmem:[%s1862_s25 + $0x1f0] sm:$0xff] }
  0x48   : > { %v431_v40 = vld [vmem:[%s1862_s25 + $0x200] sm:$0xff]  ;;  %428 = vst [vmem:[%s1867_s6 + $0xf0] sm:$0xff] %v427_v38  ;;  %430 = vst [vmem:[%s1867_s6 + $0xf8] sm:$0xff] %v429_v39  ;;  %v433_v41 = vld [vmem:[%s1862_s25 + $0x210] sm:$0xff] }
  0x49   : > { %432 = vst [vmem:[%s1867_s6 + $0x100] sm:$0xff] %v431_v40  ;;  %v435_v42 = vld [vmem:[%s1862_s25 + $0x220] sm:$0xff]  ;;  %v437_v43 = vld [vmem:[%s1862_s25 + $0x230] sm:$0xff]  ;;  %434 = vst [vmem:[%s1867_s6 + $0x108] sm:$0xff] %v433_v41 }
  0x4a   : > { %436 = vst [vmem:[%s1867_s6 + $0x110] sm:$0xff] %v435_v42  ;;  %438 = vst [vmem:[%s1867_s6 + $0x118] sm:$0xff] %v437_v43  ;;  %v439_v44 = vld [vmem:[%s1862_s25 + $0x240] sm:$0xff]  ;;  %v441_v45 = vld [vmem:[%s1862_s25 + $0x250] sm:$0xff] }
  0x4b   : > { %v443_v46 = vld [vmem:[%s1862_s25 + $0x260] sm:$0xff]  ;;  %440 = vst [vmem:[%s1867_s6 + $0x120] sm:$0xff] %v439_v44  ;;  %442 = vst [vmem:[%s1867_s6 + $0x128] sm:$0xff] %v441_v45  ;;  %v445_v47 = vld [vmem:[%s1862_s25 + $0x270] sm:$0xff] }
  0x4c   : > { %444 = vst [vmem:[%s1867_s6 + $0x130] sm:$0xff] %v443_v46  ;;  %v447_v48 = vld [vmem:[%s1862_s25 + $0x280] sm:$0xff]  ;;  %v449_v49 = vld [vmem:[%s1862_s25 + $0x290] sm:$0xff]  ;;  %446 = vst [vmem:[%s1867_s6 + $0x138] sm:$0xff] %v445_v47 }
  0x4d   : > { %448 = vst [vmem:[%s1867_s6 + $0x140] sm:$0xff] %v447_v48  ;;  %450 = vst [vmem:[%s1867_s6 + $0x148] sm:$0xff] %v449_v49  ;;  %v451_v50 = vld [vmem:[%s1862_s25 + $0x2a0] sm:$0xff]  ;;  %v453_v51 = vld [vmem:[%s1862_s25 + $0x2b0] sm:$0xff] }
  0x4e   : > { %v455_v52 = vld [vmem:[%s1862_s25 + $0x2c0] sm:$0xff]  ;;  %452 = vst [vmem:[%s1867_s6 + $0x150] sm:$0xff] %v451_v50  ;;  %454 = vst [vmem:[%s1867_s6 + $0x158] sm:$0xff] %v453_v51  ;;  %v457_v53 = vld [vmem:[%s1862_s25 + $0x2d0] sm:$0xff] }
  0x4f   : > { %456 = vst [vmem:[%s1867_s6 + $0x160] sm:$0xff] %v455_v52  ;;  %v459_v54 = vld [vmem:[%s1862_s25 + $0x2e0] sm:$0xff]  ;;  %v461_v55 = vld [vmem:[%s1862_s25 + $0x2f0] sm:$0xff]  ;;  %458 = vst [vmem:[%s1867_s6 + $0x168] sm:$0xff] %v457_v53 }
  0x50   : > { %460 = vst [vmem:[%s1867_s6 + $0x170] sm:$0xff] %v459_v54  ;;  %462 = vst [vmem:[%s1867_s6 + $0x178] sm:$0xff] %v461_v55  ;;  %v463_v56 = vld [vmem:[%s1862_s25 + $0x300] sm:$0xff]  ;;  %v465_v57 = vld [vmem:[%s1862_s25 + $0x310] sm:$0xff] }
  0x51   : > { %v467_v58 = vld [vmem:[%s1862_s25 + $0x320] sm:$0xff]  ;;  %464 = vst [vmem:[%s1867_s6 + $0x180] sm:$0xff] %v463_v56  ;;  %466 = vst [vmem:[%s1867_s6 + $0x188] sm:$0xff] %v465_v57  ;;  %v469_v59 = vld [vmem:[%s1862_s25 + $0x330] sm:$0xff] }
  0x52   : > { %468 = vst [vmem:[%s1867_s6 + $0x190] sm:$0xff] %v467_v58  ;;  %v471_v60 = vld [vmem:[%s1862_s25 + $0x340] sm:$0xff]  ;;  %v473_v61 = vld [vmem:[%s1862_s25 + $0x350] sm:$0xff]  ;;  %470 = vst [vmem:[%s1867_s6 + $0x198] sm:$0xff] %v469_v59 }
  0x53   : > { %472 = vst [vmem:[%s1867_s6 + $0x1a0] sm:$0xff] %v471_v60  ;;  %474 = vst [vmem:[%s1867_s6 + $0x1a8] sm:$0xff] %v473_v61  ;;  %v475_v62 = vld [vmem:[%s1862_s25 + $0x360] sm:$0xff]  ;;  %v477_v63 = vld [vmem:[%s1862_s25 + $0x370] sm:$0xff] }
  0x54   : > { %v479_v0 = vld [vmem:[%s1862_s25 + $0x380] sm:$0xff]  ;;  %476 = vst [vmem:[%s1867_s6 + $0x1b0] sm:$0xff] %v475_v62  ;;  %478 = vst [vmem:[%s1867_s6 + $0x1b8] sm:$0xff] %v477_v63  ;;  %v481_v1 = vld [vmem:[%s1862_s25 + $0x390] sm:$0xff] }
  0x55   : > { %480 = vst [vmem:[%s1867_s6 + $0x1c0] sm:$0xff] %v479_v0  ;;  %v483_v2 = vld [vmem:[%s1862_s25 + $0x3a0] sm:$0xff]  ;;  %v485_v3 = vld [vmem:[%s1862_s25 + $0x3b0] sm:$0xff]  ;;  %482 = vst [vmem:[%s1867_s6 + $0x1c8] sm:$0xff] %v481_v1 }
  0x56   : > { %484 = vst [vmem:[%s1867_s6 + $0x1d0] sm:$0xff] %v483_v2  ;;  %486 = vst [vmem:[%s1867_s6 + $0x1d8] sm:$0xff] %v485_v3  ;;  %v487_v4 = vld [vmem:[%s1862_s25 + $0x3c0] sm:$0xff]  ;;  %v489_v5 = vld [vmem:[%s1862_s25 + $0x3d0] sm:$0xff] }
  0x57   : > { %v491_v6 = vld [vmem:[%s1862_s25 + $0x3e0] sm:$0xff]  ;;  %488 = vst [vmem:[%s1867_s6 + $0x1e0] sm:$0xff] %v487_v4  ;;  %490 = vst [vmem:[%s1867_s6 + $0x1e8] sm:$0xff] %v489_v5  ;;  %v493_v7 = vld [vmem:[%s1862_s25 + $0x3f0] sm:$0xff] }
  0x58   : > { %492 = vst [vmem:[%s1867_s6 + $0x1f0] sm:$0xff] %v491_v6  ;;  %494 = vst [vmem:[%s1867_s6 + $0x1f8] sm:$0xff] %v493_v7 }
  0x59 PF: > { %p1347_p0 = scmp.ge.s32.totalorder %s1725_s22, 1  ;;  %p507_p1 = scmp.lt.s32.totalorder %s1725_s22, 11 }
  0x5b   : > { %p508_p2 = pnand %p1347_p0, %p507_p1 }
  0x5c   : > { %s514_s0 = sand.u32 (!%p508_p2), 1, %s1701_s16   ;;  %s521_s5 = sand.u32 (!%p508_p2), 1, %s1693_s14  }
  0x5d   : > { %511 = sbr.rel (%p508_p2) target bundleno = 422 (0x1a6), region = 85  ;;  %s1348_s23 = sshll.u32 (!%p508_p2), %s514_s0, 6 }
  0x5e   : > { %s1349_s28 = sshll.u32 (!%p508_p2), %s521_s5, 9  ;;  %s548_s7 = sand.u32 (!%p508_p2), 1, %s1685_s12  }
  0x5f   : > { %s1351_s11 = sshll.u32 (!%p508_p2), %s1713_s19, 1  ;;  %s1350_s25 = sshll.u32 (!%p508_p2), %s548_s7, 6 }
  0x60   : > { %p556_p3 = scmp.lt.s32.totalorder (!%p508_p2), %s1351_s11, 3  ;;  %s2006_s4 = scalar_lea.vmem (!%p508_p2), [#allocation3], %s1348_s23 }
  0x61   : > { %s2008_s6 = scalar_lea.vmem (!%p508_p2), [#allocation4], %s1349_s28  ;;  %s2010_s1 = scalar_lea.vmem (!%p508_p2), [#allocation5], %s1350_s25 }
  0x62   : > { %p1352_p4 = scmp.ne.s32.totalorder (!%p508_p2), %s1709_s18, 0 }
  0x64   : > { %s2177_s11 = smov (!%p556_p3, %s1351_s11), 3  ;;  %565 = sbr.rel (%p1352_p4) target bundleno = 107 (0x6b), region = 97 }
  0x65   : > { %s558_s29 = scalar_lea.vmem %s2148_s2, %s2177_s11  ;;  %v1727_v8 = vmov (!%p1352_p4), 0.0  }
  0x66   : > { %566 = vst [vmem:[#allocation2] sm:$0xff] (!%p1352_p4), %v1727_v8  ;;  %567 = vst [vmem:[#allocation2 + $0x8] sm:$0xff] (!%p1352_p4), %v1727_v8 }
  0x67   : > { %568 = vst [vmem:[#allocation2 + $0x10] sm:$0xff] (!%p1352_p4), %v1727_v8  ;;  %569 = vst [vmem:[#allocation2 + $0x18] sm:$0xff] (!%p1352_p4), %v1727_v8 }
  0x68   : > { %570 = vst [vmem:[#allocation2 + $0x20] sm:$0xff] (!%p1352_p4), %v1727_v8  ;;  %571 = vst [vmem:[#allocation2 + $0x28] sm:$0xff] (!%p1352_p4), %v1727_v8 }
  0x69   : > { %572 = vst [vmem:[#allocation2 + $0x30] sm:$0xff] (!%p1352_p4), %v1727_v8  ;;  %573 = vst [vmem:[#allocation2 + $0x38] sm:$0xff] (!%p1352_p4), %v1727_v8 }
  0x6b PF: > { %v1531_v9 = vld [vmem:[%s2008_s6 + $0x4] ss:$8 sps:$4 sm:$0xff]   ;;  %v1535_v11 = vld [vmem:[%s2008_s6] ss:$8 sps:$4 sm:$0xff]   ;;  %v1537_v13 = vld [vmem:[%s2008_s6 + $0x14] ss:$8 sps:$4 sm:$0xff]  }
  0x6c   : > { %v1533_v10 = vld [vmem:[%s2008_s6 + $0x104] ss:$8 sps:$4 sm:$0xff]   ;;  %1014 = vmatprep.subr.bf16.mxu1 %v1531_v9  ;;  %v1536_v12 = vld [vmem:[%s2008_s6 + $0x100] ss:$8 sps:$4 sm:$0xff]   ;;  %v1539_v14 = vld [vmem:[%s2008_s6 + $0x114] ss:$8 sps:$4 sm:$0xff]  }
  0x6d   : > { %1067 = vmatprep.subr.bf16.mxu0 %v1533_v10  ;;  %1015 = vmatpush1.bf16.msra.mxu1 %v1535_v11  ;;  %v1541_v15 = vld [vmem:[%s2008_s6 + $0x10] ss:$8 sps:$4 sm:$0xff]   ;;  %v1543_v17 = vld [vmem:[%s2008_s6 + $0x24] ss:$8 sps:$4 sm:$0xff]   ;;  %v1547_v19 = vld [vmem:[%s2008_s6 + $0x20] ss:$8 sps:$4 sm:$0xff]  }
  0x6e   : > { %1068 = vmatpush1.bf16.msra.mxu0 %v1536_v12  ;;  %1016 = vmatprep.subr.bf16.mxu1 %v1537_v13  ;;  %v1542_v16 = vld [vmem:[%s2008_s6 + $0x110] ss:$8 sps:$4 sm:$0xff]   ;;  %v1545_v18 = vld [vmem:[%s2008_s6 + $0x124] ss:$8 sps:$4 sm:$0xff]   ;;  %v1548_v20 = vld [vmem:[%s2008_s6 + $0x120] ss:$8 sps:$4 sm:$0xff]  }
  0x6f   : > { %1069 = vmatprep.subr.bf16.mxu0 %v1539_v14  ;;  %v1549_v21 = vld [vmem:[%s2008_s6 + $0x34] ss:$8 sps:$4 sm:$0xff]   ;;  %v1553_v23 = vld [vmem:[%s2008_s6 + $0x30] ss:$8 sps:$4 sm:$0xff]   ;;  %v1555_v25 = vld [vmem:[%s2008_s6 + $0x44] ss:$8 sps:$4 sm:$0xff]  }
  0x70   : > { %v1551_v22 = vld [vmem:[%s2008_s6 + $0x134] ss:$8 sps:$4 sm:$0xff]   ;;  %v1554_v24 = vld [vmem:[%s2008_s6 + $0x130] ss:$8 sps:$4 sm:$0xff]   ;;  %v1557_v26 = vld [vmem:[%s2008_s6 + $0x144] ss:$8 sps:$4 sm:$0xff]  }
  0x71   : > { %1017 = vmatpush1.bf16.msra.mxu1 %v1541_v15  ;;  %v1559_v27 = vld [vmem:[%s2008_s6 + $0x40] ss:$8 sps:$4 sm:$0xff]   ;;  %v1561_v29 = vld [vmem:[%s2008_s6 + $0x54] ss:$8 sps:$4 sm:$0xff]   ;;  %v1565_v31 = vld [vmem:[%s2008_s6 + $0x50] ss:$8 sps:$4 sm:$0xff]  }
  0x72   : > { %1070 = vmatpush1.bf16.msra.mxu0 %v1542_v16  ;;  %1018 = vmatprep.subr.bf16.mxu1 %v1543_v17  ;;  %v1560_v28 = vld [vmem:[%s2008_s6 + $0x140] ss:$8 sps:$4 sm:$0xff]   ;;  %v1563_v30 = vld [vmem:[%s2008_s6 + $0x154] ss:$8 sps:$4 sm:$0xff]   ;;  %v1566_v32 = vld [vmem:[%s2008_s6 + $0x150] ss:$8 sps:$4 sm:$0xff]  }
  0x73   : > { %1071 = vmatprep.subr.bf16.mxu0 %v1545_v18  ;;  %v1567_v33 = vld [vmem:[%s2008_s6 + $0x64] ss:$8 sps:$4 sm:$0xff]   ;;  %v1571_v35 = vld [vmem:[%s2008_s6 + $0x60] ss:$8 sps:$4 sm:$0xff]   ;;  %v1573_v37 = vld [vmem:[%s2008_s6 + $0x74] ss:$8 sps:$4 sm:$0xff]  }
  0x74   : > { %v1569_v34 = vld [vmem:[%s2008_s6 + $0x164] ss:$8 sps:$4 sm:$0xff]   ;;  %v1572_v36 = vld [vmem:[%s2008_s6 + $0x160] ss:$8 sps:$4 sm:$0xff]   ;;  %v1575_v38 = vld [vmem:[%s2008_s6 + $0x174] ss:$8 sps:$4 sm:$0xff]  }
  0x75   : > { %1019 = vmatpush1.bf16.msra.mxu1 %v1547_v19  ;;  %v1577_v39 = vld [vmem:[%s2008_s6 + $0x70] ss:$8 sps:$4 sm:$0xff]   ;;  %v1579_v41 = vld [vmem:[%s2008_s6 + $0x84] ss:$8 sps:$4 sm:$0xff]   ;;  %v1583_v43 = vld [vmem:[%s2008_s6 + $0x80] ss:$8 sps:$4 sm:$0xff]  }
  0x76   : > { %1072 = vmatpush1.bf16.msra.mxu0 %v1548_v20  ;;  %1020 = vmatprep.subr.bf16.mxu1 %v1549_v21  ;;  %v1578_v40 = vld [vmem:[%s2008_s6 + $0x170] ss:$8 sps:$4 sm:$0xff]   ;;  %v1581_v42 = vld [vmem:[%s2008_s6 + $0x184] ss:$8 sps:$4 sm:$0xff]   ;;  %v1584_v44 = vld [vmem:[%s2008_s6 + $0x180] ss:$8 sps:$4 sm:$0xff]  }
  0x77   : > { %1073 = vmatprep.subr.bf16.mxu0 %v1551_v22  ;;  %v1585_v45 = vld [vmem:[%s2008_s6 + $0x94] ss:$8 sps:$4 sm:$0xff]   ;;  %v1589_v47 = vld [vmem:[%s2008_s6 + $0x90] ss:$8 sps:$4 sm:$0xff]   ;;  %v1591_v49 = vld [vmem:[%s2008_s6 + $0xa4] ss:$8 sps:$4 sm:$0xff]  }
  0x78   : > { %v1587_v46 = vld [vmem:[%s2008_s6 + $0x194] ss:$8 sps:$4 sm:$0xff]   ;;  %v1590_v48 = vld [vmem:[%s2008_s6 + $0x190] ss:$8 sps:$4 sm:$0xff]   ;;  %v1593_v50 = vld [vmem:[%s2008_s6 + $0x1a4] ss:$8 sps:$4 sm:$0xff]  }
  0x79   : > { %1021 = vmatpush1.bf16.msra.mxu1 %v1553_v23  ;;  %v1595_v51 = vld [vmem:[%s2008_s6 + $0xa0] ss:$8 sps:$4 sm:$0xff]   ;;  %v1597_v53 = vld [vmem:[%s2008_s6 + $0xb4] ss:$8 sps:$4 sm:$0xff]   ;;  %v1601_v55 = vld [vmem:[%s2008_s6 + $0xb0] ss:$8 sps:$4 sm:$0xff]  }
  0x7a   : > { %1074 = vmatpush1.bf16.msra.mxu0 %v1554_v24  ;;  %1022 = vmatprep.subr.bf16.mxu1 %v1555_v25  ;;  %v1596_v52 = vld [vmem:[%s2008_s6 + $0x1a0] ss:$8 sps:$4 sm:$0xff]   ;;  %v1599_v54 = vld [vmem:[%s2008_s6 + $0x1b4] ss:$8 sps:$4 sm:$0xff]   ;;  %v1602_v56 = vld [vmem:[%s2008_s6 + $0x1b0] ss:$8 sps:$4 sm:$0xff]  }
  0x7b   : > { %1075 = vmatprep.subr.bf16.mxu0 %v1557_v26  ;;  %v1603_v57 = vld [vmem:[%s2008_s6 + $0xc4] ss:$8 sps:$4 sm:$0xff]   ;;  %v1607_v61 = vld [vmem:[%s2008_s6 + $0xc0] ss:$8 sps:$4 sm:$0xff]   ;;  %v1609_v63 = vld [vmem:[%s2008_s6 + $0xd4] ss:$8 sps:$4 sm:$0xff]  }
  0x7c   : > { %v1629_v58 = vld [vmem:[%s2006_s4 + $0x4] ss:$16 sps:$4 sm:$0xff]   ;;  %v1632_v60 = vld [vmem:[%s2006_s4 + $0xc] ss:$16 sps:$4 sm:$0xff]   ;;  %v1608_v62 = vld [vmem:[%s2008_s6 + $0x1c0] ss:$8 sps:$4 sm:$0xff]  }
  0x7d   : > { %1023 = vmatpush1.bf16.msra.mxu1 %v1559_v27  ;;  %v1605_v59 = vld [vmem:[%s2008_s6 + $0x1c4] ss:$8 sps:$4 sm:$0xff]   ;;  %1046 = vmatprep.mubr.bf16.mxu1 %v1629_v58  ;;  %v1611_v0 = vld [vmem:[%s2008_s6 + $0x1d4] ss:$8 sps:$4 sm:$0xff]   ;;  %v1613_v1 = vld [vmem:[%s2008_s6 + $0xd0] ss:$8 sps:$4 sm:$0xff]  }
  0x7e   : > { %1076 = vmatpush1.bf16.msra.mxu0 %v1560_v28  ;;  %1024 = vmatprep.subr.bf16.mxu1 %v1561_v29  ;;  %v1614_v2 = vld [vmem:[%s2008_s6 + $0x1d0] ss:$8 sps:$4 sm:$0xff]   ;;  %v1615_v3 = vld [vmem:[%s2008_s6 + $0xe4] ss:$8 sps:$4 sm:$0xff]   ;;  %v1619_v5 = vld [vmem:[%s2008_s6 + $0xe0] ss:$8 sps:$4 sm:$0xff]  }
  0x7f   : > { %1077 = vmatprep.subr.bf16.mxu0 %v1563_v30  ;;  %1099 = vmatprep.mubr.bf16.mxu0 %v1632_v60  ;;  %v1617_v4 = vld [vmem:[%s2008_s6 + $0x1e4] ss:$8 sps:$4 sm:$0xff]   ;;  %v1620_v6 = vld [vmem:[%s2008_s6 + $0x1e0] ss:$8 sps:$4 sm:$0xff]   ;;  %v1621_v7 = vld [vmem:[%s2008_s6 + $0xf4] ss:$8 sps:$4 sm:$0xff]  }
  0x80   : > { %v1623_v8 = vld [vmem:[%s2008_s6 + $0x1f4] ss:$8 sps:$4 sm:$0xff]   ;;  %v1625_v9 = vld [vmem:[%s2008_s6 + $0xf0] ss:$8 sps:$4 sm:$0xff]   ;;  %v574_v18 = vld [vmem:[#allocation2] sm:$0xff]  ;;  %p1425_p5 = scmp.ne.s32.totalorder %s1709_s18, 4 }
  0x81   : > { %1025 = vmatpush1.bf16.msra.mxu1 %v1565_v31  ;;  %v1626_v10 = vld [vmem:[%s2008_s6 + $0x1f0] ss:$8 sps:$4 sm:$0xff]   ;;  %v1633_v13 = vld [vmem:[%s2006_s4 + $0x24] ss:$16 sps:$4 sm:$0xff]   ;;  %v1635_v14 = vld [vmem:[%s2006_s4 + $0x2c] ss:$16 sps:$4 sm:$0xff]  }
  0x82   : > { %1078 = vmatpush1.bf16.msra.mxu0 %v1566_v32  ;;  %1026 = vmatprep.subr.bf16.mxu1 %v1567_v33  ;;  %v1627_v11 = vld [vmem:[%s2006_s4] ss:$16 sps:$4 sm:$0xff]   ;;  %v1630_v12 = vld [vmem:[%s2006_s4 + $0x8] ss:$16 sps:$4 sm:$0xff]  }
  0x83   : > { %1079 = vmatprep.subr.bf16.mxu0 %v1569_v34  ;;  %v1637_v15 = vld [vmem:[%s2006_s4 + $0x20] ss:$16 sps:$4 sm:$0xff]   ;;  %v1638_v16 = vld [vmem:[%s2006_s4 + $0x28] ss:$16 sps:$4 sm:$0xff]  }
  0x84   : > { %v575_v22 = vld [vmem:[#allocation2 + $0x8] sm:$0xff]  ;;  %v576_v26 = vld [vmem:[#allocation2 + $0x10] sm:$0xff]  ;;  %v577_v31 = vld [vmem:[#allocation2 + $0x18] sm:$0xff] }
  0x85   : > { %1027 = vmatpush1.bf16.msra.mxu1 %v1571_v35 }
  0x86   : > { %1080 = vmatpush1.bf16.msra.mxu0 %v1572_v36  ;;  %1028 = vmatprep.subr.bf16.mxu1 %v1573_v37 }
  0x87   : > { %1081 = vmatprep.subr.bf16.mxu0 %v1575_v38  ;;  %v578_v38 = vld [vmem:[#allocation2 + $0x20] sm:$0xff] }
  0x89   : > { %1029 = vmatpush1.bf16.msra.mxu1 %v1577_v39 }
  0x8a   : > { %1082 = vmatpush1.bf16.msra.mxu0 %v1578_v40  ;;  %1030 = vmatprep.subr.bf16.mxu1 %v1579_v41 }
  0x8b   : > { %1083 = vmatprep.subr.bf16.mxu0 %v1581_v42  ;;  %v579_v42 = vld [vmem:[#allocation2 + $0x28] sm:$0xff] }
  0x8d   : > { %1031 = vmatpush1.bf16.msra.mxu1 %v1583_v43 }
  0x8e   : > { %1084 = vmatpush1.bf16.msra.mxu0 %v1584_v44  ;;  %1032 = vmatprep.subr.bf16.mxu1 %v1585_v45 }
  0x8f   : > { %1085 = vmatprep.subr.bf16.mxu0 %v1587_v46  ;;  %v580_v46 = vld [vmem:[#allocation2 + $0x30] sm:$0xff] }
  0x91   : > { %1033 = vmatpush1.bf16.msra.mxu1 %v1589_v47 }
  0x92   : > { %1086 = vmatpush1.bf16.msra.mxu0 %v1590_v48  ;;  %1034 = vmatprep.subr.bf16.mxu1 %v1591_v49 }
  0x93   : > { %1087 = vmatprep.subr.bf16.mxu0 %v1593_v50 }
  0x95   : > { %1035 = vmatpush1.bf16.msra.mxu1 %v1595_v51  ;;  %v581_v51 = vld [vmem:[#allocation2 + $0x38] sm:$0xff] }
  0x96   : > { %1088 = vmatpush1.bf16.msra.mxu0 %v1596_v52  ;;  %1036 = vmatprep.subr.bf16.mxu1 %v1597_v53 }
  0x97   : > { %1089 = vmatprep.subr.bf16.mxu0 %v1599_v54 }
  0x99   : > { %1037 = vmatpush1.bf16.msra.mxu1 %v1601_v55 }
  0x9a   : > { %1090 = vmatpush1.bf16.msra.mxu0 %v1602_v56  ;;  %1038 = vmatprep.subr.bf16.mxu1 %v1603_v57  ;;  %v1150_v57 = vlaneseq (!%p1425_p5) }
  0x9b   : > { %1091 = vmatprep.subr.bf16.mxu0 %v1605_v59  ;;  %v1148_v59 = vld [vmem:[%s558_s29] sm:$0x3] (!%p1425_p5) }
  0x9c   : > { %v1151_v58 = vshrl.u32 (!%p1425_p5), %v1150_v57, 7 }
  0x9d   : > { %1039 = vmatpush1.bf16.msra.mxu1 %v1607_v61 }
  0x9e   : > { %1092 = vmatpush1.bf16.msra.mxu0 %v1608_v62  ;;  %1040 = vmatprep.subr.bf16.mxu1 %v1609_v63  ;;  %v1152_v61 = vsub.s32 (!%p1425_p5), 0, %v1151_v58  ;;  %v1156_v63 = vsub.s32 (!%p1425_p5), 1, %v1151_v58 }
  0x9f   : > { %1093 = vmatprep.subr.bf16.mxu0 %v1611_v0 }
  0xa1   : > { %1041 = vmatpush1.bf16.msra.mxu1 %v1613_v1 }
  0xa2   : > { %1094 = vmatpush1.bf16.msra.mxu0 %v1614_v2  ;;  %1042 = vmatprep.subr.bf16.mxu1 %v1615_v3  ;;  %v1153_v3 = vrot.slane (!%p1425_p5), %v1148_v59, %v1152_v61 }
  0xa3   : > { %1095 = vmatprep.subr.bf16.mxu0 %v1617_v4  ;;  %v1157_v4 = vrot.slane (!%p1425_p5), %v1148_v59, %v1156_v63 }
  0xa5   : > { %1043 = vmatpush1.bf16.msra.mxu1 %v1619_v5 }
  0xa6   : > { %1096 = vmatpush1.bf16.msra.mxu0 %v1620_v6  ;;  %1044 = vmatprep.subr.bf16.mxu1 %v1621_v7 }
  0xa7   : > { %1097 = vmatprep.subr.bf16.mxu0 %v1623_v8 }
  0xa9   : > { %1045 = vmatpush1.bf16.msra.mxu1 %v1625_v9 }
  0xaa   : > { %1098 = vmatpush1.bf16.msra.mxu0 %v1626_v10 }
  0xac   : > { %1047 = vmatmul.mubr.bf16.vlgmr.msra.gmra.mrb[0].mxu1 %v1627_v11 }
  0xad   : > { %1100 = vmatmul.mubr.bf16.vlgmr.msra.gmra.mrb[0].mxu0 %v1630_v12  ;;  %1056 = vmatprep.mubr.bf16.mxu1 %v1633_v13 }
  0xae   : > { %1109 = vmatprep.mubr.bf16.mxu0 %v1635_v14 }
  0xb4   : > { %1057 = vmatmul.mubr.bf16.gmra.mrb[4].mxu1 %v1637_v15 }
  0xb5   : > { %1110 = vmatmul.mubr.bf16.gmra.mrb[4].mxu0 %v1638_v16 }
 0x17f   : > { %v1048_v17 = vpop.f32.mrb[0].mxu1 }
 0x180   : > { %v1101_v19 = vpop.f32.mrb[0].mxu0  ;;  %v1050_v21 = vpop.f32.mrb[1].mxu1 }
 0x181   : > { %v1102_v20 = vadd.f32 %v1101_v19, %v1048_v17  ;;  %v1103_v23 = vpop.f32.mrb[1].mxu0  ;;  %v1052_v25 = vpop.f32.mrb[2].mxu1 }
 0x182   : > { %v1104_v24 = vadd.f32 %v1103_v23, %v1050_v21  ;;  %v1105_v27 = vpop.f32.mrb[2].mxu0  ;;  %v1054_v30 = vpop.f32.mrb[3].mxu1 }
 0x183   : > { %v1120_v28 = vadd.f32 %v1102_v20, %v574_v18  ;;  %v1106_v29 = vadd.f32 %v1105_v27, %v1052_v25  ;;  %v1107_v32 = vpop.f32.mrb[3].mxu0 }
 0x184   : > { %v1121_v33 = vadd.f32 %v1104_v24, %v575_v22  ;;  %v1108_v34 = vadd.f32 %v1107_v32, %v1054_v30 }
 0x185   : > { %1128 = vst [vmem:[#allocation2] sm:$0xff] %v1120_v28  ;;  %v1122_v35 = vadd.f32 %v1106_v29, %v576_v26 }
 0x186   : > { %1129 = vst [vmem:[#allocation2 + $0x8] sm:$0xff] %v1121_v33  ;;  %v1123_v36 = vadd.f32 %v1108_v34, %v577_v31 }
 0x187   : > { %1130 = vst [vmem:[#allocation2 + $0x10] sm:$0xff] %v1122_v35  ;;  %v1058_v37 = vpop.f32.mrb[4].mxu1 }
 0x188   : > { %1131 = vst [vmem:[#allocation2 + $0x18] sm:$0xff] %v1123_v36  ;;  %v1111_v39 = vpop.f32.mrb[4].mxu0  ;;  %v1060_v41 = vpop.f32.mrb[5].mxu1 }
 0x189   : > { %v1112_v40 = vadd.f32 %v1111_v39, %v1058_v37  ;;  %v1113_v43 = vpop.f32.mrb[5].mxu0  ;;  %v1062_v45 = vpop.f32.mrb[6].mxu1 }
 0x18a   : > { %v1114_v44 = vadd.f32 %v1113_v43, %v1060_v41  ;;  %v1115_v47 = vpop.f32.mrb[6].mxu0  ;;  %v1064_v50 = vpop.f32.mrb[7].mxu1  ;;  %1139 = sbr.rel (%p1425_p5) target bundleno = 413 (0x19d), region = 101 }
 0x18b   : > { %v1124_v48 = vadd.f32 %v1112_v40, %v578_v38  ;;  %v1116_v49 = vadd.f32 %v1115_v47, %v1062_v45  ;;  %v1117_v52 = vpop.f32.mrb[7].mxu0 }
 0x18c   : > { %v1125_v53 = vadd.f32 %v1114_v44, %v579_v42  ;;  %v1118_v54 = vadd.f32 %v1117_v52, %v1064_v50  ;;  %v1140_v60 = vld [vmem:[#allocation2] sm:$0xff] (!%p1425_p5) }
 0x18d   : > { %1132 = vst [vmem:[#allocation2 + $0x20] sm:$0xff] %v1124_v48  ;;  %v1126_v55 = vadd.f32 %v1116_v49, %v580_v46  ;;  %v1141_v62 = vld [vmem:[#allocation2 + $0x8] sm:$0xff] (!%p1425_p5)  ;;  %v1160_v8 = vadd.f32 (!%p1425_p5), %v1153_v3, %v1140_v60 }
 0x18e   : > { %1133 = vst [vmem:[#allocation2 + $0x28] sm:$0xff] %v1125_v53  ;;  %v1127_v56 = vadd.f32 %v1118_v54, %v581_v51  ;;  %v1142_v0 = vld [vmem:[#allocation2 + $0x10] sm:$0xff] (!%p1425_p5)  ;;  %v1161_v9 = vadd.f32 (!%p1425_p5), %v1157_v4, %v1141_v62 }
 0x18f   : > { %1134 = vst [vmem:[#allocation2 + $0x30] sm:$0xff] %v1126_v55  ;;  %v1143_v1 = vld [vmem:[#allocation2 + $0x18] sm:$0xff] (!%p1425_p5)  ;;  %v1162_v10 = vadd.f32 (!%p1425_p5), %v1153_v3, %v1142_v0  ;;  %v1168_v16 = vmax.f32 (!%p1425_p5), %v1160_v8, 0.0 }
 0x190   : > { %1135 = vst [vmem:[#allocation2 + $0x38] sm:$0xff] %v1127_v56  ;;  %v1163_v11 = vadd.f32 (!%p1425_p5), %v1157_v4, %v1143_v1  ;;  %v1169_v17 = vmax.f32 (!%p1425_p5), %v1161_v9, 0.0 }
 0x191   : > { %v1170_v18 = vmax.f32 %v1162_v10, 0.0  ;;  %1176 = vst [vmem:[%s2010_s1] sm:$0xff] %v1168_v16 }
 0x192   : > { %v1171_v19 = vmax.f32 %v1163_v11, 0.0  ;;  %1177 = vst [vmem:[%s2010_s1 + $0x8] sm:$0xff] %v1169_v17 }
 0x193   : > { %1178 = vst [vmem:[%s2010_s1 + $0x10] sm:$0xff] %v1170_v18 }
 0x194   : > { %v1144_v2 = vld [vmem:[#allocation2 + $0x20] sm:$0xff]  ;;  %1179 = vst [vmem:[%s2010_s1 + $0x18] sm:$0xff] %v1171_v19 }
 0x195   : > { %v1145_v5 = vld [vmem:[#allocation2 + $0x28] sm:$0xff]  ;;  %v1164_v12 = vadd.f32 %v1153_v3, %v1144_v2 }
 0x196   : > { %v1146_v6 = vld [vmem:[#allocation2 + $0x30] sm:$0xff]  ;;  %v1165_v13 = vadd.f32 %v1157_v4, %v1145_v5 }
 0x197   : > { %v1147_v7 = vld [vmem:[#allocation2 + $0x38] sm:$0xff]  ;;  %v1166_v14 = vadd.f32 %v1153_v3, %v1146_v6  ;;  %v1172_v20 = vmax.f32 %v1164_v12, 0.0 }
 0x198   : > { %v1167_v15 = vadd.f32 %v1157_v4, %v1147_v7  ;;  %v1173_v21 = vmax.f32 %v1165_v13, 0.0 }
 0x199   : > { %v1174_v22 = vmax.f32 %v1166_v14, 0.0  ;;  %1180 = vst [vmem:[%s2010_s1 + $0x20] sm:$0xff] %v1172_v20 }
 0x19a   : > { %v1175_v23 = vmax.f32 %v1167_v15, 0.0  ;;  %1181 = vst [vmem:[%s2010_s1 + $0x28] sm:$0xff] %v1173_v21 }
 0x19b   : > { %1182 = vst [vmem:[%s2010_s1 + $0x30] sm:$0xff] %v1174_v22 }
 0x19c   : > { %1183 = vst [vmem:[%s2010_s1 + $0x38] sm:$0xff] %v1175_v23 }
 0x19d PF: > { %1190 = sbr.rel (!%p1842_p12) target bundleno = 422 (0x1a6), region = 105  ;;  %s1433_s16 = sshll.u32 (%p1842_p12), %s1713_s19, 4  ;;  %v1211_v25 = vld [vmem:[%s2010_s1 + $0x8] sm:$0xff] (%p1842_p12)  ;;  %v1213_v26 = vld [vmem:[%s2010_s1 + $0x10] sm:$0xff] (%p1842_p12)  ;;  %v1215_v27 = vld [vmem:[%s2010_s1 + $0x18] sm:$0xff] (%p1842_p12) }
 0x19e   : > { %s1196_s5 = scalar_lea.vmem (%p1842_p12), %s2149_s3, %s1433_s16 }
 0x19f   : > { %1212 = vst [vmem:[%s1196_s5 + $0x8] sm:$0xff] (%p1842_p12), %v1211_v25  ;;  %1214 = vst [vmem:[%s1196_s5 + $0x20] sm:$0xff] (%p1842_p12), %v1213_v26 }
 0x1a0   : > { %v1217_v28 = vld [vmem:[%s2010_s1 + $0x20] sm:$0xff] (%p1842_p12)  ;;  %1216 = vst [vmem:[%s1196_s5 + $0x28] sm:$0xff] (%p1842_p12), %v1215_v27 }
 0x1a1   : > { %v1219_v29 = vld [vmem:[%s2010_s1 + $0x28] sm:$0xff] (%p1842_p12)  ;;  %1218 = vst [vmem:[%s1196_s5 + $0x40] sm:$0xff] (%p1842_p12), %v1217_v28 }
 0x1a2   : > { %1220 = vst [vmem:[%s1196_s5 + $0x48] sm:$0xff] (%p1842_p12), %v1219_v29  ;;  %v1221_v30 = vld [vmem:[%s2010_s1 + $0x30] sm:$0xff] (%p1842_p12) }
 0x1a3   : > { %v1223_v31 = vld [vmem:[%s2010_s1 + $0x38] sm:$0xff] (%p1842_p12)  ;;  %1222 = vst [vmem:[%s1196_s5 + $0x60] sm:$0xff] (%p1842_p12), %v1221_v30 }
 0x1a4   : > { %v1209_v24 = vld [vmem:[%s2010_s1] sm:$0xff]  ;;  %1224 = vst [vmem:[%s1196_s5 + $0x68] sm:$0xff] %v1223_v31 }
 0x1a5   : > { %1210 = vst [vmem:[%s1196_s5] sm:$0xff] %v1209_v24 }
 0x1a6 PF: > { %s13_s22 = sadd.s32 1, %s1725_s22   ;;  %s2159_s10 = sld [smem:[#allocation6_spill]] }
 0x1a7   : > { %p10_p6 = scmp.ge.s32.totalorder %s13_s22, 12   ;;  %s2160_s12 = smov %s1689_s13 }
 0x1a8   : > { %s2161_s13 = smov %s1840_s9  ;;  %s2162_s14 = smov %s1697_s15 }
 0x1a9   : > { %s2163_s15 = smov %s1837_s8  ;;  %s2164_s16 = smov %s1705_s17 }
 0x1aa   : > { %s2165_s17 = smov %s1823_s30  ;;  %s2166_s18 = smov %s1717_s20 }
 0x1ab   : > { %s2167_s19 = smov %s1721_s21  ;;  %s2168_s20 = smov %s2171_s24 }
 0x1ac   : > { %s2169_s21 = smov %s2159_s10  ;;  %12 = sbr.rel (!%p10_p6) target bundleno = 9 (0x9), region = 170 }

// kernel: alexnet_forward.16
= control target key start
LH: loop header
LB: loop body
LE: loop exit
PB: predicated region body
PF: predicated region fallthrough
CT: control target
= control target key end

     0   :  { %s2146_s0 = inlined_call_operand.vmem [shape: bf16[32,3584], index: 0, kind: input, shape index: {}]   ;;  %s2147_s1 = inlined_call_operand.vmem [shape: bf16[3584,512], index: 1, kind: input, shape index: {}]   ;;  %s2148_s2 = inlined_call_operand.vmem [shape: f32[1,512], index: 2, kind: input, shape index: {}]   ;;  %s2149_s3 = inlined_call_operand.vmem [shape: f32[32,512], index: 3, kind: output, shape index: {}]  }
   0x1   :  { %2151 = sst [smem:[#allocation7_spill]] %s2146_s0 }
   0x2   :  { %2152 = sst [smem:[#allocation8_spill]] %s2147_s1 }
   0x3   :  { %s1748_s12 = smov 0   ;;  %s1750_s13 = smov 0  }
   0x4   :  { %s1752_s14 = smov 0   ;;  %s1754_s15 = smov 0  }
   0x5   :  { %s1756_s16 = smov 0   ;;  %s1758_s17 = smov 0  }
   0x6   :  { %s1760_s18 = smov 0   ;;  %s1762_s19 = smov 0  }
   0x7   :  { %s1764_s20 = smov 0   ;;  %s1766_s21 = smov 0  }
   0x8   :  { %s1768_s22 = smov 0  }
   0x9 LB: > { %s1335_s23 = sadd.s32 4294967295, %s1725_s22   ;;  %s25_s24 = sadd.s32 1, %s1717_s20  ;;  %s1725_s22 = sphi %s1768_s22, %s13_s22   ;;  %s1721_s21 = sphi %s1766_s21, %s2169_s21   ;;  %s1717_s20 = sphi %s1764_s20, %s2168_s20   ;;  %s1713_s19 = sphi %s1762_s19, %s2167_s19   ;;  %s1709_s18 = sphi %s1760_s18, %s2166_s18   ;;  %s1705_s17 = sphi %s1758_s17, %s2165_s17   ;;  %s1701_s16 = sphi %s1756_s16, %s2164_s16   ;;  %s1697_s15 = sphi %s1754_s15, %s2163_s15   ;;  %s1693_s14 = sphi %s1752_s14, %s2162_s14   ;;  %s1689_s13 = sphi %s1750_s13, %s2161_s13   ;;  %s1685_s12 = sphi %s1748_s12, %s2160_s12  }
   0xa   : > { %p26_p0 = scmp.ge.s32.totalorder %s25_s24, 7  ;;  %s28_s25 = sadd.s32 1, %s1721_s21 }
   0xb   : > { %s41_s26 = sadd.s32 1, %s1705_s17  ;;  %p48_p1 = scmp.ne.s32.totalorder %s1705_s17, %s1701_s16 }
   0xc   : > { %s2171_s24 = smov (%p26_p0, %s25_s24), 0  ;;  %s2173_s25 = smov (!%p26_p0, %s28_s25), %s1721_s21 }
   0xd   : > { %s37_s27 = ssub.s32 %s1717_s20, %s2171_s24  ;;  %p49_p2 = scmp.eq.s32.totalorder %s1725_s22, 0 }
   0xe   : > { %p30_p3 = scmp.ge.s32.totalorder %s2173_s25, 2  ;;  %p39_p4 = scmp.eq.s32.totalorder %s37_s27, 0 }
   0xf   : > { %p1815_p5 = por %p49_p2, %p48_p1  ;;  %s69_s29 = sadd.s32 1, %s1697_s15 }
  0x10   : > { %s2175_s25 = smov (%p30_p3, %s2173_s25), 0  ;;  %p76_p6 = scmp.ne.s32.totalorder %s1697_s15, %s1693_s14 }
  0x11   : > { %2154 = sst [smem:[#allocation6_spill]] %s2175_s25  ;;  %s65_s4 = ssub.s32 %s1721_s21, %s2175_s25 }
  0x12   : > { %s1823_s30 = scalar_select %p39_p4, %s1705_s17, %s41_s26  }
  0x13   : > { %s66_s5 = sor.u32 %s65_s4, %s37_s27  ;;  %p121_p7 = scmp.eq.s32.totalorder %s65_s4, 0 }
  0x14   : > { %p67_p8 = scmp.eq.s32.totalorder %s66_s5, 0  ;;  %p1829_p9 = por %p76_p6, %p49_p2 }
  0x15   : > { %s123_s7 = sadd.s32 1, %s1689_s13  ;;  %p133_p10 = scmp.ne.s32.totalorder %s1689_s13, %s1685_s12 }
  0x16   : > { %s1837_s8 = scalar_select %p67_p8, %s1697_s15, %s69_s29  }
  0x17   : > { %s1840_s9 = scalar_select %p121_p7, %s1689_s13, %s123_s7  }
  0x18   : > { %p134_p11 = scmp.eq.s32.totalorder %s1335_s23, 13  ;;  %p1338_p13 = scmp.ge.s32.totalorder %s1725_s22, 14 }
  0x1a   : > { %p1842_p12 = por %p134_p11, %p133_p10  ;;  %156 = sbr.rel (%p1338_p13) target bundleno = 89 (0x59), region = 16 }
  0x21   : > { %159 = sbr.rel (!%p1815_p5) target bundleno = 47 (0x2f), region = 20  ;;  %s161_s11 = sand.u32 (%p1815_p5), 1, %s1705_s17  }
  0x22   : > { %s1431_s26 = sshll.u32 (%p1815_p5), %s1717_s20, 4  ;;  %s1339_s27 = sshll.u32 (%p1815_p5), %s161_s11, 6 }
  0x23   : > { %s2157_s0 = sld [smem:[#allocation7_spill]] (%p1815_p5)  ;;  %s163_s23 = scalar_lea.vmem (%p1815_p5), [#allocation3], %s1339_s27 }
  0x29   : > { %s169_s5 = scalar_lea.vmem %s2157_s0, %s1431_s26 }
  0x2a   : > { %v182_v0 = vld [vmem:[%s169_s5] sm:$0xff]  ;;  %v184_v1 = vld [vmem:[%s169_s5 + $0x8] sm:$0xff]  ;;  %v186_v2 = vld [vmem:[%s169_s5 + $0x70] sm:$0xff] }
  0x2b   : > { %183 = vst [vmem:[%s163_s23] sm:$0xff] %v182_v0  ;;  %185 = vst [vmem:[%s163_s23 + $0x8] sm:$0xff] %v184_v1  ;;  %v188_v3 = vld [vmem:[%s169_s5 + $0x78] sm:$0xff]  ;;  %v190_v4 = vld [vmem:[%s169_s5 + $0xe0] sm:$0xff] }
  0x2c   : > { %187 = vst [vmem:[%s163_s23 + $0x10] sm:$0xff] %v186_v2  ;;  %v192_v5 = vld [vmem:[%s169_s5 + $0xe8] sm:$0xff]  ;;  %189 = vst [vmem:[%s163_s23 + $0x18] sm:$0xff] %v188_v3  ;;  %v194_v6 = vld [vmem:[%s169_s5 + $0x150] sm:$0xff] }
  0x2d   : > { %191 = vst [vmem:[%s163_s23 + $0x20] sm:$0xff] %v190_v4  ;;  %193 = vst [vmem:[%s163_s23 + $0x28] sm:$0xff] %v192_v5  ;;  %v196_v7 = vld [vmem:[%s169_s5 + $0x158] sm:$0xff] }
  0x2e   : > { %195 = vst [vmem:[%s163_s23 + $0x30] sm:$0xff] %v194_v6  ;;  %197 = vst [vmem:[%s163_s23 + $0x38] sm:$0xff] %v196_v7 }
  0x2f PF: > { %203 = sbr.rel (!%p1829_p9) target bundleno = 89 (0x59), region = 43  ;;  %s205_s28 = sand.u32 (%p1829_p9), 1, %s1697_s15  }
  0x30   : > { %s1344_s7 = sshll.u32 (%p1829_p9), %s1721_s21, 1  ;;  %s1342_s11 = sshll.u32 (%p1829_p9), %s205_s28, 9 }
  0x31   : > { %s1432_s26 = sshll.u32 (%p1829_p9), %s1717_s20, 8  ;;  %s2158_s1 = sld [smem:[#allocation8_spill]] (%p1829_p9) }
  0x32   : > { %s211_s27 = sadd.s32 (%p1829_p9), %s1432_s26, %s1344_s7  ;;  %s1867_s6 = scalar_lea.vmem (%p1829_p9), [#allocation4], %s1342_s11 }
  0x33   : > { %s1346_s29 = sshll.u32 (%p1829_p9), %s211_s27, 2 }
  0x37   : > { %s1862_s25 = scalar_lea.vmem %s2158_s1, %s1346_s29 }
  0x38   : > { %v367_v8 = vld [vmem:[%s1862_s25] sm:$0xff]  ;;  %v369_v9 = vld [vmem:[%s1862_s25 + $0x10] sm:$0xff] }
  0x39   : > { %v371_v10 = vld [vmem:[%s1862_s25 + $0x20] sm:$0xff]  ;;  %368 = vst [vmem:[%s1867_s6] sm:$0xff] %v367_v8  ;;  %370 = vst [vmem:[%s1867_s6 + $0x8] sm:$0xff] %v369_v9  ;;  %v373_v11 = vld [vmem:[%s1862_s25 + $0x30] sm:$0xff] }
  0x3a   : > { %372 = vst [vmem:[%s1867_s6 + $0x10] sm:$0xff] %v371_v10  ;;  %v375_v12 = vld [vmem:[%s1862_s25 + $0x40] sm:$0xff]  ;;  %v377_v13 = vld [vmem:[%s1862_s25 + $0x50] sm:$0xff]  ;;  %374 = vst [vmem:[%s1867_s6 + $0x18] sm:$0xff] %v373_v11 }
  0x3b   : > { %376 = vst [vmem:[%s1867_s6 + $0x20] sm:$0xff] %v375_v12  ;;  %378 = vst [vmem:[%s1867_s6 + $0x28] sm:$0xff] %v377_v13  ;;  %v379_v14 = vld [vmem:[%s1862_s25 + $0x60] sm:$0xff]  ;;  %v381_v15 = vld [vmem:[%s1862_s25 + $0x70] sm:$0xff] }
  0x3c   : > { %v383_v16 = vld [vmem:[%s1862_s25 + $0x80] sm:$0xff]  ;;  %380 = vst [vmem:[%s1867_s6 + $0x30] sm:$0xff] %v379_v14  ;;  %382 = vst [vmem:[%s1867_s6 + $0x38] sm:$0xff] %v381_v15  ;;  %v385_v17 = vld [vmem:[%s1862_s25 + $0x90] sm:$0xff] }
  0x3d   : > { %384 = vst [vmem:[%s1867_s6 + $0x40] sm:$0xff] %v383_v16  ;;  %v387_v18 = vld [vmem:[%s1862_s25 + $0xa0] sm:$0xff]  ;;  %v389_v19 = vld [vmem:[%s1862_s25 + $0xb0] sm:$0xff]  ;;  %386 = vst [vmem:[%s1867_s6 + $0x48] sm:$0xff] %v385_v17 }
  0x3e   : > { %388 = vst [vmem:[%s1867_s6 + $0x50] sm:$0xff] %v387_v18  ;;  %390 = vst [vmem:[%s1867_s6 + $0x58] sm:$0xff] %v389_v19  ;;  %v391_v20 = vld [vmem:[%s1862_s25 + $0xc0] sm:$0xff]  ;;  %v393_v21 = vld [vmem:[%s1862_s25 + $0xd0] sm:$0xff] }
  0x3f   : > { %v395_v22 = vld [vmem:[%s1862_s25 + $0xe0] sm:$0xff]  ;;  %392 = vst [vmem:[%s1867_s6 + $0x60] sm:$0xff] %v391_v20  ;;  %394 = vst [vmem:[%s1867_s6 + $0x68] sm:$0xff] %v393_v21  ;;  %v397_v23 = vld [vmem:[%s1862_s25 + $0xf0] sm:$0xff] }
  0x40   : > { %396 = vst [vmem:[%s1867_s6 + $0x70] sm:$0xff] %v395_v22  ;;  %v399_v24 = vld [vmem:[%s1862_s25 + $0x100] sm:$0xff]  ;;  %v401_v25 = vld [vmem:[%s1862_s25 + $0x110] sm:$0xff]  ;;  %398 = vst [vmem:[%s1867_s6 + $0x78] sm:$0xff] %v397_v23 }
  0x41   : > { %400 = vst [vmem:[%s1867_s6 + $0x80] sm:$0xff] %v399_v24  ;;  %402 = vst [vmem:[%s1867_s6 + $0x88] sm:$0xff] %v401_v25  ;;  %v403_v26 = vld [vmem:[%s1862_s25 + $0x120] sm:$0xff]  ;;  %v405_v27 = vld [vmem:[%s1862_s25 + $0x130] sm:$0xff] }
  0x42   : > { %v407_v28 = vld [vmem:[%s1862_s25 + $0x140] sm:$0xff]  ;;  %404 = vst [vmem:[%s1867_s6 + $0x90] sm:$0xff] %v403_v26  ;;  %406 = vst [vmem:[%s1867_s6 + $0x98] sm:$0xff] %v405_v27  ;;  %v409_v29 = vld [vmem:[%s1862_s25 + $0x150] sm:$0xff] }
  0x43   : > { %408 = vst [vmem:[%s1867_s6 + $0xa0] sm:$0xff] %v407_v28  ;;  %v411_v30 = vld [vmem:[%s1862_s25 + $0x160] sm:$0xff]  ;;  %v413_v31 = vld [vmem:[%s1862_s25 + $0x170] sm:$0xff]  ;;  %410 = vst [vmem:[%s1867_s6 + $0xa8] sm:$0xff] %v409_v29 }
  0x44   : > { %412 = vst [vmem:[%s1867_s6 + $0xb0] sm:$0xff] %v411_v30  ;;  %414 = vst [vmem:[%s1867_s6 + $0xb8] sm:$0xff] %v413_v31  ;;  %v415_v32 = vld [vmem:[%s1862_s25 + $0x180] sm:$0xff]  ;;  %v417_v33 = vld [vmem:[%s1862_s25 + $0x190] sm:$0xff] }
  0x45   : > { %v419_v34 = vld [vmem:[%s1862_s25 + $0x1a0] sm:$0xff]  ;;  %416 = vst [vmem:[%s1867_s6 + $0xc0] sm:$0xff] %v415_v32  ;;  %418 = vst [vmem:[%s1867_s6 + $0xc8] sm:$0xff] %v417_v33  ;;  %v421_v35 = vld [vmem:[%s1862_s25 + $0x1b0] sm:$0xff] }
  0x46   : > { %420 = vst [vmem:[%s1867_s6 + $0xd0] sm:$0xff] %v419_v34  ;;  %v423_v36 = vld [vmem:[%s1862_s25 + $0x1c0] sm:$0xff]  ;;  %v425_v37 = vld [vmem:[%s1862_s25 + $0x1d0] sm:$0xff]  ;;  %422 = vst [vmem:[%s1867_s6 + $0xd8] sm:$0xff] %v421_v35 }
  0x47   : > { %424 = vst [vmem:[%s1867_s6 + $0xe0] sm:$0xff] %v423_v36  ;;  %426 = vst [vmem:[%s1867_s6 + $0xe8] sm:$0xff] %v425_v37  ;;  %v427_v38 = vld [vmem:[%s1862_s25 + $0x1e0] sm:$0xff]  ;;  %v429_v39 = vld [vmem:[%s1862_s25 + $0x1f0] sm:$0xff] }
  0x48   : > { %v431_v40 = vld [vmem:[%s1862_s25 + $0x200] sm:$0xff]  ;;  %428 = vst [vmem:[%s1867_s6 + $0xf0] sm:$0xff] %v427_v38  ;;  %430 = vst [vmem:[%s1867_s6 + $0xf8] sm:$0xff] %v429_v39  ;;  %v433_v41 = vld [vmem:[%s1862_s25 + $0x210] sm:$0xff] }
  0x49   : > { %432 = vst [vmem:[%s1867_s6 + $0x100] sm:$0xff] %v431_v40  ;;  %v435_v42 = vld [vmem:[%s1862_s25 + $0x220] sm:$0xff]  ;;  %v437_v43 = vld [vmem:[%s1862_s25 + $0x230] sm:$0xff]  ;;  %434 = vst [vmem:[%s1867_s6 + $0x108] sm:$0xff] %v433_v41 }
  0x4a   : > { %436 = vst [vmem:[%s1867_s6 + $0x110] sm:$0xff] %v435_v42  ;;  %438 = vst [vmem:[%s1867_s6 + $0x118] sm:$0xff] %v437_v43  ;;  %v439_v44 = vld [vmem:[%s1862_s25 + $0x240] sm:$0xff]  ;;  %v441_v45 = vld [vmem:[%s1862_s25 + $0x250] sm:$0xff] }
  0x4b   : > { %v443_v46 = vld [vmem:[%s1862_s25 + $0x260] sm:$0xff]  ;;  %440 = vst [vmem:[%s1867_s6 + $0x120] sm:$0xff] %v439_v44  ;;  %442 = vst [vmem:[%s1867_s6 + $0x128] sm:$0xff] %v441_v45  ;;  %v445_v47 = vld [vmem:[%s1862_s25 + $0x270] sm:$0xff] }
  0x4c   : > { %444 = vst [vmem:[%s1867_s6 + $0x130] sm:$0xff] %v443_v46  ;;  %v447_v48 = vld [vmem:[%s1862_s25 + $0x280] sm:$0xff]  ;;  %v449_v49 = vld [vmem:[%s1862_s25 + $0x290] sm:$0xff]  ;;  %446 = vst [vmem:[%s1867_s6 + $0x138] sm:$0xff] %v445_v47 }
  0x4d   : > { %448 = vst [vmem:[%s1867_s6 + $0x140] sm:$0xff] %v447_v48  ;;  %450 = vst [vmem:[%s1867_s6 + $0x148] sm:$0xff] %v449_v49  ;;  %v451_v50 = vld [vmem:[%s1862_s25 + $0x2a0] sm:$0xff]  ;;  %v453_v51 = vld [vmem:[%s1862_s25 + $0x2b0] sm:$0xff] }
  0x4e   : > { %v455_v52 = vld [vmem:[%s1862_s25 + $0x2c0] sm:$0xff]  ;;  %452 = vst [vmem:[%s1867_s6 + $0x150] sm:$0xff] %v451_v50  ;;  %454 = vst [vmem:[%s1867_s6 + $0x158] sm:$0xff] %v453_v51  ;;  %v457_v53 = vld [vmem:[%s1862_s25 + $0x2d0] sm:$0xff] }
  0x4f   : > { %456 = vst [vmem:[%s1867_s6 + $0x160] sm:$0xff] %v455_v52  ;;  %v459_v54 = vld [vmem:[%s1862_s25 + $0x2e0] sm:$0xff]  ;;  %v461_v55 = vld [vmem:[%s1862_s25 + $0x2f0] sm:$0xff]  ;;  %458 = vst [vmem:[%s1867_s6 + $0x168] sm:$0xff] %v457_v53 }
  0x50   : > { %460 = vst [vmem:[%s1867_s6 + $0x170] sm:$0xff] %v459_v54  ;;  %462 = vst [vmem:[%s1867_s6 + $0x178] sm:$0xff] %v461_v55  ;;  %v463_v56 = vld [vmem:[%s1862_s25 + $0x300] sm:$0xff]  ;;  %v465_v57 = vld [vmem:[%s1862_s25 + $0x310] sm:$0xff] }
  0x51   : > { %v467_v58 = vld [vmem:[%s1862_s25 + $0x320] sm:$0xff]  ;;  %464 = vst [vmem:[%s1867_s6 + $0x180] sm:$0xff] %v463_v56  ;;  %466 = vst [vmem:[%s1867_s6 + $0x188] sm:$0xff] %v465_v57  ;;  %v469_v59 = vld [vmem:[%s1862_s25 + $0x330] sm:$0xff] }
  0x52   : > { %468 = vst [vmem:[%s1867_s6 + $0x190] sm:$0xff] %v467_v58  ;;  %v471_v60 = vld [vmem:[%s1862_s25 + $0x340] sm:$0xff]  ;;  %v473_v61 = vld [vmem:[%s1862_s25 + $0x350] sm:$0xff]  ;;  %470 = vst [vmem:[%s1867_s6 + $0x198] sm:$0xff] %v469_v59 }
  0x53   : > { %472 = vst [vmem:[%s1867_s6 + $0x1a0] sm:$0xff] %v471_v60  ;;  %474 = vst [vmem:[%s1867_s6 + $0x1a8] sm:$0xff] %v473_v61  ;;  %v475_v62 = vld [vmem:[%s1862_s25 + $0x360] sm:$0xff]  ;;  %v477_v63 = vld [vmem:[%s1862_s25 + $0x370] sm:$0xff] }
  0x54   : > { %v479_v0 = vld [vmem:[%s1862_s25 + $0x380] sm:$0xff]  ;;  %476 = vst [vmem:[%s1867_s6 + $0x1b0] sm:$0xff] %v475_v62  ;;  %478 = vst [vmem:[%s1867_s6 + $0x1b8] sm:$0xff] %v477_v63  ;;  %v481_v1 = vld [vmem:[%s1862_s25 + $0x390] sm:$0xff] }
  0x55   : > { %480 = vst [vmem:[%s1867_s6 + $0x1c0] sm:$0xff] %v479_v0  ;;  %v483_v2 = vld [vmem:[%s1862_s25 + $0x3a0] sm:$0xff]  ;;  %v485_v3 = vld [vmem:[%s1862_s25 + $0x3b0] sm:$0xff]  ;;  %482 = vst [vmem:[%s1867_s6 + $0x1c8] sm:$0xff] %v481_v1 }
  0x56   : > { %484 = vst [vmem:[%s1867_s6 + $0x1d0] sm:$0xff] %v483_v2  ;;  %486 = vst [vmem:[%s1867_s6 + $0x1d8] sm:$0xff] %v485_v3  ;;  %v487_v4 = vld [vmem:[%s1862_s25 + $0x3c0] sm:$0xff]  ;;  %v489_v5 = vld [vmem:[%s1862_s25 + $0x3d0] sm:$0xff] }
  0x57   : > { %v491_v6 = vld [vmem:[%s1862_s25 + $0x3e0] sm:$0xff]  ;;  %488 = vst [vmem:[%s1867_s6 + $0x1e0] sm:$0xff] %v487_v4  ;;  %490 = vst [vmem:[%s1867_s6 + $0x1e8] sm:$0xff] %v489_v5  ;;  %v493_v7 = vld [vmem:[%s1862_s25 + $0x3f0] sm:$0xff] }
  0x58   : > { %492 = vst [vmem:[%s1867_s6 + $0x1f0] sm:$0xff] %v491_v6  ;;  %494 = vst [vmem:[%s1867_s6 + $0x1f8] sm:$0xff] %v493_v7 }
  0x59 PF: > { %p1347_p0 = scmp.ge.s32.totalorder %s1725_s22, 1  ;;  %p507_p1 = scmp.lt.s32.totalorder %s1725_s22, 15 }
  0x5b   : > { %p508_p2 = pnand %p1347_p0, %p507_p1 }
  0x5c   : > { %s514_s0 = sand.u32 (!%p508_p2), 1, %s1701_s16   ;;  %s521_s5 = sand.u32 (!%p508_p2), 1, %s1693_s14  }
  0x5d   : > { %511 = sbr.rel (%p508_p2) target bundleno = 422 (0x1a6), region = 85  ;;  %s1348_s23 = sshll.u32 (!%p508_p2), %s514_s0, 6 }
  0x5e   : > { %s1349_s28 = sshll.u32 (!%p508_p2), %s521_s5, 9  ;;  %s548_s7 = sand.u32 (!%p508_p2), 1, %s1685_s12  }
  0x5f   : > { %s1351_s11 = sshll.u32 (!%p508_p2), %s1713_s19, 1  ;;  %s1350_s25 = sshll.u32 (!%p508_p2), %s548_s7, 6 }
  0x60   : > { %p556_p3 = scmp.lt.s32.totalorder (!%p508_p2), %s1351_s11, 3  ;;  %s2006_s4 = scalar_lea.vmem (!%p508_p2), [#allocation3], %s1348_s23 }
  0x61   : > { %s2008_s6 = scalar_lea.vmem (!%p508_p2), [#allocation4], %s1349_s28  ;;  %s2010_s1 = scalar_lea.vmem (!%p508_p2), [#allocation5], %s1350_s25 }
  0x62   : > { %p1352_p4 = scmp.ne.s32.totalorder (!%p508_p2), %s1709_s18, 0 }
  0x64   : > { %s2177_s11 = smov (!%p556_p3, %s1351_s11), 3  ;;  %565 = sbr.rel (%p1352_p4) target bundleno = 107 (0x6b), region = 97 }
  0x65   : > { %s558_s29 = scalar_lea.vmem %s2148_s2, %s2177_s11  ;;  %v1727_v8 = vmov (!%p1352_p4), 0.0  }
  0x66   : > { %566 = vst [vmem:[#allocation2] sm:$0xff] (!%p1352_p4), %v1727_v8  ;;  %567 = vst [vmem:[#allocation2 + $0x8] sm:$0xff] (!%p1352_p4), %v1727_v8 }
  0x67   : > { %568 = vst [vmem:[#allocation2 + $0x10] sm:$0xff] (!%p1352_p4), %v1727_v8  ;;  %569 = vst [vmem:[#allocation2 + $0x18] sm:$0xff] (!%p1352_p4), %v1727_v8 }
  0x68   : > { %570 = vst [vmem:[#allocation2 + $0x20] sm:$0xff] (!%p1352_p4), %v1727_v8  ;;  %571 = vst [vmem:[#allocation2 + $0x28] sm:$0xff] (!%p1352_p4), %v1727_v8 }
  0x69   : > { %572 = vst [vmem:[#allocation2 + $0x30] sm:$0xff] (!%p1352_p4), %v1727_v8  ;;  %573 = vst [vmem:[#allocation2 + $0x38] sm:$0xff] (!%p1352_p4), %v1727_v8 }
  0x6b PF: > { %v1531_v9 = vld [vmem:[%s2008_s6 + $0x4] ss:$8 sps:$4 sm:$0xff]   ;;  %v1535_v11 = vld [vmem:[%s2008_s6] ss:$8 sps:$4 sm:$0xff]   ;;  %v1537_v13 = vld [vmem:[%s2008_s6 + $0x14] ss:$8 sps:$4 sm:$0xff]  }
  0x6c   : > { %v1533_v10 = vld [vmem:[%s2008_s6 + $0x104] ss:$8 sps:$4 sm:$0xff]   ;;  %1014 = vmatprep.subr.bf16.mxu1 %v1531_v9  ;;  %v1536_v12 = vld [vmem:[%s2008_s6 + $0x100] ss:$8 sps:$4 sm:$0xff]   ;;  %v1539_v14 = vld [vmem:[%s2008_s6 + $0x114] ss:$8 sps:$4 sm:$0xff]  }
  0x6d   : > { %1067 = vmatprep.subr.bf16.mxu0 %v1533_v10  ;;  %1015 = vmatpush1.bf16.msra.mxu1 %v1535_v11  ;;  %v1541_v15 = vld [vmem:[%s2008_s6 + $0x10] ss:$8 sps:$4 sm:$0xff]   ;;  %v1543_v17 = vld [vmem:[%s2008_s6 + $0x24] ss:$8 sps:$4 sm:$0xff]   ;;  %v1547_v19 = vld [vmem:[%s2008_s6 + $0x20] ss:$8 sps:$4 sm:$0xff]  }
  0x6e   : > { %1068 = vmatpush1.bf16.msra.mxu0 %v1536_v12  ;;  %1016 = vmatprep.subr.bf16.mxu1 %v1537_v13  ;;  %v1542_v16 = vld [vmem:[%s2008_s6 + $0x110] ss:$8 sps:$4 sm:$0xff]   ;;  %v1545_v18 = vld [vmem:[%s2008_s6 + $0x124] ss:$8 sps:$4 sm:$0xff]   ;;  %v1548_v20 = vld [vmem:[%s2008_s6 + $0x120] ss:$8 sps:$4 sm:$0xff]  }
  0x6f   : > { %1069 = vmatprep.subr.bf16.mxu0 %v1539_v14  ;;  %v1549_v21 = vld [vmem:[%s2008_s6 + $0x34] ss:$8 sps:$4 sm:$0xff]   ;;  %v1553_v23 = vld [vmem:[%s2008_s6 + $0x30] ss:$8 sps:$4 sm:$0xff]   ;;  %v1555_v25 = vld [vmem:[%s2008_s6 + $0x44] ss:$8 sps:$4 sm:$0xff]  }
  0x70   : > { %v1551_v22 = vld [vmem:[%s2008_s6 + $0x134] ss:$8 sps:$4 sm:$0xff]   ;;  %v1554_v24 = vld [vmem:[%s2008_s6 + $0x130] ss:$8 sps:$4 sm:$0xff]   ;;  %v1557_v26 = vld [vmem:[%s2008_s6 + $0x144] ss:$8 sps:$4 sm:$0xff]  }
  0x71   : > { %1017 = vmatpush1.bf16.msra.mxu1 %v1541_v15  ;;  %v1559_v27 = vld [vmem:[%s2008_s6 + $0x40] ss:$8 sps:$4 sm:$0xff]   ;;  %v1561_v29 = vld [vmem:[%s2008_s6 + $0x54] ss:$8 sps:$4 sm:$0xff]   ;;  %v1565_v31 = vld [vmem:[%s2008_s6 + $0x50] ss:$8 sps:$4 sm:$0xff]  }
  0x72   : > { %1070 = vmatpush1.bf16.msra.mxu0 %v1542_v16  ;;  %1018 = vmatprep.subr.bf16.mxu1 %v1543_v17  ;;  %v1560_v28 = vld [vmem:[%s2008_s6 + $0x140] ss:$8 sps:$4 sm:$0xff]   ;;  %v1563_v30 = vld [vmem:[%s2008_s6 + $0x154] ss:$8 sps:$4 sm:$0xff]   ;;  %v1566_v32 = vld [vmem:[%s2008_s6 + $0x150] ss:$8 sps:$4 sm:$0xff]  }
  0x73   : > { %1071 = vmatprep.subr.bf16.mxu0 %v1545_v18  ;;  %v1567_v33 = vld [vmem:[%s2008_s6 + $0x64] ss:$8 sps:$4 sm:$0xff]   ;;  %v1571_v35 = vld [vmem:[%s2008_s6 + $0x60] ss:$8 sps:$4 sm:$0xff]   ;;  %v1573_v37 = vld [vmem:[%s2008_s6 + $0x74] ss:$8 sps:$4 sm:$0xff]  }
  0x74   : > { %v1569_v34 = vld [vmem:[%s2008_s6 + $0x164] ss:$8 sps:$4 sm:$0xff]   ;;  %v1572_v36 = vld [vmem:[%s2008_s6 + $0x160] ss:$8 sps:$4 sm:$0xff]   ;;  %v1575_v38 = vld [vmem:[%s2008_s6 + $0x174] ss:$8 sps:$4 sm:$0xff]  }
  0x75   : > { %1019 = vmatpush1.bf16.msra.mxu1 %v1547_v19  ;;  %v1577_v39 = vld [vmem:[%s2008_s6 + $0x70] ss:$8 sps:$4 sm:$0xff]   ;;  %v1579_v41 = vld [vmem:[%s2008_s6 + $0x84] ss:$8 sps:$4 sm:$0xff]   ;;  %v1583_v43 = vld [vmem:[%s2008_s6 + $0x80] ss:$8 sps:$4 sm:$0xff]  }
  0x76   : > { %1072 = vmatpush1.bf16.msra.mxu0 %v1548_v20  ;;  %1020 = vmatprep.subr.bf16.mxu1 %v1549_v21  ;;  %v1578_v40 = vld [vmem:[%s2008_s6 + $0x170] ss:$8 sps:$4 sm:$0xff]   ;;  %v1581_v42 = vld [vmem:[%s2008_s6 + $0x184] ss:$8 sps:$4 sm:$0xff]   ;;  %v1584_v44 = vld [vmem:[%s2008_s6 + $0x180] ss:$8 sps:$4 sm:$0xff]  }
  0x77   : > { %1073 = vmatprep.subr.bf16.mxu0 %v1551_v22  ;;  %v1585_v45 = vld [vmem:[%s2008_s6 + $0x94] ss:$8 sps:$4 sm:$0xff]   ;;  %v1589_v47 = vld [vmem:[%s2008_s6 + $0x90] ss:$8 sps:$4 sm:$0xff]   ;;  %v1591_v49 = vld [vmem:[%s2008_s6 + $0xa4] ss:$8 sps:$4 sm:$0xff]  }
  0x78   : > { %v1587_v46 = vld [vmem:[%s2008_s6 + $0x194] ss:$8 sps:$4 sm:$0xff]   ;;  %v1590_v48 = vld [vmem:[%s2008_s6 + $0x190] ss:$8 sps:$4 sm:$0xff]   ;;  %v1593_v50 = vld [vmem:[%s2008_s6 + $0x1a4] ss:$8 sps:$4 sm:$0xff]  }
  0x79   : > { %1021 = vmatpush1.bf16.msra.mxu1 %v1553_v23  ;;  %v1595_v51 = vld [vmem:[%s2008_s6 + $0xa0] ss:$8 sps:$4 sm:$0xff]   ;;  %v1597_v53 = vld [vmem:[%s2008_s6 + $0xb4] ss:$8 sps:$4 sm:$0xff]   ;;  %v1601_v55 = vld [vmem:[%s2008_s6 + $0xb0] ss:$8 sps:$4 sm:$0xff]  }
  0x7a   : > { %1074 = vmatpush1.bf16.msra.mxu0 %v1554_v24  ;;  %1022 = vmatprep.subr.bf16.mxu1 %v1555_v25  ;;  %v1596_v52 = vld [vmem:[%s2008_s6 + $0x1a0] ss:$8 sps:$4 sm:$0xff]   ;;  %v1599_v54 = vld [vmem:[%s2008_s6 + $0x1b4] ss:$8 sps:$4 sm:$0xff]   ;;  %v1602_v56 = vld [vmem:[%s2008_s6 + $0x1b0] ss:$8 sps:$4 sm:$0xff]  }
  0x7b   : > { %1075 = vmatprep.subr.bf16.mxu0 %v1557_v26  ;;  %v1603_v57 = vld [vmem:[%s2008_s6 + $0xc4] ss:$8 sps:$4 sm:$0xff]   ;;  %v1607_v61 = vld [vmem:[%s2008_s6 + $0xc0] ss:$8 sps:$4 sm:$0xff]   ;;  %v1609_v63 = vld [vmem:[%s2008_s6 + $0xd4] ss:$8 sps:$4 sm:$0xff]  }
  0x7c   : > { %v1629_v58 = vld [vmem:[%s2006_s4 + $0x4] ss:$16 sps:$4 sm:$0xff]   ;;  %v1632_v60 = vld [vmem:[%s2006_s4 + $0xc] ss:$16 sps:$4 sm:$0xff]   ;;  %v1608_v62 = vld [vmem:[%s2008_s6 + $0x1c0] ss:$8 sps:$4 sm:$0xff]  }
  0x7d   : > { %1023 = vmatpush1.bf16.msra.mxu1 %v1559_v27  ;;  %v1605_v59 = vld [vmem:[%s2008_s6 + $0x1c4] ss:$8 sps:$4 sm:$0xff]   ;;  %1046 = vmatprep.mubr.bf16.mxu1 %v1629_v58  ;;  %v1611_v0 = vld [vmem:[%s2008_s6 + $0x1d4] ss:$8 sps:$4 sm:$0xff]   ;;  %v1613_v1 = vld [vmem:[%s2008_s6 + $0xd0] ss:$8 sps:$4 sm:$0xff]  }
  0x7e   : > { %1076 = vmatpush1.bf16.msra.mxu0 %v1560_v28  ;;  %1024 = vmatprep.subr.bf16.mxu1 %v1561_v29  ;;  %v1614_v2 = vld [vmem:[%s2008_s6 + $0x1d0] ss:$8 sps:$4 sm:$0xff]   ;;  %v1615_v3 = vld [vmem:[%s2008_s6 + $0xe4] ss:$8 sps:$4 sm:$0xff]   ;;  %v1619_v5 = vld [vmem:[%s2008_s6 + $0xe0] ss:$8 sps:$4 sm:$0xff]  }
  0x7f   : > { %1077 = vmatprep.subr.bf16.mxu0 %v1563_v30  ;;  %1099 = vmatprep.mubr.bf16.mxu0 %v1632_v60  ;;  %v1617_v4 = vld [vmem:[%s2008_s6 + $0x1e4] ss:$8 sps:$4 sm:$0xff]   ;;  %v1620_v6 = vld [vmem:[%s2008_s6 + $0x1e0] ss:$8 sps:$4 sm:$0xff]   ;;  %v1621_v7 = vld [vmem:[%s2008_s6 + $0xf4] ss:$8 sps:$4 sm:$0xff]  }
  0x80   : > { %v1623_v8 = vld [vmem:[%s2008_s6 + $0x1f4] ss:$8 sps:$4 sm:$0xff]   ;;  %v1625_v9 = vld [vmem:[%s2008_s6 + $0xf0] ss:$8 sps:$4 sm:$0xff]   ;;  %v574_v18 = vld [vmem:[#allocation2] sm:$0xff]  ;;  %p1425_p5 = scmp.ne.s32.totalorder %s1709_s18, 6 }
  0x81   : > { %1025 = vmatpush1.bf16.msra.mxu1 %v1565_v31  ;;  %v1626_v10 = vld [vmem:[%s2008_s6 + $0x1f0] ss:$8 sps:$4 sm:$0xff]   ;;  %v1633_v13 = vld [vmem:[%s2006_s4 + $0x24] ss:$16 sps:$4 sm:$0xff]   ;;  %v1635_v14 = vld [vmem:[%s2006_s4 + $0x2c] ss:$16 sps:$4 sm:$0xff]  }
  0x82   : > { %1078 = vmatpush1.bf16.msra.mxu0 %v1566_v32  ;;  %1026 = vmatprep.subr.bf16.mxu1 %v1567_v33  ;;  %v1627_v11 = vld [vmem:[%s2006_s4] ss:$16 sps:$4 sm:$0xff]   ;;  %v1630_v12 = vld [vmem:[%s2006_s4 + $0x8] ss:$16 sps:$4 sm:$0xff]  }
  0x83   : > { %1079 = vmatprep.subr.bf16.mxu0 %v1569_v34  ;;  %v1637_v15 = vld [vmem:[%s2006_s4 + $0x20] ss:$16 sps:$4 sm:$0xff]   ;;  %v1638_v16 = vld [vmem:[%s2006_s4 + $0x28] ss:$16 sps:$4 sm:$0xff]  }
  0x84   : > { %v575_v22 = vld [vmem:[#allocation2 + $0x8] sm:$0xff]  ;;  %v576_v26 = vld [vmem:[#allocation2 + $0x10] sm:$0xff]  ;;  %v577_v31 = vld [vmem:[#allocation2 + $0x18] sm:$0xff] }
  0x85   : > { %1027 = vmatpush1.bf16.msra.mxu1 %v1571_v35 }
  0x86   : > { %1080 = vmatpush1.bf16.msra.mxu0 %v1572_v36  ;;  %1028 = vmatprep.subr.bf16.mxu1 %v1573_v37 }
  0x87   : > { %1081 = vmatprep.subr.bf16.mxu0 %v1575_v38  ;;  %v578_v38 = vld [vmem:[#allocation2 + $0x20] sm:$0xff] }
  0x89   : > { %1029 = vmatpush1.bf16.msra.mxu1 %v1577_v39 }
  0x8a   : > { %1082 = vmatpush1.bf16.msra.mxu0 %v1578_v40  ;;  %1030 = vmatprep.subr.bf16.mxu1 %v1579_v41 }
  0x8b   : > { %1083 = vmatprep.subr.bf16.mxu0 %v1581_v42  ;;  %v579_v42 = vld [vmem:[#allocation2 + $0x28] sm:$0xff] }
  0x8d   : > { %1031 = vmatpush1.bf16.msra.mxu1 %v1583_v43 }
  0x8e   : > { %1084 = vmatpush1.bf16.msra.mxu0 %v1584_v44  ;;  %1032 = vmatprep.subr.bf16.mxu1 %v1585_v45 }
  0x8f   : > { %1085 = vmatprep.subr.bf16.mxu0 %v1587_v46  ;;  %v580_v46 = vld [vmem:[#allocation2 + $0x30] sm:$0xff] }
  0x91   : > { %1033 = vmatpush1.bf16.msra.mxu1 %v1589_v47 }
  0x92   : > { %1086 = vmatpush1.bf16.msra.mxu0 %v1590_v48  ;;  %1034 = vmatprep.subr.bf16.mxu1 %v1591_v49 }
  0x93   : > { %1087 = vmatprep.subr.bf16.mxu0 %v1593_v50 }
  0x95   : > { %1035 = vmatpush1.bf16.msra.mxu1 %v1595_v51  ;;  %v581_v51 = vld [vmem:[#allocation2 + $0x38] sm:$0xff] }
  0x96   : > { %1088 = vmatpush1.bf16.msra.mxu0 %v1596_v52  ;;  %1036 = vmatprep.subr.bf16.mxu1 %v1597_v53 }
  0x97   : > { %1089 = vmatprep.subr.bf16.mxu0 %v1599_v54 }
  0x99   : > { %1037 = vmatpush1.bf16.msra.mxu1 %v1601_v55 }
  0x9a   : > { %1090 = vmatpush1.bf16.msra.mxu0 %v1602_v56  ;;  %1038 = vmatprep.subr.bf16.mxu1 %v1603_v57  ;;  %v1150_v57 = vlaneseq (!%p1425_p5) }
  0x9b   : > { %1091 = vmatprep.subr.bf16.mxu0 %v1605_v59  ;;  %v1148_v59 = vld [vmem:[%s558_s29] sm:$0x3] (!%p1425_p5) }
  0x9c   : > { %v1151_v58 = vshrl.u32 (!%p1425_p5), %v1150_v57, 7 }
  0x9d   : > { %1039 = vmatpush1.bf16.msra.mxu1 %v1607_v61 }
  0x9e   : > { %1092 = vmatpush1.bf16.msra.mxu0 %v1608_v62  ;;  %1040 = vmatprep.subr.bf16.mxu1 %v1609_v63  ;;  %v1152_v61 = vsub.s32 (!%p1425_p5), 0, %v1151_v58  ;;  %v1156_v63 = vsub.s32 (!%p1425_p5), 1, %v1151_v58 }
  0x9f   : > { %1093 = vmatprep.subr.bf16.mxu0 %v1611_v0 }
  0xa1   : > { %1041 = vmatpush1.bf16.msra.mxu1 %v1613_v1 }
  0xa2   : > { %1094 = vmatpush1.bf16.msra.mxu0 %v1614_v2  ;;  %1042 = vmatprep.subr.bf16.mxu1 %v1615_v3  ;;  %v1153_v3 = vrot.slane (!%p1425_p5), %v1148_v59, %v1152_v61 }
  0xa3   : > { %1095 = vmatprep.subr.bf16.mxu0 %v1617_v4  ;;  %v1157_v4 = vrot.slane (!%p1425_p5), %v1148_v59, %v1156_v63 }
  0xa5   : > { %1043 = vmatpush1.bf16.msra.mxu1 %v1619_v5 }
  0xa6   : > { %1096 = vmatpush1.bf16.msra.mxu0 %v1620_v6  ;;  %1044 = vmatprep.subr.bf16.mxu1 %v1621_v7 }
  0xa7   : > { %1097 = vmatprep.subr.bf16.mxu0 %v1623_v8 }
  0xa9   : > { %1045 = vmatpush1.bf16.msra.mxu1 %v1625_v9 }
  0xaa   : > { %1098 = vmatpush1.bf16.msra.mxu0 %v1626_v10 }
  0xac   : > { %1047 = vmatmul.mubr.bf16.vlgmr.msra.gmra.mrb[0].mxu1 %v1627_v11 }
  0xad   : > { %1100 = vmatmul.mubr.bf16.vlgmr.msra.gmra.mrb[0].mxu0 %v1630_v12  ;;  %1056 = vmatprep.mubr.bf16.mxu1 %v1633_v13 }
  0xae   : > { %1109 = vmatprep.mubr.bf16.mxu0 %v1635_v14 }
  0xb4   : > { %1057 = vmatmul.mubr.bf16.gmra.mrb[4].mxu1 %v1637_v15 }
  0xb5   : > { %1110 = vmatmul.mubr.bf16.gmra.mrb[4].mxu0 %v1638_v16 }
 0x17f   : > { %v1048_v17 = vpop.f32.mrb[0].mxu1 }
 0x180   : > { %v1101_v19 = vpop.f32.mrb[0].mxu0  ;;  %v1050_v21 = vpop.f32.mrb[1].mxu1 }
 0x181   : > { %v1102_v20 = vadd.f32 %v1101_v19, %v1048_v17  ;;  %v1103_v23 = vpop.f32.mrb[1].mxu0  ;;  %v1052_v25 = vpop.f32.mrb[2].mxu1 }
 0x182   : > { %v1104_v24 = vadd.f32 %v1103_v23, %v1050_v21  ;;  %v1105_v27 = vpop.f32.mrb[2].mxu0  ;;  %v1054_v30 = vpop.f32.mrb[3].mxu1 }
 0x183   : > { %v1120_v28 = vadd.f32 %v1102_v20, %v574_v18  ;;  %v1106_v29 = vadd.f32 %v1105_v27, %v1052_v25  ;;  %v1107_v32 = vpop.f32.mrb[3].mxu0 }
 0x184   : > { %v1121_v33 = vadd.f32 %v1104_v24, %v575_v22  ;;  %v1108_v34 = vadd.f32 %v1107_v32, %v1054_v30 }
 0x185   : > { %1128 = vst [vmem:[#allocation2] sm:$0xff] %v1120_v28  ;;  %v1122_v35 = vadd.f32 %v1106_v29, %v576_v26 }
 0x186   : > { %1129 = vst [vmem:[#allocation2 + $0x8] sm:$0xff] %v1121_v33  ;;  %v1123_v36 = vadd.f32 %v1108_v34, %v577_v31 }
 0x187   : > { %1130 = vst [vmem:[#allocation2 + $0x10] sm:$0xff] %v1122_v35  ;;  %v1058_v37 = vpop.f32.mrb[4].mxu1 }
 0x188   : > { %1131 = vst [vmem:[#allocation2 + $0x18] sm:$0xff] %v1123_v36  ;;  %v1111_v39 = vpop.f32.mrb[4].mxu0  ;;  %v1060_v41 = vpop.f32.mrb[5].mxu1 }
 0x189   : > { %v1112_v40 = vadd.f32 %v1111_v39, %v1058_v37  ;;  %v1113_v43 = vpop.f32.mrb[5].mxu0  ;;  %v1062_v45 = vpop.f32.mrb[6].mxu1 }
 0x18a   : > { %v1114_v44 = vadd.f32 %v1113_v43, %v1060_v41  ;;  %v1115_v47 = vpop.f32.mrb[6].mxu0  ;;  %v1064_v50 = vpop.f32.mrb[7].mxu1  ;;  %1139 = sbr.rel (%p1425_p5) target bundleno = 413 (0x19d), region = 101 }
 0x18b   : > { %v1124_v48 = vadd.f32 %v1112_v40, %v578_v38  ;;  %v1116_v49 = vadd.f32 %v1115_v47, %v1062_v45  ;;  %v1117_v52 = vpop.f32.mrb[7].mxu0 }
 0x18c   : > { %v1125_v53 = vadd.f32 %v1114_v44, %v579_v42  ;;  %v1118_v54 = vadd.f32 %v1117_v52, %v1064_v50  ;;  %v1140_v60 = vld [vmem:[#allocation2] sm:$0xff] (!%p1425_p5) }
 0x18d   : > { %1132 = vst [vmem:[#allocation2 + $0x20] sm:$0xff] %v1124_v48  ;;  %v1126_v55 = vadd.f32 %v1116_v49, %v580_v46  ;;  %v1141_v62 = vld [vmem:[#allocation2 + $0x8] sm:$0xff] (!%p1425_p5)  ;;  %v1160_v8 = vadd.f32 (!%p1425_p5), %v1153_v3, %v1140_v60 }
 0x18e   : > { %1133 = vst [vmem:[#allocation2 + $0x28] sm:$0xff] %v1125_v53  ;;  %v1127_v56 = vadd.f32 %v1118_v54, %v581_v51  ;;  %v1142_v0 = vld [vmem:[#allocation2 + $0x10] sm:$0xff] (!%p1425_p5)  ;;  %v1161_v9 = vadd.f32 (!%p1425_p5), %v1157_v4, %v1141_v62 }
 0x18f   : > { %1134 = vst [vmem:[#allocation2 + $0x30] sm:$0xff] %v1126_v55  ;;  %v1143_v1 = vld [vmem:[#allocation2 + $0x18] sm:$0xff] (!%p1425_p5)  ;;  %v1162_v10 = vadd.f32 (!%p1425_p5), %v1153_v3, %v1142_v0  ;;  %v1168_v16 = vmax.f32 (!%p1425_p5), %v1160_v8, 0.0 }
 0x190   : > { %1135 = vst [vmem:[#allocation2 + $0x38] sm:$0xff] %v1127_v56  ;;  %v1163_v11 = vadd.f32 (!%p1425_p5), %v1157_v4, %v1143_v1  ;;  %v1169_v17 = vmax.f32 (!%p1425_p5), %v1161_v9, 0.0 }
 0x191   : > { %v1170_v18 = vmax.f32 %v1162_v10, 0.0  ;;  %1176 = vst [vmem:[%s2010_s1] sm:$0xff] %v1168_v16 }
 0x192   : > { %v1171_v19 = vmax.f32 %v1163_v11, 0.0  ;;  %1177 = vst [vmem:[%s2010_s1 + $0x8] sm:$0xff] %v1169_v17 }
 0x193   : > { %1178 = vst [vmem:[%s2010_s1 + $0x10] sm:$0xff] %v1170_v18 }
 0x194   : > { %v1144_v2 = vld [vmem:[#allocation2 + $0x20] sm:$0xff]  ;;  %1179 = vst [vmem:[%s2010_s1 + $0x18] sm:$0xff] %v1171_v19 }
 0x195   : > { %v1145_v5 = vld [vmem:[#allocation2 + $0x28] sm:$0xff]  ;;  %v1164_v12 = vadd.f32 %v1153_v3, %v1144_v2 }
 0x196   : > { %v1146_v6 = vld [vmem:[#allocation2 + $0x30] sm:$0xff]  ;;  %v1165_v13 = vadd.f32 %v1157_v4, %v1145_v5 }
 0x197   : > { %v1147_v7 = vld [vmem:[#allocation2 + $0x38] sm:$0xff]  ;;  %v1166_v14 = vadd.f32 %v1153_v3, %v1146_v6  ;;  %v1172_v20 = vmax.f32 %v1164_v12, 0.0 }
 0x198   : > { %v1167_v15 = vadd.f32 %v1157_v4, %v1147_v7  ;;  %v1173_v21 = vmax.f32 %v1165_v13, 0.0 }
 0x199   : > { %v1174_v22 = vmax.f32 %v1166_v14, 0.0  ;;  %1180 = vst [vmem:[%s2010_s1 + $0x20] sm:$0xff] %v1172_v20 }
 0x19a   : > { %v1175_v23 = vmax.f32 %v1167_v15, 0.0  ;;  %1181 = vst [vmem:[%s2010_s1 + $0x28] sm:$0xff] %v1173_v21 }
 0x19b   : > { %1182 = vst [vmem:[%s2010_s1 + $0x30] sm:$0xff] %v1174_v22 }
 0x19c   : > { %1183 = vst [vmem:[%s2010_s1 + $0x38] sm:$0xff] %v1175_v23 }
 0x19d PF: > { %1190 = sbr.rel (!%p1842_p12) target bundleno = 422 (0x1a6), region = 105  ;;  %s1433_s16 = sshll.u32 (%p1842_p12), %s1713_s19, 4  ;;  %v1211_v25 = vld [vmem:[%s2010_s1 + $0x8] sm:$0xff] (%p1842_p12)  ;;  %v1213_v26 = vld [vmem:[%s2010_s1 + $0x10] sm:$0xff] (%p1842_p12)  ;;  %v1215_v27 = vld [vmem:[%s2010_s1 + $0x18] sm:$0xff] (%p1842_p12) }
 0x19e   : > { %s1196_s5 = scalar_lea.vmem (%p1842_p12), %s2149_s3, %s1433_s16 }
 0x19f   : > { %1212 = vst [vmem:[%s1196_s5 + $0x8] sm:$0xff] (%p1842_p12), %v1211_v25  ;;  %1214 = vst [vmem:[%s1196_s5 + $0x20] sm:$0xff] (%p1842_p12), %v1213_v26 }
 0x1a0   : > { %v1217_v28 = vld [vmem:[%s2010_s1 + $0x20] sm:$0xff] (%p1842_p12)  ;;  %1216 = vst [vmem:[%s1196_s5 + $0x28] sm:$0xff] (%p1842_p12), %v1215_v27 }
 0x1a1   : > { %v1219_v29 = vld [vmem:[%s2010_s1 + $0x28] sm:$0xff] (%p1842_p12)  ;;  %1218 = vst [vmem:[%s1196_s5 + $0x40] sm:$0xff] (%p1842_p12), %v1217_v28 }
 0x1a2   : > { %1220 = vst [vmem:[%s1196_s5 + $0x48] sm:$0xff] (%p1842_p12), %v1219_v29  ;;  %v1221_v30 = vld [vmem:[%s2010_s1 + $0x30] sm:$0xff] (%p1842_p12) }
 0x1a3   : > { %v1223_v31 = vld [vmem:[%s2010_s1 + $0x38] sm:$0xff] (%p1842_p12)  ;;  %1222 = vst [vmem:[%s1196_s5 + $0x60] sm:$0xff] (%p1842_p12), %v1221_v30 }
 0x1a4   : > { %v1209_v24 = vld [vmem:[%s2010_s1] sm:$0xff]  ;;  %1224 = vst [vmem:[%s1196_s5 + $0x68] sm:$0xff] %v1223_v31 }
 0x1a5   : > { %1210 = vst [vmem:[%s1196_s5] sm:$0xff] %v1209_v24 }
 0x1a6 PF: > { %s13_s22 = sadd.s32 1, %s1725_s22   ;;  %s2159_s10 = sld [smem:[#allocation6_spill]] }
 0x1a7   : > { %p10_p6 = scmp.ge.s32.totalorder %s13_s22, 16   ;;  %s2160_s12 = smov %s1689_s13 }
 0x1a8   : > { %s2161_s13 = smov %s1840_s9  ;;  %s2162_s14 = smov %s1697_s15 }
 0x1a9   : > { %s2163_s15 = smov %s1837_s8  ;;  %s2164_s16 = smov %s1705_s17 }
 0x1aa   : > { %s2165_s17 = smov %s1823_s30  ;;  %s2166_s18 = smov %s1717_s20 }
 0x1ab   : > { %s2167_s19 = smov %s1721_s21  ;;  %s2168_s20 = smov %s2171_s24 }
 0x1ac   : > { %s2169_s21 = smov %s2159_s10  ;;  %12 = sbr.rel (!%p10_p6) target bundleno = 9 (0x9), region = 170 }

// kernel: alexnet_forward.18
= control target key start
LH: loop header
LB: loop body
LE: loop exit
PB: predicated region body
PF: predicated region fallthrough
CT: control target
= control target key end

     0   :  { %s470_s15 = smov 0   ;;  %s501_s0 = inlined_call_operand.vmem [shape: f32[2,2,2,256], index: 0, kind: input, shape index: {}]   ;;  %s502_s1 = inlined_call_operand.vmem [shape: f32[2,2,1,256], index: 1, kind: input, shape index: {}]   ;;  %s503_s2 = inlined_call_operand.vmem [shape: f32[2,1,2,256], index: 2, kind: input, shape index: {}]   ;;  %s504_s3 = inlined_call_operand.vmem [shape: f32[2,1,1,256], index: 3, kind: input, shape index: {}]   ;;  %s505_s4 = inlined_call_operand.vmem [shape: f32[2,1,1,256], index: 4, kind: output, shape index: {}]  }
   0x1 LB: > { %s406_s16 = sadd.s32 4294967295, %s441_s15   ;;  %p410_p0 = scmp.ge.s32.totalorder %s441_s15, 1  ;;  %s441_s15 = sphi %s470_s15, %s14_s15  }
   0x2   : > { %p190_p1 = scmp.lt.s32.totalorder %s441_s15, 3 }
   0x4   : > { %p191_p2 = pnand %p410_p0, %p190_p1 }
   0x5   : > { %p228_p3 = scmp.lt.s32.totalorder (!%p191_p2), %s406_s16, 1  ;;  %v271_v0 = vlaneseq (!%p191_p2)  ;;  %v443_v1 = vmov (!%p191_p2), 857870592   ;;  %v444_v17 = vmov (!%p191_p2), 1966171168  }
   0x6   : > { %194 = sbr.rel (%p191_p2) target bundleno = 38 (0x26), region = 36  ;;  %v269_v2 = vunpack.c.l.s4 (!%p191_p2), %v443_v1  ;;  %v305_v18 = vunpack.c.l.s4 (!%p191_p2), %v444_v17 }
   0x7   : > { %v272_v4 = vshrl.u32 (!%p191_p2), %v271_v0, 7  ;;  %vm314_vm0 = vcmp.lt.s32.totalorder (!%p191_p2), %v271_v0, 256 }
   0x8   : > { %v270_v3 = vunpack.c.0.s8 (!%p191_p2), %v269_v2  ;;  %v306_v24 = vunpack.c.0.s8 (!%p191_p2), %v305_v18 }
   0xa   : > { %v273_v8 = vsub.s32 (!%p191_p2), %v270_v3, %v272_v4  ;;  %v309_v28 = vsub.s32 (!%p191_p2), %v306_v24, %v272_v4 }
   0xd   : > { %s507_s16 = smov (!%p228_p3, %s406_s16), 1 }
   0xe   : > { %s423_s17 = sshll.u32 %s507_s16, 3  ;;  %s413_s18 = sshll.u32 %s507_s16, 2 }
   0xf   : > { %s232_s21 = scalar_lea.vmem %s501_s0, %s423_s17  ;;  %s236_s24 = scalar_lea.vmem %s502_s1, %s413_s18 }
  0x10   : > { %v250_v5 = vld [vmem:[%s232_s21] sm:$0xf]  ;;  %v251_v6 = vld [vmem:[%s232_s21 + $0x4] sm:$0xf]  ;;  %s416_s25 = sshll.u32 %s507_s16, 1  ;;  %s241_s28 = scalar_lea.vmem %s503_s2, %s413_s18 }
  0x11   : > { %v418_v7 = vrot.slane %v250_v5, 9  ;;  %v252_v9 = vld [vmem:[%s236_s24] sm:$0x3]  ;;  %v419_v11 = vrot.slane %v251_v6, 9  ;;  %v253_v12 = vld [vmem:[%s236_s24 + $0x2] sm:$0x3]  ;;  %s245_s5 = scalar_lea.vmem %s504_s3, %s416_s25  ;;  %s249_s8 = scalar_lea.vmem %s505_s4, %s416_s25 }
  0x12   : > { %v274_v14 = vrot.slane %v252_v9, %v273_v8  ;;  %v284_v16 = vrot.slane %v253_v12, %v273_v8  ;;  %v254_v19 = vld [vmem:[%s241_s28] sm:$0xf] }
  0x13   : > { %v260_v10 = vmax.f32 %v250_v5, %v418_v7  ;;  %v255_v21 = vld [vmem:[%s245_s5] sm:$0x3]  ;;  %v420_v23 = vrot.slane %v254_v19, 9 }
  0x14   : > { %v300_v26 = vrot.slane %v255_v21, %v273_v8 }
  0x15   : > { %v261_v13 = vmax.f32 %v260_v10, %v251_v6 }
  0x17   : > { %v266_v15 = vmax.f32 %v261_v13, %v419_v11 }
  0x19   : > { %v276_v20 = vmax.f32 %v266_v15, %v274_v14 }
  0x1b   : > { %v286_v22 = vmax.f32 %v276_v20, %v284_v16 }
  0x1d   : > { %v287_v25 = vmax.f32 %v286_v22, %v254_v19 }
  0x1f   : > { %v292_v27 = vmax.f32 %v287_v25, %v420_v23 }
  0x21   : > { %v302_v29 = vmax.f32 %v292_v27, %v300_v26 }
  0x23   : > { %v310_v30 = vrot.slane %v302_v29, %v309_v28 }
  0x25   : > { %316 = vst.msk [vmem:[%s249_s8] sm:$0x3] %vm314_vm0, %v310_v30 }
  0x26 PF: > { %s14_s15 = sadd.s32 1, %s441_s15  }
  0x27   : > { %p11_p4 = scmp.ge.s32.totalorder %s14_s15, 4  }
  0x29   :  { %13 = sbr.rel (!%p11_p4) target bundleno = 1 (0x1), region = 75 }

// kernel: alexnet_forward.17
= control target key start
LH: loop header
LB: loop body
LE: loop exit
PB: predicated region body
PF: predicated region fallthrough
CT: control target
= control target key end

     0   :  { %s1360_s12 = smov 0   ;;  %s1362_s13 = smov 0   ;;  %s1530_s0 = inlined_call_operand.vmem [shape: bf16[32,3584], index: 0, kind: input, shape index: {}]   ;;  %s1531_s1 = inlined_call_operand.vmem [shape: bf16[3584,256], index: 1, kind: input, shape index: {}]   ;;  %s1532_s2 = inlined_call_operand.vmem [shape: f32[1,256], index: 2, kind: input, shape index: {}]   ;;  %s1533_s3 = inlined_call_operand.vmem [shape: f32[32,256], index: 3, kind: output, shape index: {}]  }
   0x1   :  { %s1364_s14 = smov 0   ;;  %s1366_s15 = smov 0  }
   0x2   :  { %s1368_s16 = smov 0  }
   0x3 LB: > { %s25_s17 = sadd.s32 1, %s1333_s15  ;;  %p48_p1 = scmp.ne.s32.totalorder %s1325_s13, %s1321_s12  ;;  %s1337_s16 = sphi %s1368_s16, %s13_s16   ;;  %s1333_s15 = sphi %s1366_s15, %s1537_s15   ;;  %s1329_s14 = sphi %s1364_s14, %s1536_s14   ;;  %s1325_s13 = sphi %s1362_s13, %s1535_s13   ;;  %s1321_s12 = sphi %s1360_s12, %s1534_s12  }
   0x4   : > { %p26_p0 = scmp.ge.s32.totalorder %s25_s17, 7  ;;  %p49_p2 = scmp.eq.s32.totalorder %s1337_s16, 0 }
   0x5   : > { %s41_s19 = sadd.s32 1, %s1325_s13  ;;  %p1053_p5 = scmp.ge.s32.totalorder %s1337_s16, 7 }
   0x6   : > { %s1539_s17 = smov (%p26_p0, %s25_s17), 0  ;;  %p50_p3 = por %p49_p2, %p48_p1 }
   0x7   : > { %s37_s18 = ssub.s32 %s1333_s15, %s1539_s17  ;;  %164 = sbr.rel (%p1053_p5) target bundleno = 22 (0x16), region = 20 }
   0x8   : > { %p39_p4 = scmp.eq.s32.totalorder %s37_s18, 0 }
   0xa   : > { %s1395_s20 = scalar_select %p39_p4, %s1325_s13, %s41_s19  }
   0xe   : > { %167 = sbr.rel (!%p50_p3) target bundleno = 22 (0x16), region = 24  ;;  %s169_s21 = sand.u32 (%p50_p3), 1, %s1325_s13  }
   0xf   : > { %s1140_s22 = sshll.u32 (%p50_p3), %s1333_s15, 4  ;;  %s1054_s23 = sshll.u32 (%p50_p3), %s169_s21, 6 }
  0x10   : > { %s177_s26 = scalar_lea.vmem (%p50_p3), %s1530_s0, %s1140_s22  ;;  %s171_s27 = scalar_lea.vmem (%p50_p3), [#allocation3], %s1054_s23 }
  0x11   : > { %v190_v0 = vld [vmem:[%s177_s26] sm:$0xff] (%p50_p3)  ;;  %v192_v1 = vld [vmem:[%s177_s26 + $0x8] sm:$0xff] (%p50_p3)  ;;  %v194_v2 = vld [vmem:[%s177_s26 + $0x70] sm:$0xff] (%p50_p3) }
  0x12   : > { %191 = vst [vmem:[%s171_s27] sm:$0xff] (%p50_p3), %v190_v0  ;;  %193 = vst [vmem:[%s171_s27 + $0x8] sm:$0xff] (%p50_p3), %v192_v1  ;;  %v196_v3 = vld [vmem:[%s177_s26 + $0x78] sm:$0xff] (%p50_p3)  ;;  %v198_v4 = vld [vmem:[%s177_s26 + $0xe0] sm:$0xff] (%p50_p3) }
  0x13   : > { %195 = vst [vmem:[%s171_s27 + $0x10] sm:$0xff] (%p50_p3), %v194_v2  ;;  %v200_v5 = vld [vmem:[%s177_s26 + $0xe8] sm:$0xff] (%p50_p3)  ;;  %197 = vst [vmem:[%s171_s27 + $0x18] sm:$0xff] (%p50_p3), %v196_v3  ;;  %v202_v6 = vld [vmem:[%s177_s26 + $0x150] sm:$0xff] (%p50_p3) }
  0x14   : > { %199 = vst [vmem:[%s171_s27 + $0x20] sm:$0xff] (%p50_p3), %v198_v4  ;;  %201 = vst [vmem:[%s171_s27 + $0x28] sm:$0xff] (%p50_p3), %v200_v5  ;;  %v204_v7 = vld [vmem:[%s177_s26 + $0x158] sm:$0xff] (%p50_p3) }
  0x15   : > { %203 = vst [vmem:[%s171_s27 + $0x30] sm:$0xff] %v202_v6  ;;  %205 = vst [vmem:[%s171_s27 + $0x38] sm:$0xff] %v204_v7 }
  0x16 PF: > { %p1057_p6 = scmp.ge.s32.totalorder %s1337_s16, 1  ;;  %p225_p7 = scmp.lt.s32.totalorder %s1337_s16, 8 }
  0x18   : > { %p226_p8 = pnand %p1057_p6, %p225_p7 }
  0x19   : > { %s232_s28 = sand.u32 (!%p226_p8), 1, %s1321_s12   ;;  %s1059_s29 = sshll.u32 (!%p226_p8), %s1329_s14, 6 }
  0x1a   : > { %229 = sbr.rel (%p226_p8) target bundleno = 346 (0x15a), region = 51  ;;  %s1058_s30 = sshll.u32 (!%p226_p8), %s232_s28, 6 }
  0x1b   : > { %p278_p9 = scmp.lt.s32.totalorder (!%p226_p8), %s1059_s29, 447  ;;  %s1412_s8 = scalar_lea.vmem (!%p226_p8), [#allocation3], %s1058_s30 }
  0x1c   : > { %p1062_p10 = scmp.ne.s32.totalorder (!%p226_p8), %s1329_s14, 0 }
  0x21   : > { %s1541_s29 = smov (!%p278_p9, %s1059_s29), 447  ;;  %308 = sbr.rel (%p1062_p10) target bundleno = 40 (0x28), region = 59 }
  0x22   : > { %s1141_s4 = sshll.u32 %s1541_s29, 3  ;;  %v1339_v8 = vmov (!%p1062_p10), 0.0  }
  0x23   : > { %s1410_s7 = scalar_lea.vmem %s1531_s1, %s1141_s4  ;;  %309 = vst [vmem:[#allocation2] sm:$0xff] (!%p1062_p10), %v1339_v8  ;;  %310 = vst [vmem:[#allocation2 + $0x8] sm:$0xff] (!%p1062_p10), %v1339_v8 }
  0x24   : > { %311 = vst [vmem:[#allocation2 + $0x10] sm:$0xff] (!%p1062_p10), %v1339_v8  ;;  %312 = vst [vmem:[#allocation2 + $0x18] sm:$0xff] (!%p1062_p10), %v1339_v8 }
  0x25   : > { %313 = vst [vmem:[#allocation2 + $0x20] sm:$0xff] (!%p1062_p10), %v1339_v8  ;;  %314 = vst [vmem:[#allocation2 + $0x28] sm:$0xff] (!%p1062_p10), %v1339_v8 }
  0x26   : > { %315 = vst [vmem:[#allocation2 + $0x30] sm:$0xff] (!%p1062_p10), %v1339_v8  ;;  %316 = vst [vmem:[#allocation2 + $0x38] sm:$0xff] (!%p1062_p10), %v1339_v8 }
  0x28 PF: > { %v1191_v9 = vld [vmem:[%s1410_s7 + $0x4] ss:$8 sps:$4 sm:$0xff]   ;;  %v1195_v11 = vld [vmem:[%s1410_s7] ss:$8 sps:$4 sm:$0xff]   ;;  %v1197_v13 = vld [vmem:[%s1410_s7 + $0x14] ss:$8 sps:$4 sm:$0xff]  }
  0x29   : > { %v1193_v10 = vld [vmem:[%s1410_s7 + $0x104] ss:$8 sps:$4 sm:$0xff]   ;;  %757 = vmatprep.subr.bf16.mxu1 %v1191_v9  ;;  %v1196_v12 = vld [vmem:[%s1410_s7 + $0x100] ss:$8 sps:$4 sm:$0xff]   ;;  %v1199_v14 = vld [vmem:[%s1410_s7 + $0x114] ss:$8 sps:$4 sm:$0xff]  }
  0x2a   : > { %810 = vmatprep.subr.bf16.mxu0 %v1193_v10  ;;  %758 = vmatpush1.bf16.msra.mxu1 %v1195_v11  ;;  %v1201_v15 = vld [vmem:[%s1410_s7 + $0x10] ss:$8 sps:$4 sm:$0xff]   ;;  %v1203_v17 = vld [vmem:[%s1410_s7 + $0x24] ss:$8 sps:$4 sm:$0xff]   ;;  %v1207_v19 = vld [vmem:[%s1410_s7 + $0x20] ss:$8 sps:$4 sm:$0xff]  }
  0x2b   : > { %811 = vmatpush1.bf16.msra.mxu0 %v1196_v12  ;;  %759 = vmatprep.subr.bf16.mxu1 %v1197_v13  ;;  %v1202_v16 = vld [vmem:[%s1410_s7 + $0x110] ss:$8 sps:$4 sm:$0xff]   ;;  %v1205_v18 = vld [vmem:[%s1410_s7 + $0x124] ss:$8 sps:$4 sm:$0xff]   ;;  %v1208_v20 = vld [vmem:[%s1410_s7 + $0x120] ss:$8 sps:$4 sm:$0xff]  }
  0x2c   : > { %812 = vmatprep.subr.bf16.mxu0 %v1199_v14  ;;  %v1209_v21 = vld [vmem:[%s1410_s7 + $0x34] ss:$8 sps:$4 sm:$0xff]   ;;  %v1213_v23 = vld [vmem:[%s1410_s7 + $0x30] ss:$8 sps:$4 sm:$0xff]   ;;  %v1215_v25 = vld [vmem:[%s1410_s7 + $0x44] ss:$8 sps:$4 sm:$0xff]  }
  0x2d   : > { %v1211_v22 = vld [vmem:[%s1410_s7 + $0x134] ss:$8 sps:$4 sm:$0xff]   ;;  %v1214_v24 = vld [vmem:[%s1410_s7 + $0x130] ss:$8 sps:$4 sm:$0xff]   ;;  %v1217_v26 = vld [vmem:[%s1410_s7 + $0x144] ss:$8 sps:$4 sm:$0xff]  }
  0x2e   : > { %760 = vmatpush1.bf16.msra.mxu1 %v1201_v15  ;;  %v1219_v27 = vld [vmem:[%s1410_s7 + $0x40] ss:$8 sps:$4 sm:$0xff]   ;;  %v1221_v29 = vld [vmem:[%s1410_s7 + $0x54] ss:$8 sps:$4 sm:$0xff]   ;;  %v1225_v31 = vld [vmem:[%s1410_s7 + $0x50] ss:$8 sps:$4 sm:$0xff]  }
  0x2f   : > { %813 = vmatpush1.bf16.msra.mxu0 %v1202_v16  ;;  %761 = vmatprep.subr.bf16.mxu1 %v1203_v17  ;;  %v1220_v28 = vld [vmem:[%s1410_s7 + $0x140] ss:$8 sps:$4 sm:$0xff]   ;;  %v1223_v30 = vld [vmem:[%s1410_s7 + $0x154] ss:$8 sps:$4 sm:$0xff]   ;;  %v1226_v32 = vld [vmem:[%s1410_s7 + $0x150] ss:$8 sps:$4 sm:$0xff]  }
  0x30   : > { %814 = vmatprep.subr.bf16.mxu0 %v1205_v18  ;;  %v1227_v33 = vld [vmem:[%s1410_s7 + $0x64] ss:$8 sps:$4 sm:$0xff]   ;;  %v1231_v35 = vld [vmem:[%s1410_s7 + $0x60] ss:$8 sps:$4 sm:$0xff]   ;;  %v1233_v37 = vld [vmem:[%s1410_s7 + $0x74] ss:$8 sps:$4 sm:$0xff]  }
  0x31   : > { %v1229_v34 = vld [vmem:[%s1410_s7 + $0x164] ss:$8 sps:$4 sm:$0xff]   ;;  %v1232_v36 = vld [vmem:[%s1410_s7 + $0x160] ss:$8 sps:$4 sm:$0xff]   ;;  %v1235_v38 = vld [vmem:[%s1410_s7 + $0x174] ss:$8 sps:$4 sm:$0xff]  }
  0x32   : > { %762 = vmatpush1.bf16.msra.mxu1 %v1207_v19  ;;  %v1237_v39 = vld [vmem:[%s1410_s7 + $0x70] ss:$8 sps:$4 sm:$0xff]   ;;  %v1239_v41 = vld [vmem:[%s1410_s7 + $0x84] ss:$8 sps:$4 sm:$0xff]   ;;  %v1243_v43 = vld [vmem:[%s1410_s7 + $0x80] ss:$8 sps:$4 sm:$0xff]  }
  0x33   : > { %815 = vmatpush1.bf16.msra.mxu0 %v1208_v20  ;;  %763 = vmatprep.subr.bf16.mxu1 %v1209_v21  ;;  %v1238_v40 = vld [vmem:[%s1410_s7 + $0x170] ss:$8 sps:$4 sm:$0xff]   ;;  %v1241_v42 = vld [vmem:[%s1410_s7 + $0x184] ss:$8 sps:$4 sm:$0xff]   ;;  %v1244_v44 = vld [vmem:[%s1410_s7 + $0x180] ss:$8 sps:$4 sm:$0xff]  }
  0x34   : > { %816 = vmatprep.subr.bf16.mxu0 %v1211_v22  ;;  %v1245_v45 = vld [vmem:[%s1410_s7 + $0x94] ss:$8 sps:$4 sm:$0xff]   ;;  %v1249_v47 = vld [vmem:[%s1410_s7 + $0x90] ss:$8 sps:$4 sm:$0xff]   ;;  %v1251_v49 = vld [vmem:[%s1410_s7 + $0xa4] ss:$8 sps:$4 sm:$0xff]  }
  0x35   : > { %v1247_v46 = vld [vmem:[%s1410_s7 + $0x194] ss:$8 sps:$4 sm:$0xff]   ;;  %v1250_v48 = vld [vmem:[%s1410_s7 + $0x190] ss:$8 sps:$4 sm:$0xff]   ;;  %v1253_v50 = vld [vmem:[%s1410_s7 + $0x1a4] ss:$8 sps:$4 sm:$0xff]  }
  0x36   : > { %764 = vmatpush1.bf16.msra.mxu1 %v1213_v23  ;;  %v1255_v51 = vld [vmem:[%s1410_s7 + $0xa0] ss:$8 sps:$4 sm:$0xff]   ;;  %v1257_v53 = vld [vmem:[%s1410_s7 + $0xb4] ss:$8 sps:$4 sm:$0xff]   ;;  %v1261_v55 = vld [vmem:[%s1410_s7 + $0xb0] ss:$8 sps:$4 sm:$0xff]  }
  0x37   : > { %817 = vmatpush1.bf16.msra.mxu0 %v1214_v24  ;;  %765 = vmatprep.subr.bf16.mxu1 %v1215_v25  ;;  %v1256_v52 = vld [vmem:[%s1410_s7 + $0x1a0] ss:$8 sps:$4 sm:$0xff]   ;;  %v1259_v54 = vld [vmem:[%s1410_s7 + $0x1b4] ss:$8 sps:$4 sm:$0xff]   ;;  %v1262_v56 = vld [vmem:[%s1410_s7 + $0x1b0] ss:$8 sps:$4 sm:$0xff]  }
  0x38   : > { %818 = vmatprep.subr.bf16.mxu0 %v1217_v26  ;;  %v1263_v57 = vld [vmem:[%s1410_s7 + $0xc4] ss:$8 sps:$4 sm:$0xff]   ;;  %v1267_v61 = vld [vmem:[%s1410_s7 + $0xc0] ss:$8 sps:$4 sm:$0xff]   ;;  %v1269_v63 = vld [vmem:[%s1410_s7 + $0xd4] ss:$8 sps:$4 sm:$0xff]  }
  0x39   : > { %v1289_v58 = vld [vmem:[%s1412_s8 + $0x4] ss:$16 sps:$4 sm:$0xff]   ;;  %v1292_v60 = vld [vmem:[%s1412_s8 + $0xc] ss:$16 sps:$4 sm:$0xff]   ;;  %v1268_v62 = vld [vmem:[%s1410_s7 + $0x1c0] ss:$8 sps:$4 sm:$0xff]  }
  0x3a   : > { %766 = vmatpush1.bf16.msra.mxu1 %v1219_v27  ;;  %v1265_v59 = vld [vmem:[%s1410_s7 + $0x1c4] ss:$8 sps:$4 sm:$0xff]   ;;  %789 = vmatprep.mubr.bf16.mxu1 %v1289_v58  ;;  %v1271_v0 = vld [vmem:[%s1410_s7 + $0x1d4] ss:$8 sps:$4 sm:$0xff]   ;;  %v1273_v1 = vld [vmem:[%s1410_s7 + $0xd0] ss:$8 sps:$4 sm:$0xff]  }
  0x3b   : > { %819 = vmatpush1.bf16.msra.mxu0 %v1220_v28  ;;  %767 = vmatprep.subr.bf16.mxu1 %v1221_v29  ;;  %v1274_v2 = vld [vmem:[%s1410_s7 + $0x1d0] ss:$8 sps:$4 sm:$0xff]   ;;  %v1275_v3 = vld [vmem:[%s1410_s7 + $0xe4] ss:$8 sps:$4 sm:$0xff]   ;;  %v1279_v5 = vld [vmem:[%s1410_s7 + $0xe0] ss:$8 sps:$4 sm:$0xff]  }
  0x3c   : > { %820 = vmatprep.subr.bf16.mxu0 %v1223_v30  ;;  %842 = vmatprep.mubr.bf16.mxu0 %v1292_v60  ;;  %v1277_v4 = vld [vmem:[%s1410_s7 + $0x1e4] ss:$8 sps:$4 sm:$0xff]   ;;  %v1280_v6 = vld [vmem:[%s1410_s7 + $0x1e0] ss:$8 sps:$4 sm:$0xff]   ;;  %v1281_v7 = vld [vmem:[%s1410_s7 + $0xf4] ss:$8 sps:$4 sm:$0xff]  }
  0x3d   : > { %v1283_v8 = vld [vmem:[%s1410_s7 + $0x1f4] ss:$8 sps:$4 sm:$0xff]   ;;  %v1285_v9 = vld [vmem:[%s1410_s7 + $0xf0] ss:$8 sps:$4 sm:$0xff]   ;;  %v317_v18 = vld [vmem:[#allocation2] sm:$0xff]  ;;  %p1135_p11 = scmp.ne.s32.totalorder %s1329_s14, 6 }
  0x3e   : > { %768 = vmatpush1.bf16.msra.mxu1 %v1225_v31  ;;  %v1286_v10 = vld [vmem:[%s1410_s7 + $0x1f0] ss:$8 sps:$4 sm:$0xff]   ;;  %v1293_v13 = vld [vmem:[%s1412_s8 + $0x24] ss:$16 sps:$4 sm:$0xff]   ;;  %v1295_v14 = vld [vmem:[%s1412_s8 + $0x2c] ss:$16 sps:$4 sm:$0xff]  }
  0x3f   : > { %821 = vmatpush1.bf16.msra.mxu0 %v1226_v32  ;;  %769 = vmatprep.subr.bf16.mxu1 %v1227_v33  ;;  %v1287_v11 = vld [vmem:[%s1412_s8] ss:$16 sps:$4 sm:$0xff]   ;;  %v1290_v12 = vld [vmem:[%s1412_s8 + $0x8] ss:$16 sps:$4 sm:$0xff]  }
  0x40   : > { %822 = vmatprep.subr.bf16.mxu0 %v1229_v34  ;;  %v1297_v15 = vld [vmem:[%s1412_s8 + $0x20] ss:$16 sps:$4 sm:$0xff]   ;;  %v1298_v16 = vld [vmem:[%s1412_s8 + $0x28] ss:$16 sps:$4 sm:$0xff]  }
  0x41   : > { %v318_v22 = vld [vmem:[#allocation2 + $0x8] sm:$0xff]  ;;  %v319_v26 = vld [vmem:[#allocation2 + $0x10] sm:$0xff]  ;;  %v320_v31 = vld [vmem:[#allocation2 + $0x18] sm:$0xff] }
  0x42   : > { %770 = vmatpush1.bf16.msra.mxu1 %v1231_v35 }
  0x43   : > { %823 = vmatpush1.bf16.msra.mxu0 %v1232_v36  ;;  %771 = vmatprep.subr.bf16.mxu1 %v1233_v37 }
  0x44   : > { %824 = vmatprep.subr.bf16.mxu0 %v1235_v38  ;;  %v321_v38 = vld [vmem:[#allocation2 + $0x20] sm:$0xff] }
  0x46   : > { %772 = vmatpush1.bf16.msra.mxu1 %v1237_v39 }
  0x47   : > { %825 = vmatpush1.bf16.msra.mxu0 %v1238_v40  ;;  %773 = vmatprep.subr.bf16.mxu1 %v1239_v41 }
  0x48   : > { %826 = vmatprep.subr.bf16.mxu0 %v1241_v42  ;;  %v322_v42 = vld [vmem:[#allocation2 + $0x28] sm:$0xff] }
  0x4a   : > { %774 = vmatpush1.bf16.msra.mxu1 %v1243_v43 }
  0x4b   : > { %827 = vmatpush1.bf16.msra.mxu0 %v1244_v44  ;;  %775 = vmatprep.subr.bf16.mxu1 %v1245_v45 }
  0x4c   : > { %828 = vmatprep.subr.bf16.mxu0 %v1247_v46  ;;  %v323_v46 = vld [vmem:[#allocation2 + $0x30] sm:$0xff] }
  0x4e   : > { %776 = vmatpush1.bf16.msra.mxu1 %v1249_v47 }
  0x4f   : > { %829 = vmatpush1.bf16.msra.mxu0 %v1250_v48  ;;  %777 = vmatprep.subr.bf16.mxu1 %v1251_v49 }
  0x50   : > { %830 = vmatprep.subr.bf16.mxu0 %v1253_v50 }
  0x52   : > { %778 = vmatpush1.bf16.msra.mxu1 %v1255_v51  ;;  %v324_v51 = vld [vmem:[#allocation2 + $0x38] sm:$0xff] }
  0x53   : > { %831 = vmatpush1.bf16.msra.mxu0 %v1256_v52  ;;  %779 = vmatprep.subr.bf16.mxu1 %v1257_v53 }
  0x54   : > { %832 = vmatprep.subr.bf16.mxu0 %v1259_v54 }
  0x56   : > { %780 = vmatpush1.bf16.msra.mxu1 %v1261_v55 }
  0x57   : > { %833 = vmatpush1.bf16.msra.mxu0 %v1262_v56  ;;  %781 = vmatprep.subr.bf16.mxu1 %v1263_v57  ;;  %v893_v57 = vlaneseq (!%p1135_p11) }
  0x58   : > { %834 = vmatprep.subr.bf16.mxu0 %v1265_v59  ;;  %v891_v59 = vld [vmem:[%s1532_s2] sm:$0x3] (!%p1135_p11) }
  0x59   : > { %v894_v58 = vshrl.u32 (!%p1135_p11), %v893_v57, 7 }
  0x5a   : > { %782 = vmatpush1.bf16.msra.mxu1 %v1267_v61 }
  0x5b   : > { %835 = vmatpush1.bf16.msra.mxu0 %v1268_v62  ;;  %783 = vmatprep.subr.bf16.mxu1 %v1269_v63  ;;  %v895_v61 = vsub.s32 (!%p1135_p11), 0, %v894_v58  ;;  %v899_v63 = vsub.s32 (!%p1135_p11), 1, %v894_v58 }
  0x5c   : > { %836 = vmatprep.subr.bf16.mxu0 %v1271_v0 }
  0x5e   : > { %784 = vmatpush1.bf16.msra.mxu1 %v1273_v1 }
  0x5f   : > { %837 = vmatpush1.bf16.msra.mxu0 %v1274_v2  ;;  %785 = vmatprep.subr.bf16.mxu1 %v1275_v3  ;;  %v896_v3 = vrot.slane (!%p1135_p11), %v891_v59, %v895_v61 }
  0x60   : > { %838 = vmatprep.subr.bf16.mxu0 %v1277_v4  ;;  %v900_v4 = vrot.slane (!%p1135_p11), %v891_v59, %v899_v63 }
  0x62   : > { %786 = vmatpush1.bf16.msra.mxu1 %v1279_v5 }
  0x63   : > { %839 = vmatpush1.bf16.msra.mxu0 %v1280_v6  ;;  %787 = vmatprep.subr.bf16.mxu1 %v1281_v7 }
  0x64   : > { %840 = vmatprep.subr.bf16.mxu0 %v1283_v8 }
  0x66   : > { %788 = vmatpush1.bf16.msra.mxu1 %v1285_v9 }
  0x67   : > { %841 = vmatpush1.bf16.msra.mxu0 %v1286_v10 }
  0x69   : > { %790 = vmatmul.mubr.bf16.vlgmr.msra.gmra.mrb[0].mxu1 %v1287_v11 }
  0x6a   : > { %843 = vmatmul.mubr.bf16.vlgmr.msra.gmra.mrb[0].mxu0 %v1290_v12  ;;  %799 = vmatprep.mubr.bf16.mxu1 %v1293_v13 }
  0x6b   : > { %852 = vmatprep.mubr.bf16.mxu0 %v1295_v14 }
  0x71   : > { %800 = vmatmul.mubr.bf16.gmra.mrb[4].mxu1 %v1297_v15 }
  0x72   : > { %853 = vmatmul.mubr.bf16.gmra.mrb[4].mxu0 %v1298_v16 }
 0x13c   : > { %v791_v17 = vpop.f32.mrb[0].mxu1 }
 0x13d   : > { %v844_v19 = vpop.f32.mrb[0].mxu0  ;;  %v793_v21 = vpop.f32.mrb[1].mxu1 }
 0x13e   : > { %v845_v20 = vadd.f32 %v844_v19, %v791_v17  ;;  %v846_v23 = vpop.f32.mrb[1].mxu0  ;;  %v795_v25 = vpop.f32.mrb[2].mxu1 }
 0x13f   : > { %v847_v24 = vadd.f32 %v846_v23, %v793_v21  ;;  %v848_v27 = vpop.f32.mrb[2].mxu0  ;;  %v797_v30 = vpop.f32.mrb[3].mxu1 }
 0x140   : > { %v863_v28 = vadd.f32 %v845_v20, %v317_v18  ;;  %v849_v29 = vadd.f32 %v848_v27, %v795_v25  ;;  %v850_v32 = vpop.f32.mrb[3].mxu0 }
 0x141   : > { %v864_v33 = vadd.f32 %v847_v24, %v318_v22  ;;  %v851_v34 = vadd.f32 %v850_v32, %v797_v30 }
 0x142   : > { %871 = vst [vmem:[#allocation2] sm:$0xff] %v863_v28  ;;  %v865_v35 = vadd.f32 %v849_v29, %v319_v26 }
 0x143   : > { %872 = vst [vmem:[#allocation2 + $0x8] sm:$0xff] %v864_v33  ;;  %v866_v36 = vadd.f32 %v851_v34, %v320_v31 }
 0x144   : > { %873 = vst [vmem:[#allocation2 + $0x10] sm:$0xff] %v865_v35  ;;  %v801_v37 = vpop.f32.mrb[4].mxu1 }
 0x145   : > { %874 = vst [vmem:[#allocation2 + $0x18] sm:$0xff] %v866_v36  ;;  %v854_v39 = vpop.f32.mrb[4].mxu0  ;;  %v803_v41 = vpop.f32.mrb[5].mxu1 }
 0x146   : > { %v855_v40 = vadd.f32 %v854_v39, %v801_v37  ;;  %v856_v43 = vpop.f32.mrb[5].mxu0  ;;  %v805_v45 = vpop.f32.mrb[6].mxu1 }
 0x147   : > { %v857_v44 = vadd.f32 %v856_v43, %v803_v41  ;;  %v858_v47 = vpop.f32.mrb[6].mxu0  ;;  %v807_v50 = vpop.f32.mrb[7].mxu1  ;;  %882 = sbr.rel (%p1135_p11) target bundleno = 346 (0x15a), region = 63 }
 0x148   : > { %v867_v48 = vadd.f32 %v855_v40, %v321_v38  ;;  %v859_v49 = vadd.f32 %v858_v47, %v805_v45  ;;  %v860_v52 = vpop.f32.mrb[7].mxu0 }
 0x149   : > { %v868_v53 = vadd.f32 %v857_v44, %v322_v42  ;;  %v861_v54 = vadd.f32 %v860_v52, %v807_v50  ;;  %v883_v60 = vld [vmem:[#allocation2] sm:$0xff] (!%p1135_p11) }
 0x14a   : > { %875 = vst [vmem:[#allocation2 + $0x20] sm:$0xff] %v867_v48  ;;  %v869_v55 = vadd.f32 %v859_v49, %v323_v46  ;;  %v884_v62 = vld [vmem:[#allocation2 + $0x8] sm:$0xff] (!%p1135_p11)  ;;  %v903_v8 = vadd.f32 (!%p1135_p11), %v896_v3, %v883_v60 }
 0x14b   : > { %876 = vst [vmem:[#allocation2 + $0x28] sm:$0xff] %v868_v53  ;;  %v870_v56 = vadd.f32 %v861_v54, %v324_v51  ;;  %v885_v0 = vld [vmem:[#allocation2 + $0x10] sm:$0xff] (!%p1135_p11)  ;;  %v904_v9 = vadd.f32 (!%p1135_p11), %v900_v4, %v884_v62 }
 0x14c   : > { %877 = vst [vmem:[#allocation2 + $0x30] sm:$0xff] %v869_v55  ;;  %v886_v1 = vld [vmem:[#allocation2 + $0x18] sm:$0xff] (!%p1135_p11)  ;;  %v905_v10 = vadd.f32 (!%p1135_p11), %v896_v3, %v885_v0  ;;  %v911_v16 = vmax.f32 (!%p1135_p11), %v903_v8, 0.0 }
 0x14d   : > { %878 = vst [vmem:[#allocation2 + $0x38] sm:$0xff] %v870_v56  ;;  %v906_v11 = vadd.f32 (!%p1135_p11), %v900_v4, %v886_v1  ;;  %v912_v17 = vmax.f32 (!%p1135_p11), %v904_v9, 0.0 }
 0x14e   : > { %v913_v18 = vmax.f32 %v905_v10, 0.0  ;;  %919 = vst [vmem:[%s1533_s3] sm:$0xff] %v911_v16 }
 0x14f   : > { %v914_v19 = vmax.f32 %v906_v11, 0.0  ;;  %920 = vst [vmem:[%s1533_s3 + $0x8] sm:$0xff] %v912_v17 }
 0x150   : > { %921 = vst [vmem:[%s1533_s3 + $0x10] sm:$0xff] %v913_v18 }
 0x151   : > { %v887_v2 = vld [vmem:[#allocation2 + $0x20] sm:$0xff]  ;;  %922 = vst [vmem:[%s1533_s3 + $0x18] sm:$0xff] %v914_v19 }
 0x152   : > { %v888_v5 = vld [vmem:[#allocation2 + $0x28] sm:$0xff]  ;;  %v907_v12 = vadd.f32 %v896_v3, %v887_v2 }
 0x153   : > { %v889_v6 = vld [vmem:[#allocation2 + $0x30] sm:$0xff]  ;;  %v908_v13 = vadd.f32 %v900_v4, %v888_v5 }
 0x154   : > { %v890_v7 = vld [vmem:[#allocation2 + $0x38] sm:$0xff]  ;;  %v909_v14 = vadd.f32 %v896_v3, %v889_v6  ;;  %v915_v20 = vmax.f32 %v907_v12, 0.0 }
 0x155   : > { %v910_v15 = vadd.f32 %v900_v4, %v890_v7  ;;  %v916_v21 = vmax.f32 %v908_v13, 0.0 }
 0x156   : > { %v917_v22 = vmax.f32 %v909_v14, 0.0  ;;  %923 = vst [vmem:[%s1533_s3 + $0x20] sm:$0xff] %v915_v20 }
 0x157   : > { %v918_v23 = vmax.f32 %v910_v15, 0.0  ;;  %924 = vst [vmem:[%s1533_s3 + $0x28] sm:$0xff] %v916_v21 }
 0x158   : > { %925 = vst [vmem:[%s1533_s3 + $0x30] sm:$0xff] %v917_v22 }
 0x159   : > { %926 = vst [vmem:[%s1533_s3 + $0x38] sm:$0xff] %v918_v23 }
 0x15a PF: > { %s13_s16 = sadd.s32 1, %s1337_s16   ;;  %s1534_s12 = smov %s1325_s13 }
 0x15b   : > { %p10_p12 = scmp.ge.s32.totalorder %s13_s16, 9   ;;  %s1535_s13 = smov %s1395_s20 }
 0x15c   : > { %s1536_s14 = smov %s1333_s15  ;;  %s1537_s15 = smov %s1539_s17 }
 0x15d   :  { %12 = sbr.rel (!%p10_p12) target bundleno = 3 (0x3), region = 104 }

// kernel: alexnet_forward.19
= control target key start
LH: loop header
LB: loop body
LE: loop exit
PB: predicated region body
PF: predicated region fallthrough
CT: control target
= control target key end

     0   :  { %s1739_s0 = inlined_call_operand.vmem [shape: bf16[16,9216], index: 0, kind: input, shape index: {}]   ;;  %s1740_s1 = inlined_call_operand.hbm [shape: bf16[9216,4096], index: 1, kind: input, shape index: {}]   ;;  %s1741_s2 = inlined_call_operand.vmem [shape: f32[1,4096], index: 2, kind: input, shape index: {}]   ;;  %s1742_s3 = inlined_call_operand.vmem [shape: f32[16,4096], index: 3, kind: output, shape index: {}]  }
   0x1   :  { %1746 = sst [smem:[#allocation12_spill]] %s1739_s0 }
   0x2   :  { %8 = vsyncpa [#allocation5], 0 }
   0x3   :  { %10 = vsyncpa [#allocation5 + $0x1], 0  ;;  %s1437_s12 = smov 0   ;;  %s1439_s13 = smov 0  }
   0x4   :  { %s1441_s14 = smov 0   ;;  %s1443_s15 = smov 0  }
   0x5   :  { %s1445_s16 = smov 0   ;;  %s1447_s17 = smov 0  }
   0x6   :  { %s1449_s18 = smov 0   ;;  %s1451_s19 = smov 0  }
   0x7   :  { %s1453_s20 = smov 0   ;;  %s1455_s21 = smov 0  }
   0x8   :  { %s1457_s22 = smov 0   ;;  %s1459_s23 = smov 0  }
   0x9 LB: > { %1747 = sst [smem:[#allocation8_spill]] %s1406_s22  ;;  %s981_s24 = sadd.s32 4294967295, %s1410_s23   ;;  %s1410_s23 = sphi %s1459_s23, %s16_s23   ;;  %s1406_s22 = sphi %s1457_s22, %s1760_s22   ;;  %s1402_s21 = sphi %s1455_s21, %s1770_s21   ;;  %s1398_s20 = sphi %s1453_s20, %s1769_s20   ;;  %s1394_s19 = sphi %s1451_s19, %s1768_s19   ;;  %s1390_s18 = sphi %s1449_s18, %s1767_s18   ;;  %s1386_s17 = sphi %s1447_s17, %s1766_s17   ;;  %s1382_s16 = sphi %s1445_s16, %s1765_s16   ;;  %s1378_s15 = sphi %s1443_s15, %s1764_s15   ;;  %s1374_s14 = sphi %s1441_s14, %s1763_s14   ;;  %s1370_s13 = sphi %s1439_s13, %s1762_s13   ;;  %s1366_s12 = sphi %s1437_s12, %s1761_s12  }
   0xa   : > { %s28_s25 = sadd.s32 1, %s1402_s21  ;;  %s31_s26 = sadd.s32 1, %s1406_s22 }
   0xb   : > { %p29_p0 = scmp.ge.s32.totalorder %s28_s25, 18  ;;  %s44_s27 = sadd.s32 1, %s1390_s18 }
   0xc   : > { %p51_p1 = scmp.ne.s32.totalorder %s1390_s18, %s1386_s17  ;;  %p52_p2 = scmp.eq.s32.totalorder %s1410_s23, 0 }
   0xd   : > { %s1772_s25 = smov (%p29_p0, %s28_s25), 0  ;;  %s1774_s26 = smov (!%p29_p0, %s31_s26), %s1406_s22 }
   0xe   : > { %1748 = sst [smem:[#allocation9_spill]] %s1772_s25  ;;  %s40_s28 = ssub.s32 %s1402_s21, %s1772_s25 }
   0xf   : > { %p33_p3 = scmp.ge.s32.totalorder %s1774_s26, 16  ;;  %p42_p4 = scmp.eq.s32.totalorder %s40_s28, 0 }
  0x10   : > { %p1509_p5 = por %p52_p2, %p51_p1  ;;  %s72_s30 = sadd.s32 1, %s1382_s16 }
  0x11   : > { %s1776_s26 = smov (%p33_p3, %s1774_s26), 0  ;;  %p79_p6 = scmp.ne.s32.totalorder %s1382_s16, %s1378_s15 }
  0x12   : > { %1750 = sst [smem:[#allocation10_spill]] %s1776_s26  ;;  %s68_s5 = ssub.s32 %s1406_s22, %s1776_s26 }
  0x13   : > { %s1517_s4 = scalar_select %p42_p4, %s1390_s18, %s44_s27  }
  0x14   : > { %s69_s6 = sor.u32 %s68_s5, %s40_s28  ;;  %p85_p7 = scmp.ne.s32.totalorder %s1378_s15, %s1374_s14 }
  0x15   : > { %1751 = sst [smem:[#allocation11_spill]] %s1517_s4  ;;  %p70_p8 = scmp.eq.s32.totalorder %s69_s6, 0 }
  0x16   : > { %p1525_p9 = por %p79_p6, %p52_p2  ;;  %p86_p10 = scmp.eq.s32.totalorder %s981_s24, 0 }
  0x17   : > { %p124_p11 = scmp.eq.s32.totalorder %s68_s5, 0  ;;  %s126_s10 = sadd.s32 1, %s1370_s13 }
  0x18   : > { %s1532_s8 = scalar_select %p70_p8, %s1382_s16, %s72_s30  }
  0x19   : > { %p1534_p12 = por %p86_p10, %p85_p7  ;;  %p136_p13 = scmp.ne.s32.totalorder %s1370_s13, %s1366_s12 }
  0x1a   : > { %s1540_s11 = scalar_select %p124_p11, %s1370_s13, %s126_s10  }
  0x1b   : > { %p137_p0 = scmp.eq.s32.totalorder %s981_s24, 287  ;;  %p984_p2 = scmp.ge.s32.totalorder %s1410_s23, 288 }
  0x1d   : > { %p1546_p1 = por %p137_p0, %p136_p13  ;;  %159 = sbr.rel (%p984_p2) target bundleno = 77 (0x4d), region = 16 }
  0x1f   : > { %s1754_s14 = scalar_select %p1546_p1, 1, 0 }
  0x24   : > { %162 = sbr.rel (!%p1509_p5) target bundleno = 48 (0x30), region = 20  ;;  %s164_s27 = sand.u32 (%p1509_p5), 1, %s1390_s18  }
  0x25   : > { %s1073_s28 = sshll.u32 (%p1509_p5), %s1402_s21, 4  ;;  %s985_s30 = sshll.u32 (%p1509_p5), %s164_s27, 5 }
  0x26   : > { %s1755_s0 = sld [smem:[#allocation12_spill]] (%p1509_p5)  ;;  %s166_s24 = scalar_lea.vmem (%p1509_p5), [#allocation3], %s985_s30 }
  0x2c   : > { %s172_s10 = scalar_lea.vmem %s1755_s0, %s1073_s28 }
  0x2d   : > { %v185_v0 = vld [vmem:[%s172_s10] sm:$0xff]  ;;  %v187_v1 = vld [vmem:[%s172_s10 + $0x8] sm:$0xff] }
  0x2e   : > { %v189_v2 = vld [vmem:[%s172_s10 + $0x120] sm:$0xff]  ;;  %186 = vst [vmem:[%s166_s24] sm:$0xff] %v185_v0  ;;  %188 = vst [vmem:[%s166_s24 + $0x8] sm:$0xff] %v187_v1  ;;  %v191_v3 = vld [vmem:[%s172_s10 + $0x128] sm:$0xff] }
  0x2f   : > { %190 = vst [vmem:[%s166_s24 + $0x10] sm:$0xff] %v189_v2  ;;  %192 = vst [vmem:[%s166_s24 + $0x18] sm:$0xff] %v191_v3 }
  0x30 PF: > { %s199_s29 = sand.u32 1, %s1382_s16   ;;  %s990_s27 = sshll.u32 %s1406_s22, 1 }
  0x31   : > { %s988_s26 = sshll.u32 %s199_s29, 9  ;;  %s1074_s25 = sshll.u32 %s1402_s21, 11 }
  0x32   : > { %s210_s5 = sadd.s32 %s1074_s25, %s990_s27  ;;  %s203_s28 = scalar_lea.vmem [#allocation4], %s988_s26 }
  0x33   : > { %s213_s6 = sshll.u32 %s203_s28, 4  ;;  %s992_s0 = sshll.u32 %s210_s5, 6  ;;  %s1561_s6 = int_to_ptr.vmem [resolvable:$true] %s213_s6 }
  0x34   : > { %s1566_s10 = scalar_lea.hbm %s1740_s1, %s992_s0  ;;  %s1568_s24 = scalar_lea.sflag [#allocation5], %s199_s29 }
  0x35   : > { %s1284_s22 = scalar_lea.hbm %s1566_s10, 8192  ;;  %s1288_s27 = scalar_lea.hbm %s1740_s1, 2359296 }
  0x36   : > { %p1285_p3 = scmp.ne.s32.totalorder %s1566_s10, %s1284_s22  ;;  %p1289_p6 = scmp.lt.u32.totalorder %s1566_s10, %s1740_s1 }
  0x37   : > { %p1290_p7 = scmp.lt.u32.totalorder %s1288_s27, %s1284_s22  ;;  %p1292_p10 = scmp.lt.u32.totalorder %s1284_s22, %s1566_s10 }
  0x38   : > { %p1286_p4 = pnand %p1285_p3, %p1525_p9 }
  0x39   : > { %p1291_p8 = por %p1290_p7, %p1289_p6 }
  0x3a   : > { %p1287_p5 = pneg %p1286_p4 }
  0x3b   : > { %p1293_p11 = por %p1292_p10, %p1291_p8 }
  0x3d   : > { %p1294_p13 = pnand %p1293_p11, %p1287_p5 }
  0x3f   : > { %1297 = shalt.err (!%p1294_p13)
}
  0x40   : > { %s1298_s0 = scalar_lea.vmem %s1561_s6, 8192  ;;  %s1412_s4 = smov [#allocation4]  }
  0x41   : > { %p1299_p0 = scmp.ne.s32.totalorder %s1561_s6, %s1298_s0  ;;  %s1302_s29 = sshll.u32 %s1412_s4, 4  ;;  %s1303_s29 = int_to_ptr.vmem [resolvable:$false] %s1302_s29 }
  0x42   : > { %s1304_s30 = scalar_lea.vmem %s1303_s29, 16384  ;;  %p1305_p4 = scmp.lt.s32.totalorder %s1561_s6, %s1303_s29 }
  0x43   : > { %p1300_p2 = pnand %p1299_p0, %p1525_p9  ;;  %p1306_p1 = scmp.lt.s32.totalorder %s1304_s30, %s1298_s0 }
  0x45   : > { %p1301_p3 = pneg %p1300_p2  ;;  %p1307_p6 = por %p1306_p1, %p1305_p4 }
  0x47   : > { %p1308_p7 = pnand %p1307_p6, %p1301_p3 }
  0x49   : > { %1311 = shalt.err (!%p1308_p7)
}
  0x4a   : > { %s1413_s22 = smov 2048   ;;  %s1414_s25 = smov 128  }
  0x4b   : > { %s1415_s26 = smov 8  }
  0x4c   : > { %1080 = dma.hbm_to_vmem [thread:$0]  (%p1525_p9), %s1566_s10, 8192, %s1561_s6, %s1568_s24, %s1413_s22, %s1414_s25, %s1415_s26  }
  0x4d PF: > { %p993_p5 = scmp.ge.s32.totalorder %s1410_s23, 1  ;;  %p229_p8 = scmp.lt.s32.totalorder %s1410_s23, 289 }
  0x4f   : > { %p230_p10 = pnand %p993_p5, %p229_p8 }
  0x50   : > { %s236_s27 = sand.u32 (!%p230_p10), 1, %s1386_s17   ;;  %s242_s5 = sand.u32 (!%p230_p10), 1, %s1378_s15  }
  0x51   : > { %233 = sbr.rel (%p230_p10) target bundleno = 407 (0x197), region = 51  ;;  %s994_s28 = sshll.u32 (!%p230_p10), %s236_s27, 5 }
  0x52   : > { %s995_s0 = sshll.u32 (!%p230_p10), %s242_s5, 9  ;;  %s1596_s4 = scalar_lea.vmem (!%p230_p10), [#allocation3], %s994_s28 }
  0x53   : > { %s243_s29 = scalar_lea.sflag (!%p230_p10), [#allocation5], %s242_s5  ;;  %s1598_s30 = scalar_lea.vmem (!%p230_p10), [#allocation4], %s995_s0 }
  0x58   : > { %1361 = dma.done.wait (%p1534_p12), %s243_s29, 8192  }
  0x59   : > { %1363 = vsyncadd (%p1534_p12), %s243_s29, 4294959104  ;;  %s273_s7 = sand.u32 1, %s1366_s12   ;;  %s997_s6 = sshll.u32 %s1398_s20, 1 }
  0x5a   : > { %s996_s10 = sshll.u32 %s273_s7, 5  ;;  %p281_p9 = scmp.lt.s32.totalorder %s997_s6, 31 }
  0x5b   : > { %s1612_s25 = scalar_lea.vmem [#allocation6], %s996_s10  ;;  %p998_p1 = scmp.ne.s32.totalorder %s1394_s19, 0 }
  0x5c   : > { %s1778_s6 = smov (!%p281_p9, %s997_s6), 31  ;;  %v1416_v4 = vmov (!%p998_p1), 0.0  }
  0x5d   : > { %s283_s22 = scalar_lea.vmem %s1741_s2, %s1778_s6  ;;  %290 = sbr.rel (%p998_p1) target bundleno = 100 (0x64), region = 63  ;;  %291 = vst [vmem:[#allocation2] sm:$0xff] (!%p998_p1), %v1416_v4  ;;  %292 = vst [vmem:[#allocation2 + $0x8] sm:$0xff] (!%p998_p1), %v1416_v4 }
  0x5e   : > { %293 = vst [vmem:[#allocation2 + $0x10] sm:$0xff] (!%p998_p1), %v1416_v4  ;;  %294 = vst [vmem:[#allocation2 + $0x18] sm:$0xff] (!%p998_p1), %v1416_v4 }
  0x64 PF: > { %v1182_v5 = vld [vmem:[%s1598_s30 + $0x4] ss:$8 sps:$4 sm:$0xff]   ;;  %v1186_v7 = vld [vmem:[%s1598_s30] ss:$8 sps:$4 sm:$0xff]   ;;  %v1188_v9 = vld [vmem:[%s1598_s30 + $0x14] ss:$8 sps:$4 sm:$0xff]  }
  0x65   : > { %v1184_v6 = vld [vmem:[%s1598_s30 + $0x104] ss:$8 sps:$4 sm:$0xff]   ;;  %707 = vmatprep.subr.bf16.mxu1 %v1182_v5  ;;  %v1187_v8 = vld [vmem:[%s1598_s30 + $0x100] ss:$8 sps:$4 sm:$0xff]   ;;  %v1190_v10 = vld [vmem:[%s1598_s30 + $0x114] ss:$8 sps:$4 sm:$0xff]  }
  0x66   : > { %750 = vmatprep.subr.bf16.mxu0 %v1184_v6  ;;  %708 = vmatpush1.bf16.msra.mxu1 %v1186_v7  ;;  %v1192_v11 = vld [vmem:[%s1598_s30 + $0x10] ss:$8 sps:$4 sm:$0xff]   ;;  %v1194_v13 = vld [vmem:[%s1598_s30 + $0x24] ss:$8 sps:$4 sm:$0xff]   ;;  %v1198_v15 = vld [vmem:[%s1598_s30 + $0x20] ss:$8 sps:$4 sm:$0xff]  }
  0x67   : > { %751 = vmatpush1.bf16.msra.mxu0 %v1187_v8  ;;  %709 = vmatprep.subr.bf16.mxu1 %v1188_v9  ;;  %v1193_v12 = vld [vmem:[%s1598_s30 + $0x110] ss:$8 sps:$4 sm:$0xff]   ;;  %v1196_v14 = vld [vmem:[%s1598_s30 + $0x124] ss:$8 sps:$4 sm:$0xff]   ;;  %v1199_v16 = vld [vmem:[%s1598_s30 + $0x120] ss:$8 sps:$4 sm:$0xff]  }
  0x68   : > { %752 = vmatprep.subr.bf16.mxu0 %v1190_v10  ;;  %v1200_v17 = vld [vmem:[%s1598_s30 + $0x34] ss:$8 sps:$4 sm:$0xff]   ;;  %v1204_v19 = vld [vmem:[%s1598_s30 + $0x30] ss:$8 sps:$4 sm:$0xff]   ;;  %v1206_v21 = vld [vmem:[%s1598_s30 + $0x44] ss:$8 sps:$4 sm:$0xff]  }
  0x69   : > { %v1202_v18 = vld [vmem:[%s1598_s30 + $0x134] ss:$8 sps:$4 sm:$0xff]   ;;  %v1205_v20 = vld [vmem:[%s1598_s30 + $0x130] ss:$8 sps:$4 sm:$0xff]   ;;  %v1208_v22 = vld [vmem:[%s1598_s30 + $0x144] ss:$8 sps:$4 sm:$0xff]  }
  0x6a   : > { %710 = vmatpush1.bf16.msra.mxu1 %v1192_v11  ;;  %v1210_v23 = vld [vmem:[%s1598_s30 + $0x40] ss:$8 sps:$4 sm:$0xff]   ;;  %v1212_v25 = vld [vmem:[%s1598_s30 + $0x54] ss:$8 sps:$4 sm:$0xff]   ;;  %v1216_v27 = vld [vmem:[%s1598_s30 + $0x50] ss:$8 sps:$4 sm:$0xff]  }
  0x6b   : > { %753 = vmatpush1.bf16.msra.mxu0 %v1193_v12  ;;  %711 = vmatprep.subr.bf16.mxu1 %v1194_v13  ;;  %v1211_v24 = vld [vmem:[%s1598_s30 + $0x140] ss:$8 sps:$4 sm:$0xff]   ;;  %v1214_v26 = vld [vmem:[%s1598_s30 + $0x154] ss:$8 sps:$4 sm:$0xff]   ;;  %v1217_v28 = vld [vmem:[%s1598_s30 + $0x150] ss:$8 sps:$4 sm:$0xff]  }
  0x6c   : > { %754 = vmatprep.subr.bf16.mxu0 %v1196_v14  ;;  %v1218_v29 = vld [vmem:[%s1598_s30 + $0x64] ss:$8 sps:$4 sm:$0xff]   ;;  %v1222_v31 = vld [vmem:[%s1598_s30 + $0x60] ss:$8 sps:$4 sm:$0xff]   ;;  %v1224_v33 = vld [vmem:[%s1598_s30 + $0x74] ss:$8 sps:$4 sm:$0xff]  }
  0x6d   : > { %v1220_v30 = vld [vmem:[%s1598_s30 + $0x164] ss:$8 sps:$4 sm:$0xff]   ;;  %v1223_v32 = vld [vmem:[%s1598_s30 + $0x160] ss:$8 sps:$4 sm:$0xff]   ;;  %v1226_v34 = vld [vmem:[%s1598_s30 + $0x174] ss:$8 sps:$4 sm:$0xff]  }
  0x6e   : > { %712 = vmatpush1.bf16.msra.mxu1 %v1198_v15  ;;  %v1228_v35 = vld [vmem:[%s1598_s30 + $0x70] ss:$8 sps:$4 sm:$0xff]   ;;  %v1230_v37 = vld [vmem:[%s1598_s30 + $0x84] ss:$8 sps:$4 sm:$0xff]   ;;  %v1234_v39 = vld [vmem:[%s1598_s30 + $0x80] ss:$8 sps:$4 sm:$0xff]  }
  0x6f   : > { %755 = vmatpush1.bf16.msra.mxu0 %v1199_v16  ;;  %713 = vmatprep.subr.bf16.mxu1 %v1200_v17  ;;  %v1229_v36 = vld [vmem:[%s1598_s30 + $0x170] ss:$8 sps:$4 sm:$0xff]   ;;  %v1232_v38 = vld [vmem:[%s1598_s30 + $0x184] ss:$8 sps:$4 sm:$0xff]   ;;  %v1235_v40 = vld [vmem:[%s1598_s30 + $0x180] ss:$8 sps:$4 sm:$0xff]  }
  0x70   : > { %756 = vmatprep.subr.bf16.mxu0 %v1202_v18  ;;  %v1236_v41 = vld [vmem:[%s1598_s30 + $0x94] ss:$8 sps:$4 sm:$0xff]   ;;  %v1240_v43 = vld [vmem:[%s1598_s30 + $0x90] ss:$8 sps:$4 sm:$0xff]   ;;  %v1242_v45 = vld [vmem:[%s1598_s30 + $0xa4] ss:$8 sps:$4 sm:$0xff]  }
  0x71   : > { %v1238_v42 = vld [vmem:[%s1598_s30 + $0x194] ss:$8 sps:$4 sm:$0xff]   ;;  %v1241_v44 = vld [vmem:[%s1598_s30 + $0x190] ss:$8 sps:$4 sm:$0xff]   ;;  %v1244_v46 = vld [vmem:[%s1598_s30 + $0x1a4] ss:$8 sps:$4 sm:$0xff]  }
  0x72   : > { %714 = vmatpush1.bf16.msra.mxu1 %v1204_v19  ;;  %v1246_v47 = vld [vmem:[%s1598_s30 + $0xa0] ss:$8 sps:$4 sm:$0xff]   ;;  %v1248_v49 = vld [vmem:[%s1598_s30 + $0xb4] ss:$8 sps:$4 sm:$0xff]   ;;  %v1252_v51 = vld [vmem:[%s1598_s30 + $0xb0] ss:$8 sps:$4 sm:$0xff]  }
  0x73   : > { %757 = vmatpush1.bf16.msra.mxu0 %v1205_v20  ;;  %715 = vmatprep.subr.bf16.mxu1 %v1206_v21  ;;  %v1247_v48 = vld [vmem:[%s1598_s30 + $0x1a0] ss:$8 sps:$4 sm:$0xff]   ;;  %v1250_v50 = vld [vmem:[%s1598_s30 + $0x1b4] ss:$8 sps:$4 sm:$0xff]   ;;  %v1253_v53 = vld [vmem:[%s1598_s30 + $0x1b0] ss:$8 sps:$4 sm:$0xff]  }
  0x74   : > { %758 = vmatprep.subr.bf16.mxu0 %v1208_v22  ;;  %v1280_v52 = vld [vmem:[%s1596_s4 + $0x4] ss:$16 sps:$4 sm:$0xff]   ;;  %v1283_v56 = vld [vmem:[%s1596_s4 + $0xc] ss:$16 sps:$4 sm:$0xff]   ;;  %v1258_v57 = vld [vmem:[%s1598_s30 + $0xc0] ss:$8 sps:$4 sm:$0xff]  }
  0x75   : > { %v1254_v54 = vld [vmem:[%s1598_s30 + $0xc4] ss:$8 sps:$4 sm:$0xff]   ;;  %739 = vmatprep.mubr.bf16.mxu1 %v1280_v52  ;;  %782 = vmatprep.mubr.bf16.mxu0 %v1283_v56  ;;  %v1259_v58 = vld [vmem:[%s1598_s30 + $0x1c0] ss:$8 sps:$4 sm:$0xff]   ;;  %v1260_v59 = vld [vmem:[%s1598_s30 + $0xd4] ss:$8 sps:$4 sm:$0xff]  }
  0x76   : > { %716 = vmatpush1.bf16.msra.mxu1 %v1210_v23  ;;  %v1256_v55 = vld [vmem:[%s1598_s30 + $0x1c4] ss:$8 sps:$4 sm:$0xff]   ;;  %v1262_v60 = vld [vmem:[%s1598_s30 + $0x1d4] ss:$8 sps:$4 sm:$0xff]   ;;  %v1264_v61 = vld [vmem:[%s1598_s30 + $0xd0] ss:$8 sps:$4 sm:$0xff]  }
  0x77   : > { %759 = vmatpush1.bf16.msra.mxu0 %v1211_v24  ;;  %717 = vmatprep.subr.bf16.mxu1 %v1212_v25  ;;  %v1265_v62 = vld [vmem:[%s1598_s30 + $0x1d0] ss:$8 sps:$4 sm:$0xff]   ;;  %v1266_v63 = vld [vmem:[%s1598_s30 + $0xe4] ss:$8 sps:$4 sm:$0xff]   ;;  %v1270_v1 = vld [vmem:[%s1598_s30 + $0xe0] ss:$8 sps:$4 sm:$0xff]  }
  0x78   : > { %760 = vmatprep.subr.bf16.mxu0 %v1214_v26  ;;  %v1268_v0 = vld [vmem:[%s1598_s30 + $0x1e4] ss:$8 sps:$4 sm:$0xff]   ;;  %v1271_v2 = vld [vmem:[%s1598_s30 + $0x1e0] ss:$8 sps:$4 sm:$0xff]   ;;  %v1272_v3 = vld [vmem:[%s1598_s30 + $0xf4] ss:$8 sps:$4 sm:$0xff]  }
  0x79   : > { %v1274_v4 = vld [vmem:[%s1598_s30 + $0x1f4] ss:$8 sps:$4 sm:$0xff]   ;;  %v1276_v5 = vld [vmem:[%s1598_s30 + $0xf0] ss:$8 sps:$4 sm:$0xff]   ;;  %v295_v10 = vld [vmem:[#allocation2] sm:$0xff]  ;;  %p1067_p12 = scmp.ne.s32.totalorder %s1394_s19, 17 }
  0x7a   : > { %718 = vmatpush1.bf16.msra.mxu1 %v1216_v27  ;;  %v1277_v6 = vld [vmem:[%s1598_s30 + $0x1f0] ss:$8 sps:$4 sm:$0xff]   ;;  %v296_v14 = vld [vmem:[#allocation2 + $0x8] sm:$0xff] }
  0x7b   : > { %761 = vmatpush1.bf16.msra.mxu0 %v1217_v28  ;;  %719 = vmatprep.subr.bf16.mxu1 %v1218_v29  ;;  %v1278_v7 = vld [vmem:[%s1596_s4] ss:$16 sps:$4 sm:$0xff]   ;;  %v1281_v8 = vld [vmem:[%s1596_s4 + $0x8] ss:$16 sps:$4 sm:$0xff]   ;;  %v811_v29 = vlaneseq (!%p1067_p12) }
  0x7c   : > { %762 = vmatprep.subr.bf16.mxu0 %v1220_v30  ;;  %v297_v18 = vld [vmem:[#allocation2 + $0x10] sm:$0xff]  ;;  %v298_v23 = vld [vmem:[#allocation2 + $0x18] sm:$0xff] }
  0x7d   : > { %v812_v30 = vshrl.u32 (!%p1067_p12), %v811_v29, 7 }
  0x7e   : > { %720 = vmatpush1.bf16.msra.mxu1 %v1222_v31  ;;  %v809_v31 = vld [vmem:[%s283_s22] sm:$0x3] (!%p1067_p12) }
  0x7f   : > { %763 = vmatpush1.bf16.msra.mxu0 %v1223_v32  ;;  %721 = vmatprep.subr.bf16.mxu1 %v1224_v33  ;;  %v813_v33 = vsub.s32 (!%p1067_p12), 0, %v812_v30 }
  0x80   : > { %764 = vmatprep.subr.bf16.mxu0 %v1226_v34  ;;  %v817_v34 = vsub.s32 (!%p1067_p12), 1, %v812_v30 }
  0x82   : > { %722 = vmatpush1.bf16.msra.mxu1 %v1228_v35 }
  0x83   : > { %765 = vmatpush1.bf16.msra.mxu0 %v1229_v36  ;;  %723 = vmatprep.subr.bf16.mxu1 %v1230_v37 }
  0x84   : > { %766 = vmatprep.subr.bf16.mxu0 %v1232_v38  ;;  %v814_v38 = vrot.slane (!%p1067_p12), %v809_v31, %v813_v33 }
  0x86   : > { %724 = vmatpush1.bf16.msra.mxu1 %v1234_v39  ;;  %v818_v39 = vrot.slane (!%p1067_p12), %v809_v31, %v817_v34 }
  0x87   : > { %767 = vmatpush1.bf16.msra.mxu0 %v1235_v40  ;;  %725 = vmatprep.subr.bf16.mxu1 %v1236_v41 }
  0x88   : > { %768 = vmatprep.subr.bf16.mxu0 %v1238_v42 }
  0x8a   : > { %726 = vmatpush1.bf16.msra.mxu1 %v1240_v43 }
  0x8b   : > { %769 = vmatpush1.bf16.msra.mxu0 %v1241_v44  ;;  %727 = vmatprep.subr.bf16.mxu1 %v1242_v45 }
  0x8c   : > { %770 = vmatprep.subr.bf16.mxu0 %v1244_v46 }
  0x8e   : > { %728 = vmatpush1.bf16.msra.mxu1 %v1246_v47 }
  0x8f   : > { %771 = vmatpush1.bf16.msra.mxu0 %v1247_v48  ;;  %729 = vmatprep.subr.bf16.mxu1 %v1248_v49 }
  0x90   : > { %772 = vmatprep.subr.bf16.mxu0 %v1250_v50 }
  0x92   : > { %730 = vmatpush1.bf16.msra.mxu1 %v1252_v51 }
  0x93   : > { %773 = vmatpush1.bf16.msra.mxu0 %v1253_v53  ;;  %731 = vmatprep.subr.bf16.mxu1 %v1254_v54 }
  0x94   : > { %774 = vmatprep.subr.bf16.mxu0 %v1256_v55 }
  0x96   : > { %732 = vmatpush1.bf16.msra.mxu1 %v1258_v57 }
  0x97   : > { %775 = vmatpush1.bf16.msra.mxu0 %v1259_v58  ;;  %733 = vmatprep.subr.bf16.mxu1 %v1260_v59 }
  0x98   : > { %776 = vmatprep.subr.bf16.mxu0 %v1262_v60 }
  0x9a   : > { %734 = vmatpush1.bf16.msra.mxu1 %v1264_v61 }
  0x9b   : > { %777 = vmatpush1.bf16.msra.mxu0 %v1265_v62  ;;  %735 = vmatprep.subr.bf16.mxu1 %v1266_v63 }
  0x9c   : > { %778 = vmatprep.subr.bf16.mxu0 %v1268_v0 }
  0x9e   : > { %736 = vmatpush1.bf16.msra.mxu1 %v1270_v1 }
  0x9f   : > { %779 = vmatpush1.bf16.msra.mxu0 %v1271_v2  ;;  %737 = vmatprep.subr.bf16.mxu1 %v1272_v3 }
  0xa0   : > { %780 = vmatprep.subr.bf16.mxu0 %v1274_v4 }
  0xa2   : > { %738 = vmatpush1.bf16.msra.mxu1 %v1276_v5 }
  0xa3   : > { %781 = vmatpush1.bf16.msra.mxu0 %v1277_v6 }
  0xa5   : > { %740 = vmatmul.mubr.bf16.vlgmr.msra.gmra.mrb[0].mxu1 %v1278_v7 }
  0xa6   : > { %783 = vmatmul.mubr.bf16.vlgmr.msra.gmra.mrb[0].mxu0 %v1281_v8 }
 0x178   : > { %v741_v9 = vpop.f32.mrb[0].mxu1 }
 0x179   : > { %v784_v11 = vpop.f32.mrb[0].mxu0  ;;  %v743_v13 = vpop.f32.mrb[1].mxu1 }
 0x17a   : > { %v785_v12 = vadd.f32 %v784_v11, %v741_v9  ;;  %v786_v15 = vpop.f32.mrb[1].mxu0  ;;  %v745_v17 = vpop.f32.mrb[2].mxu1 }
 0x17b   : > { %v787_v16 = vadd.f32 %v786_v15, %v743_v13  ;;  %v788_v19 = vpop.f32.mrb[2].mxu0  ;;  %v747_v22 = vpop.f32.mrb[3].mxu1  ;;  %804 = sbr.rel (%p1067_p12) target bundleno = 398 (0x18e), region = 67 }
 0x17c   : > { %v793_v20 = vadd.f32 %v785_v12, %v295_v10  ;;  %v789_v21 = vadd.f32 %v788_v19, %v745_v17  ;;  %v790_v24 = vpop.f32.mrb[3].mxu0 }
 0x17d   : > { %v794_v25 = vadd.f32 %v787_v16, %v296_v14  ;;  %v791_v26 = vadd.f32 %v790_v24, %v747_v22 }
 0x17e   : > { %797 = vst [vmem:[#allocation2] sm:$0xff] %v793_v20  ;;  %v795_v27 = vadd.f32 %v789_v21, %v297_v18 }
 0x17f   : > { %798 = vst [vmem:[#allocation2 + $0x8] sm:$0xff] %v794_v25  ;;  %v796_v28 = vadd.f32 %v791_v26, %v298_v23 }
 0x180   : > { %799 = vst [vmem:[#allocation2 + $0x10] sm:$0xff] %v795_v27 }
 0x181   : > { %800 = vst [vmem:[#allocation2 + $0x18] sm:$0xff] %v796_v28 }
 0x185   : > { %v805_v32 = vld [vmem:[#allocation2] sm:$0xff] }
 0x186   : > { %v806_v35 = vld [vmem:[#allocation2 + $0x8] sm:$0xff]  ;;  %v821_v40 = vadd.f32 %v814_v38, %v805_v32 }
 0x187   : > { %v807_v36 = vld [vmem:[#allocation2 + $0x10] sm:$0xff]  ;;  %v822_v41 = vadd.f32 %v818_v39, %v806_v35 }
 0x188   : > { %v808_v37 = vld [vmem:[#allocation2 + $0x18] sm:$0xff]  ;;  %v823_v42 = vadd.f32 %v814_v38, %v807_v36  ;;  %v825_v44 = vmax.f32 %v821_v40, 0.0 }
 0x189   : > { %v824_v43 = vadd.f32 %v818_v39, %v808_v37  ;;  %v826_v45 = vmax.f32 %v822_v41, 0.0 }
 0x18a   : > { %v827_v46 = vmax.f32 %v823_v42, 0.0  ;;  %829 = vst [vmem:[%s1612_s25] sm:$0xff] %v825_v44 }
 0x18b   : > { %v828_v47 = vmax.f32 %v824_v43, 0.0  ;;  %830 = vst [vmem:[%s1612_s25 + $0x8] sm:$0xff] %v826_v45 }
 0x18c   : > { %831 = vst [vmem:[%s1612_s25 + $0x10] sm:$0xff] %v827_v46 }
 0x18d   : > { %832 = vst [vmem:[%s1612_s25 + $0x18] sm:$0xff] %v828_v47 }
 0x18e PF: > { %p1756_p11 = scmp.ne.s32.totalorder %s1754_s14, 0 }
 0x18f   : > { %s1075_s19 = sshll.u32 (%p1756_p11), %s1398_s20, 4 }
 0x190   : > { %839 = sbr.rel (!%p1756_p11) target bundleno = 407 (0x197), region = 71  ;;  %s845_s5 = scalar_lea.vmem (%p1756_p11), %s1742_s3, %s1075_s19 }
 0x191   : > { %v858_v48 = vld [vmem:[%s1612_s25] sm:$0xff] (%p1756_p11) }
 0x192   : > { %v860_v49 = vld [vmem:[%s1612_s25 + $0x8] sm:$0xff] (%p1756_p11)  ;;  %859 = vst [vmem:[%s845_s5] sm:$0xff] (%p1756_p11), %v858_v48 }
 0x193   : > { %v862_v50 = vld [vmem:[%s1612_s25 + $0x10] sm:$0xff] (%p1756_p11)  ;;  %861 = vst [vmem:[%s845_s5 + $0x8] sm:$0xff] (%p1756_p11), %v860_v49 }
 0x194   : > { %v864_v51 = vld [vmem:[%s1612_s25 + $0x18] sm:$0xff] (%p1756_p11)  ;;  %863 = vst [vmem:[%s845_s5 + $0x100] sm:$0xff] (%p1756_p11), %v862_v50 }
 0x195   : > { %865 = vst [vmem:[%s845_s5 + $0x108] sm:$0xff] (%p1756_p11), %v864_v51 }
 0x197 PF: > { %s16_s23 = sadd.s32 1, %s1410_s23   ;;  %s1757_s20 = sld [smem:[#allocation11_spill]] }
 0x198   : > { %p13_p13 = scmp.ge.s32.totalorder %s16_s23, 290   ;;  %s1758_s28 = sld [smem:[#allocation8_spill]] }
 0x199   : > { %s1759_s0 = sld [smem:[#allocation9_spill]]  ;;  %s1760_s22 = sld [smem:[#allocation10_spill]] }
 0x19a   : > { %s1761_s12 = smov %s1370_s13  ;;  %s1762_s13 = smov %s1540_s11 }
 0x19b   : > { %s1763_s14 = smov %s1378_s15  ;;  %s1764_s15 = smov %s1382_s16 }
 0x19c   : > { %s1765_s16 = smov %s1532_s8  ;;  %s1766_s17 = smov %s1390_s18 }
 0x19d   : > { %s1767_s18 = smov %s1757_s20  ;;  %s1768_s19 = smov %s1402_s21 }
 0x19e   : > { %s1769_s20 = smov %s1758_s28  ;;  %15 = sbr.rel (!%p13_p13) target bundleno = 9 (0x9), region = 137 }
 0x19f   : > { %s1770_s21 = smov %s1759_s0 }
 0x1a5   :  { %881 = vsyncpa [#allocation5], 1 }
 0x1a6   :  { %883 = vsyncpa [#allocation5 + $0x1], 1 }

// kernel: alexnet_forward.20
= control target key start
LH: loop header
LB: loop body
LE: loop exit
PB: predicated region body
PF: predicated region fallthrough
CT: control target
= control target key end

     0   :  { %s2356_s0 = inlined_call_operand.hbm [shape: bf16[16,4096], index: 0, kind: input, shape index: {}]   ;;  %s2357_s1 = inlined_call_operand.vmem [shape: bf16[4096,4096], index: 1, kind: input, shape index: {}]   ;;  %s2358_s2 = inlined_call_operand.hbm [shape: f32[1,4096], index: 2, kind: input, shape index: {}]   ;;  %s2359_s3 = inlined_call_operand.hbm [shape: f32[16,4096], index: 3, kind: output, shape index: {}]  }
   0x1   :  { %2373 = sst [smem:[#allocation23_spill]] %s2356_s0 }
   0x2   :  { %2374 = sst [smem:[#allocation24_spill]] %s2359_s3 }
   0x3   :  { %8 = vsyncpa [#allocation4], 0 }
   0x4   :  { %10 = vsyncpa [#allocation4 + $0x1], 0 }
   0x5   :  { %11 = vsyncpa [#allocation8], 0 }
   0x6   :  { %13 = vsyncpa [#allocation8 + $0x1], 0 }
   0x7   :  { %14 = vsyncpa [#allocation5], 0 }
   0x8   :  { %16 = vsyncpa [#allocation5 + $0x1], 0  ;;  %s1829_s12 = smov 0   ;;  %s1831_s13 = smov 0  }
   0x9   :  { %s1833_s14 = smov 0   ;;  %s1835_s15 = smov 0  }
   0xa   :  { %s1837_s16 = smov 0   ;;  %s1839_s17 = smov 0  }
   0xb   :  { %s1841_s18 = smov 0   ;;  %s1843_s19 = smov 0  }
   0xc   :  { %s1845_s20 = smov 0   ;;  %s1847_s21 = smov 0  }
   0xd   :  { %s1849_s22 = smov 0   ;;  %s1851_s23 = smov 0  }
   0xe   :  { %s1853_s24 = smov 0  }
   0xf LB: > { %2375 = sst [smem:[#allocation13_spill]] %s1749_s12  ;;  %s2360_s25 = sadd.s32 4294967295, %s1797_s24   ;;  %s1797_s24 = sphi %s1853_s24, %s22_s24   ;;  %s1793_s23 = sphi %s1851_s23, %s2423_s23   ;;  %s1789_s22 = sphi %s1849_s22, %s2422_s22   ;;  %s1785_s21 = sphi %s1847_s21, %s2421_s21   ;;  %s1781_s20 = sphi %s1845_s20, %s2420_s20   ;;  %s1777_s19 = sphi %s1843_s19, %s2410_s19   ;;  %s1773_s18 = sphi %s1841_s18, %s2419_s18   ;;  %s1769_s17 = sphi %s1839_s17, %s2418_s17   ;;  %s1765_s16 = sphi %s1837_s16, %s2417_s16   ;;  %s1761_s15 = sphi %s1835_s15, %s2416_s15   ;;  %s1757_s14 = sphi %s1833_s14, %s2415_s14   ;;  %s1753_s13 = sphi %s1831_s13, %s2414_s13   ;;  %s1749_s12 = sphi %s1829_s12, %s2413_s12  }
  0x10   : > { %2376 = sst [smem:[#allocation14_spill]] %s1777_s19  ;;  %s34_s27 = sadd.s32 1, %s1789_s22 }
  0x11   : > { %2377 = sst [smem:[#allocation15_spill]] %s1785_s21  ;;  %s37_s28 = sadd.s32 1, %s1793_s23 }
  0x12   : > { %p35_p0 = scmp.ge.s32.totalorder %s34_s27, 8  ;;  %s50_s29 = sadd.s32 1, %s1777_s19 }
  0x13   : > { %p57_p1 = scmp.ne.s32.totalorder %s1777_s19, %s1773_s18  ;;  %p58_p2 = scmp.eq.s32.totalorder %s1797_s24, 0 }
  0x14   : > { %s2425_s27 = smov (%p35_p0, %s34_s27), 0  ;;  %s2427_s28 = smov (!%p35_p0, %s37_s28), %s1793_s23 }
  0x15   : > { %2378 = sst [smem:[#allocation16_spill]] %s2425_s27  ;;  %s46_s30 = ssub.s32 %s1789_s22, %s2425_s27 }
  0x16   : > { %p1907_p3 = por %p58_p2, %p57_p1  ;;  %p39_p4 = scmp.ge.s32.totalorder %s2427_s28, 16 }
  0x17   : > { %p48_p5 = scmp.eq.s32.totalorder %s46_s30, 0  ;;  %p63_p6 = scmp.ne.s32.totalorder %s1773_s18, %s1769_s17 }
  0x18   : > { %p1914_p7 = scmp.eq.s32.totalorder %s2360_s25, 0  ;;  %s2429_s28 = smov (%p39_p4, %s2427_s28), 0 }
  0x19   : > { %2381 = sst [smem:[#allocation17_spill]] %s2429_s28  ;;  %s74_s8 = ssub.s32 %s1793_s23, %s2429_s28 }
  0x1a   : > { %s1921_s6 = scalar_select %p48_p5, %s1777_s19, %s50_s29  }
  0x1b   : > { %p1925_p8 = por %p1914_p7, %p63_p6  ;;  %s75_s9 = sor.u32 %s74_s8, %s46_s30 }
  0x1c   : > { %2382 = sst [smem:[#allocation18_spill]] %s1921_s6  ;;  %s78_s10 = sadd.s32 1, %s1765_s16 }
  0x1d   : > { %s2383_s7 = scalar_select %p1925_p8, 1, 0 }
  0x1e   : > { %p76_p9 = scmp.eq.s32.totalorder %s75_s9, 0  ;;  %p85_p10 = scmp.ne.s32.totalorder %s1765_s16, %s1761_s15 }
  0x1f   : > { %p102_p11 = scmp.eq.s32.totalorder %s74_s8, 0  ;;  %s104_s11 = sadd.s32 1, %s1757_s14 }
  0x20   : > { %s1936_s17 = scalar_select %p76_p9, %s1765_s16, %s78_s10  }
  0x21   : > { %p1940_p12 = por %p85_p10, %p58_p2  ;;  %p111_p13 = scmp.ne.s32.totalorder %s1757_s14, %s1753_s13 }
  0x22   : > { %2384 = sst [smem:[#allocation19_spill]] %s1936_s17  ;;  %p117_p1 = scmp.ne.s32.totalorder %s1753_s13, %s1749_s12 }
  0x23   : > { %s1947_s26 = scalar_select %p102_p11, %s1757_s14, %s104_s11  }
  0x24   : > { %p1951_p0 = por %p111_p13, %p58_p2  ;;  %s2388_s30 = sadd.s32 4294967295, %s1797_s24  }
  0x25   : > { %2386 = sst [smem:[#allocation20_spill]] %s1947_s26  ;;  %p143_p4 = scmp.eq.s32.totalorder %s2388_s30, 127 }
  0x26   : > { %s2387_s25 = scalar_select %p1951_p0, 1, 0 }
  0x27   : > { %s2389_s8 = sadd.s32 4294967294, %s1797_s24   ;;  %p1963_p6 = por %p117_p1, %p1914_p7 }
  0x28   : > { %p149_p5 = scmp.eq.s32.totalorder %s2389_s8, 127  ;;  %p1967_p9 = por %p143_p4, %p111_p13 }
  0x29   : > { %s2390_s9 = scalar_select %p1963_p6, 1, 0 }
  0x2a   : > { %s2391_s10 = scalar_select %p1967_p9, 1, 0 }
  0x2b   : > { %p1971_p10 = por %p149_p5, %p117_p1  ;;  %p1275_p2 = scmp.ge.s32.totalorder %s1797_s24, 128 }
  0x2c   : > { %2392 = sst [smem:[#allocation21_spill]] %s2391_s10  ;;  %s169_s30 = sand.u32 (!%p1275_p2), 1, %s1777_s19  }
  0x2d   : > { %s2393_s11 = scalar_select %p1971_p10, 1, 0 }
  0x2e   : > { %165 = sbr.rel (%p1275_p2) target bundleno = 174 (0xae), region = 16  ;;  %s1367_s5 = sshll.u32 (!%p1275_p2), %s1789_s22, 8 }
  0x2f   : > { %2394 = sst [smem:[#allocation22_spill]] %s2393_s11  ;;  %s1276_s8 = sshll.u32 (!%p1275_p2), %s169_s30, 5 }
  0x30   : > { %s2395_s0 = sld [smem:[#allocation23_spill]] (!%p1275_p2)  ;;  %s173_s17 = scalar_lea.vmem (!%p1275_p2), [#allocation3], %s1276_s8 }
  0x31   : > { %s183_s26 = sshll.u32 (!%p1275_p2), %s173_s17, 4  ;;  %s1985_s11 = scalar_lea.sflag (!%p1275_p2), [#allocation4], %s169_s30  ;;  %s1983_s26 = int_to_ptr.vmem [resolvable:$true] %s183_s26 }
  0x36   : > { %s1981_s6 = scalar_lea.hbm %s2395_s0, %s1367_s5  ;;  %s1603_s27 = scalar_lea.hbm %s2395_s0, 4096 }
  0x37   : > { %s1599_s12 = scalar_lea.hbm %s1981_s6, 512  ;;  %p1604_p1 = scmp.lt.u32.totalorder %s1981_s6, %s2395_s0 }
  0x38   : > { %p1600_p7 = scmp.ne.s32.totalorder %s1981_s6, %s1599_s12  ;;  %p1605_p4 = scmp.lt.u32.totalorder %s1603_s27, %s1599_s12 }
  0x39   : > { %p1607_p2 = scmp.lt.u32.totalorder %s1599_s12, %s1981_s6 }
  0x3a   : > { %p1601_p11 = pnand %p1600_p7, %p1907_p3  ;;  %p1606_p5 = por %p1605_p4, %p1604_p1 }
  0x3c   : > { %p1602_p13 = pneg %p1601_p11  ;;  %p1608_p10 = por %p1607_p2, %p1606_p5 }
  0x3e   : > { %p1609_p9 = pnand %p1608_p10, %p1602_p13 }
  0x40   : > { %1612 = shalt.err (!%p1609_p9)
}
  0x41   : > { %s1613_s17 = scalar_lea.vmem %s1983_s26, 512  ;;  %s1799_s3 = smov [#allocation3]  }
  0x42   : > { %p1614_p7 = scmp.ne.s32.totalorder %s1983_s26, %s1613_s17  ;;  %s1617_s19 = sshll.u32 %s1799_s3, 4  ;;  %s1618_s19 = int_to_ptr.vmem [resolvable:$false] %s1617_s19 }
  0x43   : > { %s1619_s30 = scalar_lea.vmem %s1618_s19, 1024  ;;  %p1620_p8 = scmp.lt.s32.totalorder %s1983_s26, %s1618_s19 }
  0x44   : > { %p1615_p11 = pnand %p1614_p7, %p1907_p3  ;;  %p1621_p0 = scmp.lt.s32.totalorder %s1619_s30, %s1613_s17 }
  0x46   : > { %p1616_p6 = pneg %p1615_p11  ;;  %p1622_p1 = por %p1621_p0, %p1620_p8 }
  0x48   : > { %p1623_p4 = pnand %p1622_p1, %p1616_p6 }
  0x4a   : > { %1626 = shalt.err (!%p1623_p4)
}
  0x4b   : > { %s1800_s12 = smov 2048   ;;  %s1801_s8 = smov 256  }
  0x4c   : > { %s1802_s27 = smov 16   ;;  %192 = sbr.rel (!%p1940_p12) target bundleno = 148 (0x94), region = 24 }
  0x4d   : > { %1375 = dma.hbm_to_vmem [thread:$0]  (%p1907_p3), %s1981_s6, 512, %s1983_s26, %s1985_s11, %s1800_s12, %s1801_s8, %s1802_s27  }
  0x4e   : > { %s194_s28 = sand.u32 (%p1940_p12), 1, %s1765_s16   ;;  %s1281_s5 = sshll.u32 (%p1940_p12), %s1793_s23, 1 }
  0x4f   : > { %s1279_s17 = sshll.u32 (%p1940_p12), %s194_s28, 9  ;;  %s1368_s3 = sshll.u32 (%p1940_p12), %s1789_s22, 11 }
  0x50   : > { %s200_s19 = sadd.s32 (%p1940_p12), %s1368_s3, %s1281_s5  ;;  %s2022_s26 = scalar_lea.vmem (%p1940_p12), [#allocation6], %s1279_s17 }
  0x51   : > { %s1283_s30 = sshll.u32 (%p1940_p12), %s200_s19, 2 }
  0x52   : > { %s2017_s21 = scalar_lea.vmem (%p1940_p12), %s2357_s1, %s1283_s30 }
  0x53   : > { %v356_v0 = vld [vmem:[%s2017_s21] sm:$0xff] }
  0x54   : > { %v358_v1 = vld [vmem:[%s2017_s21 + $0x80] sm:$0xff]  ;;  %357 = vst [vmem:[%s2022_s26] sm:$0xff] %v356_v0 }
  0x55   : > { %v360_v2 = vld [vmem:[%s2017_s21 + $0x100] sm:$0xff]  ;;  %359 = vst [vmem:[%s2022_s26 + $0x8] sm:$0xff] %v358_v1 }
  0x56   : > { %361 = vst [vmem:[%s2022_s26 + $0x10] sm:$0xff] %v360_v2  ;;  %v362_v3 = vld [vmem:[%s2017_s21 + $0x180] sm:$0xff] }
  0x57   : > { %v364_v4 = vld [vmem:[%s2017_s21 + $0x200] sm:$0xff]  ;;  %363 = vst [vmem:[%s2022_s26 + $0x18] sm:$0xff] %v362_v3 }
  0x58   : > { %v366_v5 = vld [vmem:[%s2017_s21 + $0x280] sm:$0xff]  ;;  %365 = vst [vmem:[%s2022_s26 + $0x20] sm:$0xff] %v364_v4 }
  0x59   : > { %367 = vst [vmem:[%s2022_s26 + $0x28] sm:$0xff] %v366_v5  ;;  %v368_v6 = vld [vmem:[%s2017_s21 + $0x300] sm:$0xff] }
  0x5a   : > { %v370_v7 = vld [vmem:[%s2017_s21 + $0x380] sm:$0xff]  ;;  %369 = vst [vmem:[%s2022_s26 + $0x30] sm:$0xff] %v368_v6 }
  0x5b   : > { %v372_v8 = vld [vmem:[%s2017_s21 + $0x400] sm:$0xff]  ;;  %371 = vst [vmem:[%s2022_s26 + $0x38] sm:$0xff] %v370_v7 }
  0x5c   : > { %373 = vst [vmem:[%s2022_s26 + $0x40] sm:$0xff] %v372_v8  ;;  %v374_v9 = vld [vmem:[%s2017_s21 + $0x480] sm:$0xff] }
  0x5d   : > { %v376_v10 = vld [vmem:[%s2017_s21 + $0x500] sm:$0xff]  ;;  %375 = vst [vmem:[%s2022_s26 + $0x48] sm:$0xff] %v374_v9 }
  0x5e   : > { %v378_v11 = vld [vmem:[%s2017_s21 + $0x580] sm:$0xff]  ;;  %377 = vst [vmem:[%s2022_s26 + $0x50] sm:$0xff] %v376_v10 }
  0x5f   : > { %379 = vst [vmem:[%s2022_s26 + $0x58] sm:$0xff] %v378_v11  ;;  %v380_v12 = vld [vmem:[%s2017_s21 + $0x600] sm:$0xff] }
  0x60   : > { %v382_v13 = vld [vmem:[%s2017_s21 + $0x680] sm:$0xff]  ;;  %381 = vst [vmem:[%s2022_s26 + $0x60] sm:$0xff] %v380_v12 }
  0x61   : > { %v384_v14 = vld [vmem:[%s2017_s21 + $0x700] sm:$0xff]  ;;  %383 = vst [vmem:[%s2022_s26 + $0x68] sm:$0xff] %v382_v13 }
  0x62   : > { %385 = vst [vmem:[%s2022_s26 + $0x70] sm:$0xff] %v384_v14  ;;  %v386_v15 = vld [vmem:[%s2017_s21 + $0x780] sm:$0xff] }
  0x63   : > { %v388_v16 = vld [vmem:[%s2017_s21 + $0x800] sm:$0xff]  ;;  %387 = vst [vmem:[%s2022_s26 + $0x78] sm:$0xff] %v386_v15 }
  0x64   : > { %v390_v17 = vld [vmem:[%s2017_s21 + $0x880] sm:$0xff]  ;;  %389 = vst [vmem:[%s2022_s26 + $0x80] sm:$0xff] %v388_v16 }
  0x65   : > { %391 = vst [vmem:[%s2022_s26 + $0x88] sm:$0xff] %v390_v17  ;;  %v392_v18 = vld [vmem:[%s2017_s21 + $0x900] sm:$0xff] }
  0x66   : > { %v394_v19 = vld [vmem:[%s2017_s21 + $0x980] sm:$0xff]  ;;  %393 = vst [vmem:[%s2022_s26 + $0x90] sm:$0xff] %v392_v18 }
  0x67   : > { %v396_v20 = vld [vmem:[%s2017_s21 + $0xa00] sm:$0xff]  ;;  %395 = vst [vmem:[%s2022_s26 + $0x98] sm:$0xff] %v394_v19 }
  0x68   : > { %397 = vst [vmem:[%s2022_s26 + $0xa0] sm:$0xff] %v396_v20  ;;  %v398_v21 = vld [vmem:[%s2017_s21 + $0xa80] sm:$0xff] }
  0x69   : > { %v400_v22 = vld [vmem:[%s2017_s21 + $0xb00] sm:$0xff]  ;;  %399 = vst [vmem:[%s2022_s26 + $0xa8] sm:$0xff] %v398_v21 }
  0x6a   : > { %v402_v23 = vld [vmem:[%s2017_s21 + $0xb80] sm:$0xff]  ;;  %401 = vst [vmem:[%s2022_s26 + $0xb0] sm:$0xff] %v400_v22 }
  0x6b   : > { %403 = vst [vmem:[%s2022_s26 + $0xb8] sm:$0xff] %v402_v23  ;;  %v404_v24 = vld [vmem:[%s2017_s21 + $0xc00] sm:$0xff] }
  0x6c   : > { %v406_v25 = vld [vmem:[%s2017_s21 + $0xc80] sm:$0xff]  ;;  %405 = vst [vmem:[%s2022_s26 + $0xc0] sm:$0xff] %v404_v24 }
  0x6d   : > { %v408_v26 = vld [vmem:[%s2017_s21 + $0xd00] sm:$0xff]  ;;  %407 = vst [vmem:[%s2022_s26 + $0xc8] sm:$0xff] %v406_v25 }
  0x6e   : > { %409 = vst [vmem:[%s2022_s26 + $0xd0] sm:$0xff] %v408_v26  ;;  %v410_v27 = vld [vmem:[%s2017_s21 + $0xd80] sm:$0xff] }
  0x6f   : > { %v412_v28 = vld [vmem:[%s2017_s21 + $0xe00] sm:$0xff]  ;;  %411 = vst [vmem:[%s2022_s26 + $0xd8] sm:$0xff] %v410_v27 }
  0x70   : > { %v414_v29 = vld [vmem:[%s2017_s21 + $0xe80] sm:$0xff]  ;;  %413 = vst [vmem:[%s2022_s26 + $0xe0] sm:$0xff] %v412_v28 }
  0x71   : > { %415 = vst [vmem:[%s2022_s26 + $0xe8] sm:$0xff] %v414_v29  ;;  %v416_v30 = vld [vmem:[%s2017_s21 + $0xf00] sm:$0xff] }
  0x72   : > { %v418_v31 = vld [vmem:[%s2017_s21 + $0xf80] sm:$0xff]  ;;  %417 = vst [vmem:[%s2022_s26 + $0xf0] sm:$0xff] %v416_v30 }
  0x73   : > { %v420_v32 = vld [vmem:[%s2017_s21 + $0x1000] sm:$0xff]  ;;  %419 = vst [vmem:[%s2022_s26 + $0xf8] sm:$0xff] %v418_v31 }
  0x74   : > { %421 = vst [vmem:[%s2022_s26 + $0x100] sm:$0xff] %v420_v32  ;;  %v422_v33 = vld [vmem:[%s2017_s21 + $0x1080] sm:$0xff] }
  0x75   : > { %v424_v34 = vld [vmem:[%s2017_s21 + $0x1100] sm:$0xff]  ;;  %423 = vst [vmem:[%s2022_s26 + $0x108] sm:$0xff] %v422_v33 }
  0x76   : > { %v426_v35 = vld [vmem:[%s2017_s21 + $0x1180] sm:$0xff]  ;;  %425 = vst [vmem:[%s2022_s26 + $0x110] sm:$0xff] %v424_v34 }
  0x77   : > { %427 = vst [vmem:[%s2022_s26 + $0x118] sm:$0xff] %v426_v35  ;;  %v428_v36 = vld [vmem:[%s2017_s21 + $0x1200] sm:$0xff] }
  0x78   : > { %v430_v37 = vld [vmem:[%s2017_s21 + $0x1280] sm:$0xff]  ;;  %429 = vst [vmem:[%s2022_s26 + $0x120] sm:$0xff] %v428_v36 }
  0x79   : > { %v432_v38 = vld [vmem:[%s2017_s21 + $0x1300] sm:$0xff]  ;;  %431 = vst [vmem:[%s2022_s26 + $0x128] sm:$0xff] %v430_v37 }
  0x7a   : > { %433 = vst [vmem:[%s2022_s26 + $0x130] sm:$0xff] %v432_v38  ;;  %v434_v39 = vld [vmem:[%s2017_s21 + $0x1380] sm:$0xff] }
  0x7b   : > { %v436_v40 = vld [vmem:[%s2017_s21 + $0x1400] sm:$0xff]  ;;  %435 = vst [vmem:[%s2022_s26 + $0x138] sm:$0xff] %v434_v39 }
  0x7c   : > { %v438_v41 = vld [vmem:[%s2017_s21 + $0x1480] sm:$0xff]  ;;  %437 = vst [vmem:[%s2022_s26 + $0x140] sm:$0xff] %v436_v40 }
  0x7d   : > { %439 = vst [vmem:[%s2022_s26 + $0x148] sm:$0xff] %v438_v41  ;;  %v440_v42 = vld [vmem:[%s2017_s21 + $0x1500] sm:$0xff] }
  0x7e   : > { %v442_v43 = vld [vmem:[%s2017_s21 + $0x1580] sm:$0xff]  ;;  %441 = vst [vmem:[%s2022_s26 + $0x150] sm:$0xff] %v440_v42 }
  0x7f   : > { %v444_v44 = vld [vmem:[%s2017_s21 + $0x1600] sm:$0xff]  ;;  %443 = vst [vmem:[%s2022_s26 + $0x158] sm:$0xff] %v442_v43 }
  0x80   : > { %445 = vst [vmem:[%s2022_s26 + $0x160] sm:$0xff] %v444_v44  ;;  %v446_v45 = vld [vmem:[%s2017_s21 + $0x1680] sm:$0xff] }
  0x81   : > { %v448_v46 = vld [vmem:[%s2017_s21 + $0x1700] sm:$0xff]  ;;  %447 = vst [vmem:[%s2022_s26 + $0x168] sm:$0xff] %v446_v45 }
  0x82   : > { %v450_v47 = vld [vmem:[%s2017_s21 + $0x1780] sm:$0xff]  ;;  %449 = vst [vmem:[%s2022_s26 + $0x170] sm:$0xff] %v448_v46 }
  0x83   : > { %451 = vst [vmem:[%s2022_s26 + $0x178] sm:$0xff] %v450_v47  ;;  %v452_v48 = vld [vmem:[%s2017_s21 + $0x1800] sm:$0xff] }
  0x84   : > { %v454_v49 = vld [vmem:[%s2017_s21 + $0x1880] sm:$0xff]  ;;  %453 = vst [vmem:[%s2022_s26 + $0x180] sm:$0xff] %v452_v48 }
  0x85   : > { %v456_v50 = vld [vmem:[%s2017_s21 + $0x1900] sm:$0xff]  ;;  %455 = vst [vmem:[%s2022_s26 + $0x188] sm:$0xff] %v454_v49 }
  0x86   : > { %457 = vst [vmem:[%s2022_s26 + $0x190] sm:$0xff] %v456_v50  ;;  %v458_v51 = vld [vmem:[%s2017_s21 + $0x1980] sm:$0xff] }
  0x87   : > { %v460_v52 = vld [vmem:[%s2017_s21 + $0x1a00] sm:$0xff]  ;;  %459 = vst [vmem:[%s2022_s26 + $0x198] sm:$0xff] %v458_v51 }
  0x88   : > { %v462_v53 = vld [vmem:[%s2017_s21 + $0x1a80] sm:$0xff]  ;;  %461 = vst [vmem:[%s2022_s26 + $0x1a0] sm:$0xff] %v460_v52 }
  0x89   : > { %463 = vst [vmem:[%s2022_s26 + $0x1a8] sm:$0xff] %v462_v53  ;;  %v464_v54 = vld [vmem:[%s2017_s21 + $0x1b00] sm:$0xff] }
  0x8a   : > { %v466_v55 = vld [vmem:[%s2017_s21 + $0x1b80] sm:$0xff]  ;;  %465 = vst [vmem:[%s2022_s26 + $0x1b0] sm:$0xff] %v464_v54 }
  0x8b   : > { %v468_v56 = vld [vmem:[%s2017_s21 + $0x1c00] sm:$0xff]  ;;  %467 = vst [vmem:[%s2022_s26 + $0x1b8] sm:$0xff] %v466_v55 }
  0x8c   : > { %469 = vst [vmem:[%s2022_s26 + $0x1c0] sm:$0xff] %v468_v56  ;;  %v470_v57 = vld [vmem:[%s2017_s21 + $0x1c80] sm:$0xff] }
  0x8d   : > { %v472_v58 = vld [vmem:[%s2017_s21 + $0x1d00] sm:$0xff]  ;;  %471 = vst [vmem:[%s2022_s26 + $0x1c8] sm:$0xff] %v470_v57 }
  0x8e   : > { %v474_v59 = vld [vmem:[%s2017_s21 + $0x1d80] sm:$0xff]  ;;  %473 = vst [vmem:[%s2022_s26 + $0x1d0] sm:$0xff] %v472_v58 }
  0x8f   : > { %475 = vst [vmem:[%s2022_s26 + $0x1d8] sm:$0xff] %v474_v59  ;;  %v476_v60 = vld [vmem:[%s2017_s21 + $0x1e00] sm:$0xff] }
  0x90   : > { %v478_v61 = vld [vmem:[%s2017_s21 + $0x1e80] sm:$0xff]  ;;  %477 = vst [vmem:[%s2022_s26 + $0x1e0] sm:$0xff] %v476_v60 }
  0x91   : > { %v480_v62 = vld [vmem:[%s2017_s21 + $0x1f00] sm:$0xff]  ;;  %479 = vst [vmem:[%s2022_s26 + $0x1e8] sm:$0xff] %v478_v61 }
  0x92   : > { %481 = vst [vmem:[%s2022_s26 + $0x1f0] sm:$0xff] %v480_v62  ;;  %v482_v63 = vld [vmem:[%s2017_s21 + $0x1f80] sm:$0xff] }
  0x93   : > { %483 = vst [vmem:[%s2022_s26 + $0x1f8] sm:$0xff] %v482_v63 }
  0x94 PF: > { %s490_s0 = sand.u32 1, %s1757_s14   ;;  %s1369_s4 = sshll.u32 %s1793_s23, 5 }
  0x95   : > { %s1284_s6 = sshll.u32 %s490_s0, 1  ;;  %s2154_s11 = scalar_lea.hbm %s2358_s2, %s1369_s4 }
  0x96   : > { %s494_s12 = scalar_lea.vmem [#allocation7], %s1284_s6  ;;  %s491_s21 = scalar_lea.sflag [#allocation8], %s490_s0 }
  0x97   : > { %s502_s8 = sshll.u32 %s494_s12, 4  ;;  %s1627_s27 = scalar_lea.hbm %s2154_s11, 32  ;;  %s503_s8 = int_to_ptr.vmem [resolvable:$true] %s502_s8 }
  0x98   : > { %p1628_p3 = scmp.ne.s32.totalorder %s2154_s11, %s1627_s27  ;;  %p2396_p8 = scmp.ne.s32.totalorder %s2387_s25, 0 }
  0x99   : > { %s1631_s17 = scalar_lea.hbm %s2358_s2, 512  ;;  %p1632_p6 = scmp.lt.u32.totalorder %s2154_s11, %s2358_s2 }
  0x9a   : > { %p1629_p12 = pnand %p1628_p3, %p2396_p8  ;;  %p1633_p9 = scmp.lt.u32.totalorder %s1631_s17, %s1627_s27 }
  0x9b   : > { %p1635_p13 = scmp.lt.u32.totalorder %s1627_s27, %s2154_s11 }
  0x9c   : > { %p1630_p0 = pneg %p1629_p12  ;;  %p1634_p10 = por %p1633_p9, %p1632_p6 }
  0x9e   : > { %p1636_p5 = por %p1635_p13, %p1634_p10 }
  0xa0   : > { %p1637_p2 = pnand %p1636_p5, %p1630_p0 }
  0xa2   : > { %1640 = shalt.err (!%p1637_p2)
}
  0xa3   : > { %s1641_s30 = scalar_lea.vmem %s503_s8, 32  ;;  %s1803_s26 = smov [#allocation7]  }
  0xa4   : > { %p1642_p7 = scmp.ne.s32.totalorder %s503_s8, %s1641_s30  ;;  %s1645_s0 = sshll.u32 %s1803_s26, 4  ;;  %s1646_s0 = int_to_ptr.vmem [resolvable:$false] %s1645_s0 }
  0xa5   : > { %s1647_s4 = scalar_lea.vmem %s1646_s0, 64  ;;  %p1648_p4 = scmp.lt.s32.totalorder %s503_s8, %s1646_s0 }
  0xa6   : > { %p1643_p11 = pnand %p1642_p7, %p2396_p8  ;;  %p1649_p3 = scmp.lt.s32.totalorder %s1647_s4, %s1641_s30 }
  0xa8   : > { %p1644_p1 = pneg %p1643_p11  ;;  %p1650_p12 = por %p1649_p3, %p1648_p4 }
  0xaa   : > { %p1651_p6 = pnand %p1650_p12, %p1644_p1 }
  0xac   : > { %1654 = shalt.err (!%p1651_p6)
}
  0xad   : > { %1376 = dma.hbm_to_vmem [thread:$0]  (%p2396_p8), %s2154_s11, 32, %s503_s8, %s491_s21  }
  0xae PF: > { %p1287_p0 = scmp.ge.s32.totalorder %s1797_s24, 1  ;;  %p507_p9 = scmp.lt.s32.totalorder %s1797_s24, 129 }
  0xb0   : > { %p508_p10 = pnand %p1287_p0, %p507_p9 }
  0xb1   : > { %s513_s6 = sand.u32 (!%p508_p10), 1, %s1773_s18   ;;  %p2397_p13 = scmp.ne.s32.totalorder (!%p508_p10), %s2383_s7, 0 }
  0xb2   : > { %511 = sbr.rel (%p508_p10) target bundleno = 528 (0x210), region = 66  ;;  %s1288_s29 = sshll.u32 (!%p508_p10), %s513_s6, 5 }
  0xb3   : > { %s514_s10 = scalar_lea.sflag (!%p508_p10), [#allocation4], %s513_s6  ;;  %s2176_s12 = scalar_lea.vmem (!%p508_p10), [#allocation3], %s1288_s29 }
  0xb9   : > { %1736 = dma.done.wait (%p2397_p13), %s514_s10, 512  }
  0xba   : > { %1738 = vsyncadd (%p2397_p13), %s514_s10, 4294966784  ;;  %s523_s25 = sand.u32 1, %s1761_s15   ;;  %s2184_s11 = sand.u32 1, %s1753_s13  }
  0xbb   : > { %s1289_s8 = sshll.u32 %s523_s25, 9  ;;  %s1290_s21 = sshll.u32 %s2184_s11, 1 }
  0xbc   : > { %s2187_s27 = scalar_lea.vmem [#allocation6], %s1289_s8  ;;  %s530_s28 = scalar_lea.sflag [#allocation8], %s2184_s11 }
  0xbd   : > { %s2190_s5 = scalar_lea.vmem [#allocation7], %s1290_s21  ;;  %p2398_p8 = scmp.ne.s32.totalorder %s2390_s9, 0 }
  0xbf   : > { %1740 = dma.done.wait (%p2398_p8), %s530_s28, 32  }
  0xc0   : > { %1742 = vsyncadd (%p2398_p8), %s530_s28, 4294967264  ;;  %s1291_s7 = sshll.u32 %s2184_s11, 5  ;;  %p1292_p5 = scmp.ne.s32.totalorder %s1781_s20, 0 }
  0xc1   : > { %s2197_s17 = scalar_lea.vmem [#allocation9], %s1291_s7  ;;  %v1804_v0 = vmov (!%p1292_p5), 0.0  }
  0xc2   : > { %575 = sbr.rel (%p1292_p5) target bundleno = 201 (0xc9), region = 82  ;;  %576 = vst [vmem:[#allocation2] sm:$0xff] (!%p1292_p5), %v1804_v0  ;;  %577 = vst [vmem:[#allocation2 + $0x8] sm:$0xff] (!%p1292_p5), %v1804_v0 }
  0xc3   : > { %578 = vst [vmem:[#allocation2 + $0x10] sm:$0xff] (!%p1292_p5), %v1804_v0  ;;  %579 = vst [vmem:[#allocation2 + $0x18] sm:$0xff] (!%p1292_p5), %v1804_v0 }
  0xc9 PF: > { %v1497_v1 = vld [vmem:[%s2187_s27 + $0x4] ss:$8 sps:$4 sm:$0xff]   ;;  %v1501_v3 = vld [vmem:[%s2187_s27] ss:$8 sps:$4 sm:$0xff]   ;;  %v1503_v5 = vld [vmem:[%s2187_s27 + $0x14] ss:$8 sps:$4 sm:$0xff]  }
  0xca   : > { %v1499_v2 = vld [vmem:[%s2187_s27 + $0x104] ss:$8 sps:$4 sm:$0xff]   ;;  %992 = vmatprep.subr.bf16.mxu1 %v1497_v1  ;;  %v1502_v4 = vld [vmem:[%s2187_s27 + $0x100] ss:$8 sps:$4 sm:$0xff]   ;;  %v1505_v6 = vld [vmem:[%s2187_s27 + $0x114] ss:$8 sps:$4 sm:$0xff]  }
  0xcb   : > { %1035 = vmatprep.subr.bf16.mxu0 %v1499_v2  ;;  %993 = vmatpush1.bf16.msra.mxu1 %v1501_v3  ;;  %v1507_v7 = vld [vmem:[%s2187_s27 + $0x10] ss:$8 sps:$4 sm:$0xff]   ;;  %v1509_v9 = vld [vmem:[%s2187_s27 + $0x24] ss:$8 sps:$4 sm:$0xff]   ;;  %v1513_v11 = vld [vmem:[%s2187_s27 + $0x20] ss:$8 sps:$4 sm:$0xff]  }
  0xcc   : > { %1036 = vmatpush1.bf16.msra.mxu0 %v1502_v4  ;;  %994 = vmatprep.subr.bf16.mxu1 %v1503_v5  ;;  %v1508_v8 = vld [vmem:[%s2187_s27 + $0x110] ss:$8 sps:$4 sm:$0xff]   ;;  %v1511_v10 = vld [vmem:[%s2187_s27 + $0x124] ss:$8 sps:$4 sm:$0xff]   ;;  %v1514_v12 = vld [vmem:[%s2187_s27 + $0x120] ss:$8 sps:$4 sm:$0xff]  }
  0xcd   : > { %1037 = vmatprep.subr.bf16.mxu0 %v1505_v6  ;;  %v1515_v13 = vld [vmem:[%s2187_s27 + $0x34] ss:$8 sps:$4 sm:$0xff]   ;;  %v1519_v15 = vld [vmem:[%s2187_s27 + $0x30] ss:$8 sps:$4 sm:$0xff]   ;;  %v1521_v17 = vld [vmem:[%s2187_s27 + $0x44] ss:$8 sps:$4 sm:$0xff]  }
  0xce   : > { %v1517_v14 = vld [vmem:[%s2187_s27 + $0x134] ss:$8 sps:$4 sm:$0xff]   ;;  %v1520_v16 = vld [vmem:[%s2187_s27 + $0x130] ss:$8 sps:$4 sm:$0xff]   ;;  %v1523_v18 = vld [vmem:[%s2187_s27 + $0x144] ss:$8 sps:$4 sm:$0xff]  }
  0xcf   : > { %995 = vmatpush1.bf16.msra.mxu1 %v1507_v7  ;;  %v1525_v19 = vld [vmem:[%s2187_s27 + $0x40] ss:$8 sps:$4 sm:$0xff]   ;;  %v1527_v21 = vld [vmem:[%s2187_s27 + $0x54] ss:$8 sps:$4 sm:$0xff]   ;;  %v1531_v23 = vld [vmem:[%s2187_s27 + $0x50] ss:$8 sps:$4 sm:$0xff]  }
  0xd0   : > { %1038 = vmatpush1.bf16.msra.mxu0 %v1508_v8  ;;  %996 = vmatprep.subr.bf16.mxu1 %v1509_v9  ;;  %v1526_v20 = vld [vmem:[%s2187_s27 + $0x140] ss:$8 sps:$4 sm:$0xff]   ;;  %v1529_v22 = vld [vmem:[%s2187_s27 + $0x154] ss:$8 sps:$4 sm:$0xff]   ;;  %v1532_v24 = vld [vmem:[%s2187_s27 + $0x150] ss:$8 sps:$4 sm:$0xff]  }
  0xd1   : > { %1039 = vmatprep.subr.bf16.mxu0 %v1511_v10  ;;  %v1533_v25 = vld [vmem:[%s2187_s27 + $0x64] ss:$8 sps:$4 sm:$0xff]   ;;  %v1537_v27 = vld [vmem:[%s2187_s27 + $0x60] ss:$8 sps:$4 sm:$0xff]   ;;  %v1539_v29 = vld [vmem:[%s2187_s27 + $0x74] ss:$8 sps:$4 sm:$0xff]  }
  0xd2   : > { %v1535_v26 = vld [vmem:[%s2187_s27 + $0x164] ss:$8 sps:$4 sm:$0xff]   ;;  %v1538_v28 = vld [vmem:[%s2187_s27 + $0x160] ss:$8 sps:$4 sm:$0xff]   ;;  %v1541_v30 = vld [vmem:[%s2187_s27 + $0x174] ss:$8 sps:$4 sm:$0xff]  }
  0xd3   : > { %997 = vmatpush1.bf16.msra.mxu1 %v1513_v11  ;;  %v1543_v31 = vld [vmem:[%s2187_s27 + $0x70] ss:$8 sps:$4 sm:$0xff]   ;;  %v1545_v33 = vld [vmem:[%s2187_s27 + $0x84] ss:$8 sps:$4 sm:$0xff]   ;;  %v1549_v35 = vld [vmem:[%s2187_s27 + $0x80] ss:$8 sps:$4 sm:$0xff]  }
  0xd4   : > { %1040 = vmatpush1.bf16.msra.mxu0 %v1514_v12  ;;  %998 = vmatprep.subr.bf16.mxu1 %v1515_v13  ;;  %v1544_v32 = vld [vmem:[%s2187_s27 + $0x170] ss:$8 sps:$4 sm:$0xff]   ;;  %v1547_v34 = vld [vmem:[%s2187_s27 + $0x184] ss:$8 sps:$4 sm:$0xff]   ;;  %v1550_v36 = vld [vmem:[%s2187_s27 + $0x180] ss:$8 sps:$4 sm:$0xff]  }
  0xd5   : > { %1041 = vmatprep.subr.bf16.mxu0 %v1517_v14  ;;  %v1551_v37 = vld [vmem:[%s2187_s27 + $0x94] ss:$8 sps:$4 sm:$0xff]   ;;  %v1555_v39 = vld [vmem:[%s2187_s27 + $0x90] ss:$8 sps:$4 sm:$0xff]   ;;  %v1557_v41 = vld [vmem:[%s2187_s27 + $0xa4] ss:$8 sps:$4 sm:$0xff]  }
  0xd6   : > { %v1553_v38 = vld [vmem:[%s2187_s27 + $0x194] ss:$8 sps:$4 sm:$0xff]   ;;  %v1556_v40 = vld [vmem:[%s2187_s27 + $0x190] ss:$8 sps:$4 sm:$0xff]   ;;  %v1559_v42 = vld [vmem:[%s2187_s27 + $0x1a4] ss:$8 sps:$4 sm:$0xff]  }
  0xd7   : > { %999 = vmatpush1.bf16.msra.mxu1 %v1519_v15  ;;  %v1561_v43 = vld [vmem:[%s2187_s27 + $0xa0] ss:$8 sps:$4 sm:$0xff]   ;;  %v1563_v45 = vld [vmem:[%s2187_s27 + $0xb4] ss:$8 sps:$4 sm:$0xff]   ;;  %v1567_v47 = vld [vmem:[%s2187_s27 + $0xb0] ss:$8 sps:$4 sm:$0xff]  }
  0xd8   : > { %1042 = vmatpush1.bf16.msra.mxu0 %v1520_v16  ;;  %1000 = vmatprep.subr.bf16.mxu1 %v1521_v17  ;;  %v1562_v44 = vld [vmem:[%s2187_s27 + $0x1a0] ss:$8 sps:$4 sm:$0xff]   ;;  %v1565_v46 = vld [vmem:[%s2187_s27 + $0x1b4] ss:$8 sps:$4 sm:$0xff]   ;;  %v1568_v49 = vld [vmem:[%s2187_s27 + $0x1b0] ss:$8 sps:$4 sm:$0xff]  }
  0xd9   : > { %1043 = vmatprep.subr.bf16.mxu0 %v1523_v18  ;;  %v1595_v48 = vld [vmem:[%s2176_s12 + $0x4] ss:$16 sps:$4 sm:$0xff]   ;;  %v1598_v52 = vld [vmem:[%s2176_s12 + $0xc] ss:$16 sps:$4 sm:$0xff]   ;;  %v1573_v53 = vld [vmem:[%s2187_s27 + $0xc0] ss:$8 sps:$4 sm:$0xff]  }
  0xda   : > { %v1569_v50 = vld [vmem:[%s2187_s27 + $0xc4] ss:$8 sps:$4 sm:$0xff]   ;;  %1024 = vmatprep.mubr.bf16.mxu1 %v1595_v48  ;;  %1067 = vmatprep.mubr.bf16.mxu0 %v1598_v52  ;;  %v1574_v54 = vld [vmem:[%s2187_s27 + $0x1c0] ss:$8 sps:$4 sm:$0xff]   ;;  %v1575_v55 = vld [vmem:[%s2187_s27 + $0xd4] ss:$8 sps:$4 sm:$0xff]  }
  0xdb   : > { %1001 = vmatpush1.bf16.msra.mxu1 %v1525_v19  ;;  %v1571_v51 = vld [vmem:[%s2187_s27 + $0x1c4] ss:$8 sps:$4 sm:$0xff]   ;;  %v1577_v56 = vld [vmem:[%s2187_s27 + $0x1d4] ss:$8 sps:$4 sm:$0xff]   ;;  %v1579_v57 = vld [vmem:[%s2187_s27 + $0xd0] ss:$8 sps:$4 sm:$0xff]  }
  0xdc   : > { %1044 = vmatpush1.bf16.msra.mxu0 %v1526_v20  ;;  %1002 = vmatprep.subr.bf16.mxu1 %v1527_v21  ;;  %v1580_v58 = vld [vmem:[%s2187_s27 + $0x1d0] ss:$8 sps:$4 sm:$0xff]   ;;  %v1581_v59 = vld [vmem:[%s2187_s27 + $0xe4] ss:$8 sps:$4 sm:$0xff]   ;;  %v1585_v61 = vld [vmem:[%s2187_s27 + $0xe0] ss:$8 sps:$4 sm:$0xff]  }
  0xdd   : > { %1045 = vmatprep.subr.bf16.mxu0 %v1529_v22  ;;  %v1583_v60 = vld [vmem:[%s2187_s27 + $0x1e4] ss:$8 sps:$4 sm:$0xff]   ;;  %v1586_v62 = vld [vmem:[%s2187_s27 + $0x1e0] ss:$8 sps:$4 sm:$0xff]   ;;  %v1587_v63 = vld [vmem:[%s2187_s27 + $0xf4] ss:$8 sps:$4 sm:$0xff]  }
  0xde   : > { %v1589_v0 = vld [vmem:[%s2187_s27 + $0x1f4] ss:$8 sps:$4 sm:$0xff]   ;;  %v1591_v1 = vld [vmem:[%s2187_s27 + $0xf0] ss:$8 sps:$4 sm:$0xff]   ;;  %v580_v6 = vld [vmem:[#allocation2] sm:$0xff]  ;;  %p1361_p2 = scmp.ne.s32.totalorder %s1781_s20, 7 }
  0xdf   : > { %1003 = vmatpush1.bf16.msra.mxu1 %v1531_v23  ;;  %v1592_v2 = vld [vmem:[%s2187_s27 + $0x1f0] ss:$8 sps:$4 sm:$0xff]   ;;  %v581_v10 = vld [vmem:[#allocation2 + $0x8] sm:$0xff] }
  0xe0   : > { %1046 = vmatpush1.bf16.msra.mxu0 %v1532_v24  ;;  %1004 = vmatprep.subr.bf16.mxu1 %v1533_v25  ;;  %v1593_v3 = vld [vmem:[%s2176_s12] ss:$16 sps:$4 sm:$0xff]   ;;  %v1596_v4 = vld [vmem:[%s2176_s12 + $0x8] ss:$16 sps:$4 sm:$0xff]   ;;  %v1096_v25 = vlaneseq (!%p1361_p2) }
  0xe1   : > { %1047 = vmatprep.subr.bf16.mxu0 %v1535_v26  ;;  %v582_v14 = vld [vmem:[#allocation2 + $0x10] sm:$0xff]  ;;  %v583_v19 = vld [vmem:[#allocation2 + $0x18] sm:$0xff] }
  0xe2   : > { %v1097_v26 = vshrl.u32 (!%p1361_p2), %v1096_v25, 7 }
  0xe3   : > { %1005 = vmatpush1.bf16.msra.mxu1 %v1537_v27  ;;  %v1094_v27 = vld [vmem:[%s2190_s5] sm:$0x3] (!%p1361_p2) }
  0xe4   : > { %1048 = vmatpush1.bf16.msra.mxu0 %v1538_v28  ;;  %1006 = vmatprep.subr.bf16.mxu1 %v1539_v29  ;;  %v1098_v29 = vsub.s32 (!%p1361_p2), 0, %v1097_v26 }
  0xe5   : > { %1049 = vmatprep.subr.bf16.mxu0 %v1541_v30  ;;  %v1102_v30 = vsub.s32 (!%p1361_p2), 1, %v1097_v26 }
  0xe7   : > { %1007 = vmatpush1.bf16.msra.mxu1 %v1543_v31 }
  0xe8   : > { %1050 = vmatpush1.bf16.msra.mxu0 %v1544_v32  ;;  %1008 = vmatprep.subr.bf16.mxu1 %v1545_v33 }
  0xe9   : > { %1051 = vmatprep.subr.bf16.mxu0 %v1547_v34  ;;  %v1099_v34 = vrot.slane (!%p1361_p2), %v1094_v27, %v1098_v29 }
  0xeb   : > { %1009 = vmatpush1.bf16.msra.mxu1 %v1549_v35  ;;  %v1103_v35 = vrot.slane (!%p1361_p2), %v1094_v27, %v1102_v30 }
  0xec   : > { %1052 = vmatpush1.bf16.msra.mxu0 %v1550_v36  ;;  %1010 = vmatprep.subr.bf16.mxu1 %v1551_v37 }
  0xed   : > { %1053 = vmatprep.subr.bf16.mxu0 %v1553_v38 }
  0xef   : > { %1011 = vmatpush1.bf16.msra.mxu1 %v1555_v39 }
  0xf0   : > { %1054 = vmatpush1.bf16.msra.mxu0 %v1556_v40  ;;  %1012 = vmatprep.subr.bf16.mxu1 %v1557_v41 }
  0xf1   : > { %1055 = vmatprep.subr.bf16.mxu0 %v1559_v42 }
  0xf3   : > { %1013 = vmatpush1.bf16.msra.mxu1 %v1561_v43 }
  0xf4   : > { %1056 = vmatpush1.bf16.msra.mxu0 %v1562_v44  ;;  %1014 = vmatprep.subr.bf16.mxu1 %v1563_v45 }
  0xf5   : > { %1057 = vmatprep.subr.bf16.mxu0 %v1565_v46 }
  0xf7   : > { %1015 = vmatpush1.bf16.msra.mxu1 %v1567_v47 }
  0xf8   : > { %1058 = vmatpush1.bf16.msra.mxu0 %v1568_v49  ;;  %1016 = vmatprep.subr.bf16.mxu1 %v1569_v50 }
  0xf9   : > { %1059 = vmatprep.subr.bf16.mxu0 %v1571_v51 }
  0xfb   : > { %1017 = vmatpush1.bf16.msra.mxu1 %v1573_v53 }
  0xfc   : > { %1060 = vmatpush1.bf16.msra.mxu0 %v1574_v54  ;;  %1018 = vmatprep.subr.bf16.mxu1 %v1575_v55 }
  0xfd   : > { %1061 = vmatprep.subr.bf16.mxu0 %v1577_v56 }
  0xff   : > { %1019 = vmatpush1.bf16.msra.mxu1 %v1579_v57 }
 0x100   : > { %1062 = vmatpush1.bf16.msra.mxu0 %v1580_v58  ;;  %1020 = vmatprep.subr.bf16.mxu1 %v1581_v59 }
 0x101   : > { %1063 = vmatprep.subr.bf16.mxu0 %v1583_v60 }
 0x103   : > { %1021 = vmatpush1.bf16.msra.mxu1 %v1585_v61 }
 0x104   : > { %1064 = vmatpush1.bf16.msra.mxu0 %v1586_v62  ;;  %1022 = vmatprep.subr.bf16.mxu1 %v1587_v63 }
 0x105   : > { %1065 = vmatprep.subr.bf16.mxu0 %v1589_v0 }
 0x107   : > { %1023 = vmatpush1.bf16.msra.mxu1 %v1591_v1 }
 0x108   : > { %1066 = vmatpush1.bf16.msra.mxu0 %v1592_v2 }
 0x10a   : > { %1025 = vmatmul.mubr.bf16.vlgmr.msra.gmra.mrb[0].mxu1 %v1593_v3 }
 0x10b   : > { %1068 = vmatmul.mubr.bf16.vlgmr.msra.gmra.mrb[0].mxu0 %v1596_v4 }
 0x1dd   : > { %v1026_v5 = vpop.f32.mrb[0].mxu1 }
 0x1de   : > { %v1069_v7 = vpop.f32.mrb[0].mxu0  ;;  %v1028_v9 = vpop.f32.mrb[1].mxu1 }
 0x1df   : > { %v1070_v8 = vadd.f32 %v1069_v7, %v1026_v5  ;;  %v1071_v11 = vpop.f32.mrb[1].mxu0  ;;  %v1030_v13 = vpop.f32.mrb[2].mxu1 }
 0x1e0   : > { %v1072_v12 = vadd.f32 %v1071_v11, %v1028_v9  ;;  %v1073_v15 = vpop.f32.mrb[2].mxu0  ;;  %v1032_v18 = vpop.f32.mrb[3].mxu1  ;;  %1089 = sbr.rel (%p1361_p2) target bundleno = 499 (0x1f3), region = 86 }
 0x1e1   : > { %v1078_v16 = vadd.f32 %v1070_v8, %v580_v6  ;;  %v1074_v17 = vadd.f32 %v1073_v15, %v1030_v13  ;;  %v1075_v20 = vpop.f32.mrb[3].mxu0 }
 0x1e2   : > { %v1079_v21 = vadd.f32 %v1072_v12, %v581_v10  ;;  %v1076_v22 = vadd.f32 %v1075_v20, %v1032_v18 }
 0x1e3   : > { %1082 = vst [vmem:[#allocation2] sm:$0xff] %v1078_v16  ;;  %v1080_v23 = vadd.f32 %v1074_v17, %v582_v14 }
 0x1e4   : > { %1083 = vst [vmem:[#allocation2 + $0x8] sm:$0xff] %v1079_v21  ;;  %v1081_v24 = vadd.f32 %v1076_v22, %v583_v19 }
 0x1e5   : > { %1084 = vst [vmem:[#allocation2 + $0x10] sm:$0xff] %v1080_v23 }
 0x1e6   : > { %1085 = vst [vmem:[#allocation2 + $0x18] sm:$0xff] %v1081_v24 }
 0x1ea   : > { %v1090_v28 = vld [vmem:[#allocation2] sm:$0xff] }
 0x1eb   : > { %v1091_v31 = vld [vmem:[#allocation2 + $0x8] sm:$0xff]  ;;  %v1106_v36 = vadd.f32 %v1099_v34, %v1090_v28 }
 0x1ec   : > { %v1092_v32 = vld [vmem:[#allocation2 + $0x10] sm:$0xff]  ;;  %v1107_v37 = vadd.f32 %v1103_v35, %v1091_v31 }
 0x1ed   : > { %v1093_v33 = vld [vmem:[#allocation2 + $0x18] sm:$0xff]  ;;  %v1108_v38 = vadd.f32 %v1099_v34, %v1092_v32  ;;  %v1110_v40 = vmax.f32 %v1106_v36, 0.0 }
 0x1ee   : > { %v1109_v39 = vadd.f32 %v1103_v35, %v1093_v33  ;;  %v1111_v41 = vmax.f32 %v1107_v37, 0.0 }
 0x1ef   : > { %v1112_v42 = vmax.f32 %v1108_v38, 0.0  ;;  %1114 = vst [vmem:[%s2197_s17] sm:$0xff] %v1110_v40 }
 0x1f0   : > { %v1113_v43 = vmax.f32 %v1109_v39, 0.0  ;;  %1115 = vst [vmem:[%s2197_s17 + $0x8] sm:$0xff] %v1111_v41 }
 0x1f1   : > { %1116 = vst [vmem:[%s2197_s17 + $0x10] sm:$0xff] %v1112_v42 }
 0x1f2   : > { %1117 = vst [vmem:[%s2197_s17 + $0x18] sm:$0xff] %v1113_v43 }
 0x1f3 PF: > { %s2399_s15 = sld [smem:[#allocation15_spill]]  ;;  %s2400_s20 = sld [smem:[#allocation21_spill]] }
 0x1f4   : > { %s2401_s30 = sld [smem:[#allocation24_spill]]  ;;  %s1135_s0 = sshll.u32 %s2197_s17, 4  ;;  %s2281_s0 = int_to_ptr.vmem [resolvable:$true] %s1135_s0 }
 0x1f5   : > { %s1119_s4 = scalar_lea.sflag [#allocation5], %s2184_s11  ;;  %s1655_s6 = scalar_lea.vmem %s2281_s0, 512 }
 0x1f6   : > { %p1656_p7 = scmp.ne.s32.totalorder %s2281_s0, %s1655_s6  ;;  %s1805_s29 = smov [#allocation9]  }
 0x1f7   : > { %s1659_s10 = sshll.u32 %s1805_s29, 4  ;;  %s1660_s10 = int_to_ptr.vmem [resolvable:$false] %s1659_s10 }
 0x1f8   : > { %s1661_s12 = scalar_lea.vmem %s1660_s10, 1024  ;;  %p1662_p3 = scmp.lt.s32.totalorder %s2281_s0, %s1660_s10 }
 0x1f9   : > { %s1370_s9 = sshll.u32 %s2399_s15, 8  ;;  %p2402_p11 = scmp.ne.s32.totalorder %s2400_s20, 0 }
 0x1fa   : > { %s2278_s26 = scalar_lea.hbm %s2401_s30, %s1370_s9  ;;  %p1663_p12 = scmp.lt.s32.totalorder %s1661_s12, %s1655_s6 }
 0x1fb   : > { %p1657_p1 = pnand %p1656_p7, %p2402_p11 }
 0x1fc   : > { %p1664_p6 = por %p1663_p12, %p1662_p3 }
 0x1fd   : > { %p1658_p4 = pneg %p1657_p1 }
 0x1ff   : > { %p1665_p0 = pnand %p1664_p6, %p1658_p4 }
 0x201   : > { %1668 = shalt.err (!%p1665_p0)
}
 0x202   : > { %s1669_s25 = scalar_lea.hbm %s2278_s26, 512  ;;  %s1673_s27 = scalar_lea.hbm %s2401_s30, 8192 }
 0x203   : > { %p1670_p9 = scmp.ne.s32.totalorder %s2278_s26, %s1669_s25  ;;  %p1674_p8 = scmp.lt.u32.totalorder %s2278_s26, %s2401_s30 }
 0x204   : > { %p1675_p5 = scmp.lt.u32.totalorder %s1673_s27, %s1669_s25  ;;  %p1677_p7 = scmp.lt.u32.totalorder %s1669_s25, %s2278_s26 }
 0x205   : > { %p1671_p10 = pnand %p1670_p9, %p2402_p11 }
 0x206   : > { %p1676_p2 = por %p1675_p5, %p1674_p8 }
 0x207   : > { %p1672_p13 = pneg %p1671_p10 }
 0x208   : > { %p1678_p1 = por %p1677_p7, %p1676_p2 }
 0x20a   : > { %p1679_p4 = pnand %p1678_p1, %p1672_p13 }
 0x20c   : > { %1682 = shalt.err (!%p1679_p4)
}
 0x20d   : > { %s1806_s7 = smov 256   ;;  %s1807_s17 = smov 4096  }
 0x20e   : > { %s1808_s15 = smov 16  }
 0x20f   : > { %1379 = dma.vmem_to_hbm [thread:$0]  (%p2402_p11), %s2281_s0, 512, %s2278_s26, %s1119_s4, %s1806_s7, %s1807_s17, %s1808_s15  }
 0x210 PF: > { %s2403_s9 = sld [smem:[#allocation13_spill]]  ;;  %s2404_s3 = sld [smem:[#allocation22_spill]] }
 0x211   : > { %p1385_p3 = scmp.ge.s32.totalorder %s1797_s24, 2 }
 0x216   : > { %s1150_s19 = sand.u32 1, %s2403_s9   ;;  %p2405_p12 = scmp.ne.s32.totalorder %s2404_s3, 0 }
 0x217   : > { %s1151_s6 = scalar_lea.sflag [#allocation5], %s1150_s19 }
 0x218   : > { %p1382_p6 = pnand %p1385_p3, %p2405_p12 }
 0x21a   : > { %1744 = dma.done.wait (!%p1382_p6), %s1151_s6, 512  }
 0x21b   : > { %1746 = vsyncadd (!%p1382_p6), %s1151_s6, 4294966784  ;;  %s22_s24 = sadd.s32 1, %s1797_s24   ;;  %s2407_s11 = sld [smem:[#allocation20_spill]] }
 0x21c   : > { %p2312_p0 = scmp.ge.s32.totalorder %s22_s24, 130   ;;  %s2408_s20 = sld [smem:[#allocation19_spill]] }
 0x21d   : > { %s2409_s26 = sld [smem:[#allocation14_spill]]  ;;  %s2410_s19 = sld [smem:[#allocation18_spill]] }
 0x21e   : > { %s2411_s0 = sld [smem:[#allocation16_spill]]  ;;  %s2412_s4 = sld [smem:[#allocation17_spill]] }
 0x21f   : > { %s2413_s12 = smov %s1753_s13  ;;  %s2414_s13 = smov %s1757_s14 }
 0x220   : > { %s2416_s15 = smov %s1765_s16  ;;  %s2418_s17 = smov %s1773_s18 }
 0x221   : > { %s2415_s14 = smov %s2407_s11  ;;  %s2421_s21 = smov %s1793_s23 }
 0x222   : > { %s2417_s16 = smov %s2408_s20  ;;  %s2420_s20 = smov %s1789_s22 }
 0x223   : > { %s2419_s18 = smov %s2409_s26  ;;  %21 = sbr.rel (!%p2312_p0) target bundleno = 15 (0xf), region = 144 }
 0x224   : > { %s2422_s22 = smov %s2411_s0  ;;  %s2423_s23 = smov %s2412_s4 }
 0x22a   :  { %1156 = vsyncpa [#allocation4], 1 }
 0x22b   :  { %1158 = vsyncpa [#allocation4 + $0x1], 1 }
 0x22c   :  { %1159 = vsyncpa [#allocation8], 1 }
 0x22d   :  { %1161 = vsyncpa [#allocation8 + $0x1], 1 }
 0x22e   :  { %1162 = vsyncpa [#allocation5], 1 }
 0x22f   :  { %1164 = vsyncpa [#allocation5 + $0x1], 1 }

// kernel: alexnet_forward.21
= control target key start
LH: loop header
LB: loop body
LE: loop exit
PB: predicated region body
PF: predicated region fallthrough
CT: control target
= control target key end

     0   :  { %s1021_s12 = smov 0   ;;  %s1023_s13 = smov 0   ;;  %s1137_s0 = inlined_call_operand.vmem [shape: bf16[16,4096], index: 0, kind: input, shape index: {}]   ;;  %s1138_s1 = inlined_call_operand.vmem [shape: bf16[4096,128], index: 1, kind: input, shape index: {}]   ;;  %s1139_s2 = inlined_call_operand.vmem [shape: f32[1,128], index: 2, kind: input, shape index: {}]   ;;  %s1140_s3 = inlined_call_operand.vmem [shape: f32[16,128], index: 3, kind: output, shape index: {}]  }
   0x1   :  { %s1025_s14 = smov 0   ;;  %s1027_s15 = smov 0  }
   0x2   :  { %s1029_s16 = smov 0  }
   0x3 LB: > { %s25_s17 = sadd.s32 1, %s994_s15  ;;  %p48_p1 = scmp.ne.s32.totalorder %s986_s13, %s982_s12  ;;  %s998_s16 = sphi %s1029_s16, %s13_s16   ;;  %s994_s15 = sphi %s1027_s15, %s1144_s15   ;;  %s990_s14 = sphi %s1025_s14, %s1143_s14   ;;  %s986_s13 = sphi %s1023_s13, %s1142_s13   ;;  %s982_s12 = sphi %s1021_s12, %s1141_s12  }
   0x4   : > { %p26_p0 = scmp.ge.s32.totalorder %s25_s17, 8  ;;  %p49_p2 = scmp.eq.s32.totalorder %s998_s16, 0 }
   0x5   : > { %s41_s19 = sadd.s32 1, %s986_s13  ;;  %p785_p5 = scmp.ge.s32.totalorder %s998_s16, 8 }
   0x6   : > { %s1146_s17 = smov (%p26_p0, %s25_s17), 0  ;;  %p50_p3 = por %p49_p2, %p48_p1 }
   0x7   : > { %s37_s18 = ssub.s32 %s994_s15, %s1146_s17  ;;  %162 = sbr.rel (%p785_p5) target bundleno = 21 (0x15), region = 20 }
   0x8   : > { %p39_p4 = scmp.eq.s32.totalorder %s37_s18, 0 }
   0xa   : > { %s1056_s20 = scalar_select %p39_p4, %s986_s13, %s41_s19  }
   0xe   : > { %165 = sbr.rel (!%p50_p3) target bundleno = 21 (0x15), region = 24  ;;  %s167_s21 = sand.u32 (%p50_p3), 1, %s986_s13  }
   0xf   : > { %s836_s22 = sshll.u32 (%p50_p3), %s994_s15, 4  ;;  %s786_s23 = sshll.u32 (%p50_p3), %s167_s21, 5 }
  0x10   : > { %s175_s26 = scalar_lea.vmem (%p50_p3), %s1137_s0, %s836_s22  ;;  %s169_s27 = scalar_lea.vmem (%p50_p3), [#allocation3], %s786_s23 }
  0x11   : > { %v188_v0 = vld [vmem:[%s175_s26] sm:$0xff] (%p50_p3)  ;;  %v190_v1 = vld [vmem:[%s175_s26 + $0x8] sm:$0xff] (%p50_p3) }
  0x12   : > { %v192_v2 = vld [vmem:[%s175_s26 + $0x80] sm:$0xff] (%p50_p3)  ;;  %189 = vst [vmem:[%s169_s27] sm:$0xff] (%p50_p3), %v188_v0  ;;  %191 = vst [vmem:[%s169_s27 + $0x8] sm:$0xff] (%p50_p3), %v190_v1  ;;  %v194_v3 = vld [vmem:[%s175_s26 + $0x88] sm:$0xff] (%p50_p3) }
  0x13   : > { %193 = vst [vmem:[%s169_s27 + $0x10] sm:$0xff] (%p50_p3), %v192_v2  ;;  %195 = vst [vmem:[%s169_s27 + $0x18] sm:$0xff] (%p50_p3), %v194_v3 }
  0x15 PF: > { %p789_p6 = scmp.ge.s32.totalorder %s998_s16, 1  ;;  %p212_p7 = scmp.lt.s32.totalorder %s998_s16, 9 }
  0x17   : > { %p213_p8 = pnand %p789_p6, %p212_p7 }
  0x18   : > { %s219_s28 = sand.u32 (!%p213_p8), 1, %s982_s12   ;;  %s791_s29 = sshll.u32 (!%p213_p8), %s990_s14, 6 }
  0x19   : > { %216 = sbr.rel (%p213_p8) target bundleno = 306 (0x132), region = 51  ;;  %s790_s30 = sshll.u32 (!%p213_p8), %s219_s28, 5 }
  0x1a   : > { %p259_p9 = scmp.lt.s32.totalorder (!%p213_p8), %s791_s29, 511  ;;  %s1073_s8 = scalar_lea.vmem (!%p213_p8), [#allocation3], %s790_s30 }
  0x1b   : > { %p793_p10 = scmp.ne.s32.totalorder (!%p213_p8), %s990_s14, 0 }
  0x20   : > { %s1148_s29 = smov (!%p259_p9, %s791_s29), 511  ;;  %283 = sbr.rel (%p793_p10) target bundleno = 39 (0x27), region = 59 }
  0x21   : > { %s792_s4 = sshll.u32 %s1148_s29, 2  ;;  %v1000_v4 = vmov (!%p793_p10), 0.0  }
  0x22   : > { %s1071_s7 = scalar_lea.vmem %s1138_s1, %s792_s4  ;;  %284 = vst [vmem:[#allocation2] sm:$0xff] (!%p793_p10), %v1000_v4  ;;  %285 = vst [vmem:[#allocation2 + $0x8] sm:$0xff] (!%p793_p10), %v1000_v4 }
  0x27 PF: > { %v922_v5 = vld [vmem:[%s1071_s7 + $0x40] sm:$0xff]   ;;  %v926_v9 = vld [vmem:[%s1071_s7 + $0x48] sm:$0xff]   ;;  %v930_v13 = vld [vmem:[%s1071_s7 + $0x50] sm:$0xff]   ;;  %p830_p11 = scmp.ne.s32.totalorder %s990_s14, 7 }
  0x28   : > { %v923_v6 = vld [vmem:[%s1071_s7 + $0xc0] sm:$0xff]   ;;  %837 = vmatprep.subr.bf16.mxu0 %v922_v5  ;;  %v927_v10 = vld [vmem:[%s1071_s7 + $0xc8] sm:$0xff]   ;;  %v931_v14 = vld [vmem:[%s1071_s7 + $0xd0] sm:$0xff]  }
  0x29   : > { %v924_v7 = vld [vmem:[%s1071_s7] sm:$0xff]   ;;  %859 = vmatprep.subr.bf16.mxu1 %v923_v6  ;;  %v928_v11 = vld [vmem:[%s1071_s7 + $0x8] sm:$0xff]   ;;  %v932_v15 = vld [vmem:[%s1071_s7 + $0x10] sm:$0xff]  }
  0x2a   : > { %v925_v8 = vld [vmem:[%s1071_s7 + $0x80] sm:$0xff]   ;;  %838 = vmatpush3.bf16.msra.mxu0 %v924_v7  ;;  %v929_v12 = vld [vmem:[%s1071_s7 + $0x88] sm:$0xff]   ;;  %v933_v16 = vld [vmem:[%s1071_s7 + $0x90] sm:$0xff]  }
  0x2b   : > { %860 = vmatpush3.bf16.msra.mxu1 %v925_v8  ;;  %839 = vmatprep.subr.bf16.mxu0 %v926_v9  ;;  %v934_v17 = vld [vmem:[%s1071_s7 + $0x58] sm:$0xff]   ;;  %v938_v21 = vld [vmem:[%s1071_s7 + $0x60] sm:$0xff]   ;;  %v942_v25 = vld [vmem:[%s1071_s7 + $0x68] sm:$0xff]  }
  0x2c   : > { %861 = vmatprep.subr.bf16.mxu1 %v927_v10  ;;  %v935_v18 = vld [vmem:[%s1071_s7 + $0xd8] sm:$0xff]   ;;  %v939_v22 = vld [vmem:[%s1071_s7 + $0xe0] sm:$0xff]   ;;  %v943_v26 = vld [vmem:[%s1071_s7 + $0xe8] sm:$0xff]  }
  0x2d   : > { %v936_v19 = vld [vmem:[%s1071_s7 + $0x18] sm:$0xff]   ;;  %v940_v23 = vld [vmem:[%s1071_s7 + $0x20] sm:$0xff]   ;;  %v944_v27 = vld [vmem:[%s1071_s7 + $0x28] sm:$0xff]  }
  0x2e   : > { %840 = vmatpush3.bf16.msra.mxu0 %v928_v11  ;;  %v937_v20 = vld [vmem:[%s1071_s7 + $0x98] sm:$0xff]   ;;  %v941_v24 = vld [vmem:[%s1071_s7 + $0xa0] sm:$0xff]   ;;  %v945_v28 = vld [vmem:[%s1071_s7 + $0xa8] sm:$0xff]  }
  0x2f   : > { %862 = vmatpush3.bf16.msra.mxu1 %v929_v12  ;;  %841 = vmatprep.subr.bf16.mxu0 %v930_v13  ;;  %v946_v29 = vld [vmem:[%s1071_s7 + $0x70] sm:$0xff]   ;;  %v950_v33 = vld [vmem:[%s1071_s7 + $0x78] sm:$0xff]   ;;  %v286_v50 = vld [vmem:[#allocation2] sm:$0xff] }
  0x30   : > { %863 = vmatprep.subr.bf16.mxu1 %v931_v14  ;;  %v947_v30 = vld [vmem:[%s1071_s7 + $0xf0] sm:$0xff]   ;;  %v951_v34 = vld [vmem:[%s1071_s7 + $0xf8] sm:$0xff]   ;;  %v287_v55 = vld [vmem:[#allocation2 + $0x8] sm:$0xff] }
  0x31   : > { %v948_v31 = vld [vmem:[%s1071_s7 + $0x30] sm:$0xff]   ;;  %v952_v35 = vld [vmem:[%s1071_s7 + $0x38] sm:$0xff]   ;;  %v831_v60 = vld [vmem:[%s1139_s2] ss:$0 sm:$0xff] (!%p830_p11) }
  0x32   : > { %842 = vmatpush3.bf16.msra.mxu0 %v932_v15  ;;  %v949_v32 = vld [vmem:[%s1071_s7 + $0xb0] sm:$0xff]   ;;  %v953_v36 = vld [vmem:[%s1071_s7 + $0xb8] sm:$0xff]  }
  0x33   : > { %864 = vmatpush3.bf16.msra.mxu1 %v933_v16  ;;  %843 = vmatprep.subr.bf16.mxu0 %v934_v17  ;;  %v954_v37 = vld [vmem:[%s1073_s8] ss:$16 sps:$4 sm:$0xff]   ;;  %v956_v38 = vld [vmem:[%s1073_s8 + $0x4] ss:$16 sps:$4 sm:$0xff]   ;;  %v957_v39 = vld [vmem:[%s1073_s8 + $0x8] ss:$16 sps:$4 sm:$0xff]  }
  0x34   : > { %865 = vmatprep.subr.bf16.mxu1 %v935_v18  ;;  %v959_v40 = vld [vmem:[%s1073_s8 + $0xc] ss:$16 sps:$4 sm:$0xff]   ;;  %600 = vmatprep.mubr.bf16.mxu0 %v956_v38 }
  0x35   : > { %641 = vmatprep.mubr.bf16.mxu1 %v959_v40 }
  0x36   : > { %844 = vmatpush3.bf16.msra.mxu0 %v936_v19 }
  0x37   : > { %866 = vmatpush3.bf16.msra.mxu1 %v937_v20  ;;  %845 = vmatprep.subr.bf16.mxu0 %v938_v21 }
  0x38   : > { %867 = vmatprep.subr.bf16.mxu1 %v939_v22 }
  0x3a   : > { %846 = vmatpush3.bf16.msra.mxu0 %v940_v23 }
  0x3b   : > { %868 = vmatpush3.bf16.msra.mxu1 %v941_v24  ;;  %847 = vmatprep.subr.bf16.mxu0 %v942_v25 }
  0x3c   : > { %869 = vmatprep.subr.bf16.mxu1 %v943_v26 }
  0x3e   : > { %848 = vmatpush3.bf16.msra.mxu0 %v944_v27 }
  0x3f   : > { %870 = vmatpush3.bf16.msra.mxu1 %v945_v28  ;;  %849 = vmatprep.subr.bf16.mxu0 %v946_v29 }
  0x40   : > { %871 = vmatprep.subr.bf16.mxu1 %v947_v30 }
  0x42   : > { %850 = vmatpush3.bf16.msra.mxu0 %v948_v31 }
  0x43   : > { %872 = vmatpush3.bf16.msra.mxu1 %v949_v32  ;;  %851 = vmatprep.subr.bf16.mxu0 %v950_v33 }
  0x44   : > { %873 = vmatprep.subr.bf16.mxu1 %v951_v34 }
  0x46   : > { %852 = vmatpush3.bf16.msra.mxu0 %v952_v35 }
  0x47   : > { %874 = vmatpush3.bf16.msra.mxu1 %v953_v36 }
  0x49   : > { %601 = vmatmul.mubr.bf16.vlgmr.msra.gmra.mrb[0].mxu0 %v954_v37 }
  0x4a   : > { %642 = vmatmul.mubr.bf16.vlgmr.msra.gmra.mrb[0].mxu1 %v957_v39 }
 0x11c   : > { %v853_v41 = vpop.f32.mrb[0].mxu0 }
 0x11d   : > { %v875_v42 = vpop.f32.mrb[0].mxu1  ;;  %v854_v43 = vpop.f32.mrb[1].mxu0 }
 0x11e   : > { %v855_v44 = vadd.f32 %v854_v43, %v853_v41  ;;  %v876_v45 = vpop.f32.mrb[1].mxu1  ;;  %v856_v46 = vpop.f32.mrb[2].mxu0 }
 0x11f   : > { %v877_v47 = vadd.f32 %v876_v45, %v875_v42  ;;  %v878_v48 = vpop.f32.mrb[2].mxu1  ;;  %v857_v49 = vpop.f32.mrb[3].mxu0 }
 0x120   : > { %v858_v51 = vadd.f32 %v857_v49, %v856_v46  ;;  %v879_v52 = vpop.f32.mrb[3].mxu1 }
 0x121   : > { %v644_v53 = vadd.f32 %v877_v47, %v855_v44  ;;  %v880_v54 = vadd.f32 %v879_v52, %v878_v48  ;;  %657 = sbr.rel (%p830_p11) target bundleno = 306 (0x132), region = 63 }
 0x123   : > { %v650_v56 = vadd.f32 %v644_v53, %v286_v50  ;;  %v647_v57 = vadd.f32 %v880_v54, %v858_v51 }
 0x125   : > { %652 = vst [vmem:[#allocation2] sm:$0xff] %v650_v56  ;;  %v651_v58 = vadd.f32 %v647_v57, %v287_v55 }
 0x127   : > { %653 = vst [vmem:[#allocation2 + $0x8] sm:$0xff] %v651_v58 }
 0x12c   : > { %v658_v59 = vld [vmem:[#allocation2] sm:$0xff] }
 0x12d   : > { %v667_v62 = vadd.f32 %v831_v60, %v658_v59 }
 0x12e   : > { %v659_v61 = vld [vmem:[#allocation2 + $0x8] sm:$0xff] }
 0x12f   : > { %v668_v63 = vadd.f32 %v831_v60, %v659_v61  ;;  %669 = vst [vmem:[%s1140_s3] sm:$0xff] %v667_v62 }
 0x131   : > { %670 = vst [vmem:[%s1140_s3 + $0x8] sm:$0xff] %v668_v63 }
 0x132 PF: > { %s13_s16 = sadd.s32 1, %s998_s16   ;;  %s1141_s12 = smov %s986_s13 }
 0x133   : > { %p10_p12 = scmp.ge.s32.totalorder %s13_s16, 10   ;;  %s1142_s13 = smov %s1056_s20 }
 0x134   : > { %s1143_s14 = smov %s994_s15  ;;  %s1144_s15 = smov %s1146_s17 }
 0x135   :  { %12 = sbr.rel (!%p10_p12) target bundleno = 3 (0x3), region = 104 }

</bundles_post_ra>
